<compile_context>
chip_gen: v7x
topology: tpu7x:2x2x1
jax: 0.10.0
libtpu: 0.0.40
codegen_flags: <defaults>
</compile_context>

<pallas_src>
import functools

import jax
import jax.numpy as jnp
import numpy as np
from jax.experimental import pallas as pl
from jax.experimental.pallas import tpu as pltpu

LANE = 128
_EPS = 1e-5


def _pad_to(n, m):
    return ((n + m - 1) // m) * m


def _tile_and_pad(hw, max_tile=512):
    """Pick a sublane row-tile TM (multiple of 8) and the padded row count."""
    if hw % max_tile == 0:
        return max_tile, hw
    if hw <= max_tile:
        m = _pad_to(max(hw, 8), 8)
        return m, m
    return max_tile, _pad_to(hw, max_tile)


# ----------------------------------------------------------------------------
# Pallas kernels
# ----------------------------------------------------------------------------
def _conv_stats_kernel(a_ref, w_ref, b_ref, y_ref, s_ref, q_ref):
    # a: (1, TM, Kp) bf16, w: (Kp, Cp) bf16, b: (1, Cp) f32
    # y: (1, TM, Cp) f32; s/q: (1, 8, Cp) f32 resident accumulators over row tiles
    mt = pl.program_id(1)
    y = jnp.dot(a_ref[0], w_ref[...], preferred_element_type=jnp.float32) + b_ref[...]
    y_ref[0] = y

    tm, cp = y.shape
    part = y.reshape(tm // 8, 8, cp)

    @pl.when(mt == 0)
    def _():
        s_ref[...] = jnp.zeros_like(s_ref)
        q_ref[...] = jnp.zeros_like(q_ref)

    s_ref[0] = s_ref[0] + jnp.sum(part, axis=0)
    q_ref[0] = q_ref[0] + jnp.sum(part * part, axis=0)


def _conv_bias_kernel(a_ref, w_ref, b_ref, y_ref):
    y_ref[0] = (
        jnp.dot(a_ref[0], w_ref[...], preferred_element_type=jnp.float32) + b_ref[...]
    )


def _affine_kernel(y_ref, s_ref, t_ref, o_ref, *, relu):
    # y: (1, TM, Cp); s/t: (1, 1, Cp) per-image scale/shift (gamma/beta folded in)
    v = y_ref[0] * s_ref[0] + t_ref[0]
    if relu:
        v = jnp.maximum(v, 0.0)
    o_ref[0] = v


def _affine_res_kernel(y_ref, s_ref, t_ref, r_ref, o_ref):
    o_ref[0] = y_ref[0] * s_ref[0] + t_ref[0] + r_ref[0]


# ----------------------------------------------------------------------------
# Conv (im2col matmul) wrapper
# ----------------------------------------------------------------------------
def _conv_matmul(x_nhwc, w, b, stride, *, collect_stats):
    """ReflectionPad(k//2) + Conv2d(k, stride) as a Pallas matmul.

    Returns (y, sum, sumsq, padded_bias, meta); y is (N, Mpad, Cp) f32 with
    Cp = Cout padded to 128 and Mpad = H*W padded to the row tile.
    """
    N, H, W, Cin = x_nhwc.shape
    Cout, _, k, _ = w.shape
    p = k // 2
    xp = jnp.pad(x_nhwc, ((0, 0), (p, p), (p, p), (0, 0)), mode="reflect")
    Ho = (H + 2 * p - k) // stride + 1
    Wo = (W + 2 * p - k) // stride + 1
    HW = Ho * Wo

    cols = []
    for ky in range(k):
        for kx in range(k):
            cols.append(
                xp[:, ky:ky + stride * (Ho - 1) + 1:stride,
                      kx:kx + stride * (Wo - 1) + 1:stride, :]
            )
    K = k * k * Cin
    patches = jnp.stack(cols, axis=3).reshape(N, HW, K)

    TM, Mpad = _tile_and_pad(HW)
    Kp = _pad_to(K, LANE)
    Cp = _pad_to(Cout, LANE)

    patches = jnp.pad(patches, ((0, 0), (0, Mpad - HW), (0, Kp - K)))
    patches = patches.astype(jnp.bfloat16)

    w_mat = jnp.transpose(w, (2, 3, 1, 0)).reshape(K, Cout)
    w_mat = jnp.pad(w_mat, ((0, Kp - K), (0, Cp - Cout))).astype(jnp.bfloat16)
    b_p = jnp.pad(b, (0, Cp - Cout)).reshape(1, Cp).astype(jnp.float32)

    MT = Mpad // TM
    grid = (N, MT)
    in_specs = [
        pl.BlockSpec((1, TM, Kp), lambda n, m: (n, m, 0)),
        pl.BlockSpec((Kp, Cp), lambda n, m: (0, 0)),
        pl.BlockSpec((1, Cp), lambda n, m: (0, 0)),
    ]
    y_spec = pl.BlockSpec((1, TM, Cp), lambda n, m: (n, m, 0))
    meta = (N, Ho, Wo, Cout, Cp, HW, Mpad, TM)

    if collect_stats:
        y, s, q = pl.pallas_call(
            _conv_stats_kernel,
            out_shape=(
                jax.ShapeDtypeStruct((N, Mpad, Cp), jnp.float32),
                jax.ShapeDtypeStruct((N, 8, Cp), jnp.float32),
                jax.ShapeDtypeStruct((N, 8, Cp), jnp.float32),
            ),
            grid=grid,
            in_specs=in_specs,
            out_specs=(
                y_spec,
                pl.BlockSpec((1, 8, Cp), lambda n, m: (n, 0, 0)),
                pl.BlockSpec((1, 8, Cp), lambda n, m: (n, 0, 0)),
            ),
            compiler_params=pltpu.CompilerParams(
                dimension_semantics=("parallel", "arbitrary")),
        )(patches, w_mat, b_p)
        return y, s, q, b_p, meta

    y = pl.pallas_call(
        _conv_bias_kernel,
        out_shape=jax.ShapeDtypeStruct((N, Mpad, Cp), jnp.float32),
        grid=grid,
        in_specs=in_specs,
        out_specs=y_spec,
        compiler_params=pltpu.CompilerParams(
            dimension_semantics=("parallel", "parallel")),
    )(patches, w_mat, b_p)
    return y, None, None, b_p, meta


# ----------------------------------------------------------------------------
# InstanceNorm (+ReLU / +residual) as a fused affine over (N, HW, Cpad)
# ----------------------------------------------------------------------------
def _instnorm_affine(y_pad, s_part, q_part, bias_p, gamma, beta, meta, *,
                     relu, residual=None, eps=_EPS):
    N, Ho, Wo, Cout, Cp, HW, Mpad, TM = meta
    n_pad_rows = Mpad - HW

    ssum = jnp.sum(s_part, axis=1)    # (N, Cp)
    sqsum = jnp.sum(q_part, axis=1)   # (N, Cp)
    if n_pad_rows:
        # Padded (all-zero) patch rows produce exactly `bias` -> remove exactly.
        ssum = ssum - n_pad_rows * bias_p
        sqsum = sqsum - n_pad_rows * bias_p * bias_p

    mean = ssum / HW
    var = jnp.maximum(sqsum / HW - mean * mean, 0.0)
    inv = jax.lax.rsqrt(var + eps)
    g = jnp.pad(gamma, (0, Cp - Cout))[None, :]
    bt = jnp.pad(beta, (0, Cp - Cout))[None, :]
    scale = (g * inv).reshape(N, 1, Cp).astype(jnp.float32)
    shift = (bt - mean * g * inv).reshape(N, 1, Cp).astype(jnp.float32)

    MT = Mpad // TM
    grid = (N, MT)
    data_spec = pl.BlockSpec((1, TM, Cp), lambda n, m: (n, m, 0))
    vec_spec = pl.BlockSpec((1, 1, Cp), lambda n, m: (n, 0, 0))
    cparams = pltpu.CompilerParams(dimension_semantics=("parallel", "parallel"))

    if residual is None:
        out = pl.pallas_call(
            functools.partial(_affine_kernel, relu=relu),
            out_shape=jax.ShapeDtypeStruct((N, Mpad, Cp), jnp.float32),
            grid=grid,
            in_specs=[data_spec, vec_spec, vec_spec],
            out_specs=data_spec,
            compiler_params=cparams,
        )(y_pad, scale, shift)
    else:
        rc = residual.shape[-1]
        r = residual.reshape(N, HW, rc)
        r = jnp.pad(r, ((0, 0), (0, Mpad - HW), (0, Cp - rc))).astype(jnp.float32)
        out = pl.pallas_call(
            _affine_res_kernel,
            out_shape=jax.ShapeDtypeStruct((N, Mpad, Cp), jnp.float32),
            grid=grid,
            in_specs=[data_spec, vec_spec, vec_spec, data_spec],
            out_specs=data_spec,
            compiler_params=cparams,
        )(y_pad, scale, shift, r)

    return out[:, :HW, :Cout].reshape(N, Ho, Wo, Cout)


def upsample_nearest_2x(x_nhwc):
    # Single broadcast + reshape (one materialization) instead of two repeats.
    N, H, W, C = x_nhwc.shape
    y = jnp.broadcast_to(x_nhwc[:, :, None, :, None, :], (N, H, 2, W, 2, C))
    return y.reshape(N, 2 * H, 2 * W, C)


# ----------------------------------------------------------------------------
# Parameters (deterministic synthetic init)
# ----------------------------------------------------------------------------
def init_params(key):
    params = {}

    def conv_p(name, cout, cin, k):
        nonlocal key
        key, kw, kb = jax.random.split(key, 3)
        fan_in = cin * k * k
        params[name + "_w"] = (
            jax.random.normal(kw, (cout, cin, k, k), jnp.float32) / np.sqrt(fan_in)
        )
        params[name + "_b"] = jax.random.normal(kb, (cout,), jnp.float32) * 0.01

    def in_p(name, c):
        params[name + "_g"] = jnp.ones((c,), jnp.float32)
        params[name + "_b"] = jnp.zeros((c,), jnp.float32)

    conv_p("conv1", 32, 3, 9);   in_p("in1", 32)
    conv_p("conv2", 64, 32, 3);  in_p("in2", 64)
    conv_p("conv3", 128, 64, 3); in_p("in3", 128)
    for i in range(1, 6):
        conv_p(f"res{i}_conv1", 128, 128, 3); in_p(f"res{i}_in1", 128)
        conv_p(f"res{i}_conv2", 128, 128, 3); in_p(f"res{i}_in2", 128)
    conv_p("deconv1", 64, 128, 3); in_p("in4", 64)
    conv_p("deconv2", 32, 64, 3);  in_p("in5", 32)
    conv_p("deconv3", 3, 32, 9)
    return params


# ----------------------------------------------------------------------------
# Full forward pass (matches TransformerNet.forward)
# ----------------------------------------------------------------------------
def transformer_net(params, x_nchw):
    x = jnp.transpose(x_nchw, (0, 2, 3, 1)).astype(jnp.float32)  # -> NHWC

    def conv_in(h, cname, iname, stride, *, relu, residual=None):
        y, s, q, b_p, meta = _conv_matmul(
            h, params[cname + "_w"], params[cname + "_b"], stride,
            collect_stats=True)
        return _instnorm_affine(y, s, q, b_p,
                                params[iname + "_g"], params[iname + "_b"],
                                meta, relu=relu, residual=residual)

    y = conv_in(x, "conv1", "in1", 1, relu=True)
    y = conv_in(y, "conv2", "in2", 2, relu=True)
    y = conv_in(y, "conv3", "in3", 2, relu=True)

    for i in range(1, 6):
        res = y
        y = conv_in(y, f"res{i}_conv1", f"res{i}_in1", 1, relu=True)
        y = conv_in(y, f"res{i}_conv2", f"res{i}_in2", 1, relu=False, residual=res)

    y = upsample_nearest_2x(y)
    y = conv_in(y, "deconv1", "in4", 1, relu=True)
    y = upsample_nearest_2x(y)
    y = conv_in(y, "deconv2", "in5", 1, relu=True)

    # Final conv: bias only, no InstanceNorm.
    yf, _, _, _, meta = _conv_matmul(
        y, params["deconv3_w"], params["deconv3_b"], 1, collect_stats=False)
    N, Ho, Wo, Cout, Cp, HW, Mpad, TM = meta
    y = yf[:, :HW, :Cout].reshape(N, Ho, Wo, Cout)

    return jnp.transpose(y, (0, 3, 1, 2))  # -> NCHW


if __name__ == "__main__":
    key = jax.random.PRNGKey(0)
    k_params, k_x = jax.random.split(key)
    params = init_params(k_params)

    # Small input consistent with the module: NCHW, 3 input channels.
    x = jax.random.normal(k_x, (2, 3, 16, 16), jnp.float32)

    fwd = jax.jit(transformer_net)
    out = fwd(params, x)
    out = jax.block_until_ready(out)

    assert out.shape == (2, 3, 16, 16), out.shape
    assert out.dtype == jnp.float32
    assert bool(jnp.all(jnp.isfinite(out)))
    print("KERNEL_OK")
</pallas_src>

<mosaic_0001>
module attributes {stable_mosaic.version = 11 : i64} {
  func.func @_conv_stats_kernel(%arg0: i32, %arg1: i32, %arg2: memref<1x256x256xbf16, #tpu.memory_space<vmem>>, %arg3: memref<256x128xbf16, #tpu.memory_space<vmem>>, %arg4: memref<1x128xf32, #tpu.memory_space<vmem>>, %arg5: memref<1x256x128xf32, #tpu.memory_space<vmem>>, %arg6: memref<1x8x128xf32, #tpu.memory_space<vmem>>, %arg7: memref<1x8x128xf32, #tpu.memory_space<vmem>>) attributes {dimension_semantics = [#tpu.dimension_semantics<parallel>, #tpu.dimension_semantics<arbitrary>], iteration_bounds = array<i64: 2, 1>, scalar_prefetch = 0 : i64, scratch_operands = 0 : i64, tpu.core_type = #tpu.core_type<tc>, window_params = [{transform_indices = @transform_0, window_bounds = array<i64: 1, 256, 256>}, {pipeline_mode = #tpu.pipeline_mode<synchronous>, transform_indices = @transform_1, window_bounds = array<i64: 256, 128>}, {pipeline_mode = #tpu.pipeline_mode<synchronous>, transform_indices = @transform_2, window_bounds = array<i64: 1, 128>}, {transform_indices = @transform_3, window_bounds = array<i64: 1, 256, 128>}, {transform_indices = @transform_4, window_bounds = array<i64: 1, 8, 128>}, {transform_indices = @transform_5, window_bounds = array<i64: 1, 8, 128>}]} {
    %c0 = arith.constant 0 : index
    %c0_0 = arith.constant 0 : index
    %c0_1 = arith.constant 0 : index
    %0 = vector.load %arg2[%c0, %c0_0, %c0_1] : memref<1x256x256xbf16, #tpu.memory_space<vmem>>, vector<1x256x256xbf16>
    %1 = vector.shape_cast %0 : vector<1x256x256xbf16> to vector<256x256xbf16>
    %c0_2 = arith.constant 0 : index
    %c0_3 = arith.constant 0 : index
    %2 = vector.load %arg3[%c0_2, %c0_3] : memref<256x128xbf16, #tpu.memory_space<vmem>>, vector<256x128xbf16>
    %cst = arith.constant dense<0.000000e+00> : vector<256x128xf32>
    %3 = tpu.matmul %1, %2, %cst {dimension_numbers = #tpu.dot_dimension_numbers<[1], [0], [0], [1], [0, 0, 1, 1], [], []>} : vector<256x256xbf16>, vector<256x128xbf16>, vector<256x128xf32> -> vector<256x128xf32>
    %c0_4 = arith.constant 0 : index
    %c0_5 = arith.constant 0 : index
    %4 = vector.load %arg4[%c0_4, %c0_5] : memref<1x128xf32, #tpu.memory_space<vmem>>, vector<1x128xf32>
    %5 = vector.broadcast %4 : vector<1x128xf32> to vector<256x128xf32>
    %6 = arith.addf %3, %5 : vector<256x128xf32>
    %c0_6 = arith.constant 0 : index
    %c0_7 = arith.constant 0 : index
    %c0_8 = arith.constant 0 : index
    %7 = vector.load %arg5[%c0_6, %c0_7, %c0_8] : memref<1x256x128xf32, #tpu.memory_space<vmem>>, vector<1x256x128xf32>
    %8 = vector.shape_cast %7 : vector<1x256x128xf32> to vector<256x128xf32>
    %9 = vector.shape_cast %6 : vector<256x128xf32> to vector<1x256x128xf32>
    tpu.vector_store %arg5[%c0_6, %c0_7, %c0_8], %9 {strides = array<i32>} : memref<1x256x128xf32, #tpu.memory_space<vmem>>, vector<1x256x128xf32>,
    %10 = vector.shape_cast %6 : vector<256x128xf32> to vector<32x8x128xf32>
    %c0_i32 = arith.constant 0 : i32
    %11 = arith.cmpi eq, %arg1, %c0_i32 : i32
    %12 = arith.extui %11 : i1 to i32
    %c0_i32_9 = arith.constant 0 : i32
    %13 = arith.cmpi ne, %12, %c0_i32_9 : i32
    scf.if %13 {
      %cst_24 = arith.constant 0.000000e+00 : f32
      %29 = vector.broadcast %cst_24 : f32 to vector<1x8x128xf32>
      %c0_25 = arith.constant 0 : index
      %c0_26 = arith.constant 0 : index
      %c0_27 = arith.constant 0 : index
      %30 = vector.load %arg6[%c0_25, %c0_26, %c0_27] : memref<1x8x128xf32, #tpu.memory_space<vmem>>, vector<1x8x128xf32>
      tpu.vector_store %arg6[%c0_25, %c0_26, %c0_27], %29 {strides = array<i32>} : memref<1x8x128xf32, #tpu.memory_space<vmem>>, vector<1x8x128xf32>,
      %cst_28 = arith.constant 0.000000e+00 : f32
      %31 = vector.broadcast %cst_28 : f32 to vector<1x8x128xf32>
      %c0_29 = arith.constant 0 : index
      %c0_30 = arith.constant 0 : index
      %c0_31 = arith.constant 0 : index
      %32 = vector.load %arg7[%c0_29, %c0_30, %c0_31] : memref<1x8x128xf32, #tpu.memory_space<vmem>>, vector<1x8x128xf32>
      tpu.vector_store %arg7[%c0_29, %c0_30, %c0_31], %31 {strides = array<i32>} : memref<1x8x128xf32, #tpu.memory_space<vmem>>, vector<1x8x128xf32>,
    } else {
    }
    %c0_10 = arith.constant 0 : index
    %c0_11 = arith.constant 0 : index
    %c0_12 = arith.constant 0 : index
    %14 = vector.load %arg6[%c0_10, %c0_11, %c0_12] : memref<1x8x128xf32, #tpu.memory_space<vmem>>, vector<1x8x128xf32>
    %15 = vector.shape_cast %14 : vector<1x8x128xf32> to vector<8x128xf32>
    %cst_13 = arith.constant dense<0.000000e+00> : vector<8x128xf32>
    %16 = vector.multi_reduction <add>, %10, %cst_13 [0] : vector<32x8x128xf32> to vector<8x128xf32>
    %17 = arith.addf %15, %16 : vector<8x128xf32>
    %c0_14 = arith.constant 0 : index
    %c0_15 = arith.constant 0 : index
    %c0_16 = arith.constant 0 : index
    %18 = vector.load %arg6[%c0_14, %c0_15, %c0_16] : memref<1x8x128xf32, #tpu.memory_space<vmem>>, vector<1x8x128xf32>
    %19 = vector.shape_cast %18 : vector<1x8x128xf32> to vector<8x128xf32>
    %20 = vector.shape_cast %17 : vector<8x128xf32> to vector<1x8x128xf32>
    tpu.vector_store %arg6[%c0_14, %c0_15, %c0_16], %20 {strides = array<i32>} : memref<1x8x128xf32, #tpu.memory_space<vmem>>, vector<1x8x128xf32>,
    %c0_17 = arith.constant 0 : index
    %c0_18 = arith.constant 0 : index
    %c0_19 = arith.constant 0 : index
    %21 = vector.load %arg7[%c0_17, %c0_18, %c0_19] : memref<1x8x128xf32, #tpu.memory_space<vmem>>, vector<1x8x128xf32>
    %22 = vector.shape_cast %21 : vector<1x8x128xf32> to vector<8x128xf32>
    %23 = arith.mulf %10, %10 : vector<32x8x128xf32>
    %cst_20 = arith.constant dense<0.000000e+00> : vector<8x128xf32>
    %24 = vector.multi_reduction <add>, %23, %cst_20 [0] : vector<32x8x128xf32> to vector<8x128xf32>
    %25 = arith.addf %22, %24 : vector<8x128xf32>
    %c0_21 = arith.constant 0 : index
    %c0_22 = arith.constant 0 : index
    %c0_23 = arith.constant 0 : index
    %26 = vector.load %arg7[%c0_21, %c0_22, %c0_23] : memref<1x8x128xf32, #tpu.memory_space<vmem>>, vector<1x8x128xf32>
    %27 = vector.shape_cast %26 : vector<1x8x128xf32> to vector<8x128xf32>
    %28 = vector.shape_cast %25 : vector<8x128xf32> to vector<1x8x128xf32>
    tpu.vector_store %arg7[%c0_21, %c0_22, %c0_23], %28 {strides = array<i32>} : memref<1x8x128xf32, #tpu.memory_space<vmem>>, vector<1x8x128xf32>,
    return
  }
  func.func @transform_0(%arg0: i32, %arg1: i32) -> (i32, i32, i32) {
    %c0_i32 = arith.constant 0 : i32
    %c0_i32_0 = arith.constant 0 : i32
    return %arg0, %arg1, %c0_i32 : i32, i32, i32
  }
  func.func @transform_1(%arg0: i32, %arg1: i32) -> (i32, i32) {
    %c0_i32 = arith.constant 0 : i32
    %c0_i32_0 = arith.constant 0 : i32
    %c0_i32_1 = arith.constant 0 : i32
    return %c0_i32, %c0_i32_0 : i32, i32
  }
  func.func @transform_2(%arg0: i32, %arg1: i32) -> (i32, i32) {
    %c0_i32 = arith.constant 0 : i32
    %c0_i32_0 = arith.constant 0 : i32
    %c0_i32_1 = arith.constant 0 : i32
    return %c0_i32, %c0_i32_0 : i32, i32
  }
  func.func @transform_3(%arg0: i32, %arg1: i32) -> (i32, i32, i32) {
    %c0_i32 = arith.constant 0 : i32
    %c0_i32_0 = arith.constant 0 : i32
    return %arg0, %arg1, %c0_i32 : i32, i32, i32
  }
  func.func @transform_4(%arg0: i32, %arg1: i32) -> (i32, i32, i32) {
    %c0_i32 = arith.constant 0 : i32
    %c0_i32_0 = arith.constant 0 : i32
    %c0_i32_1 = arith.constant 0 : i32
    return %arg0, %c0_i32, %c0_i32_0 : i32, i32, i32
  }
  func.func @transform_5(%arg0: i32, %arg1: i32) -> (i32, i32, i32) {
    %c0_i32 = arith.constant 0 : i32
    %c0_i32_0 = arith.constant 0 : i32
    %c0_i32_1 = arith.constant 0 : i32
    return %arg0, %c0_i32, %c0_i32_0 : i32, i32, i32
  }
}

module attributes {stable_mosaic.version = 11 : i64} {
  func.func @_affine_kernel(%arg0: i32, %arg1: i32, %arg2: memref<1x256x128xf32, #tpu.memory_space<vmem>>, %arg3: memref<1x1x128xf32, #tpu.memory_space<vmem>>, %arg4: memref<1x1x128xf32, #tpu.memory_space<vmem>>, %arg5: memref<1x256x128xf32, #tpu.memory_space<vmem>>) attributes {dimension_semantics = [#tpu.dimension_semantics<parallel>, #tpu.dimension_semantics<parallel>], iteration_bounds = array<i64: 2, 1>, scalar_prefetch = 0 : i64, scratch_operands = 0 : i64, tpu.core_type = #tpu.core_type<tc>, window_params = [{transform_indices = @transform_0, window_bounds = array<i64: 1, 256, 128>}, {transform_indices = @transform_1, window_bounds = array<i64: 1, 1, 128>}, {transform_indices = @transform_2, window_bounds = array<i64: 1, 1, 128>}, {transform_indices = @transform_3, window_bounds = array<i64: 1, 256, 128>}]} {
    %c0 = arith.constant 0 : index
    %c0_0 = arith.constant 0 : index
    %c0_1 = arith.constant 0 : index
    %0 = vector.load %arg2[%c0, %c0_0, %c0_1] : memref<1x256x128xf32, #tpu.memory_space<vmem>>, vector<1x256x128xf32>
    %1 = vector.shape_cast %0 : vector<1x256x128xf32> to vector<256x128xf32>
    %c0_2 = arith.constant 0 : index
    %c0_3 = arith.constant 0 : index
    %c0_4 = arith.constant 0 : index
    %2 = vector.load %arg3[%c0_2, %c0_3, %c0_4] : memref<1x1x128xf32, #tpu.memory_space<vmem>>, vector<1x1x128xf32>
    %3 = vector.shape_cast %2 : vector<1x1x128xf32> to vector<1x128xf32>
    %4 = vector.broadcast %3 : vector<1x128xf32> to vector<256x128xf32>
    %5 = arith.mulf %1, %4 : vector<256x128xf32>
    %c0_5 = arith.constant 0 : index
    %c0_6 = arith.constant 0 : index
    %c0_7 = arith.constant 0 : index
    %6 = vector.load %arg4[%c0_5, %c0_6, %c0_7] : memref<1x1x128xf32, #tpu.memory_space<vmem>>, vector<1x1x128xf32>
    %7 = vector.shape_cast %6 : vector<1x1x128xf32> to vector<1x128xf32>
    %8 = vector.broadcast %7 : vector<1x128xf32> to vector<256x128xf32>
    %9 = arith.addf %5, %8 : vector<256x128xf32>
    %cst = arith.constant 0.000000e+00 : f32
    %10 = vector.broadcast %cst : f32 to vector<256x128xf32>
    %11 = arith.maximumf %9, %10 : vector<256x128xf32>
    %c0_8 = arith.constant 0 : index
    %c0_9 = arith.constant 0 : index
    %c0_10 = arith.constant 0 : index
    %12 = vector.load %arg5[%c0_8, %c0_9, %c0_10] : memref<1x256x128xf32, #tpu.memory_space<vmem>>, vector<1x256x128xf32>
    %13 = vector.shape_cast %12 : vector<1x256x128xf32> to vector<256x128xf32>
    %14 = vector.shape_cast %11 : vector<256x128xf32> to vector<1x256x128xf32>
    tpu.vector_store %arg5[%c0_8, %c0_9, %c0_10], %14 {strides = array<i32>} : memref<1x256x128xf32, #tpu.memory_space<vmem>>, vector<1x256x128xf32>,
    return
  }
  func.func @transform_0(%arg0: i32, %arg1: i32) -> (i32, i32, i32) {
    %c0_i32 = arith.constant 0 : i32
    %c0_i32_0 = arith.constant 0 : i32
    return %arg0, %arg1, %c0_i32 : i32, i32, i32
  }
  func.func @transform_1(%arg0: i32, %arg1: i32) -> (i32, i32, i32) {
    %c0_i32 = arith.constant 0 : i32
    %c0_i32_0 = arith.constant 0 : i32
    %c0_i32_1 = arith.constant 0 : i32
    return %arg0, %c0_i32, %c0_i32_0 : i32, i32, i32
  }
  func.func @transform_2(%arg0: i32, %arg1: i32) -> (i32, i32, i32) {
    %c0_i32 = arith.constant 0 : i32
    %c0_i32_0 = arith.constant 0 : i32
    %c0_i32_1 = arith.constant 0 : i32
    return %arg0, %c0_i32, %c0_i32_0 : i32, i32, i32
  }
  func.func @transform_3(%arg0: i32, %arg1: i32) -> (i32, i32, i32) {
    %c0_i32 = arith.constant 0 : i32
    %c0_i32_0 = arith.constant 0 : i32
    return %arg0, %arg1, %c0_i32 : i32, i32, i32
  }
}

module attributes {stable_mosaic.version = 11 : i64} {
  func.func @_conv_stats_kernel(%arg0: i32, %arg1: i32, %arg2: memref<1x64x384xbf16, #tpu.memory_space<vmem>>, %arg3: memref<384x128xbf16, #tpu.memory_space<vmem>>, %arg4: memref<1x128xf32, #tpu.memory_space<vmem>>, %arg5: memref<1x64x128xf32, #tpu.memory_space<vmem>>, %arg6: memref<1x8x128xf32, #tpu.memory_space<vmem>>, %arg7: memref<1x8x128xf32, #tpu.memory_space<vmem>>) attributes {dimension_semantics = [#tpu.dimension_semantics<parallel>, #tpu.dimension_semantics<arbitrary>], iteration_bounds = array<i64: 2, 1>, scalar_prefetch = 0 : i64, scratch_operands = 0 : i64, tpu.core_type = #tpu.core_type<tc>, window_params = [{transform_indices = @transform_0, window_bounds = array<i64: 1, 64, 384>}, {pipeline_mode = #tpu.pipeline_mode<synchronous>, transform_indices = @transform_1, window_bounds = array<i64: 384, 128>}, {pipeline_mode = #tpu.pipeline_mode<synchronous>, transform_indices = @transform_2, window_bounds = array<i64: 1, 128>}, {transform_indices = @transform_3, window_bounds = array<i64: 1, 64, 128>}, {transform_indices = @transform_4, window_bounds = array<i64: 1, 8, 128>}, {transform_indices = @transform_5, window_bounds = array<i64: 1, 8, 128>}]} {
    %c0 = arith.constant 0 : index
    %c0_0 = arith.constant 0 : index
    %c0_1 = arith.constant 0 : index
    %0 = vector.load %arg2[%c0, %c0_0, %c0_1] : memref<1x64x384xbf16, #tpu.memory_space<vmem>>, vector<1x64x384xbf16>
    %1 = vector.shape_cast %0 : vector<1x64x384xbf16> to vector<64x384xbf16>
    %c0_2 = arith.constant 0 : index
    %c0_3 = arith.constant 0 : index
    %2 = vector.load %arg3[%c0_2, %c0_3] : memref<384x128xbf16, #tpu.memory_space<vmem>>, vector<384x128xbf16>
    %cst = arith.constant dense<0.000000e+00> : vector<64x128xf32>
    %3 = tpu.matmul %1, %2, %cst {dimension_numbers = #tpu.dot_dimension_numbers<[1], [0], [0], [1], [0, 0, 1, 1], [], []>} : vector<64x384xbf16>, vector<384x128xbf16>, vector<64x128xf32> -> vector<64x128xf32>
    %c0_4 = arith.constant 0 : index
    %c0_5 = arith.constant 0 : index
    %4 = vector.load %arg4[%c0_4, %c0_5] : memref<1x128xf32, #tpu.memory_space<vmem>>, vector<1x128xf32>
    %5 = vector.broadcast %4 : vector<1x128xf32> to vector<64x128xf32>
    %6 = arith.addf %3, %5 : vector<64x128xf32>
    %c0_6 = arith.constant 0 : index
    %c0_7 = arith.constant 0 : index
    %c0_8 = arith.constant 0 : index
    %7 = vector.load %arg5[%c0_6, %c0_7, %c0_8] : memref<1x64x128xf32, #tpu.memory_space<vmem>>, vector<1x64x128xf32>
    %8 = vector.shape_cast %7 : vector<1x64x128xf32> to vector<64x128xf32>
    %9 = vector.shape_cast %6 : vector<64x128xf32> to vector<1x64x128xf32>
    tpu.vector_store %arg5[%c0_6, %c0_7, %c0_8], %9 {strides = array<i32>} : memref<1x64x128xf32, #tpu.memory_space<vmem>>, vector<1x64x128xf32>,
    %10 = vector.shape_cast %6 : vector<64x128xf32> to vector<8x8x128xf32>
    %c0_i32 = arith.constant 0 : i32
    %11 = arith.cmpi eq, %arg1, %c0_i32 : i32
    %12 = arith.extui %11 : i1 to i32
    %c0_i32_9 = arith.constant 0 : i32
    %13 = arith.cmpi ne, %12, %c0_i32_9 : i32
    scf.if %13 {
      %cst_24 = arith.constant 0.000000e+00 : f32
      %29 = vector.broadcast %cst_24 : f32 to vector<1x8x128xf32>
      %c0_25 = arith.constant 0 : index
      %c0_26 = arith.constant 0 : index
      %c0_27 = arith.constant 0 : index
      %30 = vector.load %arg6[%c0_25, %c0_26, %c0_27] : memref<1x8x128xf32, #tpu.memory_space<vmem>>, vector<1x8x128xf32>
      tpu.vector_store %arg6[%c0_25, %c0_26, %c0_27], %29 {strides = array<i32>} : memref<1x8x128xf32, #tpu.memory_space<vmem>>, vector<1x8x128xf32>,
      %cst_28 = arith.constant 0.000000e+00 : f32
      %31 = vector.broadcast %cst_28 : f32 to vector<1x8x128xf32>
      %c0_29 = arith.constant 0 : index
      %c0_30 = arith.constant 0 : index
      %c0_31 = arith.constant 0 : index
      %32 = vector.load %arg7[%c0_29, %c0_30, %c0_31] : memref<1x8x128xf32, #tpu.memory_space<vmem>>, vector<1x8x128xf32>
      tpu.vector_store %arg7[%c0_29, %c0_30, %c0_31], %31 {strides = array<i32>} : memref<1x8x128xf32, #tpu.memory_space<vmem>>, vector<1x8x128xf32>,
    } else {
    }
    %c0_10 = arith.constant 0 : index
    %c0_11 = arith.constant 0 : index
    %c0_12 = arith.constant 0 : index
    %14 = vector.load %arg6[%c0_10, %c0_11, %c0_12] : memref<1x8x128xf32, #tpu.memory_space<vmem>>, vector<1x8x128xf32>
    %15 = vector.shape_cast %14 : vector<1x8x128xf32> to vector<8x128xf32>
    %cst_13 = arith.constant dense<0.000000e+00> : vector<8x128xf32>
    %16 = vector.multi_reduction <add>, %10, %cst_13 [0] : vector<8x8x128xf32> to vector<8x128xf32>
    %17 = arith.addf %15, %16 : vector<8x128xf32>
    %c0_14 = arith.constant 0 : index
    %c0_15 = arith.constant 0 : index
    %c0_16 = arith.constant 0 : index
    %18 = vector.load %arg6[%c0_14, %c0_15, %c0_16] : memref<1x8x128xf32, #tpu.memory_space<vmem>>, vector<1x8x128xf32>
    %19 = vector.shape_cast %18 : vector<1x8x128xf32> to vector<8x128xf32>
    %20 = vector.shape_cast %17 : vector<8x128xf32> to vector<1x8x128xf32>
    tpu.vector_store %arg6[%c0_14, %c0_15, %c0_16], %20 {strides = array<i32>} : memref<1x8x128xf32, #tpu.memory_space<vmem>>, vector<1x8x128xf32>,
    %c0_17 = arith.constant 0 : index
    %c0_18 = arith.constant 0 : index
    %c0_19 = arith.constant 0 : index
    %21 = vector.load %arg7[%c0_17, %c0_18, %c0_19] : memref<1x8x128xf32, #tpu.memory_space<vmem>>, vector<1x8x128xf32>
    %22 = vector.shape_cast %21 : vector<1x8x128xf32> to vector<8x128xf32>
    %23 = arith.mulf %10, %10 : vector<8x8x128xf32>
    %cst_20 = arith.constant dense<0.000000e+00> : vector<8x128xf32>
    %24 = vector.multi_reduction <add>, %23, %cst_20 [0] : vector<8x8x128xf32> to vector<8x128xf32>
    %25 = arith.addf %22, %24 : vector<8x128xf32>
    %c0_21 = arith.constant 0 : index
    %c0_22 = arith.constant 0 : index
    %c0_23 = arith.constant 0 : index
    %26 = vector.load %arg7[%c0_21, %c0_22, %c0_23] : memref<1x8x128xf32, #tpu.memory_space<vmem>>, vector<1x8x128xf32>
    %27 = vector.shape_cast %26 : vector<1x8x128xf32> to vector<8x128xf32>
    %28 = vector.shape_cast %25 : vector<8x128xf32> to vector<1x8x128xf32>
    tpu.vector_store %arg7[%c0_21, %c0_22, %c0_23], %28 {strides = array<i32>} : memref<1x8x128xf32, #tpu.memory_space<vmem>>, vector<1x8x128xf32>,
    return
  }
  func.func @transform_0(%arg0: i32, %arg1: i32) -> (i32, i32, i32) {
    %c0_i32 = arith.constant 0 : i32
    %c0_i32_0 = arith.constant 0 : i32
    return %arg0, %arg1, %c0_i32 : i32, i32, i32
  }
  func.func @transform_1(%arg0: i32, %arg1: i32) -> (i32, i32) {
    %c0_i32 = arith.constant 0 : i32
    %c0_i32_0 = arith.constant 0 : i32
    %c0_i32_1 = arith.constant 0 : i32
    return %c0_i32, %c0_i32_0 : i32, i32
  }
  func.func @transform_2(%arg0: i32, %arg1: i32) -> (i32, i32) {
    %c0_i32 = arith.constant 0 : i32
    %c0_i32_0 = arith.constant 0 : i32
    %c0_i32_1 = arith.constant 0 : i32
    return %c0_i32, %c0_i32_0 : i32, i32
  }
  func.func @transform_3(%arg0: i32, %arg1: i32) -> (i32, i32, i32) {
    %c0_i32 = arith.constant 0 : i32
    %c0_i32_0 = arith.constant 0 : i32
    return %arg0, %arg1, %c0_i32 : i32, i32, i32
  }
  func.func @transform_4(%arg0: i32, %arg1: i32) -> (i32, i32, i32) {
    %c0_i32 = arith.constant 0 : i32
    %c0_i32_0 = arith.constant 0 : i32
    %c0_i32_1 = arith.constant 0 : i32
    return %arg0, %c0_i32, %c0_i32_0 : i32, i32, i32
  }
  func.func @transform_5(%arg0: i32, %arg1: i32) -> (i32, i32, i32) {
    %c0_i32 = arith.constant 0 : i32
    %c0_i32_0 = arith.constant 0 : i32
    %c0_i32_1 = arith.constant 0 : i32
    return %arg0, %c0_i32, %c0_i32_0 : i32, i32, i32
  }
}

module attributes {stable_mosaic.version = 11 : i64} {
  func.func @_affine_kernel(%arg0: i32, %arg1: i32, %arg2: memref<1x64x128xf32, #tpu.memory_space<vmem>>, %arg3: memref<1x1x128xf32, #tpu.memory_space<vmem>>, %arg4: memref<1x1x128xf32, #tpu.memory_space<vmem>>, %arg5: memref<1x64x128xf32, #tpu.memory_space<vmem>>) attributes {dimension_semantics = [#tpu.dimension_semantics<parallel>, #tpu.dimension_semantics<parallel>], iteration_bounds = array<i64: 2, 1>, scalar_prefetch = 0 : i64, scratch_operands = 0 : i64, tpu.core_type = #tpu.core_type<tc>, window_params = [{transform_indices = @transform_0, window_bounds = array<i64: 1, 64, 128>}, {transform_indices = @transform_1, window_bounds = array<i64: 1, 1, 128>}, {transform_indices = @transform_2, window_bounds = array<i64: 1, 1, 128>}, {transform_indices = @transform_3, window_bounds = array<i64: 1, 64, 128>}]} {
    %c0 = arith.constant 0 : index
    %c0_0 = arith.constant 0 : index
    %c0_1 = arith.constant 0 : index
    %0 = vector.load %arg2[%c0, %c0_0, %c0_1] : memref<1x64x128xf32, #tpu.memory_space<vmem>>, vector<1x64x128xf32>
    %1 = vector.shape_cast %0 : vector<1x64x128xf32> to vector<64x128xf32>
    %c0_2 = arith.constant 0 : index
    %c0_3 = arith.constant 0 : index
    %c0_4 = arith.constant 0 : index
    %2 = vector.load %arg3[%c0_2, %c0_3, %c0_4] : memref<1x1x128xf32, #tpu.memory_space<vmem>>, vector<1x1x128xf32>
    %3 = vector.shape_cast %2 : vector<1x1x128xf32> to vector<1x128xf32>
    %4 = vector.broadcast %3 : vector<1x128xf32> to vector<64x128xf32>
    %5 = arith.mulf %1, %4 : vector<64x128xf32>
    %c0_5 = arith.constant 0 : index
    %c0_6 = arith.constant 0 : index
    %c0_7 = arith.constant 0 : index
    %6 = vector.load %arg4[%c0_5, %c0_6, %c0_7] : memref<1x1x128xf32, #tpu.memory_space<vmem>>, vector<1x1x128xf32>
    %7 = vector.shape_cast %6 : vector<1x1x128xf32> to vector<1x128xf32>
    %8 = vector.broadcast %7 : vector<1x128xf32> to vector<64x128xf32>
    %9 = arith.addf %5, %8 : vector<64x128xf32>
    %cst = arith.constant 0.000000e+00 : f32
    %10 = vector.broadcast %cst : f32 to vector<64x128xf32>
    %11 = arith.maximumf %9, %10 : vector<64x128xf32>
    %c0_8 = arith.constant 0 : index
    %c0_9 = arith.constant 0 : index
    %c0_10 = arith.constant 0 : index
    %12 = vector.load %arg5[%c0_8, %c0_9, %c0_10] : memref<1x64x128xf32, #tpu.memory_space<vmem>>, vector<1x64x128xf32>
    %13 = vector.shape_cast %12 : vector<1x64x128xf32> to vector<64x128xf32>
    %14 = vector.shape_cast %11 : vector<64x128xf32> to vector<1x64x128xf32>
    tpu.vector_store %arg5[%c0_8, %c0_9, %c0_10], %14 {strides = array<i32>} : memref<1x64x128xf32, #tpu.memory_space<vmem>>, vector<1x64x128xf32>,
    return
  }
  func.func @transform_0(%arg0: i32, %arg1: i32) -> (i32, i32, i32) {
    %c0_i32 = arith.constant 0 : i32
    %c0_i32_0 = arith.constant 0 : i32
    return %arg0, %arg1, %c0_i32 : i32, i32, i32
  }
  func.func @transform_1(%arg0: i32, %arg1: i32) -> (i32, i32, i32) {
    %c0_i32 = arith.constant 0 : i32
    %c0_i32_0 = arith.constant 0 : i32
    %c0_i32_1 = arith.constant 0 : i32
    return %arg0, %c0_i32, %c0_i32_0 : i32, i32, i32
  }
  func.func @transform_2(%arg0: i32, %arg1: i32) -> (i32, i32, i32) {
    %c0_i32 = arith.constant 0 : i32
    %c0_i32_0 = arith.constant 0 : i32
    %c0_i32_1 = arith.constant 0 : i32
    return %arg0, %c0_i32, %c0_i32_0 : i32, i32, i32
  }
  func.func @transform_3(%arg0: i32, %arg1: i32) -> (i32, i32, i32) {
    %c0_i32 = arith.constant 0 : i32
    %c0_i32_0 = arith.constant 0 : i32
    return %arg0, %arg1, %c0_i32 : i32, i32, i32
  }
}

module attributes {stable_mosaic.version = 11 : i64} {
  func.func @_conv_stats_kernel(%arg0: i32, %arg1: i32, %arg2: memref<1x16x640xbf16, #tpu.memory_space<vmem>>, %arg3: memref<640x128xbf16, #tpu.memory_space<vmem>>, %arg4: memref<1x128xf32, #tpu.memory_space<vmem>>, %arg5: memref<1x16x128xf32, #tpu.memory_space<vmem>>, %arg6: memref<1x8x128xf32, #tpu.memory_space<vmem>>, %arg7: memref<1x8x128xf32, #tpu.memory_space<vmem>>) attributes {dimension_semantics = [#tpu.dimension_semantics<parallel>, #tpu.dimension_semantics<arbitrary>], iteration_bounds = array<i64: 2, 1>, scalar_prefetch = 0 : i64, scratch_operands = 0 : i64, tpu.core_type = #tpu.core_type<tc>, window_params = [{transform_indices = @transform_0, window_bounds = array<i64: 1, 16, 640>}, {pipeline_mode = #tpu.pipeline_mode<synchronous>, transform_indices = @transform_1, window_bounds = array<i64: 640, 128>}, {pipeline_mode = #tpu.pipeline_mode<synchronous>, transform_indices = @transform_2, window_bounds = array<i64: 1, 128>}, {transform_indices = @transform_3, window_bounds = array<i64: 1, 16, 128>}, {transform_indices = @transform_4, window_bounds = array<i64: 1, 8, 128>}, {transform_indices = @transform_5, window_bounds = array<i64: 1, 8, 128>}]} {
    %c0 = arith.constant 0 : index
    %c0_0 = arith.constant 0 : index
    %c0_1 = arith.constant 0 : index
    %0 = vector.load %arg2[%c0, %c0_0, %c0_1] : memref<1x16x640xbf16, #tpu.memory_space<vmem>>, vector<1x16x640xbf16>
    %1 = vector.shape_cast %0 : vector<1x16x640xbf16> to vector<16x640xbf16>
    %c0_2 = arith.constant 0 : index
    %c0_3 = arith.constant 0 : index
    %2 = vector.load %arg3[%c0_2, %c0_3] : memref<640x128xbf16, #tpu.memory_space<vmem>>, vector<640x128xbf16>
    %cst = arith.constant dense<0.000000e+00> : vector<16x128xf32>
    %3 = tpu.matmul %1, %2, %cst {dimension_numbers = #tpu.dot_dimension_numbers<[1], [0], [0], [1], [0, 0, 1, 1], [], []>} : vector<16x640xbf16>, vector<640x128xbf16>, vector<16x128xf32> -> vector<16x128xf32>
    %c0_4 = arith.constant 0 : index
    %c0_5 = arith.constant 0 : index
    %4 = vector.load %arg4[%c0_4, %c0_5] : memref<1x128xf32, #tpu.memory_space<vmem>>, vector<1x128xf32>
    %5 = vector.broadcast %4 : vector<1x128xf32> to vector<16x128xf32>
    %6 = arith.addf %3, %5 : vector<16x128xf32>
    %c0_6 = arith.constant 0 : index
    %c0_7 = arith.constant 0 : index
    %c0_8 = arith.constant 0 : index
    %7 = vector.load %arg5[%c0_6, %c0_7, %c0_8] : memref<1x16x128xf32, #tpu.memory_space<vmem>>, vector<1x16x128xf32>
    %8 = vector.shape_cast %7 : vector<1x16x128xf32> to vector<16x128xf32>
    %9 = vector.shape_cast %6 : vector<16x128xf32> to vector<1x16x128xf32>
    tpu.vector_store %arg5[%c0_6, %c0_7, %c0_8], %9 {strides = array<i32>} : memref<1x16x128xf32, #tpu.memory_space<vmem>>, vector<1x16x128xf32>,
    %10 = vector.shape_cast %6 : vector<16x128xf32> to vector<2x8x128xf32>
    %c0_i32 = arith.constant 0 : i32
    %11 = arith.cmpi eq, %arg1, %c0_i32 : i32
    %12 = arith.extui %11 : i1 to i32
    %c0_i32_9 = arith.constant 0 : i32
    %13 = arith.cmpi ne, %12, %c0_i32_9 : i32
    scf.if %13 {
      %cst_24 = arith.constant 0.000000e+00 : f32
      %29 = vector.broadcast %cst_24 : f32 to vector<1x8x128xf32>
      %c0_25 = arith.constant 0 : index
      %c0_26 = arith.constant 0 : index
      %c0_27 = arith.constant 0 : index
      %30 = vector.load %arg6[%c0_25, %c0_26, %c0_27] : memref<1x8x128xf32, #tpu.memory_space<vmem>>, vector<1x8x128xf32>
      tpu.vector_store %arg6[%c0_25, %c0_26, %c0_27], %29 {strides = array<i32>} : memref<1x8x128xf32, #tpu.memory_space<vmem>>, vector<1x8x128xf32>,
      %cst_28 = arith.constant 0.000000e+00 : f32
      %31 = vector.broadcast %cst_28 : f32 to vector<1x8x128xf32>
      %c0_29 = arith.constant 0 : index
      %c0_30 = arith.constant 0 : index
      %c0_31 = arith.constant 0 : index
      %32 = vector.load %arg7[%c0_29, %c0_30, %c0_31] : memref<1x8x128xf32, #tpu.memory_space<vmem>>, vector<1x8x128xf32>
      tpu.vector_store %arg7[%c0_29, %c0_30, %c0_31], %31 {strides = array<i32>} : memref<1x8x128xf32, #tpu.memory_space<vmem>>, vector<1x8x128xf32>,
    } else {
    }
    %c0_10 = arith.constant 0 : index
    %c0_11 = arith.constant 0 : index
    %c0_12 = arith.constant 0 : index
    %14 = vector.load %arg6[%c0_10, %c0_11, %c0_12] : memref<1x8x128xf32, #tpu.memory_space<vmem>>, vector<1x8x128xf32>
    %15 = vector.shape_cast %14 : vector<1x8x128xf32> to vector<8x128xf32>
    %cst_13 = arith.constant dense<0.000000e+00> : vector<8x128xf32>
    %16 = vector.multi_reduction <add>, %10, %cst_13 [0] : vector<2x8x128xf32> to vector<8x128xf32>
    %17 = arith.addf %15, %16 : vector<8x128xf32>
    %c0_14 = arith.constant 0 : index
    %c0_15 = arith.constant 0 : index
    %c0_16 = arith.constant 0 : index
    %18 = vector.load %arg6[%c0_14, %c0_15, %c0_16] : memref<1x8x128xf32, #tpu.memory_space<vmem>>, vector<1x8x128xf32>
    %19 = vector.shape_cast %18 : vector<1x8x128xf32> to vector<8x128xf32>
    %20 = vector.shape_cast %17 : vector<8x128xf32> to vector<1x8x128xf32>
    tpu.vector_store %arg6[%c0_14, %c0_15, %c0_16], %20 {strides = array<i32>} : memref<1x8x128xf32, #tpu.memory_space<vmem>>, vector<1x8x128xf32>,
    %c0_17 = arith.constant 0 : index
    %c0_18 = arith.constant 0 : index
    %c0_19 = arith.constant 0 : index
    %21 = vector.load %arg7[%c0_17, %c0_18, %c0_19] : memref<1x8x128xf32, #tpu.memory_space<vmem>>, vector<1x8x128xf32>
    %22 = vector.shape_cast %21 : vector<1x8x128xf32> to vector<8x128xf32>
    %23 = arith.mulf %10, %10 : vector<2x8x128xf32>
    %cst_20 = arith.constant dense<0.000000e+00> : vector<8x128xf32>
    %24 = vector.multi_reduction <add>, %23, %cst_20 [0] : vector<2x8x128xf32> to vector<8x128xf32>
    %25 = arith.addf %22, %24 : vector<8x128xf32>
    %c0_21 = arith.constant 0 : index
    %c0_22 = arith.constant 0 : index
    %c0_23 = arith.constant 0 : index
    %26 = vector.load %arg7[%c0_21, %c0_22, %c0_23] : memref<1x8x128xf32, #tpu.memory_space<vmem>>, vector<1x8x128xf32>
    %27 = vector.shape_cast %26 : vector<1x8x128xf32> to vector<8x128xf32>
    %28 = vector.shape_cast %25 : vector<8x128xf32> to vector<1x8x128xf32>
    tpu.vector_store %arg7[%c0_21, %c0_22, %c0_23], %28 {strides = array<i32>} : memref<1x8x128xf32, #tpu.memory_space<vmem>>, vector<1x8x128xf32>,
    return
  }
  func.func @transform_0(%arg0: i32, %arg1: i32) -> (i32, i32, i32) {
    %c0_i32 = arith.constant 0 : i32
    %c0_i32_0 = arith.constant 0 : i32
    return %arg0, %arg1, %c0_i32 : i32, i32, i32
  }
  func.func @transform_1(%arg0: i32, %arg1: i32) -> (i32, i32) {
    %c0_i32 = arith.constant 0 : i32
    %c0_i32_0 = arith.constant 0 : i32
    %c0_i32_1 = arith.constant 0 : i32
    return %c0_i32, %c0_i32_0 : i32, i32
  }
  func.func @transform_2(%arg0: i32, %arg1: i32) -> (i32, i32) {
    %c0_i32 = arith.constant 0 : i32
    %c0_i32_0 = arith.constant 0 : i32
    %c0_i32_1 = arith.constant 0 : i32
    return %c0_i32, %c0_i32_0 : i32, i32
  }
  func.func @transform_3(%arg0: i32, %arg1: i32) -> (i32, i32, i32) {
    %c0_i32 = arith.constant 0 : i32
    %c0_i32_0 = arith.constant 0 : i32
    return %arg0, %arg1, %c0_i32 : i32, i32, i32
  }
  func.func @transform_4(%arg0: i32, %arg1: i32) -> (i32, i32, i32) {
    %c0_i32 = arith.constant 0 : i32
    %c0_i32_0 = arith.constant 0 : i32
    %c0_i32_1 = arith.constant 0 : i32
    return %arg0, %c0_i32, %c0_i32_0 : i32, i32, i32
  }
  func.func @transform_5(%arg0: i32, %arg1: i32) -> (i32, i32, i32) {
    %c0_i32 = arith.constant 0 : i32
    %c0_i32_0 = arith.constant 0 : i32
    %c0_i32_1 = arith.constant 0 : i32
    return %arg0, %c0_i32, %c0_i32_0 : i32, i32, i32
  }
}

module attributes {stable_mosaic.version = 11 : i64} {
  func.func @_affine_kernel(%arg0: i32, %arg1: i32, %arg2: memref<1x16x128xf32, #tpu.memory_space<vmem>>, %arg3: memref<1x1x128xf32, #tpu.memory_space<vmem>>, %arg4: memref<1x1x128xf32, #tpu.memory_space<vmem>>, %arg5: memref<1x16x128xf32, #tpu.memory_space<vmem>>) attributes {dimension_semantics = [#tpu.dimension_semantics<parallel>, #tpu.dimension_semantics<parallel>], iteration_bounds = array<i64: 2, 1>, scalar_prefetch = 0 : i64, scratch_operands = 0 : i64, tpu.core_type = #tpu.core_type<tc>, window_params = [{transform_indices = @transform_0, window_bounds = array<i64: 1, 16, 128>}, {transform_indices = @transform_1, window_bounds = array<i64: 1, 1, 128>}, {transform_indices = @transform_2, window_bounds = array<i64: 1, 1, 128>}, {transform_indices = @transform_3, window_bounds = array<i64: 1, 16, 128>}]} {
    %c0 = arith.constant 0 : index
    %c0_0 = arith.constant 0 : index
    %c0_1 = arith.constant 0 : index
    %0 = vector.load %arg2[%c0, %c0_0, %c0_1] : memref<1x16x128xf32, #tpu.memory_space<vmem>>, vector<1x16x128xf32>
    %1 = vector.shape_cast %0 : vector<1x16x128xf32> to vector<16x128xf32>
    %c0_2 = arith.constant 0 : index
    %c0_3 = arith.constant 0 : index
    %c0_4 = arith.constant 0 : index
    %2 = vector.load %arg3[%c0_2, %c0_3, %c0_4] : memref<1x1x128xf32, #tpu.memory_space<vmem>>, vector<1x1x128xf32>
    %3 = vector.shape_cast %2 : vector<1x1x128xf32> to vector<1x128xf32>
    %4 = vector.broadcast %3 : vector<1x128xf32> to vector<16x128xf32>
    %5 = arith.mulf %1, %4 : vector<16x128xf32>
    %c0_5 = arith.constant 0 : index
    %c0_6 = arith.constant 0 : index
    %c0_7 = arith.constant 0 : index
    %6 = vector.load %arg4[%c0_5, %c0_6, %c0_7] : memref<1x1x128xf32, #tpu.memory_space<vmem>>, vector<1x1x128xf32>
    %7 = vector.shape_cast %6 : vector<1x1x128xf32> to vector<1x128xf32>
    %8 = vector.broadcast %7 : vector<1x128xf32> to vector<16x128xf32>
    %9 = arith.addf %5, %8 : vector<16x128xf32>
    %cst = arith.constant 0.000000e+00 : f32
    %10 = vector.broadcast %cst : f32 to vector<16x128xf32>
    %11 = arith.maximumf %9, %10 : vector<16x128xf32>
    %c0_8 = arith.constant 0 : index
    %c0_9 = arith.constant 0 : index
    %c0_10 = arith.constant 0 : index
    %12 = vector.load %arg5[%c0_8, %c0_9, %c0_10] : memref<1x16x128xf32, #tpu.memory_space<vmem>>, vector<1x16x128xf32>
    %13 = vector.shape_cast %12 : vector<1x16x128xf32> to vector<16x128xf32>
    %14 = vector.shape_cast %11 : vector<16x128xf32> to vector<1x16x128xf32>
    tpu.vector_store %arg5[%c0_8, %c0_9, %c0_10], %14 {strides = array<i32>} : memref<1x16x128xf32, #tpu.memory_space<vmem>>, vector<1x16x128xf32>,
    return
  }
  func.func @transform_0(%arg0: i32, %arg1: i32) -> (i32, i32, i32) {
    %c0_i32 = arith.constant 0 : i32
    %c0_i32_0 = arith.constant 0 : i32
    return %arg0, %arg1, %c0_i32 : i32, i32, i32
  }
  func.func @transform_1(%arg0: i32, %arg1: i32) -> (i32, i32, i32) {
    %c0_i32 = arith.constant 0 : i32
    %c0_i32_0 = arith.constant 0 : i32
    %c0_i32_1 = arith.constant 0 : i32
    return %arg0, %c0_i32, %c0_i32_0 : i32, i32, i32
  }
  func.func @transform_2(%arg0: i32, %arg1: i32) -> (i32, i32, i32) {
    %c0_i32 = arith.constant 0 : i32
    %c0_i32_0 = arith.constant 0 : i32
    %c0_i32_1 = arith.constant 0 : i32
    return %arg0, %c0_i32, %c0_i32_0 : i32, i32, i32
  }
  func.func @transform_3(%arg0: i32, %arg1: i32) -> (i32, i32, i32) {
    %c0_i32 = arith.constant 0 : i32
    %c0_i32_0 = arith.constant 0 : i32
    return %arg0, %arg1, %c0_i32 : i32, i32, i32
  }
}

module attributes {stable_mosaic.version = 11 : i64} {
  func.func @_affine_res_kernel(%arg0: i32, %arg1: i32, %arg2: memref<1x16x128xf32, #tpu.memory_space<vmem>>, %arg3: memref<1x1x128xf32, #tpu.memory_space<vmem>>, %arg4: memref<1x1x128xf32, #tpu.memory_space<vmem>>, %arg5: memref<1x16x128xf32, #tpu.memory_space<vmem>>, %arg6: memref<1x16x128xf32, #tpu.memory_space<vmem>>) attributes {dimension_semantics = [#tpu.dimension_semantics<parallel>, #tpu.dimension_semantics<parallel>], iteration_bounds = array<i64: 2, 1>, scalar_prefetch = 0 : i64, scratch_operands = 0 : i64, tpu.core_type = #tpu.core_type<tc>, window_params = [{transform_indices = @transform_0, window_bounds = array<i64: 1, 16, 128>}, {transform_indices = @transform_1, window_bounds = array<i64: 1, 1, 128>}, {transform_indices = @transform_2, window_bounds = array<i64: 1, 1, 128>}, {transform_indices = @transform_3, window_bounds = array<i64: 1, 16, 128>}, {transform_indices = @transform_4, window_bounds = array<i64: 1, 16, 128>}]} {
    %c0 = arith.constant 0 : index
    %c0_0 = arith.constant 0 : index
    %c0_1 = arith.constant 0 : index
    %0 = vector.load %arg2[%c0, %c0_0, %c0_1] : memref<1x16x128xf32, #tpu.memory_space<vmem>>, vector<1x16x128xf32>
    %1 = vector.shape_cast %0 : vector<1x16x128xf32> to vector<16x128xf32>
    %c0_2 = arith.constant 0 : index
    %c0_3 = arith.constant 0 : index
    %c0_4 = arith.constant 0 : index
    %2 = vector.load %arg3[%c0_2, %c0_3, %c0_4] : memref<1x1x128xf32, #tpu.memory_space<vmem>>, vector<1x1x128xf32>
    %3 = vector.shape_cast %2 : vector<1x1x128xf32> to vector<1x128xf32>
    %4 = vector.broadcast %3 : vector<1x128xf32> to vector<16x128xf32>
    %5 = arith.mulf %1, %4 : vector<16x128xf32>
    %c0_5 = arith.constant 0 : index
    %c0_6 = arith.constant 0 : index
    %c0_7 = arith.constant 0 : index
    %6 = vector.load %arg4[%c0_5, %c0_6, %c0_7] : memref<1x1x128xf32, #tpu.memory_space<vmem>>, vector<1x1x128xf32>
    %7 = vector.shape_cast %6 : vector<1x1x128xf32> to vector<1x128xf32>
    %8 = vector.broadcast %7 : vector<1x128xf32> to vector<16x128xf32>
    %9 = arith.addf %5, %8 : vector<16x128xf32>
    %c0_8 = arith.constant 0 : index
    %c0_9 = arith.constant 0 : index
    %c0_10 = arith.constant 0 : index
    %10 = vector.load %arg5[%c0_8, %c0_9, %c0_10] : memref<1x16x128xf32, #tpu.memory_space<vmem>>, vector<1x16x128xf32>
    %11 = vector.shape_cast %10 : vector<1x16x128xf32> to vector<16x128xf32>
    %12 = arith.addf %9, %11 : vector<16x128xf32>
    %c0_11 = arith.constant 0 : index
    %c0_12 = arith.constant 0 : index
    %c0_13 = arith.constant 0 : index
    %13 = vector.load %arg6[%c0_11, %c0_12, %c0_13] : memref<1x16x128xf32, #tpu.memory_space<vmem>>, vector<1x16x128xf32>
    %14 = vector.shape_cast %13 : vector<1x16x128xf32> to vector<16x128xf32>
    %15 = vector.shape_cast %12 : vector<16x128xf32> to vector<1x16x128xf32>
    tpu.vector_store %arg6[%c0_11, %c0_12, %c0_13], %15 {strides = array<i32>} : memref<1x16x128xf32, #tpu.memory_space<vmem>>, vector<1x16x128xf32>,
    return
  }
  func.func @transform_0(%arg0: i32, %arg1: i32) -> (i32, i32, i32) {
    %c0_i32 = arith.constant 0 : i32
    %c0_i32_0 = arith.constant 0 : i32
    return %arg0, %arg1, %c0_i32 : i32, i32, i32
  }
  func.func @transform_1(%arg0: i32, %arg1: i32) -> (i32, i32, i32) {
    %c0_i32 = arith.constant 0 : i32
    %c0_i32_0 = arith.constant 0 : i32
    %c0_i32_1 = arith.constant 0 : i32
    return %arg0, %c0_i32, %c0_i32_0 : i32, i32, i32
  }
  func.func @transform_2(%arg0: i32, %arg1: i32) -> (i32, i32, i32) {
    %c0_i32 = arith.constant 0 : i32
    %c0_i32_0 = arith.constant 0 : i32
    %c0_i32_1 = arith.constant 0 : i32
    return %arg0, %c0_i32, %c0_i32_0 : i32, i32, i32
  }
  func.func @transform_3(%arg0: i32, %arg1: i32) -> (i32, i32, i32) {
    %c0_i32 = arith.constant 0 : i32
    %c0_i32_0 = arith.constant 0 : i32
    return %arg0, %arg1, %c0_i32 : i32, i32, i32
  }
  func.func @transform_4(%arg0: i32, %arg1: i32) -> (i32, i32, i32) {
    %c0_i32 = arith.constant 0 : i32
    %c0_i32_0 = arith.constant 0 : i32
    return %arg0, %arg1, %c0_i32 : i32, i32, i32
  }
}

module attributes {stable_mosaic.version = 11 : i64} {
  func.func @_conv_stats_kernel(%arg0: i32, %arg1: i32, %arg2: memref<1x16x1152xbf16, #tpu.memory_space<vmem>>, %arg3: memref<1152x128xbf16, #tpu.memory_space<vmem>>, %arg4: memref<1x128xf32, #tpu.memory_space<vmem>>, %arg5: memref<1x16x128xf32, #tpu.memory_space<vmem>>, %arg6: memref<1x8x128xf32, #tpu.memory_space<vmem>>, %arg7: memref<1x8x128xf32, #tpu.memory_space<vmem>>) attributes {dimension_semantics = [#tpu.dimension_semantics<parallel>, #tpu.dimension_semantics<arbitrary>], iteration_bounds = array<i64: 2, 1>, scalar_prefetch = 0 : i64, scratch_operands = 0 : i64, tpu.core_type = #tpu.core_type<tc>, window_params = [{transform_indices = @transform_0, window_bounds = array<i64: 1, 16, 1152>}, {pipeline_mode = #tpu.pipeline_mode<synchronous>, transform_indices = @transform_1, window_bounds = array<i64: 1152, 128>}, {pipeline_mode = #tpu.pipeline_mode<synchronous>, transform_indices = @transform_2, window_bounds = array<i64: 1, 128>}, {transform_indices = @transform_3, window_bounds = array<i64: 1, 16, 128>}, {transform_indices = @transform_4, window_bounds = array<i64: 1, 8, 128>}, {transform_indices = @transform_5, window_bounds = array<i64: 1, 8, 128>}]} {
    %c0 = arith.constant 0 : index
    %c0_0 = arith.constant 0 : index
    %c0_1 = arith.constant 0 : index
    %0 = vector.load %arg2[%c0, %c0_0, %c0_1] : memref<1x16x1152xbf16, #tpu.memory_space<vmem>>, vector<1x16x1152xbf16>
    %1 = vector.shape_cast %0 : vector<1x16x1152xbf16> to vector<16x1152xbf16>
    %c0_2 = arith.constant 0 : index
    %c0_3 = arith.constant 0 : index
    %2 = vector.load %arg3[%c0_2, %c0_3] : memref<1152x128xbf16, #tpu.memory_space<vmem>>, vector<1152x128xbf16>
    %cst = arith.constant dense<0.000000e+00> : vector<16x128xf32>
    %3 = tpu.matmul %1, %2, %cst {dimension_numbers = #tpu.dot_dimension_numbers<[1], [0], [0], [1], [0, 0, 1, 1], [], []>} : vector<16x1152xbf16>, vector<1152x128xbf16>, vector<16x128xf32> -> vector<16x128xf32>
    %c0_4 = arith.constant 0 : index
    %c0_5 = arith.constant 0 : index
    %4 = vector.load %arg4[%c0_4, %c0_5] : memref<1x128xf32, #tpu.memory_space<vmem>>, vector<1x128xf32>
    %5 = vector.broadcast %4 : vector<1x128xf32> to vector<16x128xf32>
    %6 = arith.addf %3, %5 : vector<16x128xf32>
    %c0_6 = arith.constant 0 : index
    %c0_7 = arith.constant 0 : index
    %c0_8 = arith.constant 0 : index
    %7 = vector.load %arg5[%c0_6, %c0_7, %c0_8] : memref<1x16x128xf32, #tpu.memory_space<vmem>>, vector<1x16x128xf32>
    %8 = vector.shape_cast %7 : vector<1x16x128xf32> to vector<16x128xf32>
    %9 = vector.shape_cast %6 : vector<16x128xf32> to vector<1x16x128xf32>
    tpu.vector_store %arg5[%c0_6, %c0_7, %c0_8], %9 {strides = array<i32>} : memref<1x16x128xf32, #tpu.memory_space<vmem>>, vector<1x16x128xf32>,
    %10 = vector.shape_cast %6 : vector<16x128xf32> to vector<2x8x128xf32>
    %c0_i32 = arith.constant 0 : i32
    %11 = arith.cmpi eq, %arg1, %c0_i32 : i32
    %12 = arith.extui %11 : i1 to i32
    %c0_i32_9 = arith.constant 0 : i32
    %13 = arith.cmpi ne, %12, %c0_i32_9 : i32
    scf.if %13 {
      %cst_24 = arith.constant 0.000000e+00 : f32
      %29 = vector.broadcast %cst_24 : f32 to vector<1x8x128xf32>
      %c0_25 = arith.constant 0 : index
      %c0_26 = arith.constant 0 : index
      %c0_27 = arith.constant 0 : index
      %30 = vector.load %arg6[%c0_25, %c0_26, %c0_27] : memref<1x8x128xf32, #tpu.memory_space<vmem>>, vector<1x8x128xf32>
      tpu.vector_store %arg6[%c0_25, %c0_26, %c0_27], %29 {strides = array<i32>} : memref<1x8x128xf32, #tpu.memory_space<vmem>>, vector<1x8x128xf32>,
      %cst_28 = arith.constant 0.000000e+00 : f32
      %31 = vector.broadcast %cst_28 : f32 to vector<1x8x128xf32>
      %c0_29 = arith.constant 0 : index
      %c0_30 = arith.constant 0 : index
      %c0_31 = arith.constant 0 : index
      %32 = vector.load %arg7[%c0_29, %c0_30, %c0_31] : memref<1x8x128xf32, #tpu.memory_space<vmem>>, vector<1x8x128xf32>
      tpu.vector_store %arg7[%c0_29, %c0_30, %c0_31], %31 {strides = array<i32>} : memref<1x8x128xf32, #tpu.memory_space<vmem>>, vector<1x8x128xf32>,
    } else {
    }
    %c0_10 = arith.constant 0 : index
    %c0_11 = arith.constant 0 : index
    %c0_12 = arith.constant 0 : index
    %14 = vector.load %arg6[%c0_10, %c0_11, %c0_12] : memref<1x8x128xf32, #tpu.memory_space<vmem>>, vector<1x8x128xf32>
    %15 = vector.shape_cast %14 : vector<1x8x128xf32> to vector<8x128xf32>
    %cst_13 = arith.constant dense<0.000000e+00> : vector<8x128xf32>
    %16 = vector.multi_reduction <add>, %10, %cst_13 [0] : vector<2x8x128xf32> to vector<8x128xf32>
    %17 = arith.addf %15, %16 : vector<8x128xf32>
    %c0_14 = arith.constant 0 : index
    %c0_15 = arith.constant 0 : index
    %c0_16 = arith.constant 0 : index
    %18 = vector.load %arg6[%c0_14, %c0_15, %c0_16] : memref<1x8x128xf32, #tpu.memory_space<vmem>>, vector<1x8x128xf32>
    %19 = vector.shape_cast %18 : vector<1x8x128xf32> to vector<8x128xf32>
    %20 = vector.shape_cast %17 : vector<8x128xf32> to vector<1x8x128xf32>
    tpu.vector_store %arg6[%c0_14, %c0_15, %c0_16], %20 {strides = array<i32>} : memref<1x8x128xf32, #tpu.memory_space<vmem>>, vector<1x8x128xf32>,
    %c0_17 = arith.constant 0 : index
    %c0_18 = arith.constant 0 : index
    %c0_19 = arith.constant 0 : index
    %21 = vector.load %arg7[%c0_17, %c0_18, %c0_19] : memref<1x8x128xf32, #tpu.memory_space<vmem>>, vector<1x8x128xf32>
    %22 = vector.shape_cast %21 : vector<1x8x128xf32> to vector<8x128xf32>
    %23 = arith.mulf %10, %10 : vector<2x8x128xf32>
    %cst_20 = arith.constant dense<0.000000e+00> : vector<8x128xf32>
    %24 = vector.multi_reduction <add>, %23, %cst_20 [0] : vector<2x8x128xf32> to vector<8x128xf32>
    %25 = arith.addf %22, %24 : vector<8x128xf32>
    %c0_21 = arith.constant 0 : index
    %c0_22 = arith.constant 0 : index
    %c0_23 = arith.constant 0 : index
    %26 = vector.load %arg7[%c0_21, %c0_22, %c0_23] : memref<1x8x128xf32, #tpu.memory_space<vmem>>, vector<1x8x128xf32>
    %27 = vector.shape_cast %26 : vector<1x8x128xf32> to vector<8x128xf32>
    %28 = vector.shape_cast %25 : vector<8x128xf32> to vector<1x8x128xf32>
    tpu.vector_store %arg7[%c0_21, %c0_22, %c0_23], %28 {strides = array<i32>} : memref<1x8x128xf32, #tpu.memory_space<vmem>>, vector<1x8x128xf32>,
    return
  }
  func.func @transform_0(%arg0: i32, %arg1: i32) -> (i32, i32, i32) {
    %c0_i32 = arith.constant 0 : i32
    %c0_i32_0 = arith.constant 0 : i32
    return %arg0, %arg1, %c0_i32 : i32, i32, i32
  }
  func.func @transform_1(%arg0: i32, %arg1: i32) -> (i32, i32) {
    %c0_i32 = arith.constant 0 : i32
    %c0_i32_0 = arith.constant 0 : i32
    %c0_i32_1 = arith.constant 0 : i32
    return %c0_i32, %c0_i32_0 : i32, i32
  }
  func.func @transform_2(%arg0: i32, %arg1: i32) -> (i32, i32) {
    %c0_i32 = arith.constant 0 : i32
    %c0_i32_0 = arith.constant 0 : i32
    %c0_i32_1 = arith.constant 0 : i32
    return %c0_i32, %c0_i32_0 : i32, i32
  }
  func.func @transform_3(%arg0: i32, %arg1: i32) -> (i32, i32, i32) {
    %c0_i32 = arith.constant 0 : i32
    %c0_i32_0 = arith.constant 0 : i32
    return %arg0, %arg1, %c0_i32 : i32, i32, i32
  }
  func.func @transform_4(%arg0: i32, %arg1: i32) -> (i32, i32, i32) {
    %c0_i32 = arith.constant 0 : i32
    %c0_i32_0 = arith.constant 0 : i32
    %c0_i32_1 = arith.constant 0 : i32
    return %arg0, %c0_i32, %c0_i32_0 : i32, i32, i32
  }
  func.func @transform_5(%arg0: i32, %arg1: i32) -> (i32, i32, i32) {
    %c0_i32 = arith.constant 0 : i32
    %c0_i32_0 = arith.constant 0 : i32
    %c0_i32_1 = arith.constant 0 : i32
    return %arg0, %c0_i32, %c0_i32_0 : i32, i32, i32
  }
}

module attributes {stable_mosaic.version = 11 : i64} {
  func.func @_conv_stats_kernel(%arg0: i32, %arg1: i32, %arg2: memref<1x64x1152xbf16, #tpu.memory_space<vmem>>, %arg3: memref<1152x128xbf16, #tpu.memory_space<vmem>>, %arg4: memref<1x128xf32, #tpu.memory_space<vmem>>, %arg5: memref<1x64x128xf32, #tpu.memory_space<vmem>>, %arg6: memref<1x8x128xf32, #tpu.memory_space<vmem>>, %arg7: memref<1x8x128xf32, #tpu.memory_space<vmem>>) attributes {dimension_semantics = [#tpu.dimension_semantics<parallel>, #tpu.dimension_semantics<arbitrary>], iteration_bounds = array<i64: 2, 1>, scalar_prefetch = 0 : i64, scratch_operands = 0 : i64, tpu.core_type = #tpu.core_type<tc>, window_params = [{transform_indices = @transform_0, window_bounds = array<i64: 1, 64, 1152>}, {pipeline_mode = #tpu.pipeline_mode<synchronous>, transform_indices = @transform_1, window_bounds = array<i64: 1152, 128>}, {pipeline_mode = #tpu.pipeline_mode<synchronous>, transform_indices = @transform_2, window_bounds = array<i64: 1, 128>}, {transform_indices = @transform_3, window_bounds = array<i64: 1, 64, 128>}, {transform_indices = @transform_4, window_bounds = array<i64: 1, 8, 128>}, {transform_indices = @transform_5, window_bounds = array<i64: 1, 8, 128>}]} {
    %c0 = arith.constant 0 : index
    %c0_0 = arith.constant 0 : index
    %c0_1 = arith.constant 0 : index
    %0 = vector.load %arg2[%c0, %c0_0, %c0_1] : memref<1x64x1152xbf16, #tpu.memory_space<vmem>>, vector<1x64x1152xbf16>
    %1 = vector.shape_cast %0 : vector<1x64x1152xbf16> to vector<64x1152xbf16>
    %c0_2 = arith.constant 0 : index
    %c0_3 = arith.constant 0 : index
    %2 = vector.load %arg3[%c0_2, %c0_3] : memref<1152x128xbf16, #tpu.memory_space<vmem>>, vector<1152x128xbf16>
    %cst = arith.constant dense<0.000000e+00> : vector<64x128xf32>
    %3 = tpu.matmul %1, %2, %cst {dimension_numbers = #tpu.dot_dimension_numbers<[1], [0], [0], [1], [0, 0, 1, 1], [], []>} : vector<64x1152xbf16>, vector<1152x128xbf16>, vector<64x128xf32> -> vector<64x128xf32>
    %c0_4 = arith.constant 0 : index
    %c0_5 = arith.constant 0 : index
    %4 = vector.load %arg4[%c0_4, %c0_5] : memref<1x128xf32, #tpu.memory_space<vmem>>, vector<1x128xf32>
    %5 = vector.broadcast %4 : vector<1x128xf32> to vector<64x128xf32>
    %6 = arith.addf %3, %5 : vector<64x128xf32>
    %c0_6 = arith.constant 0 : index
    %c0_7 = arith.constant 0 : index
    %c0_8 = arith.constant 0 : index
    %7 = vector.load %arg5[%c0_6, %c0_7, %c0_8] : memref<1x64x128xf32, #tpu.memory_space<vmem>>, vector<1x64x128xf32>
    %8 = vector.shape_cast %7 : vector<1x64x128xf32> to vector<64x128xf32>
    %9 = vector.shape_cast %6 : vector<64x128xf32> to vector<1x64x128xf32>
    tpu.vector_store %arg5[%c0_6, %c0_7, %c0_8], %9 {strides = array<i32>} : memref<1x64x128xf32, #tpu.memory_space<vmem>>, vector<1x64x128xf32>,
    %10 = vector.shape_cast %6 : vector<64x128xf32> to vector<8x8x128xf32>
    %c0_i32 = arith.constant 0 : i32
    %11 = arith.cmpi eq, %arg1, %c0_i32 : i32
    %12 = arith.extui %11 : i1 to i32
    %c0_i32_9 = arith.constant 0 : i32
    %13 = arith.cmpi ne, %12, %c0_i32_9 : i32
    scf.if %13 {
      %cst_24 = arith.constant 0.000000e+00 : f32
      %29 = vector.broadcast %cst_24 : f32 to vector<1x8x128xf32>
      %c0_25 = arith.constant 0 : index
      %c0_26 = arith.constant 0 : index
      %c0_27 = arith.constant 0 : index
      %30 = vector.load %arg6[%c0_25, %c0_26, %c0_27] : memref<1x8x128xf32, #tpu.memory_space<vmem>>, vector<1x8x128xf32>
      tpu.vector_store %arg6[%c0_25, %c0_26, %c0_27], %29 {strides = array<i32>} : memref<1x8x128xf32, #tpu.memory_space<vmem>>, vector<1x8x128xf32>,
      %cst_28 = arith.constant 0.000000e+00 : f32
      %31 = vector.broadcast %cst_28 : f32 to vector<1x8x128xf32>
      %c0_29 = arith.constant 0 : index
      %c0_30 = arith.constant 0 : index
      %c0_31 = arith.constant 0 : index
      %32 = vector.load %arg7[%c0_29, %c0_30, %c0_31] : memref<1x8x128xf32, #tpu.memory_space<vmem>>, vector<1x8x128xf32>
      tpu.vector_store %arg7[%c0_29, %c0_30, %c0_31], %31 {strides = array<i32>} : memref<1x8x128xf32, #tpu.memory_space<vmem>>, vector<1x8x128xf32>,
    } else {
    }
    %c0_10 = arith.constant 0 : index
    %c0_11 = arith.constant 0 : index
    %c0_12 = arith.constant 0 : index
    %14 = vector.load %arg6[%c0_10, %c0_11, %c0_12] : memref<1x8x128xf32, #tpu.memory_space<vmem>>, vector<1x8x128xf32>
    %15 = vector.shape_cast %14 : vector<1x8x128xf32> to vector<8x128xf32>
    %cst_13 = arith.constant dense<0.000000e+00> : vector<8x128xf32>
    %16 = vector.multi_reduction <add>, %10, %cst_13 [0] : vector<8x8x128xf32> to vector<8x128xf32>
    %17 = arith.addf %15, %16 : vector<8x128xf32>
    %c0_14 = arith.constant 0 : index
    %c0_15 = arith.constant 0 : index
    %c0_16 = arith.constant 0 : index
    %18 = vector.load %arg6[%c0_14, %c0_15, %c0_16] : memref<1x8x128xf32, #tpu.memory_space<vmem>>, vector<1x8x128xf32>
    %19 = vector.shape_cast %18 : vector<1x8x128xf32> to vector<8x128xf32>
    %20 = vector.shape_cast %17 : vector<8x128xf32> to vector<1x8x128xf32>
    tpu.vector_store %arg6[%c0_14, %c0_15, %c0_16], %20 {strides = array<i32>} : memref<1x8x128xf32, #tpu.memory_space<vmem>>, vector<1x8x128xf32>,
    %c0_17 = arith.constant 0 : index
    %c0_18 = arith.constant 0 : index
    %c0_19 = arith.constant 0 : index
    %21 = vector.load %arg7[%c0_17, %c0_18, %c0_19] : memref<1x8x128xf32, #tpu.memory_space<vmem>>, vector<1x8x128xf32>
    %22 = vector.shape_cast %21 : vector<1x8x128xf32> to vector<8x128xf32>
    %23 = arith.mulf %10, %10 : vector<8x8x128xf32>
    %cst_20 = arith.constant dense<0.000000e+00> : vector<8x128xf32>
    %24 = vector.multi_reduction <add>, %23, %cst_20 [0] : vector<8x8x128xf32> to vector<8x128xf32>
    %25 = arith.addf %22, %24 : vector<8x128xf32>
    %c0_21 = arith.constant 0 : index
    %c0_22 = arith.constant 0 : index
    %c0_23 = arith.constant 0 : index
    %26 = vector.load %arg7[%c0_21, %c0_22, %c0_23] : memref<1x8x128xf32, #tpu.memory_space<vmem>>, vector<1x8x128xf32>
    %27 = vector.shape_cast %26 : vector<1x8x128xf32> to vector<8x128xf32>
    %28 = vector.shape_cast %25 : vector<8x128xf32> to vector<1x8x128xf32>
    tpu.vector_store %arg7[%c0_21, %c0_22, %c0_23], %28 {strides = array<i32>} : memref<1x8x128xf32, #tpu.memory_space<vmem>>, vector<1x8x128xf32>,
    return
  }
  func.func @transform_0(%arg0: i32, %arg1: i32) -> (i32, i32, i32) {
    %c0_i32 = arith.constant 0 : i32
    %c0_i32_0 = arith.constant 0 : i32
    return %arg0, %arg1, %c0_i32 : i32, i32, i32
  }
  func.func @transform_1(%arg0: i32, %arg1: i32) -> (i32, i32) {
    %c0_i32 = arith.constant 0 : i32
    %c0_i32_0 = arith.constant 0 : i32
    %c0_i32_1 = arith.constant 0 : i32
    return %c0_i32, %c0_i32_0 : i32, i32
  }
  func.func @transform_2(%arg0: i32, %arg1: i32) -> (i32, i32) {
    %c0_i32 = arith.constant 0 : i32
    %c0_i32_0 = arith.constant 0 : i32
    %c0_i32_1 = arith.constant 0 : i32
    return %c0_i32, %c0_i32_0 : i32, i32
  }
  func.func @transform_3(%arg0: i32, %arg1: i32) -> (i32, i32, i32) {
    %c0_i32 = arith.constant 0 : i32
    %c0_i32_0 = arith.constant 0 : i32
    return %arg0, %arg1, %c0_i32 : i32, i32, i32
  }
  func.func @transform_4(%arg0: i32, %arg1: i32) -> (i32, i32, i32) {
    %c0_i32 = arith.constant 0 : i32
    %c0_i32_0 = arith.constant 0 : i32
    %c0_i32_1 = arith.constant 0 : i32
    return %arg0, %c0_i32, %c0_i32_0 : i32, i32, i32
  }
  func.func @transform_5(%arg0: i32, %arg1: i32) -> (i32, i32, i32) {
    %c0_i32 = arith.constant 0 : i32
    %c0_i32_0 = arith.constant 0 : i32
    %c0_i32_1 = arith.constant 0 : i32
    return %arg0, %c0_i32, %c0_i32_0 : i32, i32, i32
  }
}

module attributes {stable_mosaic.version = 11 : i64} {
  func.func @_conv_stats_kernel(%arg0: i32, %arg1: i32, %arg2: memref<1x256x640xbf16, #tpu.memory_space<vmem>>, %arg3: memref<640x128xbf16, #tpu.memory_space<vmem>>, %arg4: memref<1x128xf32, #tpu.memory_space<vmem>>, %arg5: memref<1x256x128xf32, #tpu.memory_space<vmem>>, %arg6: memref<1x8x128xf32, #tpu.memory_space<vmem>>, %arg7: memref<1x8x128xf32, #tpu.memory_space<vmem>>) attributes {dimension_semantics = [#tpu.dimension_semantics<parallel>, #tpu.dimension_semantics<arbitrary>], iteration_bounds = array<i64: 2, 1>, scalar_prefetch = 0 : i64, scratch_operands = 0 : i64, tpu.core_type = #tpu.core_type<tc>, window_params = [{transform_indices = @transform_0, window_bounds = array<i64: 1, 256, 640>}, {pipeline_mode = #tpu.pipeline_mode<synchronous>, transform_indices = @transform_1, window_bounds = array<i64: 640, 128>}, {pipeline_mode = #tpu.pipeline_mode<synchronous>, transform_indices = @transform_2, window_bounds = array<i64: 1, 128>}, {transform_indices = @transform_3, window_bounds = array<i64: 1, 256, 128>}, {transform_indices = @transform_4, window_bounds = array<i64: 1, 8, 128>}, {transform_indices = @transform_5, window_bounds = array<i64: 1, 8, 128>}]} {
    %c0 = arith.constant 0 : index
    %c0_0 = arith.constant 0 : index
    %c0_1 = arith.constant 0 : index
    %0 = vector.load %arg2[%c0, %c0_0, %c0_1] : memref<1x256x640xbf16, #tpu.memory_space<vmem>>, vector<1x256x640xbf16>
    %1 = vector.shape_cast %0 : vector<1x256x640xbf16> to vector<256x640xbf16>
    %c0_2 = arith.constant 0 : index
    %c0_3 = arith.constant 0 : index
    %2 = vector.load %arg3[%c0_2, %c0_3] : memref<640x128xbf16, #tpu.memory_space<vmem>>, vector<640x128xbf16>
    %cst = arith.constant dense<0.000000e+00> : vector<256x128xf32>
    %3 = tpu.matmul %1, %2, %cst {dimension_numbers = #tpu.dot_dimension_numbers<[1], [0], [0], [1], [0, 0, 1, 1], [], []>} : vector<256x640xbf16>, vector<640x128xbf16>, vector<256x128xf32> -> vector<256x128xf32>
    %c0_4 = arith.constant 0 : index
    %c0_5 = arith.constant 0 : index
    %4 = vector.load %arg4[%c0_4, %c0_5] : memref<1x128xf32, #tpu.memory_space<vmem>>, vector<1x128xf32>
    %5 = vector.broadcast %4 : vector<1x128xf32> to vector<256x128xf32>
    %6 = arith.addf %3, %5 : vector<256x128xf32>
    %c0_6 = arith.constant 0 : index
    %c0_7 = arith.constant 0 : index
    %c0_8 = arith.constant 0 : index
    %7 = vector.load %arg5[%c0_6, %c0_7, %c0_8] : memref<1x256x128xf32, #tpu.memory_space<vmem>>, vector<1x256x128xf32>
    %8 = vector.shape_cast %7 : vector<1x256x128xf32> to vector<256x128xf32>
    %9 = vector.shape_cast %6 : vector<256x128xf32> to vector<1x256x128xf32>
    tpu.vector_store %arg5[%c0_6, %c0_7, %c0_8], %9 {strides = array<i32>} : memref<1x256x128xf32, #tpu.memory_space<vmem>>, vector<1x256x128xf32>,
    %10 = vector.shape_cast %6 : vector<256x128xf32> to vector<32x8x128xf32>
    %c0_i32 = arith.constant 0 : i32
    %11 = arith.cmpi eq, %arg1, %c0_i32 : i32
    %12 = arith.extui %11 : i1 to i32
    %c0_i32_9 = arith.constant 0 : i32
    %13 = arith.cmpi ne, %12, %c0_i32_9 : i32
    scf.if %13 {
      %cst_24 = arith.constant 0.000000e+00 : f32
      %29 = vector.broadcast %cst_24 : f32 to vector<1x8x128xf32>
      %c0_25 = arith.constant 0 : index
      %c0_26 = arith.constant 0 : index
      %c0_27 = arith.constant 0 : index
      %30 = vector.load %arg6[%c0_25, %c0_26, %c0_27] : memref<1x8x128xf32, #tpu.memory_space<vmem>>, vector<1x8x128xf32>
      tpu.vector_store %arg6[%c0_25, %c0_26, %c0_27], %29 {strides = array<i32>} : memref<1x8x128xf32, #tpu.memory_space<vmem>>, vector<1x8x128xf32>,
      %cst_28 = arith.constant 0.000000e+00 : f32
      %31 = vector.broadcast %cst_28 : f32 to vector<1x8x128xf32>
      %c0_29 = arith.constant 0 : index
      %c0_30 = arith.constant 0 : index
      %c0_31 = arith.constant 0 : index
      %32 = vector.load %arg7[%c0_29, %c0_30, %c0_31] : memref<1x8x128xf32, #tpu.memory_space<vmem>>, vector<1x8x128xf32>
      tpu.vector_store %arg7[%c0_29, %c0_30, %c0_31], %31 {strides = array<i32>} : memref<1x8x128xf32, #tpu.memory_space<vmem>>, vector<1x8x128xf32>,
    } else {
    }
    %c0_10 = arith.constant 0 : index
    %c0_11 = arith.constant 0 : index
    %c0_12 = arith.constant 0 : index
    %14 = vector.load %arg6[%c0_10, %c0_11, %c0_12] : memref<1x8x128xf32, #tpu.memory_space<vmem>>, vector<1x8x128xf32>
    %15 = vector.shape_cast %14 : vector<1x8x128xf32> to vector<8x128xf32>
    %cst_13 = arith.constant dense<0.000000e+00> : vector<8x128xf32>
    %16 = vector.multi_reduction <add>, %10, %cst_13 [0] : vector<32x8x128xf32> to vector<8x128xf32>
    %17 = arith.addf %15, %16 : vector<8x128xf32>
    %c0_14 = arith.constant 0 : index
    %c0_15 = arith.constant 0 : index
    %c0_16 = arith.constant 0 : index
    %18 = vector.load %arg6[%c0_14, %c0_15, %c0_16] : memref<1x8x128xf32, #tpu.memory_space<vmem>>, vector<1x8x128xf32>
    %19 = vector.shape_cast %18 : vector<1x8x128xf32> to vector<8x128xf32>
    %20 = vector.shape_cast %17 : vector<8x128xf32> to vector<1x8x128xf32>
    tpu.vector_store %arg6[%c0_14, %c0_15, %c0_16], %20 {strides = array<i32>} : memref<1x8x128xf32, #tpu.memory_space<vmem>>, vector<1x8x128xf32>,
    %c0_17 = arith.constant 0 : index
    %c0_18 = arith.constant 0 : index
    %c0_19 = arith.constant 0 : index
    %21 = vector.load %arg7[%c0_17, %c0_18, %c0_19] : memref<1x8x128xf32, #tpu.memory_space<vmem>>, vector<1x8x128xf32>
    %22 = vector.shape_cast %21 : vector<1x8x128xf32> to vector<8x128xf32>
    %23 = arith.mulf %10, %10 : vector<32x8x128xf32>
    %cst_20 = arith.constant dense<0.000000e+00> : vector<8x128xf32>
    %24 = vector.multi_reduction <add>, %23, %cst_20 [0] : vector<32x8x128xf32> to vector<8x128xf32>
    %25 = arith.addf %22, %24 : vector<8x128xf32>
    %c0_21 = arith.constant 0 : index
    %c0_22 = arith.constant 0 : index
    %c0_23 = arith.constant 0 : index
    %26 = vector.load %arg7[%c0_21, %c0_22, %c0_23] : memref<1x8x128xf32, #tpu.memory_space<vmem>>, vector<1x8x128xf32>
    %27 = vector.shape_cast %26 : vector<1x8x128xf32> to vector<8x128xf32>
    %28 = vector.shape_cast %25 : vector<8x128xf32> to vector<1x8x128xf32>
    tpu.vector_store %arg7[%c0_21, %c0_22, %c0_23], %28 {strides = array<i32>} : memref<1x8x128xf32, #tpu.memory_space<vmem>>, vector<1x8x128xf32>,
    return
  }
  func.func @transform_0(%arg0: i32, %arg1: i32) -> (i32, i32, i32) {
    %c0_i32 = arith.constant 0 : i32
    %c0_i32_0 = arith.constant 0 : i32
    return %arg0, %arg1, %c0_i32 : i32, i32, i32
  }
  func.func @transform_1(%arg0: i32, %arg1: i32) -> (i32, i32) {
    %c0_i32 = arith.constant 0 : i32
    %c0_i32_0 = arith.constant 0 : i32
    %c0_i32_1 = arith.constant 0 : i32
    return %c0_i32, %c0_i32_0 : i32, i32
  }
  func.func @transform_2(%arg0: i32, %arg1: i32) -> (i32, i32) {
    %c0_i32 = arith.constant 0 : i32
    %c0_i32_0 = arith.constant 0 : i32
    %c0_i32_1 = arith.constant 0 : i32
    return %c0_i32, %c0_i32_0 : i32, i32
  }
  func.func @transform_3(%arg0: i32, %arg1: i32) -> (i32, i32, i32) {
    %c0_i32 = arith.constant 0 : i32
    %c0_i32_0 = arith.constant 0 : i32
    return %arg0, %arg1, %c0_i32 : i32, i32, i32
  }
  func.func @transform_4(%arg0: i32, %arg1: i32) -> (i32, i32, i32) {
    %c0_i32 = arith.constant 0 : i32
    %c0_i32_0 = arith.constant 0 : i32
    %c0_i32_1 = arith.constant 0 : i32
    return %arg0, %c0_i32, %c0_i32_0 : i32, i32, i32
  }
  func.func @transform_5(%arg0: i32, %arg1: i32) -> (i32, i32, i32) {
    %c0_i32 = arith.constant 0 : i32
    %c0_i32_0 = arith.constant 0 : i32
    %c0_i32_1 = arith.constant 0 : i32
    return %arg0, %c0_i32, %c0_i32_0 : i32, i32, i32
  }
}

module attributes {stable_mosaic.version = 11 : i64} {
  func.func @_conv_bias_kernel(%arg0: i32, %arg1: i32, %arg2: memref<1x256x2688xbf16, #tpu.memory_space<vmem>>, %arg3: memref<2688x128xbf16, #tpu.memory_space<vmem>>, %arg4: memref<1x128xf32, #tpu.memory_space<vmem>>, %arg5: memref<1x256x128xf32, #tpu.memory_space<vmem>>) attributes {dimension_semantics = [#tpu.dimension_semantics<parallel>, #tpu.dimension_semantics<parallel>], iteration_bounds = array<i64: 2, 1>, scalar_prefetch = 0 : i64, scratch_operands = 0 : i64, tpu.core_type = #tpu.core_type<tc>, window_params = [{transform_indices = @transform_0, window_bounds = array<i64: 1, 256, 2688>}, {pipeline_mode = #tpu.pipeline_mode<synchronous>, transform_indices = @transform_1, window_bounds = array<i64: 2688, 128>}, {pipeline_mode = #tpu.pipeline_mode<synchronous>, transform_indices = @transform_2, window_bounds = array<i64: 1, 128>}, {transform_indices = @transform_3, window_bounds = array<i64: 1, 256, 128>}]} {
    %c0 = arith.constant 0 : index
    %c0_0 = arith.constant 0 : index
    %c0_1 = arith.constant 0 : index
    %0 = vector.load %arg2[%c0, %c0_0, %c0_1] : memref<1x256x2688xbf16, #tpu.memory_space<vmem>>, vector<1x256x2688xbf16>
    %1 = vector.shape_cast %0 : vector<1x256x2688xbf16> to vector<256x2688xbf16>
    %c0_2 = arith.constant 0 : index
    %c0_3 = arith.constant 0 : index
    %2 = vector.load %arg3[%c0_2, %c0_3] : memref<2688x128xbf16, #tpu.memory_space<vmem>>, vector<2688x128xbf16>
    %cst = arith.constant dense<0.000000e+00> : vector<256x128xf32>
    %3 = tpu.matmul %1, %2, %cst {dimension_numbers = #tpu.dot_dimension_numbers<[1], [0], [0], [1], [0, 0, 1, 1], [], []>} : vector<256x2688xbf16>, vector<2688x128xbf16>, vector<256x128xf32> -> vector<256x128xf32>
    %c0_4 = arith.constant 0 : index
    %c0_5 = arith.constant 0 : index
    %4 = vector.load %arg4[%c0_4, %c0_5] : memref<1x128xf32, #tpu.memory_space<vmem>>, vector<1x128xf32>
    %5 = vector.broadcast %4 : vector<1x128xf32> to vector<256x128xf32>
    %6 = arith.addf %3, %5 : vector<256x128xf32>
    %c0_6 = arith.constant 0 : index
    %c0_7 = arith.constant 0 : index
    %c0_8 = arith.constant 0 : index
    %7 = vector.load %arg5[%c0_6, %c0_7, %c0_8] : memref<1x256x128xf32, #tpu.memory_space<vmem>>, vector<1x256x128xf32>
    %8 = vector.shape_cast %7 : vector<1x256x128xf32> to vector<256x128xf32>
    %9 = vector.shape_cast %6 : vector<256x128xf32> to vector<1x256x128xf32>
    tpu.vector_store %arg5[%c0_6, %c0_7, %c0_8], %9 {strides = array<i32>} : memref<1x256x128xf32, #tpu.memory_space<vmem>>, vector<1x256x128xf32>,
    return
  }
  func.func @transform_0(%arg0: i32, %arg1: i32) -> (i32, i32, i32) {
    %c0_i32 = arith.constant 0 : i32
    %c0_i32_0 = arith.constant 0 : i32
    return %arg0, %arg1, %c0_i32 : i32, i32, i32
  }
  func.func @transform_1(%arg0: i32, %arg1: i32) -> (i32, i32) {
    %c0_i32 = arith.constant 0 : i32
    %c0_i32_0 = arith.constant 0 : i32
    %c0_i32_1 = arith.constant 0 : i32
    return %c0_i32, %c0_i32_0 : i32, i32
  }
  func.func @transform_2(%arg0: i32, %arg1: i32) -> (i32, i32) {
    %c0_i32 = arith.constant 0 : i32
    %c0_i32_0 = arith.constant 0 : i32
    %c0_i32_1 = arith.constant 0 : i32
    return %c0_i32, %c0_i32_0 : i32, i32
  }
  func.func @transform_3(%arg0: i32, %arg1: i32) -> (i32, i32, i32) {
    %c0_i32 = arith.constant 0 : i32
    %c0_i32_0 = arith.constant 0 : i32
    return %arg0, %arg1, %c0_i32 : i32, i32, i32
  }
}

</mosaic_0001>

<bundles_post_ra>
// kernel: transformer_net.32
= control target key start
LH: loop header
LB: loop body
LE: loop exit
PB: predicated region body
PF: predicated region fallthrough
CT: control target
= control target key end

     0   :  { %s600_s12 = smov 0   ;;  %s602_s13 = smov 0   ;;  %s775_s0 = inlined_call_operand.vmem [shape: f32[2,256,128], index: 0, kind: input, shape index: {}]   ;;  %s776_s1 = inlined_call_operand.vmem [shape: f32[2,1,128], index: 1, kind: input, shape index: {}]   ;;  %s777_s2 = inlined_call_operand.vmem [shape: f32[2,1,128], index: 2, kind: input, shape index: {}]   ;;  %s778_s3 = inlined_call_operand.vmem [shape: f32[2,256,128], index: 3, kind: output, shape index: {}]  }
   0x1   :  { %s604_s14 = smov 0  }
   0x2 LB: > { %s25_s15 = sadd.s32 1, %s574_s13  ;;  %p521_p0 = scmp.ge.s32.totalorder %s578_s14, 1  ;;  %s578_s14 = sphi %s604_s14, %s13_s14   ;;  %s574_s13 = sphi %s602_s13, %s780_s13   ;;  %s570_s12 = sphi %s600_s12, %s779_s12  }
   0x3   : > { %p27_p1 = scmp.ge.s32.totalorder %s25_s15, 2  ;;  %p174_p2 = scmp.lt.s32.totalorder %s578_s14, 3 }
   0x5   : > { %s782_s15 = smov (%p27_p1, %s25_s15), 0  ;;  %p175_p3 = pnand %p521_p0, %p174_p2 }
   0x6   : > { %p213_p4 = scmp.lt.s32.totalorder (!%p175_p3), %s570_s12, 1 }
   0x7   : > { %178 = sbr.rel (%p175_p3) target bundleno = 47 (0x2f), region = 32 }
   0xe   : > { %s784_s12 = smov (!%p213_p4, %s570_s12), 1 }
   0xf   : > { %s530_s16 = sshll.u32 %s784_s12, 8  ;;  %s224_s19 = scalar_lea.vmem %s776_s1, %s784_s12 }
  0x10   : > { %s624_s22 = scalar_lea.vmem %s775_s0, %s530_s16  ;;  %s227_s25 = scalar_lea.vmem %s777_s2, %s784_s12  ;;  %v629_v0 = vld [vmem:[%s224_s19] ss:$0 sm:$0xff] }
  0x11   : > { %v238_v1 = vld [vmem:[%s624_s22] sm:$0xff]  ;;  %v239_v3 = vld [vmem:[%s624_s22 + $0x8] sm:$0xff]  ;;  %v240_v6 = vld [vmem:[%s624_s22 + $0x10] sm:$0xff]  ;;  %s653_s28 = scalar_lea.vmem %s778_s3, %s530_s16 }
  0x12   : > { %v632_v2 = vld [vmem:[%s227_s25] ss:$0 sm:$0xff]  ;;  %v277_v4 = vmul.f32 %v629_v0, %v238_v1  ;;  %v278_v5 = vmul.f32 %v629_v0, %v239_v3  ;;  %v241_v7 = vld [vmem:[%s624_s22 + $0x18] sm:$0xff]  ;;  %v279_v9 = vmul.f32 %v629_v0, %v240_v6  ;;  %v243_v12 = vld [vmem:[%s624_s22 + $0x28] sm:$0xff] }
  0x13   : > { %v242_v8 = vld [vmem:[%s624_s22 + $0x20] sm:$0xff]  ;;  %v280_v10 = vmul.f32 %v629_v0, %v241_v7  ;;  %v244_v13 = vld [vmem:[%s624_s22 + $0x30] sm:$0xff]  ;;  %v245_v14 = vld [vmem:[%s624_s22 + $0x38] sm:$0xff]  ;;  %v282_v17 = vmul.f32 %v629_v0, %v243_v12 }
  0x14   : > { %v281_v11 = vmul.f32 %v629_v0, %v242_v8  ;;  %v316_v15 = vadd.f32 %v632_v2, %v277_v4  ;;  %v317_v16 = vadd.f32 %v632_v2, %v278_v5  ;;  %v283_v18 = vmul.f32 %v629_v0, %v244_v13  ;;  %v246_v23 = vld [vmem:[%s624_s22 + $0x40] sm:$0xff]  ;;  %v247_v24 = vld [vmem:[%s624_s22 + $0x48] sm:$0xff]  ;;  %v248_v29 = vld [vmem:[%s624_s22 + $0x50] sm:$0xff] }
  0x15   : > { %v318_v19 = vadd.f32 %v632_v2, %v279_v9  ;;  %v319_v20 = vadd.f32 %v632_v2, %v280_v10  ;;  %v284_v22 = vmul.f32 %v629_v0, %v245_v14  ;;  %v321_v27 = vadd.f32 %v632_v2, %v282_v17  ;;  %v249_v30 = vld [vmem:[%s624_s22 + $0x58] sm:$0xff]  ;;  %v250_v31 = vld [vmem:[%s624_s22 + $0x60] sm:$0xff]  ;;  %v251_v36 = vld [vmem:[%s624_s22 + $0x68] sm:$0xff] }
  0x16   : > { %v320_v21 = vadd.f32 %v632_v2, %v281_v11  ;;  %v348_v25 = vmax.f32 %v316_v15, 0.0  ;;  %v349_v26 = vmax.f32 %v317_v16, 0.0  ;;  %v322_v28 = vadd.f32 %v632_v2, %v283_v18  ;;  %v252_v37 = vld [vmem:[%s624_s22 + $0x70] sm:$0xff]  ;;  %v253_v42 = vld [vmem:[%s624_s22 + $0x78] sm:$0xff]  ;;  %v254_v55 = vld [vmem:[%s624_s22 + $0x80] sm:$0xff] }
  0x17   : > { %v350_v32 = vmax.f32 %v318_v19, 0.0  ;;  %v351_v33 = vmax.f32 %v319_v20, 0.0  ;;  %v323_v35 = vadd.f32 %v632_v2, %v284_v22  ;;  %v353_v38 = vmax.f32 %v321_v27, 0.0  ;;  %v255_v56 = vld [vmem:[%s624_s22 + $0x88] sm:$0xff]  ;;  %v256_v61 = vld [vmem:[%s624_s22 + $0x90] sm:$0xff]  ;;  %v257_v62 = vld [vmem:[%s624_s22 + $0x98] sm:$0xff] }
  0x18   : > { %v352_v34 = vmax.f32 %v320_v21, 0.0  ;;  %380 = vst [vmem:[%s653_s28] sm:$0xff] %v348_v25  ;;  %381 = vst [vmem:[%s653_s28 + $0x8] sm:$0xff] %v349_v26  ;;  %v354_v39 = vmax.f32 %v322_v28, 0.0  ;;  %v285_v40 = vmul.f32 %v629_v0, %v246_v23  ;;  %v286_v41 = vmul.f32 %v629_v0, %v247_v24  ;;  %v258_v63 = vld [vmem:[%s624_s22 + $0xa0] sm:$0xff]  ;;  %v259_v6 = vld [vmem:[%s624_s22 + $0xa8] sm:$0xff] }
  0x19   : > { %382 = vst [vmem:[%s653_s28 + $0x10] sm:$0xff] %v350_v32  ;;  %383 = vst [vmem:[%s653_s28 + $0x18] sm:$0xff] %v351_v33  ;;  %v355_v43 = vmax.f32 %v323_v35, 0.0  ;;  %v287_v44 = vmul.f32 %v629_v0, %v248_v29  ;;  %v288_v45 = vmul.f32 %v629_v0, %v249_v30  ;;  %v289_v46 = vmul.f32 %v629_v0, %v250_v31  ;;  %v260_v7 = vld [vmem:[%s624_s22 + $0xb0] sm:$0xff]  ;;  %v261_v12 = vld [vmem:[%s624_s22 + $0xb8] sm:$0xff] }
  0x1a   : > { %384 = vst [vmem:[%s653_s28 + $0x20] sm:$0xff] %v352_v34  ;;  %385 = vst [vmem:[%s653_s28 + $0x28] sm:$0xff] %v353_v38  ;;  %v324_v47 = vadd.f32 %v632_v2, %v285_v40  ;;  %v325_v48 = vadd.f32 %v632_v2, %v286_v41  ;;  %v290_v49 = vmul.f32 %v629_v0, %v251_v36  ;;  %v262_v25 = vld [vmem:[%s624_s22 + $0xc0] sm:$0xff]  ;;  %v263_v26 = vld [vmem:[%s624_s22 + $0xc8] sm:$0xff] }
  0x1b   : > { %386 = vst [vmem:[%s653_s28 + $0x30] sm:$0xff] %v354_v39  ;;  %v291_v50 = vmul.f32 %v629_v0, %v252_v37  ;;  %387 = vst [vmem:[%s653_s28 + $0x38] sm:$0xff] %v355_v43  ;;  %v326_v51 = vadd.f32 %v632_v2, %v287_v44  ;;  %v327_v52 = vadd.f32 %v632_v2, %v288_v45  ;;  %v264_v31 = vld [vmem:[%s624_s22 + $0xd0] sm:$0xff]  ;;  %v265_v32 = vld [vmem:[%s624_s22 + $0xd8] sm:$0xff] }
  0x1c   : > { %v328_v53 = vadd.f32 %v632_v2, %v289_v46  ;;  %v292_v54 = vmul.f32 %v629_v0, %v253_v42  ;;  %v356_v57 = vmax.f32 %v324_v47, 0.0  ;;  %v357_v58 = vmax.f32 %v325_v48, 0.0  ;;  %v266_v33 = vld [vmem:[%s624_s22 + $0xe0] sm:$0xff]  ;;  %v267_v38 = vld [vmem:[%s624_s22 + $0xe8] sm:$0xff]  ;;  %v268_v39 = vld [vmem:[%s624_s22 + $0xf0] sm:$0xff] }
  0x1d   : > { %v329_v59 = vadd.f32 %v632_v2, %v290_v49  ;;  %v330_v60 = vadd.f32 %v632_v2, %v291_v50  ;;  %v358_v1 = vmax.f32 %v326_v51, 0.0  ;;  %v359_v3 = vmax.f32 %v327_v52, 0.0  ;;  %v269_v44 = vld [vmem:[%s624_s22 + $0xf8] sm:$0xff] }
  0x1e   : > { %v360_v4 = vmax.f32 %v328_v53, 0.0  ;;  %v331_v5 = vadd.f32 %v632_v2, %v292_v54  ;;  %388 = vst [vmem:[%s653_s28 + $0x40] sm:$0xff] %v356_v57  ;;  %389 = vst [vmem:[%s653_s28 + $0x48] sm:$0xff] %v357_v58  ;;  %v293_v10 = vmul.f32 %v629_v0, %v254_v55  ;;  %v294_v11 = vmul.f32 %v629_v0, %v255_v56 }
  0x1f   : > { %v361_v8 = vmax.f32 %v329_v59, 0.0  ;;  %v362_v9 = vmax.f32 %v330_v60, 0.0  ;;  %390 = vst [vmem:[%s653_s28 + $0x50] sm:$0xff] %v358_v1  ;;  %391 = vst [vmem:[%s653_s28 + $0x58] sm:$0xff] %v359_v3  ;;  %v295_v14 = vmul.f32 %v629_v0, %v256_v61  ;;  %v296_v15 = vmul.f32 %v629_v0, %v257_v62 }
  0x20   : > { %392 = vst [vmem:[%s653_s28 + $0x60] sm:$0xff] %v360_v4  ;;  %v363_v13 = vmax.f32 %v331_v5, 0.0  ;;  %v297_v16 = vmul.f32 %v629_v0, %v258_v63  ;;  %v332_v17 = vadd.f32 %v632_v2, %v293_v10  ;;  %v333_v18 = vadd.f32 %v632_v2, %v294_v11 }
  0x21   : > { %393 = vst [vmem:[%s653_s28 + $0x68] sm:$0xff] %v361_v8  ;;  %394 = vst [vmem:[%s653_s28 + $0x70] sm:$0xff] %v362_v9  ;;  %v298_v19 = vmul.f32 %v629_v0, %v259_v6  ;;  %v299_v20 = vmul.f32 %v629_v0, %v260_v7  ;;  %v334_v21 = vadd.f32 %v632_v2, %v295_v14 }
  0x22   : > { %395 = vst [vmem:[%s653_s28 + $0x78] sm:$0xff] %v363_v13  ;;  %v335_v22 = vadd.f32 %v632_v2, %v296_v15  ;;  %v336_v23 = vadd.f32 %v632_v2, %v297_v16  ;;  %v300_v24 = vmul.f32 %v629_v0, %v261_v12  ;;  %v364_v27 = vmax.f32 %v332_v17, 0.0 }
  0x23   : > { %v365_v28 = vmax.f32 %v333_v18, 0.0  ;;  %v337_v29 = vadd.f32 %v632_v2, %v298_v19  ;;  %v338_v30 = vadd.f32 %v632_v2, %v299_v20  ;;  %v366_v34 = vmax.f32 %v334_v21, 0.0 }
  0x24   : > { %v367_v35 = vmax.f32 %v335_v22, 0.0  ;;  %v368_v36 = vmax.f32 %v336_v23, 0.0  ;;  %v339_v37 = vadd.f32 %v632_v2, %v300_v24  ;;  %396 = vst [vmem:[%s653_s28 + $0x80] sm:$0xff] %v364_v27  ;;  %v301_v42 = vmul.f32 %v629_v0, %v262_v25 }
  0x25   : > { %397 = vst [vmem:[%s653_s28 + $0x88] sm:$0xff] %v365_v28  ;;  %v369_v40 = vmax.f32 %v337_v29, 0.0  ;;  %v370_v41 = vmax.f32 %v338_v30, 0.0  ;;  %v302_v43 = vmul.f32 %v629_v0, %v263_v26  ;;  %398 = vst [vmem:[%s653_s28 + $0x90] sm:$0xff] %v366_v34  ;;  %v303_v46 = vmul.f32 %v629_v0, %v264_v31 }
  0x26   : > { %399 = vst [vmem:[%s653_s28 + $0x98] sm:$0xff] %v367_v35  ;;  %400 = vst [vmem:[%s653_s28 + $0xa0] sm:$0xff] %v368_v36  ;;  %v371_v45 = vmax.f32 %v339_v37, 0.0  ;;  %v304_v47 = vmul.f32 %v629_v0, %v265_v32  ;;  %v305_v48 = vmul.f32 %v629_v0, %v266_v33  ;;  %v340_v49 = vadd.f32 %v632_v2, %v301_v42 }
  0x27   : > { %401 = vst [vmem:[%s653_s28 + $0xa8] sm:$0xff] %v369_v40  ;;  %402 = vst [vmem:[%s653_s28 + $0xb0] sm:$0xff] %v370_v41  ;;  %v341_v50 = vadd.f32 %v632_v2, %v302_v43  ;;  %v306_v51 = vmul.f32 %v629_v0, %v267_v38  ;;  %v307_v52 = vmul.f32 %v629_v0, %v268_v39 }
  0x28   : > { %403 = vst [vmem:[%s653_s28 + $0xb8] sm:$0xff] %v371_v45  ;;  %v342_v53 = vadd.f32 %v632_v2, %v303_v46  ;;  %v343_v54 = vadd.f32 %v632_v2, %v304_v47  ;;  %v344_v55 = vadd.f32 %v632_v2, %v305_v48  ;;  %v308_v56 = vmul.f32 %v629_v0, %v269_v44 }
  0x29   : > { %v372_v57 = vmax.f32 %v340_v49, 0.0  ;;  %v373_v58 = vmax.f32 %v341_v50, 0.0  ;;  %v345_v59 = vadd.f32 %v632_v2, %v306_v51  ;;  %v346_v60 = vadd.f32 %v632_v2, %v307_v52 }
  0x2a   : > { %v374_v61 = vmax.f32 %v342_v53, 0.0  ;;  %v375_v62 = vmax.f32 %v343_v54, 0.0  ;;  %v376_v63 = vmax.f32 %v344_v55, 0.0  ;;  %v347_v1 = vadd.f32 %v632_v2, %v308_v56 }
  0x2b   : > { %404 = vst [vmem:[%s653_s28 + $0xc0] sm:$0xff] %v372_v57  ;;  %405 = vst [vmem:[%s653_s28 + $0xc8] sm:$0xff] %v373_v58  ;;  %v377_v3 = vmax.f32 %v345_v59, 0.0  ;;  %v378_v4 = vmax.f32 %v346_v60, 0.0 }
  0x2c   : > { %406 = vst [vmem:[%s653_s28 + $0xd0] sm:$0xff] %v374_v61  ;;  %407 = vst [vmem:[%s653_s28 + $0xd8] sm:$0xff] %v375_v62  ;;  %v379_v0 = vmax.f32 %v347_v1, 0.0 }
  0x2d   : > { %408 = vst [vmem:[%s653_s28 + $0xe0] sm:$0xff] %v376_v63  ;;  %409 = vst [vmem:[%s653_s28 + $0xe8] sm:$0xff] %v377_v3 }
  0x2e   : > { %410 = vst [vmem:[%s653_s28 + $0xf0] sm:$0xff] %v378_v4  ;;  %411 = vst [vmem:[%s653_s28 + $0xf8] sm:$0xff] %v379_v0 }
  0x2f PF: > { %s13_s14 = sadd.s32 1, %s578_s14   ;;  %s779_s12 = smov %s574_s13 }
  0x30   : > { %p10_p5 = scmp.ge.s32.totalorder %s13_s14, 4   ;;  %s780_s13 = smov %s782_s15 }
  0x32   :  { %12 = sbr.rel (!%p10_p5) target bundleno = 2 (0x2), region = 68 }

// kernel: transformer_net.31
= control target key start
LH: loop header
LB: loop body
LE: loop exit
PB: predicated region body
PF: predicated region fallthrough
CT: control target
= control target key end

     0   :  { %s1402_s18 = smov 0   ;;  %s1404_s19 = smov 0   ;;  %s1686_s0 = inlined_call_operand.vmem [shape: bf16[2,256,256], index: 0, kind: input, shape index: {}]   ;;  %s1687_s1 = inlined_call_operand.vmem [shape: bf16[256,128], index: 1, kind: input, shape index: {}]   ;;  %s1688_s2 = inlined_call_operand.vmem [shape: f32[1,128], index: 2, kind: input, shape index: {}]   ;;  %s1689_s3 = inlined_call_operand.vmem [shape: f32[2,256,128], index: 3, kind: output, shape index: {0}]   ;;  %s1690_s4 = inlined_call_operand.vmem [shape: f32[2,8,128], index: 4, kind: output, shape index: {1}]   ;;  %s1691_s5 = inlined_call_operand.vmem [shape: f32[2,8,128], index: 5, kind: output, shape index: {2}]  }
   0x1   :  { %s1406_s20 = smov 0  }
   0x2 LB: > { %s28_s21 = sadd.s32 1, %s1366_s19  ;;  %p1071_p0 = scmp.ge.s32.totalorder %s1370_s20, 1  ;;  %s1370_s20 = sphi %s1406_s20, %s16_s20   ;;  %s1366_s19 = sphi %s1404_s19, %s1693_s19   ;;  %s1362_s18 = sphi %s1402_s18, %s1692_s18  }
   0x3   : > { %p30_p1 = scmp.ge.s32.totalorder %s28_s21, 2  ;;  %p214_p2 = scmp.lt.s32.totalorder %s1370_s20, 3 }
   0x5   : > { %s1695_s21 = smov (%p30_p1, %s28_s21), 0  ;;  %p215_p3 = pnand %p1071_p0, %p214_p2 }
   0x6   : > { %v1284_v0 = vld [vmem:[%s1687_s1 + $0x40] sm:$0xff] (!%p215_p3)   ;;  %v1286_v2 = vld [vmem:[%s1687_s1 + $0x48] sm:$0xff] (!%p215_p3)   ;;  %p260_p4 = scmp.lt.s32.totalorder (!%p215_p3), %s1362_s18, 1  ;;  %v1288_v4 = vld [vmem:[%s1687_s1 + $0x50] sm:$0xff] (!%p215_p3)  }
   0x7   : > { %218 = sbr.rel (%p215_p3) target bundleno = 351 (0x15f), region = 32  ;;  %v1285_v1 = vld [vmem:[%s1687_s1] sm:$0xff] (!%p215_p3)   ;;  %1131 = vmatprep.subr.bf16.mxu0 (!%p215_p3), %v1284_v0  ;;  %1243 = vmatprep.subr.bf16.mxu1 (!%p215_p3), %v1284_v0  ;;  %v1287_v3 = vld [vmem:[%s1687_s1 + $0x8] sm:$0xff] (!%p215_p3)   ;;  %v1289_v5 = vld [vmem:[%s1687_s1 + $0x10] sm:$0xff] (!%p215_p3)  }
   0x8   : > { %1132 = vmatpush3.bf16.msra.mxu0 (!%p215_p3), %v1285_v1  ;;  %1251 = vmatpush3.bf16.msra.mxu1 (!%p215_p3), %v1285_v1  ;;  %v1290_v6 = vld [vmem:[%s1687_s1 + $0x58] sm:$0xff] (!%p215_p3)   ;;  %v1292_v8 = vld [vmem:[%s1687_s1 + $0x60] sm:$0xff] (!%p215_p3)   ;;  %v1294_v10 = vld [vmem:[%s1687_s1 + $0x68] sm:$0xff] (!%p215_p3)  }
   0x9   : > { %1133 = vmatprep.subr.bf16.mxu0 (!%p215_p3), %v1286_v2  ;;  %1244 = vmatprep.subr.bf16.mxu1 (!%p215_p3), %v1286_v2  ;;  %v1291_v7 = vld [vmem:[%s1687_s1 + $0x18] sm:$0xff] (!%p215_p3)   ;;  %v1293_v9 = vld [vmem:[%s1687_s1 + $0x20] sm:$0xff] (!%p215_p3)   ;;  %v1295_v12 = vld [vmem:[%s1687_s1 + $0x28] sm:$0xff] (!%p215_p3)  }
   0xa   : > { %v1296_v13 = vld [vmem:[%s1687_s1 + $0x70] sm:$0xff] (!%p215_p3)   ;;  %v1298_v16 = vld [vmem:[%s1687_s1 + $0x78] sm:$0xff] (!%p215_p3)   ;;  %v1513_v49 = vld [vmem:[%s1688_s2] ss:$0 sm:$0xff] (!%p215_p3) }
   0xb   : > { %v1297_v15 = vld [vmem:[%s1687_s1 + $0x30] sm:$0xff] (!%p215_p3)   ;;  %v1299_v17 = vld [vmem:[%s1687_s1 + $0x38] sm:$0xff] (!%p215_p3)  }
   0xc   : > { %1134 = vmatpush3.bf16.msra.mxu0 (!%p215_p3), %v1287_v3  ;;  %1252 = vmatpush3.bf16.msra.mxu1 (!%p215_p3), %v1287_v3 }
   0xd   : > { %1135 = vmatprep.subr.bf16.mxu0 (!%p215_p3), %v1288_v4  ;;  %1245 = vmatprep.subr.bf16.mxu1 (!%p215_p3), %v1288_v4 }
   0xe   : > { %s1697_s18 = smov (!%p260_p4, %s1362_s18), 1 }
   0xf   : > { %s1129_s13 = sshll.u32 %s1697_s18, 8 }
  0x10   : > { %1136 = vmatpush3.bf16.msra.mxu0 %v1289_v5  ;;  %1253 = vmatpush3.bf16.msra.mxu1 %v1289_v5  ;;  %s1455_s22 = scalar_lea.vmem %s1686_s0, %s1129_s13  ;;  %s1520_s17 = scalar_lea.vmem %s1689_s3, %s1129_s13 }
  0x11   : > { %1137 = vmatprep.subr.bf16.mxu0 %v1290_v6  ;;  %1246 = vmatprep.subr.bf16.mxu1 %v1290_v6  ;;  %v1302_v11 = vld [vmem:[%s1455_s22 + $0x4] ss:$8 sps:$4 sm:$0xff]   ;;  %v1300_v18 = vld [vmem:[%s1455_s22] ss:$8 sps:$4 sm:$0xff]   ;;  %v1303_v19 = vld [vmem:[%s1455_s22 + $0x14] ss:$8 sps:$4 sm:$0xff]  }
  0x12   : > { %648 = vmatprep.mubr.bf16.mxu0 %v1302_v11  ;;  %v1314_v14 = vld [vmem:[%s1455_s22 + $0x84] ss:$8 sps:$4 sm:$0xff]   ;;  %v1312_v20 = vld [vmem:[%s1455_s22 + $0x80] ss:$8 sps:$4 sm:$0xff]   ;;  %v1318_v21 = vld [vmem:[%s1455_s22 + $0x94] ss:$8 sps:$4 sm:$0xff]  }
  0x13   : > { %712 = vmatprep.mubr.bf16.mxu1 %v1314_v14  ;;  %v1305_v22 = vld [vmem:[%s1455_s22 + $0x10] ss:$8 sps:$4 sm:$0xff]   ;;  %v1306_v23 = vld [vmem:[%s1455_s22 + $0x24] ss:$8 sps:$4 sm:$0xff]   ;;  %v1308_v26 = vld [vmem:[%s1455_s22 + $0x20] ss:$8 sps:$4 sm:$0xff]  }
  0x14   : > { %1138 = vmatpush3.bf16.msra.mxu0 %v1291_v7  ;;  %1254 = vmatpush3.bf16.msra.mxu1 %v1291_v7  ;;  %v1320_v24 = vld [vmem:[%s1455_s22 + $0x90] ss:$8 sps:$4 sm:$0xff]   ;;  %v1324_v25 = vld [vmem:[%s1455_s22 + $0xa4] ss:$8 sps:$4 sm:$0xff]   ;;  %v1309_v27 = vld [vmem:[%s1455_s22 + $0x34] ss:$8 sps:$4 sm:$0xff]  }
  0x15   : > { %1139 = vmatprep.subr.bf16.mxu0 %v1292_v8  ;;  %1247 = vmatprep.subr.bf16.mxu1 %v1292_v8  ;;  %v1326_v28 = vld [vmem:[%s1455_s22 + $0xa0] ss:$8 sps:$4 sm:$0xff]   ;;  %v1330_v29 = vld [vmem:[%s1455_s22 + $0xb4] ss:$8 sps:$4 sm:$0xff]   ;;  %v1311_v30 = vld [vmem:[%s1455_s22 + $0x30] ss:$8 sps:$4 sm:$0xff]  }
  0x16   : > { %v1315_v31 = vld [vmem:[%s1455_s22 + $0x44] ss:$8 sps:$4 sm:$0xff]   ;;  %v1332_v32 = vld [vmem:[%s1455_s22 + $0xb0] ss:$8 sps:$4 sm:$0xff]   ;;  %v1317_v34 = vld [vmem:[%s1455_s22 + $0x40] ss:$8 sps:$4 sm:$0xff]  }
  0x17   : > { %v1336_v33 = vld [vmem:[%s1455_s22 + $0xc4] ss:$8 sps:$4 sm:$0xff]   ;;  %v1321_v35 = vld [vmem:[%s1455_s22 + $0x54] ss:$8 sps:$4 sm:$0xff]   ;;  %v1338_v36 = vld [vmem:[%s1455_s22 + $0xc0] ss:$8 sps:$4 sm:$0xff]  }
  0x18   : > { %1140 = vmatpush3.bf16.msra.mxu0 %v1293_v9  ;;  %1255 = vmatpush3.bf16.msra.mxu1 %v1293_v9  ;;  %v1339_v37 = vld [vmem:[%s1455_s22 + $0xd4] ss:$8 sps:$4 sm:$0xff]   ;;  %v1323_v38 = vld [vmem:[%s1455_s22 + $0x50] ss:$8 sps:$4 sm:$0xff]   ;;  %v1327_v39 = vld [vmem:[%s1455_s22 + $0x64] ss:$8 sps:$4 sm:$0xff]  }
  0x19   : > { %1141 = vmatprep.subr.bf16.mxu0 %v1294_v10  ;;  %1248 = vmatprep.subr.bf16.mxu1 %v1294_v10  ;;  %v1341_v40 = vld [vmem:[%s1455_s22 + $0xd0] ss:$8 sps:$4 sm:$0xff]   ;;  %v1342_v41 = vld [vmem:[%s1455_s22 + $0xe4] ss:$8 sps:$4 sm:$0xff]   ;;  %v1329_v42 = vld [vmem:[%s1455_s22 + $0x60] ss:$8 sps:$4 sm:$0xff]  }
  0x1a   : > { %v1333_v43 = vld [vmem:[%s1455_s22 + $0x74] ss:$8 sps:$4 sm:$0xff]   ;;  %v1344_v44 = vld [vmem:[%s1455_s22 + $0xe0] ss:$8 sps:$4 sm:$0xff]   ;;  %v1335_v46 = vld [vmem:[%s1455_s22 + $0x70] ss:$8 sps:$4 sm:$0xff]  }
  0x1b   : > { %v1345_v45 = vld [vmem:[%s1455_s22 + $0xf4] ss:$8 sps:$4 sm:$0xff]   ;;  %v1347_v47 = vld [vmem:[%s1455_s22 + $0xf0] ss:$8 sps:$4 sm:$0xff]   ;;  %s1076_s13 = sshll.u32 %s1697_s18, 3 }
  0x1c   : > { %1142 = vmatpush3.bf16.msra.mxu0 %v1295_v12  ;;  %1256 = vmatpush3.bf16.msra.mxu1 %v1295_v12  ;;  %s283_s24 = scalar_lea.vmem %s1690_s4, %s1076_s13  ;;  %s287_s27 = scalar_lea.vmem %s1691_s5, %s1076_s13 }
  0x1d   : > { %1143 = vmatprep.subr.bf16.mxu0 %v1296_v13  ;;  %1249 = vmatprep.subr.bf16.mxu1 %v1296_v13 }
  0x20   : > { %1144 = vmatpush3.bf16.msra.mxu0 %v1297_v15  ;;  %1257 = vmatpush3.bf16.msra.mxu1 %v1297_v15 }
  0x21   : > { %1145 = vmatprep.subr.bf16.mxu0 %v1298_v16  ;;  %1250 = vmatprep.subr.bf16.mxu1 %v1298_v16 }
  0x24   : > { %1146 = vmatpush3.bf16.msra.mxu0 %v1299_v17  ;;  %1258 = vmatpush3.bf16.msra.mxu1 %v1299_v17 }
  0x27   : > { %649 = vmatmul.mubr.bf16.vlgmr.msra.gmra.mrb[0].mxu0 %v1300_v18  ;;  %713 = vmatmul.mubr.bf16.vlgmr.msra.gmra.mrb[0].mxu1 %v1312_v20 }
  0x28   : > { %656 = vmatprep.mubr.bf16.mxu0 %v1303_v19  ;;  %720 = vmatprep.mubr.bf16.mxu1 %v1318_v21 }
  0x2f   : > { %657 = vmatmul.mubr.bf16.gmra.mrb[4].mxu0 %v1305_v22  ;;  %721 = vmatmul.mubr.bf16.gmra.mrb[4].mxu1 %v1320_v24 }
  0x30   : > { %664 = vmatprep.mubr.bf16.mxu0 %v1306_v23  ;;  %728 = vmatprep.mubr.bf16.mxu1 %v1324_v25 }
  0x37   : > { %665 = vmatmul.mubr.bf16.gmra.mrb[8].mxu0 %v1308_v26  ;;  %729 = vmatmul.mubr.bf16.gmra.mrb[8].mxu1 %v1326_v28 }
  0x38   : > { %672 = vmatprep.mubr.bf16.mxu0 %v1309_v27  ;;  %736 = vmatprep.mubr.bf16.mxu1 %v1330_v29 }
  0x3f   : > { %673 = vmatmul.mubr.bf16.gmra.mrb[12].mxu0 %v1311_v30  ;;  %737 = vmatmul.mubr.bf16.gmra.mrb[12].mxu1 %v1332_v32 }
  0x40   : > { %680 = vmatprep.mubr.bf16.mxu0 %v1315_v31  ;;  %744 = vmatprep.mubr.bf16.mxu1 %v1336_v33 }
  0x47   : > { %681 = vmatmul.mubr.bf16.gmra.mrb[16].mxu0 %v1317_v34  ;;  %745 = vmatmul.mubr.bf16.gmra.mrb[16].mxu1 %v1338_v36 }
  0x48   : > { %688 = vmatprep.mubr.bf16.mxu0 %v1321_v35  ;;  %752 = vmatprep.mubr.bf16.mxu1 %v1339_v37 }
  0x4f   : > { %689 = vmatmul.mubr.bf16.gmra.mrb[20].mxu0 %v1323_v38  ;;  %753 = vmatmul.mubr.bf16.gmra.mrb[20].mxu1 %v1341_v40 }
  0x50   : > { %696 = vmatprep.mubr.bf16.mxu0 %v1327_v39  ;;  %760 = vmatprep.mubr.bf16.mxu1 %v1342_v41 }
  0x57   : > { %697 = vmatmul.mubr.bf16.gmra.mrb[24].mxu0 %v1329_v42  ;;  %761 = vmatmul.mubr.bf16.gmra.mrb[24].mxu1 %v1344_v44 }
  0x58   : > { %704 = vmatprep.mubr.bf16.mxu0 %v1333_v43  ;;  %768 = vmatprep.mubr.bf16.mxu1 %v1345_v45 }
  0x5f   : > { %705 = vmatmul.mubr.bf16.gmra.mrb[28].mxu0 %v1335_v46  ;;  %769 = vmatmul.mubr.bf16.gmra.mrb[28].mxu1 %v1347_v47 }
  0xfa   : > { %v1147_v48 = vpop.f32.mrb[0].mxu0  ;;  %v1195_v51 = vpop.f32.mrb[0].mxu1 }
  0xfb   : > { %v1148_v50 = vpop.f32.mrb[1].mxu0  ;;  %v1196_v54 = vpop.f32.mrb[1].mxu1 }
  0xfc   : > { %v1149_v52 = vadd.f32 %v1148_v50, %v1147_v48  ;;  %v1150_v53 = vpop.f32.mrb[2].mxu0  ;;  %v1197_v56 = vadd.f32 %v1196_v54, %v1195_v51  ;;  %v1198_v57 = vpop.f32.mrb[2].mxu1 }
  0xfd   : > { %v1151_v55 = vpop.f32.mrb[3].mxu0  ;;  %v1199_v60 = vpop.f32.mrb[3].mxu1 }
  0xfe   : > { %v651_v58 = vadd.f32 %v1149_v52, %v1513_v49  ;;  %v1152_v59 = vadd.f32 %v1151_v55, %v1150_v53  ;;  %v1524_v61 = vadd.f32 %v1197_v56, %v1513_v49  ;;  %v1200_v62 = vadd.f32 %v1199_v60, %v1198_v57 }
 0x100   : > { %777 = vst [vmem:[%s1520_s17] sm:$0xff] %v651_v58  ;;  %v654_v63 = vadd.f32 %v1152_v59, %v1513_v49  ;;  %793 = vst [vmem:[%s1520_s17 + $0x80] sm:$0xff] %v1524_v61  ;;  %v1531_v0 = vadd.f32 %v1200_v62, %v1513_v49  ;;  %v850_v1 = vmul.f32 %v651_v58, %v651_v58 }
 0x102   : > { %778 = vst [vmem:[%s1520_s17 + $0x8] sm:$0xff] %v654_v63  ;;  %v816_v2 = vadd.f32 %v654_v63, %v651_v58  ;;  %v851_v3 = vmul.f32 %v654_v63, %v654_v63  ;;  %v1153_v4 = vpop.f32.mrb[4].mxu0  ;;  %794 = vst [vmem:[%s1520_s17 + $0x88] sm:$0xff] %v1531_v0  ;;  %v1201_v6 = vpop.f32.mrb[4].mxu1 }
 0x103   : > { %v1154_v5 = vpop.f32.mrb[5].mxu0  ;;  %v1202_v10 = vpop.f32.mrb[5].mxu1 }
 0x104   : > { %v882_v7 = vadd.f32 %v851_v3, %v850_v1  ;;  %v1155_v8 = vadd.f32 %v1154_v5, %v1153_v4  ;;  %v1156_v9 = vpop.f32.mrb[6].mxu0  ;;  %v1203_v12 = vadd.f32 %v1202_v10, %v1201_v6  ;;  %v1204_v13 = vpop.f32.mrb[6].mxu1 }
 0x105   : > { %v1157_v11 = vpop.f32.mrb[7].mxu0  ;;  %v1205_v16 = vpop.f32.mrb[7].mxu1 }
 0x106   : > { %v659_v14 = vadd.f32 %v1155_v8, %v1513_v49  ;;  %v1158_v15 = vadd.f32 %v1157_v11, %v1156_v9  ;;  %v1538_v17 = vadd.f32 %v1203_v12, %v1513_v49  ;;  %v1206_v18 = vadd.f32 %v1205_v16, %v1204_v13 }
 0x108   : > { %779 = vst [vmem:[%s1520_s17 + $0x10] sm:$0xff] %v659_v14  ;;  %v817_v19 = vadd.f32 %v816_v2, %v659_v14  ;;  %v852_v20 = vmul.f32 %v659_v14, %v659_v14  ;;  %v662_v21 = vadd.f32 %v1158_v15, %v1513_v49  ;;  %795 = vst [vmem:[%s1520_s17 + $0x90] sm:$0xff] %v1538_v17 }
 0x109   : > { %v1545_v22 = vadd.f32 %v1206_v18, %v1513_v49 }
 0x10a   : > { %v883_v23 = vadd.f32 %v882_v7, %v852_v20  ;;  %780 = vst [vmem:[%s1520_s17 + $0x18] sm:$0xff] %v662_v21  ;;  %v818_v24 = vadd.f32 %v817_v19, %v662_v21  ;;  %v853_v25 = vmul.f32 %v662_v21, %v662_v21  ;;  %v1159_v26 = vpop.f32.mrb[8].mxu0  ;;  %v1207_v28 = vpop.f32.mrb[8].mxu1 }
 0x10b   : > { %v1160_v27 = vpop.f32.mrb[9].mxu0  ;;  %796 = vst [vmem:[%s1520_s17 + $0x98] sm:$0xff] %v1545_v22  ;;  %v1208_v32 = vpop.f32.mrb[9].mxu1 }
 0x10c   : > { %v884_v29 = vadd.f32 %v883_v23, %v853_v25  ;;  %v1161_v30 = vadd.f32 %v1160_v27, %v1159_v26  ;;  %v1162_v31 = vpop.f32.mrb[10].mxu0  ;;  %v1209_v34 = vadd.f32 %v1208_v32, %v1207_v28  ;;  %v1210_v35 = vpop.f32.mrb[10].mxu1 }
 0x10d   : > { %v1163_v33 = vpop.f32.mrb[11].mxu0  ;;  %v1211_v38 = vpop.f32.mrb[11].mxu1 }
 0x10e   : > { %v667_v36 = vadd.f32 %v1161_v30, %v1513_v49  ;;  %v1164_v37 = vadd.f32 %v1163_v33, %v1162_v31  ;;  %v1552_v39 = vadd.f32 %v1209_v34, %v1513_v49  ;;  %v1212_v40 = vadd.f32 %v1211_v38, %v1210_v35 }
 0x110   : > { %781 = vst [vmem:[%s1520_s17 + $0x20] sm:$0xff] %v667_v36  ;;  %v819_v41 = vadd.f32 %v818_v24, %v667_v36  ;;  %v854_v42 = vmul.f32 %v667_v36, %v667_v36  ;;  %v670_v43 = vadd.f32 %v1164_v37, %v1513_v49  ;;  %797 = vst [vmem:[%s1520_s17 + $0xa0] sm:$0xff] %v1552_v39 }
 0x111   : > { %v1559_v44 = vadd.f32 %v1212_v40, %v1513_v49 }
 0x112   : > { %v885_v45 = vadd.f32 %v884_v29, %v854_v42  ;;  %782 = vst [vmem:[%s1520_s17 + $0x28] sm:$0xff] %v670_v43  ;;  %v820_v46 = vadd.f32 %v819_v41, %v670_v43  ;;  %v855_v47 = vmul.f32 %v670_v43, %v670_v43  ;;  %v1165_v48 = vpop.f32.mrb[12].mxu0  ;;  %v1213_v51 = vpop.f32.mrb[12].mxu1 }
 0x113   : > { %v1166_v50 = vpop.f32.mrb[13].mxu0  ;;  %798 = vst [vmem:[%s1520_s17 + $0xa8] sm:$0xff] %v1559_v44  ;;  %v1214_v55 = vpop.f32.mrb[13].mxu1 }
 0x114   : > { %v886_v52 = vadd.f32 %v885_v45, %v855_v47  ;;  %v1167_v53 = vadd.f32 %v1166_v50, %v1165_v48  ;;  %v1168_v54 = vpop.f32.mrb[14].mxu0  ;;  %v1215_v57 = vadd.f32 %v1214_v55, %v1213_v51  ;;  %v1216_v58 = vpop.f32.mrb[14].mxu1 }
 0x115   : > { %v1169_v56 = vpop.f32.mrb[15].mxu0  ;;  %v1217_v62 = vpop.f32.mrb[15].mxu1 }
 0x116   : > { %v675_v59 = vadd.f32 %v1167_v53, %v1513_v49  ;;  %v1170_v60 = vadd.f32 %v1169_v56, %v1168_v54  ;;  %v1566_v63 = vadd.f32 %v1215_v57, %v1513_v49  ;;  %v1218_v1 = vadd.f32 %v1217_v62, %v1216_v58 }
 0x118   : > { %783 = vst [vmem:[%s1520_s17 + $0x30] sm:$0xff] %v675_v59  ;;  %v821_v2 = vadd.f32 %v820_v46, %v675_v59  ;;  %v856_v3 = vmul.f32 %v675_v59, %v675_v59  ;;  %v678_v4 = vadd.f32 %v1170_v60, %v1513_v49  ;;  %799 = vst [vmem:[%s1520_s17 + $0xb0] sm:$0xff] %v1566_v63 }
 0x119   : > { %v1573_v5 = vadd.f32 %v1218_v1, %v1513_v49 }
 0x11a   : > { %v887_v6 = vadd.f32 %v886_v52, %v856_v3  ;;  %784 = vst [vmem:[%s1520_s17 + $0x38] sm:$0xff] %v678_v4  ;;  %v822_v7 = vadd.f32 %v821_v2, %v678_v4  ;;  %v857_v8 = vmul.f32 %v678_v4, %v678_v4  ;;  %v1171_v9 = vpop.f32.mrb[16].mxu0  ;;  %v1219_v11 = vpop.f32.mrb[16].mxu1 }
 0x11b   : > { %v1172_v10 = vpop.f32.mrb[17].mxu0  ;;  %800 = vst [vmem:[%s1520_s17 + $0xb8] sm:$0xff] %v1573_v5  ;;  %v1220_v15 = vpop.f32.mrb[17].mxu1 }
 0x11c   : > { %v888_v12 = vadd.f32 %v887_v6, %v857_v8  ;;  %v1173_v13 = vadd.f32 %v1172_v10, %v1171_v9  ;;  %v1174_v14 = vpop.f32.mrb[18].mxu0  ;;  %v1221_v18 = vadd.f32 %v1220_v15, %v1219_v11  ;;  %v1222_v19 = vpop.f32.mrb[18].mxu1 }
 0x11d   : > { %v1175_v16 = vpop.f32.mrb[19].mxu0  ;;  %v1223_v23 = vpop.f32.mrb[19].mxu1 }
 0x11e   : > { %v683_v20 = vadd.f32 %v1173_v13, %v1513_v49  ;;  %v1176_v21 = vadd.f32 %v1175_v16, %v1174_v14  ;;  %v1580_v24 = vadd.f32 %v1221_v18, %v1513_v49  ;;  %v1224_v25 = vadd.f32 %v1223_v23, %v1222_v19 }
 0x120   : > { %785 = vst [vmem:[%s1520_s17 + $0x40] sm:$0xff] %v683_v20  ;;  %v823_v26 = vadd.f32 %v822_v7, %v683_v20  ;;  %v858_v27 = vmul.f32 %v683_v20, %v683_v20  ;;  %v686_v28 = vadd.f32 %v1176_v21, %v1513_v49  ;;  %801 = vst [vmem:[%s1520_s17 + $0xc0] sm:$0xff] %v1580_v24 }
 0x121   : > { %v1587_v29 = vadd.f32 %v1224_v25, %v1513_v49 }
 0x122   : > { %v889_v30 = vadd.f32 %v888_v12, %v858_v27  ;;  %786 = vst [vmem:[%s1520_s17 + $0x48] sm:$0xff] %v686_v28  ;;  %v824_v31 = vadd.f32 %v823_v26, %v686_v28  ;;  %v859_v32 = vmul.f32 %v686_v28, %v686_v28  ;;  %v1177_v33 = vpop.f32.mrb[20].mxu0  ;;  %v1225_v35 = vpop.f32.mrb[20].mxu1 }
 0x123   : > { %v1178_v34 = vpop.f32.mrb[21].mxu0  ;;  %802 = vst [vmem:[%s1520_s17 + $0xc8] sm:$0xff] %v1587_v29  ;;  %v1226_v40 = vpop.f32.mrb[21].mxu1 }
 0x124   : > { %v890_v36 = vadd.f32 %v889_v30, %v859_v32  ;;  %v1179_v37 = vadd.f32 %v1178_v34, %v1177_v33  ;;  %v1180_v38 = vpop.f32.mrb[22].mxu0  ;;  %v1227_v42 = vadd.f32 %v1226_v40, %v1225_v35  ;;  %v1228_v43 = vpop.f32.mrb[22].mxu1 }
 0x125   : > { %v1181_v41 = vpop.f32.mrb[23].mxu0  ;;  %v1229_v47 = vpop.f32.mrb[23].mxu1 }
 0x126   : > { %v691_v45 = vadd.f32 %v1179_v37, %v1513_v49  ;;  %v1182_v46 = vadd.f32 %v1181_v41, %v1180_v38  ;;  %v1594_v48 = vadd.f32 %v1227_v42, %v1513_v49  ;;  %v1230_v50 = vadd.f32 %v1229_v47, %v1228_v43 }
 0x128   : > { %787 = vst [vmem:[%s1520_s17 + $0x50] sm:$0xff] %v691_v45  ;;  %v825_v51 = vadd.f32 %v824_v31, %v691_v45  ;;  %v860_v52 = vmul.f32 %v691_v45, %v691_v45  ;;  %v694_v53 = vadd.f32 %v1182_v46, %v1513_v49  ;;  %803 = vst [vmem:[%s1520_s17 + $0xd0] sm:$0xff] %v1594_v48 }
 0x129   : > { %v1601_v54 = vadd.f32 %v1230_v50, %v1513_v49  ;;  %v866_v50 = vmul.f32 %v1524_v61, %v1524_v61 }
 0x12a   : > { %v891_v55 = vadd.f32 %v890_v36, %v860_v52  ;;  %788 = vst [vmem:[%s1520_s17 + $0x58] sm:$0xff] %v694_v53  ;;  %v826_v56 = vadd.f32 %v825_v51, %v694_v53  ;;  %v861_v57 = vmul.f32 %v694_v53, %v694_v53  ;;  %v1183_v58 = vpop.f32.mrb[24].mxu0  ;;  %v1231_v60 = vpop.f32.mrb[24].mxu1  ;;  %v867_v53 = vmul.f32 %v1531_v0, %v1531_v0 }
 0x12b   : > { %v1184_v59 = vpop.f32.mrb[25].mxu0  ;;  %804 = vst [vmem:[%s1520_s17 + $0xd8] sm:$0xff] %v1601_v54  ;;  %v1232_v3 = vpop.f32.mrb[25].mxu1 }
 0x12c   : > { %v892_v62 = vadd.f32 %v891_v55, %v861_v57  ;;  %v1185_v1 = vadd.f32 %v1184_v59, %v1183_v58  ;;  %v1186_v2 = vpop.f32.mrb[26].mxu0  ;;  %v1233_v6 = vadd.f32 %v1232_v3, %v1231_v60  ;;  %v1234_v7 = vpop.f32.mrb[26].mxu1  ;;  %v869_v59 = vmul.f32 %v1545_v22, %v1545_v22 }
 0x12d   : > { %v1187_v4 = vpop.f32.mrb[27].mxu0  ;;  %v1235_v10 = vpop.f32.mrb[27].mxu1 }
 0x12e   : > { %v699_v8 = vadd.f32 %v1185_v1, %v1513_v49  ;;  %v1188_v9 = vadd.f32 %v1187_v4, %v1186_v2  ;;  %v1608_v11 = vadd.f32 %v1233_v6, %v1513_v49  ;;  %v1236_v12 = vadd.f32 %v1235_v10, %v1234_v7 }
 0x12f   : > { %v874_v10 = vmul.f32 %v1580_v24, %v1580_v24 }
 0x130   : > { %789 = vst [vmem:[%s1520_s17 + $0x60] sm:$0xff] %v699_v8  ;;  %v827_v13 = vadd.f32 %v826_v56, %v699_v8  ;;  %v862_v14 = vmul.f32 %v699_v8, %v699_v8  ;;  %v702_v15 = vadd.f32 %v1188_v9, %v1513_v49  ;;  %805 = vst [vmem:[%s1520_s17 + $0xe0] sm:$0xff] %v1608_v11 }
 0x131   : > { %v1615_v16 = vadd.f32 %v1236_v12, %v1513_v49 }
 0x132   : > { %v893_v18 = vadd.f32 %v892_v62, %v862_v14  ;;  %790 = vst [vmem:[%s1520_s17 + $0x68] sm:$0xff] %v702_v15  ;;  %v828_v19 = vadd.f32 %v827_v13, %v702_v15  ;;  %v863_v20 = vmul.f32 %v702_v15, %v702_v15  ;;  %v1189_v21 = vpop.f32.mrb[28].mxu0  ;;  %v1237_v25 = vpop.f32.mrb[28].mxu1  ;;  %v875_v14 = vmul.f32 %v1587_v29, %v1587_v29 }
 0x133   : > { %v1190_v23 = vpop.f32.mrb[29].mxu0  ;;  %806 = vst [vmem:[%s1520_s17 + $0xe8] sm:$0xff] %v1615_v16  ;;  %v1238_v30 = vpop.f32.mrb[29].mxu1 }
 0x134   : > { %v894_v26 = vadd.f32 %v893_v18, %v863_v20  ;;  %v1191_v27 = vadd.f32 %v1190_v23, %v1189_v21  ;;  %v1192_v28 = vpop.f32.mrb[30].mxu0  ;;  %v1239_v32 = vadd.f32 %v1238_v30, %v1237_v25  ;;  %v1240_v33 = vpop.f32.mrb[30].mxu1  ;;  %v878_v23 = vmul.f32 %v1608_v11, %v1608_v11 }
 0x135   : > { %v1193_v31 = vpop.f32.mrb[31].mxu0  ;;  %v1241_v36 = vpop.f32.mrb[31].mxu1 }
 0x136   : > { %v707_v34 = vadd.f32 %v1191_v27, %v1513_v49  ;;  %v1194_v35 = vadd.f32 %v1193_v31, %v1192_v28  ;;  %v771_v37 = vadd.f32 %v1239_v32, %v1513_v49  ;;  %v1242_v38 = vadd.f32 %v1241_v36, %v1240_v33 }
 0x138   : > { %791 = vst [vmem:[%s1520_s17 + $0x70] sm:$0xff] %v707_v34  ;;  %v829_v40 = vadd.f32 %v828_v19, %v707_v34  ;;  %v864_v41 = vmul.f32 %v707_v34, %v707_v34  ;;  %v710_v42 = vadd.f32 %v1194_v35, %v1513_v49  ;;  %807 = vst [vmem:[%s1520_s17 + $0xf0] sm:$0xff] %v771_v37 }
 0x139   : > { %v774_v43 = vadd.f32 %v1242_v38, %v1513_v49  ;;  %v868_v49 = vmul.f32 %v1538_v17, %v1538_v17  ;;  %v880_v27 = vmul.f32 %v771_v37, %v771_v37 }
 0x13a   : > { %v895_v45 = vadd.f32 %v894_v26, %v864_v41  ;;  %792 = vst [vmem:[%s1520_s17 + $0x78] sm:$0xff] %v710_v42  ;;  %v830_v46 = vadd.f32 %v829_v40, %v710_v42  ;;  %v865_v47 = vmul.f32 %v710_v42, %v710_v42  ;;  %v879_v26 = vmul.f32 %v1615_v16, %v1615_v16 }
 0x13b   : > { %808 = vst [vmem:[%s1520_s17 + $0xf8] sm:$0xff] %v774_v43  ;;  %v881_v32 = vmul.f32 %v774_v43, %v774_v43 }
 0x13c   : > { %v831_v51 = vadd.f32 %v830_v46, %v1524_v61  ;;  %v896_v52 = vadd.f32 %v895_v45, %v865_v47  ;;  %v870_v61 = vmul.f32 %v1552_v39, %v1552_v39 }
 0x13e   : > { %v832_v55 = vadd.f32 %v831_v51, %v1531_v0  ;;  %v897_v56 = vadd.f32 %v896_v52, %v866_v50  ;;  %v871_v0 = vmul.f32 %v1559_v44, %v1559_v44 }
 0x140   : > { %v833_v57 = vadd.f32 %v832_v55, %v1538_v17  ;;  %v898_v58 = vadd.f32 %v897_v56, %v867_v53  ;;  %v872_v17 = vmul.f32 %v1566_v63, %v1566_v63 }
 0x142   : > { %v834_v60 = vadd.f32 %v833_v57, %v1545_v22  ;;  %v899_v62 = vadd.f32 %v898_v58, %v868_v49  ;;  %v873_v22 = vmul.f32 %v1573_v5, %v1573_v5 }
 0x144   : > { %v900_v1 = vadd.f32 %v899_v62, %v869_v59  ;;  %v835_v2 = vadd.f32 %v834_v60, %v1552_v39 }
 0x146   : > { %v836_v3 = vadd.f32 %v835_v2, %v1559_v44  ;;  %v901_v4 = vadd.f32 %v900_v1, %v870_v61 }
 0x148   : > { %v837_v6 = vadd.f32 %v836_v3, %v1566_v63  ;;  %v902_v7 = vadd.f32 %v901_v4, %v871_v0 }
 0x14a   : > { %v838_v8 = vadd.f32 %v837_v6, %v1573_v5  ;;  %v903_v9 = vadd.f32 %v902_v7, %v872_v17  ;;  %v876_v5 = vmul.f32 %v1594_v48, %v1594_v48 }
 0x14c   : > { %v839_v39 = vadd.f32 %v838_v8, %v1580_v24  ;;  %v904_v12 = vadd.f32 %v903_v9, %v873_v22  ;;  %v877_v24 = vmul.f32 %v1601_v54, %v1601_v54 }
 0x14e   : > { %v905_v44 = vadd.f32 %v904_v12, %v874_v10  ;;  %v840_v13 = vadd.f32 %v839_v39, %v1587_v29 }
 0x150   : > { %v906_v63 = vadd.f32 %v905_v44, %v875_v14  ;;  %v841_v15 = vadd.f32 %v840_v13, %v1594_v48 }
 0x152   : > { %v907_v18 = vadd.f32 %v906_v63, %v876_v5  ;;  %v842_v19 = vadd.f32 %v841_v15, %v1601_v54 }
 0x154   : > { %v908_v20 = vadd.f32 %v907_v18, %v877_v24  ;;  %v843_v21 = vadd.f32 %v842_v19, %v1608_v11 }
 0x156   : > { %v909_v29 = vadd.f32 %v908_v20, %v878_v23  ;;  %v844_v25 = vadd.f32 %v843_v21, %v1615_v16 }
 0x158   : > { %v910_v48 = vadd.f32 %v909_v29, %v879_v26  ;;  %v845_v28 = vadd.f32 %v844_v25, %v771_v37 }
 0x15a   : > { %v911_v30 = vadd.f32 %v910_v48, %v880_v27  ;;  %v846_v31 = vadd.f32 %v845_v28, %v774_v43 }
 0x15c   : > { %v912_v54 = vadd.f32 %v911_v30, %v881_v32  ;;  %848 = vst [vmem:[%s283_s24] sm:$0xff] %v846_v31 }
 0x15e   : > { %914 = vst [vmem:[%s287_s27] sm:$0xff] %v912_v54 }
 0x15f PF: > { %s16_s20 = sadd.s32 1, %s1370_s20   ;;  %s1692_s18 = smov %s1366_s19 }
 0x160   : > { %p13_p5 = scmp.ge.s32.totalorder %s16_s20, 4   ;;  %s1693_s19 = smov %s1695_s21 }
 0x162   :  { %15 = sbr.rel (!%p13_p5) target bundleno = 2 (0x2), region = 90 }

// kernel: transformer_net.33
= control target key start
LH: loop header
LB: loop body
LE: loop exit
PB: predicated region body
PF: predicated region fallthrough
CT: control target
= control target key end

     0   :  { %s1138_s18 = smov 0   ;;  %s1140_s19 = smov 0   ;;  %s1295_s0 = inlined_call_operand.vmem [shape: bf16[2,64,384], index: 0, kind: input, shape index: {}]   ;;  %s1296_s1 = inlined_call_operand.vmem [shape: bf16[384,128], index: 1, kind: input, shape index: {}]   ;;  %s1297_s2 = inlined_call_operand.vmem [shape: f32[1,128], index: 2, kind: input, shape index: {}]   ;;  %s1298_s3 = inlined_call_operand.vmem [shape: f32[2,64,128], index: 3, kind: output, shape index: {0}]   ;;  %s1299_s4 = inlined_call_operand.vmem [shape: f32[2,8,128], index: 4, kind: output, shape index: {1}]   ;;  %s1300_s5 = inlined_call_operand.vmem [shape: f32[2,8,128], index: 5, kind: output, shape index: {2}]  }
   0x1   :  { %s1142_s20 = smov 0  }
   0x2 LB: > { %s28_s21 = sadd.s32 1, %s1102_s19  ;;  %p896_p0 = scmp.ge.s32.totalorder %s1106_s20, 1  ;;  %s1106_s20 = sphi %s1142_s20, %s16_s20   ;;  %s1102_s19 = sphi %s1140_s19, %s1302_s19   ;;  %s1098_s18 = sphi %s1138_s18, %s1301_s18  }
   0x3   : > { %p30_p1 = scmp.ge.s32.totalorder %s28_s21, 2  ;;  %p214_p2 = scmp.lt.s32.totalorder %s1106_s20, 3 }
   0x5   : > { %s1304_s21 = smov (%p30_p1, %s28_s21), 0  ;;  %p215_p3 = pnand %p896_p0, %p214_p2 }
   0x6   : > { %v1044_v0 = vld [vmem:[%s1296_s1 + $0x40] sm:$0xff] (!%p215_p3)   ;;  %v1046_v2 = vld [vmem:[%s1296_s1 + $0x48] sm:$0xff] (!%p215_p3)   ;;  %v1049_v5 = vld [vmem:[%s1296_s1 + $0x50] sm:$0xff] (!%p215_p3)   ;;  %p260_p4 = scmp.lt.s32.totalorder (!%p215_p3), %s1098_s18, 1 }
   0x7   : > { %218 = sbr.rel (%p215_p3) target bundleno = 289 (0x121), region = 32  ;;  %v1045_v1 = vld [vmem:[%s1296_s1] sm:$0xff] (!%p215_p3)   ;;  %942 = vmatprep.subr.bf16.mxu0 (!%p215_p3), %v1044_v0  ;;  %v1048_v4 = vld [vmem:[%s1296_s1 + $0x8] sm:$0xff] (!%p215_p3)   ;;  %v1051_v7 = vld [vmem:[%s1296_s1 + $0x10] sm:$0xff] (!%p215_p3)  }
   0x8   : > { %943 = vmatpush3.bf16.msra.mxu0 (!%p215_p3), %v1045_v1  ;;  %v1047_v3 = vld [vmem:[%s1296_s1 + $0x80] sm:$0xff] (!%p215_p3)   ;;  %v1050_v6 = vld [vmem:[%s1296_s1 + $0x88] sm:$0xff] (!%p215_p3)   ;;  %v1052_v8 = vld [vmem:[%s1296_s1 + $0x58] sm:$0xff] (!%p215_p3)  }
   0x9   : > { %944 = vmatprep.subr.bf16.mxu0 (!%p215_p3), %v1046_v2  ;;  %994 = vmatprep.subr.bf16.mxu1 (!%p215_p3), %v1047_v3  ;;  %v1053_v9 = vld [vmem:[%s1296_s1 + $0x90] sm:$0xff] (!%p215_p3)   ;;  %v1054_v10 = vld [vmem:[%s1296_s1 + $0x18] sm:$0xff] (!%p215_p3)   ;;  %v1055_v11 = vld [vmem:[%s1296_s1 + $0x60] sm:$0xff] (!%p215_p3)  }
   0xa   : > { %995 = vmatpush3.bf16.msra.mxu1 (!%p215_p3), %v1047_v3  ;;  %v1056_v12 = vld [vmem:[%s1296_s1 + $0x98] sm:$0xff] (!%p215_p3)   ;;  %v1057_v13 = vld [vmem:[%s1296_s1 + $0x20] sm:$0xff] (!%p215_p3)   ;;  %v1058_v15 = vld [vmem:[%s1296_s1 + $0x68] sm:$0xff] (!%p215_p3)  }
   0xb   : > { %996 = vmatprep.subr.bf16.mxu1 (!%p215_p3), %v1050_v6  ;;  %v1059_v14 = vld [vmem:[%s1296_s1 + $0xa0] sm:$0xff] (!%p215_p3)   ;;  %v1060_v16 = vld [vmem:[%s1296_s1 + $0x28] sm:$0xff] (!%p215_p3)   ;;  %v1061_v18 = vld [vmem:[%s1296_s1 + $0x70] sm:$0xff] (!%p215_p3)  }
   0xc   : > { %945 = vmatpush3.bf16.msra.mxu0 (!%p215_p3), %v1048_v4  ;;  %v1062_v17 = vld [vmem:[%s1296_s1 + $0xa8] sm:$0xff] (!%p215_p3)   ;;  %v1063_v19 = vld [vmem:[%s1296_s1 + $0x30] sm:$0xff] (!%p215_p3)   ;;  %v1064_v20 = vld [vmem:[%s1296_s1 + $0x78] sm:$0xff] (!%p215_p3)  }
   0xd   : > { %946 = vmatprep.subr.bf16.mxu0 (!%p215_p3), %v1049_v5  ;;  %v1065_v21 = vld [vmem:[%s1296_s1 + $0xb0] sm:$0xff] (!%p215_p3)   ;;  %v1066_v23 = vld [vmem:[%s1296_s1 + $0x38] sm:$0xff] (!%p215_p3)   ;;  %v1255_v38 = vld [vmem:[%s1297_s2] ss:$0 sm:$0xff] (!%p215_p3) }
   0xe   : > { %997 = vmatpush3.bf16.msra.mxu1 %v1050_v6  ;;  %s1306_s18 = smov (!%p260_p4, %s1098_s18), 1  ;;  %v1070_v25 = vld [vmem:[%s1296_s1 + $0xb8] sm:$0xff]  }
   0xf   : > { %998 = vmatprep.subr.bf16.mxu1 %v1053_v9  ;;  %s1018_s8 = smul.u32 96, %s1306_s18  ;;  %s941_s9 = sshll.u32 %s1306_s18, 6 }
  0x10   : > { %947 = vmatpush3.bf16.msra.mxu0 %v1051_v7  ;;  %s1262_s12 = scalar_lea.vmem %s1298_s3, %s941_s9  ;;  %s900_s13 = sshll.u32 %s1306_s18, 3 }
  0x11   : > { %948 = vmatprep.subr.bf16.mxu0 %v1052_v8  ;;  %s1226_s23 = scalar_lea.vmem %s1295_s0, %s1018_s8  ;;  %s283_s16 = scalar_lea.vmem %s1299_s4, %s900_s13 }
  0x12   : > { %999 = vmatpush3.bf16.msra.mxu1 %v1053_v9  ;;  %v1069_v22 = vld [vmem:[%s1226_s23 + $0x4] ss:$12 sps:$4 sm:$0xff]   ;;  %v1071_v24 = vld [vmem:[%s1226_s23 + $0x8] ss:$12 sps:$4 sm:$0xff]   ;;  %v1067_v26 = vld [vmem:[%s1226_s23] ss:$12 sps:$4 sm:$0xff]  }
  0x13   : > { %1000 = vmatprep.subr.bf16.mxu1 %v1056_v12  ;;  %600 = vmatprep.mubr.bf16.mxu0 %v1069_v22  ;;  %v1073_v27 = vld [vmem:[%s1226_s23 + $0x1c] ss:$12 sps:$4 sm:$0xff]   ;;  %v1072_v28 = vld [vmem:[%s1226_s23 + $0x20] ss:$12 sps:$4 sm:$0xff]   ;;  %v1079_v29 = vld [vmem:[%s1226_s23 + $0x38] ss:$12 sps:$4 sm:$0xff]  }
  0x14   : > { %949 = vmatpush3.bf16.msra.mxu0 %v1054_v10  ;;  %1010 = vmatprep.mubr.bf16.mxu1 %v1071_v24  ;;  %v1075_v30 = vld [vmem:[%s1226_s23 + $0x18] ss:$12 sps:$4 sm:$0xff]   ;;  %v1076_v31 = vld [vmem:[%s1226_s23 + $0x34] ss:$12 sps:$4 sm:$0xff]   ;;  %v1080_v32 = vld [vmem:[%s1226_s23 + $0x50] ss:$12 sps:$4 sm:$0xff]  }
  0x15   : > { %950 = vmatprep.subr.bf16.mxu0 %v1055_v11  ;;  %v1078_v33 = vld [vmem:[%s1226_s23 + $0x30] ss:$12 sps:$4 sm:$0xff]   ;;  %v1081_v34 = vld [vmem:[%s1226_s23 + $0x4c] ss:$12 sps:$4 sm:$0xff]   ;;  %v1083_v35 = vld [vmem:[%s1226_s23 + $0x48] ss:$12 sps:$4 sm:$0xff]   ;;  %s287_s23 = scalar_lea.vmem %s1300_s5, %s900_s13 }
  0x16   : > { %1001 = vmatpush3.bf16.msra.mxu1 %v1056_v12 }
  0x17   : > { %1002 = vmatprep.subr.bf16.mxu1 %v1059_v14 }
  0x18   : > { %951 = vmatpush3.bf16.msra.mxu0 %v1057_v13 }
  0x19   : > { %952 = vmatprep.subr.bf16.mxu0 %v1058_v15 }
  0x1a   : > { %1003 = vmatpush3.bf16.msra.mxu1 %v1059_v14 }
  0x1b   : > { %1004 = vmatprep.subr.bf16.mxu1 %v1062_v17 }
  0x1c   : > { %953 = vmatpush3.bf16.msra.mxu0 %v1060_v16 }
  0x1d   : > { %954 = vmatprep.subr.bf16.mxu0 %v1061_v18 }
  0x1e   : > { %1005 = vmatpush3.bf16.msra.mxu1 %v1062_v17 }
  0x1f   : > { %1006 = vmatprep.subr.bf16.mxu1 %v1065_v21 }
  0x20   : > { %955 = vmatpush3.bf16.msra.mxu0 %v1063_v19 }
  0x21   : > { %956 = vmatprep.subr.bf16.mxu0 %v1064_v20 }
  0x22   : > { %1007 = vmatpush3.bf16.msra.mxu1 %v1065_v21 }
  0x23   : > { %1008 = vmatprep.subr.bf16.mxu1 %v1070_v25 }
  0x24   : > { %957 = vmatpush3.bf16.msra.mxu0 %v1066_v23 }
  0x26   : > { %1009 = vmatpush3.bf16.msra.mxu1 %v1070_v25 }
  0x27   : > { %601 = vmatmul.mubr.bf16.vlgmr.msra.gmra.mrb[0].mxu0 %v1067_v26 }
  0x28   : > { %608 = vmatprep.mubr.bf16.mxu0 %v1073_v27 }
  0x29   : > { %1011 = vmatmul.mubr.bf16.vlgmr.msra.gmra.mrb[0].mxu1 %v1072_v28 }
  0x2a   : > { %1014 = vmatprep.mubr.bf16.mxu1 %v1079_v29 }
  0x2f   : > { %609 = vmatmul.mubr.bf16.gmra.mrb[4].mxu0 %v1075_v30 }
  0x30   : > { %616 = vmatprep.mubr.bf16.mxu0 %v1076_v31 }
  0x31   : > { %1015 = vmatmul.mubr.bf16.gmra.mrb[4].mxu1 %v1080_v32 }
  0x37   : > { %617 = vmatmul.mubr.bf16.gmra.mrb[8].mxu0 %v1078_v33 }
  0x38   : > { %624 = vmatprep.mubr.bf16.mxu0 %v1081_v34 }
  0x3f   : > { %625 = vmatmul.mubr.bf16.gmra.mrb[12].mxu0 %v1083_v35 }
  0xfa   : > { %v958_v36 = vpop.f32.mrb[0].mxu0 }
  0xfb   : > { %v959_v37 = vpop.f32.mrb[1].mxu0 }
  0xfc   : > { %v960_v39 = vadd.f32 %v959_v37, %v958_v36  ;;  %v961_v40 = vpop.f32.mrb[2].mxu0  ;;  %v1012_v42 = vpop.f32.mrb[0].mxu1 }
  0xfd   : > { %v962_v41 = vpop.f32.mrb[3].mxu0  ;;  %v667_v45 = vpop.f32.mrb[1].mxu1 }
  0xfe   : > { %v963_v43 = vadd.f32 %v962_v41, %v961_v40  ;;  %v603_v44 = vadd.f32 %v960_v39, %v1255_v38  ;;  %v1013_v46 = vpop.f32.mrb[2].mxu1 }
  0xff   : > { %v670_v49 = vpop.f32.mrb[3].mxu1 }
 0x100   : > { %v668_v47 = vadd.f32 %v667_v45, %v603_v44  ;;  %v606_v48 = vadd.f32 %v963_v43, %v1255_v38 }
 0x102   : > { %698 = vst [vmem:[%s1262_s12] sm:$0xff] %v668_v47  ;;  %v671_v50 = vadd.f32 %v670_v49, %v606_v48  ;;  %v964_v51 = vpop.f32.mrb[4].mxu0  ;;  %v723_v53 = vmul.f32 %v668_v47, %v668_v47 }
 0x103   : > { %v965_v52 = vpop.f32.mrb[5].mxu0 }
 0x104   : > { %699 = vst [vmem:[%s1262_s12 + $0x8] sm:$0xff] %v671_v50  ;;  %v713_v54 = vadd.f32 %v671_v50, %v668_v47  ;;  %v724_v55 = vmul.f32 %v671_v50, %v671_v50  ;;  %v966_v56 = vadd.f32 %v965_v52, %v964_v51  ;;  %v967_v57 = vpop.f32.mrb[6].mxu0  ;;  %v1016_v59 = vpop.f32.mrb[4].mxu1 }
 0x105   : > { %v968_v58 = vpop.f32.mrb[7].mxu0  ;;  %v683_v63 = vpop.f32.mrb[5].mxu1 }
 0x106   : > { %v731_v60 = vadd.f32 %v724_v55, %v723_v53  ;;  %v611_v61 = vadd.f32 %v966_v56, %v1255_v38  ;;  %v969_v62 = vadd.f32 %v968_v58, %v967_v57  ;;  %v1017_v0 = vpop.f32.mrb[6].mxu1 }
 0x107   : > { %v686_v3 = vpop.f32.mrb[7].mxu1 }
 0x108   : > { %v676_v1 = vadd.f32 %v1012_v42, %v611_v61  ;;  %v614_v2 = vadd.f32 %v969_v62, %v1255_v38 }
 0x10a   : > { %700 = vst [vmem:[%s1262_s12 + $0x10] sm:$0xff] %v676_v1  ;;  %v725_v4 = vmul.f32 %v676_v1, %v676_v1  ;;  %v679_v5 = vadd.f32 %v1013_v46, %v614_v2  ;;  %v970_v6 = vpop.f32.mrb[8].mxu0  ;;  %v714_v7 = vadd.f32 %v713_v54, %v676_v1 }
 0x10b   : > { %v971_v8 = vpop.f32.mrb[9].mxu0 }
 0x10c   : > { %701 = vst [vmem:[%s1262_s12 + $0x18] sm:$0xff] %v679_v5  ;;  %v726_v9 = vmul.f32 %v679_v5, %v679_v5  ;;  %v972_v10 = vadd.f32 %v971_v8, %v970_v6  ;;  %v973_v11 = vpop.f32.mrb[10].mxu0  ;;  %v715_v12 = vadd.f32 %v714_v7, %v679_v5  ;;  %v732_v13 = vadd.f32 %v731_v60, %v725_v4 }
 0x10d   : > { %v974_v14 = vpop.f32.mrb[11].mxu0 }
 0x10e   : > { %v975_v15 = vadd.f32 %v974_v14, %v973_v11  ;;  %v619_v16 = vadd.f32 %v972_v10, %v1255_v38  ;;  %v733_v17 = vadd.f32 %v732_v13, %v726_v9 }
 0x110   : > { %v684_v18 = vadd.f32 %v683_v63, %v619_v16  ;;  %v622_v19 = vadd.f32 %v975_v15, %v1255_v38 }
 0x112   : > { %702 = vst [vmem:[%s1262_s12 + $0x20] sm:$0xff] %v684_v18  ;;  %v716_v20 = vadd.f32 %v715_v12, %v684_v18  ;;  %v727_v21 = vmul.f32 %v684_v18, %v684_v18  ;;  %v687_v22 = vadd.f32 %v686_v3, %v622_v19  ;;  %v976_v23 = vpop.f32.mrb[12].mxu0 }
 0x113   : > { %v977_v24 = vpop.f32.mrb[13].mxu0 }
 0x114   : > { %v734_v25 = vadd.f32 %v733_v17, %v727_v21  ;;  %703 = vst [vmem:[%s1262_s12 + $0x28] sm:$0xff] %v687_v22  ;;  %v717_v26 = vadd.f32 %v716_v20, %v687_v22  ;;  %v728_v27 = vmul.f32 %v687_v22, %v687_v22  ;;  %v978_v28 = vadd.f32 %v977_v24, %v976_v23  ;;  %v979_v29 = vpop.f32.mrb[14].mxu0 }
 0x115   : > { %v980_v30 = vpop.f32.mrb[15].mxu0 }
 0x116   : > { %v735_v31 = vadd.f32 %v734_v25, %v728_v27  ;;  %v627_v32 = vadd.f32 %v978_v28, %v1255_v38  ;;  %v981_v33 = vadd.f32 %v980_v30, %v979_v29 }
 0x118   : > { %v692_v34 = vadd.f32 %v1016_v59, %v627_v32  ;;  %v630_v35 = vadd.f32 %v981_v33, %v1255_v38 }
 0x11a   : > { %704 = vst [vmem:[%s1262_s12 + $0x30] sm:$0xff] %v692_v34  ;;  %v718_v36 = vadd.f32 %v717_v26, %v692_v34  ;;  %v729_v37 = vmul.f32 %v692_v34, %v692_v34  ;;  %v695_v39 = vadd.f32 %v1017_v0, %v630_v35 }
 0x11c   : > { %v736_v40 = vadd.f32 %v735_v31, %v729_v37  ;;  %705 = vst [vmem:[%s1262_s12 + $0x38] sm:$0xff] %v695_v39  ;;  %v719_v41 = vadd.f32 %v718_v36, %v695_v39  ;;  %v730_v42 = vmul.f32 %v695_v39, %v695_v39 }
 0x11e   : > { %v737_v43 = vadd.f32 %v736_v40, %v730_v42  ;;  %721 = vst [vmem:[%s283_s16] sm:$0xff] %v719_v41 }
 0x120   : > { %739 = vst [vmem:[%s287_s23] sm:$0xff] %v737_v43 }
 0x121 PF: > { %s16_s20 = sadd.s32 1, %s1106_s20   ;;  %s1301_s18 = smov %s1102_s19 }
 0x122   : > { %p13_p5 = scmp.ge.s32.totalorder %s16_s20, 4   ;;  %s1302_s19 = smov %s1304_s21 }
 0x124   :  { %15 = sbr.rel (!%p13_p5) target bundleno = 2 (0x2), region = 90 }

// kernel: transformer_net.34
= control target key start
LH: loop header
LB: loop body
LE: loop exit
PB: predicated region body
PF: predicated region fallthrough
CT: control target
= control target key end

     0   :  { %s480_s12 = smov 0   ;;  %s482_s13 = smov 0   ;;  %s519_s0 = inlined_call_operand.vmem [shape: f32[2,64,128], index: 0, kind: input, shape index: {}]   ;;  %s520_s1 = inlined_call_operand.vmem [shape: f32[2,1,128], index: 1, kind: input, shape index: {}]   ;;  %s521_s2 = inlined_call_operand.vmem [shape: f32[2,1,128], index: 2, kind: input, shape index: {}]   ;;  %s522_s3 = inlined_call_operand.vmem [shape: f32[2,64,128], index: 3, kind: output, shape index: {}]  }
   0x1   :  { %s484_s14 = smov 0  }
   0x2 LB: > { %s25_s15 = sadd.s32 1, %s454_s13  ;;  %p401_p0 = scmp.ge.s32.totalorder %s458_s14, 1  ;;  %s458_s14 = sphi %s484_s14, %s13_s14   ;;  %s454_s13 = sphi %s482_s13, %s524_s13   ;;  %s450_s12 = sphi %s480_s12, %s523_s12  }
   0x3   : > { %p27_p1 = scmp.ge.s32.totalorder %s25_s15, 2  ;;  %p174_p2 = scmp.lt.s32.totalorder %s458_s14, 3 }
   0x5   : > { %s526_s15 = smov (%p27_p1, %s25_s15), 0  ;;  %p175_p3 = pnand %p401_p0, %p174_p2 }
   0x6   : > { %p213_p4 = scmp.lt.s32.totalorder (!%p175_p3), %s450_s12, 1 }
   0x7   : > { %178 = sbr.rel (%p175_p3) target bundleno = 28 (0x1c), region = 32 }
   0xe   : > { %s528_s12 = smov (!%p213_p4, %s450_s12), 1 }
   0xf   : > { %s410_s16 = sshll.u32 %s528_s12, 6  ;;  %s224_s19 = scalar_lea.vmem %s520_s1, %s528_s12 }
  0x10   : > { %s220_s22 = scalar_lea.vmem %s519_s0, %s410_s16  ;;  %s227_s25 = scalar_lea.vmem %s521_s2, %s528_s12  ;;  %v406_v0 = vld [vmem:[%s224_s19] ss:$0 sm:$0xff] }
  0x11   : > { %v238_v1 = vld [vmem:[%s220_s22] sm:$0xff]  ;;  %v239_v3 = vld [vmem:[%s220_s22 + $0x8] sm:$0xff]  ;;  %v240_v6 = vld [vmem:[%s220_s22 + $0x10] sm:$0xff]  ;;  %s236_s28 = scalar_lea.vmem %s522_s3, %s410_s16 }
  0x12   : > { %v407_v2 = vld [vmem:[%s227_s25] ss:$0 sm:$0xff]  ;;  %v253_v4 = vmul.f32 %v406_v0, %v238_v1  ;;  %v254_v5 = vmul.f32 %v406_v0, %v239_v3  ;;  %v241_v7 = vld [vmem:[%s220_s22 + $0x18] sm:$0xff]  ;;  %v255_v9 = vmul.f32 %v406_v0, %v240_v6  ;;  %v243_v12 = vld [vmem:[%s220_s22 + $0x28] sm:$0xff] }
  0x13   : > { %v242_v8 = vld [vmem:[%s220_s22 + $0x20] sm:$0xff]  ;;  %v256_v10 = vmul.f32 %v406_v0, %v241_v7  ;;  %v244_v13 = vld [vmem:[%s220_s22 + $0x30] sm:$0xff]  ;;  %v245_v14 = vld [vmem:[%s220_s22 + $0x38] sm:$0xff]  ;;  %v258_v17 = vmul.f32 %v406_v0, %v243_v12 }
  0x14   : > { %v257_v11 = vmul.f32 %v406_v0, %v242_v8  ;;  %v268_v15 = vadd.f32 %v407_v2, %v253_v4  ;;  %v269_v16 = vadd.f32 %v407_v2, %v254_v5  ;;  %v259_v18 = vmul.f32 %v406_v0, %v244_v13 }
  0x15   : > { %v270_v19 = vadd.f32 %v407_v2, %v255_v9  ;;  %v271_v20 = vadd.f32 %v407_v2, %v256_v10  ;;  %v260_v22 = vmul.f32 %v406_v0, %v245_v14  ;;  %v273_v25 = vadd.f32 %v407_v2, %v258_v17 }
  0x16   : > { %v272_v21 = vadd.f32 %v407_v2, %v257_v11  ;;  %v276_v23 = vmax.f32 %v268_v15, 0.0  ;;  %v277_v24 = vmax.f32 %v269_v16, 0.0  ;;  %v274_v26 = vadd.f32 %v407_v2, %v259_v18 }
  0x17   : > { %v278_v27 = vmax.f32 %v270_v19, 0.0  ;;  %v279_v28 = vmax.f32 %v271_v20, 0.0  ;;  %v275_v30 = vadd.f32 %v407_v2, %v260_v22  ;;  %v281_v31 = vmax.f32 %v273_v25, 0.0 }
  0x18   : > { %v280_v29 = vmax.f32 %v272_v21, 0.0  ;;  %284 = vst [vmem:[%s236_s28] sm:$0xff] %v276_v23  ;;  %285 = vst [vmem:[%s236_s28 + $0x8] sm:$0xff] %v277_v24  ;;  %v282_v32 = vmax.f32 %v274_v26, 0.0 }
  0x19   : > { %286 = vst [vmem:[%s236_s28 + $0x10] sm:$0xff] %v278_v27  ;;  %287 = vst [vmem:[%s236_s28 + $0x18] sm:$0xff] %v279_v28  ;;  %v283_v33 = vmax.f32 %v275_v30, 0.0 }
  0x1a   : > { %288 = vst [vmem:[%s236_s28 + $0x20] sm:$0xff] %v280_v29  ;;  %289 = vst [vmem:[%s236_s28 + $0x28] sm:$0xff] %v281_v31 }
  0x1b   : > { %290 = vst [vmem:[%s236_s28 + $0x30] sm:$0xff] %v282_v32  ;;  %291 = vst [vmem:[%s236_s28 + $0x38] sm:$0xff] %v283_v33 }
  0x1c PF: > { %s13_s14 = sadd.s32 1, %s458_s14   ;;  %s523_s12 = smov %s454_s13 }
  0x1d   : > { %p10_p5 = scmp.ge.s32.totalorder %s13_s14, 4   ;;  %s524_s13 = smov %s526_s15 }
  0x1f   :  { %12 = sbr.rel (!%p10_p5) target bundleno = 2 (0x2), region = 68 }

// kernel: transformer_net.36
= control target key start
LH: loop header
LB: loop body
LE: loop exit
PB: predicated region body
PF: predicated region fallthrough
CT: control target
= control target key end

     0   :  { %s450_s12 = smov 0   ;;  %s452_s13 = smov 0   ;;  %s486_s0 = inlined_call_operand.vmem [shape: f32[2,16,128], index: 0, kind: input, shape index: {}]   ;;  %s487_s1 = inlined_call_operand.vmem [shape: f32[2,1,128], index: 1, kind: input, shape index: {}]   ;;  %s488_s2 = inlined_call_operand.vmem [shape: f32[2,1,128], index: 2, kind: input, shape index: {}]   ;;  %s489_s3 = inlined_call_operand.vmem [shape: f32[2,16,128], index: 3, kind: output, shape index: {}]  }
   0x1   :  { %s454_s14 = smov 0  }
   0x2 LB: > { %s25_s15 = sadd.s32 1, %s424_s13  ;;  %p371_p0 = scmp.ge.s32.totalorder %s428_s14, 1  ;;  %s428_s14 = sphi %s454_s14, %s13_s14   ;;  %s424_s13 = sphi %s452_s13, %s491_s13   ;;  %s420_s12 = sphi %s450_s12, %s490_s12  }
   0x3   : > { %p27_p1 = scmp.ge.s32.totalorder %s25_s15, 2  ;;  %p174_p2 = scmp.lt.s32.totalorder %s428_s14, 3 }
   0x5   : > { %s493_s15 = smov (%p27_p1, %s25_s15), 0  ;;  %p175_p3 = pnand %p371_p0, %p174_p2 }
   0x6   : > { %p213_p4 = scmp.lt.s32.totalorder (!%p175_p3), %s420_s12, 1 }
   0x7   : > { %178 = sbr.rel (%p175_p3) target bundleno = 25 (0x19), region = 32 }
   0xe   : > { %s495_s12 = smov (!%p213_p4, %s420_s12), 1 }
   0xf   : > { %s380_s16 = sshll.u32 %s495_s12, 4  ;;  %s224_s19 = scalar_lea.vmem %s487_s1, %s495_s12 }
  0x10   : > { %s220_s22 = scalar_lea.vmem %s486_s0, %s380_s16  ;;  %s227_s25 = scalar_lea.vmem %s488_s2, %s495_s12  ;;  %v376_v0 = vld [vmem:[%s224_s19] ss:$0 sm:$0xff] }
  0x11   : > { %v238_v1 = vld [vmem:[%s220_s22] sm:$0xff]  ;;  %v239_v2 = vld [vmem:[%s220_s22 + $0x8] sm:$0xff]  ;;  %s236_s28 = scalar_lea.vmem %s489_s3, %s380_s16 }
  0x12   : > { %v377_v3 = vld [vmem:[%s227_s25] ss:$0 sm:$0xff]  ;;  %v247_v4 = vmul.f32 %v376_v0, %v238_v1  ;;  %v248_v5 = vmul.f32 %v376_v0, %v239_v2 }
  0x14   : > { %v256_v6 = vadd.f32 %v377_v3, %v247_v4  ;;  %v257_v7 = vadd.f32 %v377_v3, %v248_v5 }
  0x16   : > { %v258_v8 = vmax.f32 %v256_v6, 0.0  ;;  %v259_v9 = vmax.f32 %v257_v7, 0.0 }
  0x18   : > { %260 = vst [vmem:[%s236_s28] sm:$0xff] %v258_v8  ;;  %261 = vst [vmem:[%s236_s28 + $0x8] sm:$0xff] %v259_v9 }
  0x19 PF: > { %s13_s14 = sadd.s32 1, %s428_s14   ;;  %s490_s12 = smov %s424_s13 }
  0x1a   : > { %p10_p5 = scmp.ge.s32.totalorder %s13_s14, 4   ;;  %s491_s13 = smov %s493_s15 }
  0x1c   :  { %12 = sbr.rel (!%p10_p5) target bundleno = 2 (0x2), region = 68 }

// kernel: transformer_net.35
= control target key start
LH: loop header
LB: loop body
LE: loop exit
PB: predicated region body
PF: predicated region fallthrough
CT: control target
= control target key end

     0   :  { %s1203_s18 = smov 0   ;;  %s1205_s19 = smov 0   ;;  %s1381_s0 = inlined_call_operand.vmem [shape: bf16[2,16,640], index: 0, kind: input, shape index: {}]   ;;  %s1382_s1 = inlined_call_operand.vmem [shape: bf16[640,128], index: 1, kind: input, shape index: {}]   ;;  %s1383_s2 = inlined_call_operand.vmem [shape: f32[1,128], index: 2, kind: input, shape index: {}]   ;;  %s1384_s3 = inlined_call_operand.vmem [shape: f32[2,16,128], index: 3, kind: output, shape index: {0}]   ;;  %s1385_s4 = inlined_call_operand.vmem [shape: f32[2,8,128], index: 4, kind: output, shape index: {1}]   ;;  %s1386_s5 = inlined_call_operand.vmem [shape: f32[2,8,128], index: 5, kind: output, shape index: {2}]  }
   0x1   :  { %s1207_s20 = smov 0  }
   0x2 LB: > { %s28_s21 = sadd.s32 1, %s1165_s19  ;;  %p945_p0 = scmp.ge.s32.totalorder %s1169_s20, 1  ;;  %s1169_s20 = sphi %s1207_s20, %s16_s20   ;;  %s1165_s19 = sphi %s1205_s19, %s1388_s19   ;;  %s1161_s18 = sphi %s1203_s18, %s1387_s18  }
   0x3   : > { %p30_p1 = scmp.ge.s32.totalorder %s28_s21, 2  ;;  %p214_p2 = scmp.lt.s32.totalorder %s1169_s20, 3 }
   0x5   : > { %s1390_s21 = smov (%p30_p1, %s28_s21), 0  ;;  %p215_p3 = pnand %p945_p0, %p214_p2 }
   0x6   : > { %v1100_v0 = vld [vmem:[%s1382_s1 + $0x40] sm:$0xff] (!%p215_p3)   ;;  %v1104_v4 = vld [vmem:[%s1382_s1 + $0x48] sm:$0xff] (!%p215_p3)   ;;  %v1108_v8 = vld [vmem:[%s1382_s1 + $0x50] sm:$0xff] (!%p215_p3)   ;;  %p260_p4 = scmp.lt.s32.totalorder (!%p215_p3), %s1161_s18, 1  ;;  %v1171_v33 = vmov (!%p215_p3), 0.0   ;;  %vm1172_vm0 = vmmov (!%p215_p3), 0  }
   0x7   : > { %218 = sbr.rel (%p215_p3) target bundleno = 292 (0x124), region = 32  ;;  %v1101_v1 = vld [vmem:[%s1382_s1] sm:$0xff] (!%p215_p3)   ;;  %1000 = vmatprep.subr.bf16.mxu0 (!%p215_p3), %v1100_v0  ;;  %v1105_v5 = vld [vmem:[%s1382_s1 + $0x8] sm:$0xff] (!%p215_p3)   ;;  %v1109_v9 = vld [vmem:[%s1382_s1 + $0x10] sm:$0xff] (!%p215_p3)  }
   0x8   : > { %v1102_v2 = vld [vmem:[%s1382_s1 + $0xc0] sm:$0xff] (!%p215_p3)   ;;  %1001 = vmatpush3.bf16.msra.mxu0 (!%p215_p3), %v1101_v1  ;;  %v1106_v6 = vld [vmem:[%s1382_s1 + $0xc8] sm:$0xff] (!%p215_p3)   ;;  %v1110_v10 = vld [vmem:[%s1382_s1 + $0xd0] sm:$0xff] (!%p215_p3)  }
   0x9   : > { %v1103_v3 = vld [vmem:[%s1382_s1 + $0x80] sm:$0xff] (!%p215_p3)   ;;  %1022 = vmatprep.subr.bf16.mxu1 (!%p215_p3), %v1102_v2  ;;  %1002 = vmatprep.subr.bf16.mxu0 (!%p215_p3), %v1104_v4  ;;  %v1107_v7 = vld [vmem:[%s1382_s1 + $0x88] sm:$0xff] (!%p215_p3)   ;;  %v1111_v11 = vld [vmem:[%s1382_s1 + $0x90] sm:$0xff] (!%p215_p3)  }
   0xa   : > { %1023 = vmatpush3.bf16.msra.mxu1 (!%p215_p3), %v1103_v3  ;;  %v1112_v12 = vld [vmem:[%s1382_s1 + $0x58] sm:$0xff] (!%p215_p3)   ;;  %v1116_v16 = vld [vmem:[%s1382_s1 + $0x60] sm:$0xff] (!%p215_p3)   ;;  %v1120_v20 = vld [vmem:[%s1382_s1 + $0x68] sm:$0xff] (!%p215_p3)  }
   0xb   : > { %1024 = vmatprep.subr.bf16.mxu1 (!%p215_p3), %v1106_v6  ;;  %v1113_v13 = vld [vmem:[%s1382_s1 + $0x18] sm:$0xff] (!%p215_p3)   ;;  %v1117_v17 = vld [vmem:[%s1382_s1 + $0x20] sm:$0xff] (!%p215_p3)   ;;  %v1121_v21 = vld [vmem:[%s1382_s1 + $0x28] sm:$0xff] (!%p215_p3)  }
   0xc   : > { %1003 = vmatpush3.bf16.msra.mxu0 (!%p215_p3), %v1105_v5  ;;  %v1114_v14 = vld [vmem:[%s1382_s1 + $0xd8] sm:$0xff] (!%p215_p3)   ;;  %v1118_v18 = vld [vmem:[%s1382_s1 + $0xe0] sm:$0xff] (!%p215_p3)   ;;  %v1122_v22 = vld [vmem:[%s1382_s1 + $0xe8] sm:$0xff] (!%p215_p3)  }
   0xd   : > { %1004 = vmatprep.subr.bf16.mxu0 (!%p215_p3), %v1108_v8  ;;  %v1115_v15 = vld [vmem:[%s1382_s1 + $0x98] sm:$0xff] (!%p215_p3)   ;;  %v1119_v19 = vld [vmem:[%s1382_s1 + $0xa0] sm:$0xff] (!%p215_p3)   ;;  %v1123_v23 = vld [vmem:[%s1382_s1 + $0xa8] sm:$0xff] (!%p215_p3)  }
   0xe   : > { %1025 = vmatpush3.bf16.msra.mxu1 %v1107_v7  ;;  %s1392_s18 = smov (!%p260_p4, %s1161_s18), 1  ;;  %v1124_v24 = vld [vmem:[%s1382_s1 + $0x70] sm:$0xff]   ;;  %v1128_v28 = vld [vmem:[%s1382_s1 + $0x78] sm:$0xff]   ;;  %v1138_v37 = vld [vmem:[%s1382_s1 + $0x100] sm:$0xff]  }
   0xf   : > { %1026 = vmatprep.subr.bf16.mxu1 %v1110_v10  ;;  %s1073_s30 = smul.u32 40, %s1392_s18  ;;  %v1125_v25 = vld [vmem:[%s1382_s1 + $0x30] sm:$0xff]   ;;  %v1129_v29 = vld [vmem:[%s1382_s1 + $0x38] sm:$0xff]   ;;  %v1139_v38 = vld [vmem:[%s1382_s1 + $0x108] sm:$0xff]   ;;  %s949_s28 = sshll.u32 %s1392_s18, 3 }
  0x10   : > { %1005 = vmatpush3.bf16.msra.mxu0 %v1109_v9  ;;  %v1126_v26 = vld [vmem:[%s1382_s1 + $0xf0] sm:$0xff]   ;;  %v1130_v30 = vld [vmem:[%s1382_s1 + $0xf8] sm:$0xff]   ;;  %v1142_v41 = vld [vmem:[%s1382_s1 + $0x120] sm:$0xff]   ;;  %s283_s6 = scalar_lea.vmem %s1385_s4, %s949_s28  ;;  %s287_s9 = scalar_lea.vmem %s1386_s5, %s949_s28 }
  0x11   : > { %1006 = vmatprep.subr.bf16.mxu0 %v1112_v12  ;;  %v1127_v27 = vld [vmem:[%s1382_s1 + $0xb0] sm:$0xff]   ;;  %s1318_s16 = scalar_lea.vmem %s1381_s0, %s1073_s30  ;;  %v1134_v34 = vld [vmem:[%s1382_s1 + $0xb8] sm:$0xff]   ;;  %v1143_v42 = vld [vmem:[%s1382_s1 + $0x128] sm:$0xff]  }
  0x12   : > { %1027 = vmatpush3.bf16.msra.mxu1 %v1111_v11  ;;  %v1131_v31 = vld [vmem:[%s1318_s16] ss:$20 sps:$4 sm:$0xff]   ;;  %v1133_v32 = vld [vmem:[%s1318_s16 + $0x4] ss:$20 sps:$4 sm:$0xff]   ;;  %v1135_v35 = vld [vmem:[%s1318_s16 + $0x8] ss:$20 sps:$4 sm:$0xff]  }
  0x13   : > { %1028 = vmatprep.subr.bf16.mxu1 %v1114_v14  ;;  %680 = vmatprep.mubr.bf16.mxu0 %v1133_v32  ;;  %v1137_v36 = vld [vmem:[%s1318_s16 + $0xc] ss:$20 sps:$4 sm:$0xff]   ;;  %v1140_v39 = vld [vmem:[%s1382_s1 + $0x110] sm:$0xff]   ;;  %v1141_v40 = vld [vmem:[%s1382_s1 + $0x118] sm:$0xff]  }
  0x14   : > { %1007 = vmatpush3.bf16.msra.mxu0 %v1113_v13  ;;  %721 = vmatprep.mubr.bf16.mxu1 %v1137_v36  ;;  %v1144_v43 = vld [vmem:[%s1382_s1 + $0x130] sm:$0xff]   ;;  %v1145_v44 = vld [vmem:[%s1382_s1 + $0x138] sm:$0xff]   ;;  %v951_v47 = vld [vmem:[%s1383_s2] ss:$0 sm:$0xff] }
  0x15   : > { %1008 = vmatprep.subr.bf16.mxu0 %v1116_v16  ;;  %v1146_v45 = vld [vmem:[%s1318_s16 + $0x10] ss:$20 sps:$4 sm:$0xff]   ;;  %s999_s16 = sshll.u32 %s1392_s18, 4 }
  0x16   : > { %1029 = vmatpush3.bf16.msra.mxu1 %v1115_v15  ;;  %s278_s27 = scalar_lea.vmem %s1384_s3, %s999_s16 }
  0x17   : > { %1030 = vmatprep.subr.bf16.mxu1 %v1118_v18 }
  0x18   : > { %1009 = vmatpush3.bf16.msra.mxu0 %v1117_v17 }
  0x19   : > { %1010 = vmatprep.subr.bf16.mxu0 %v1120_v20 }
  0x1a   : > { %1031 = vmatpush3.bf16.msra.mxu1 %v1119_v19 }
  0x1b   : > { %1032 = vmatprep.subr.bf16.mxu1 %v1122_v22 }
  0x1c   : > { %1011 = vmatpush3.bf16.msra.mxu0 %v1121_v21 }
  0x1d   : > { %1012 = vmatprep.subr.bf16.mxu0 %v1124_v24 }
  0x1e   : > { %1033 = vmatpush3.bf16.msra.mxu1 %v1123_v23 }
  0x1f   : > { %1034 = vmatprep.subr.bf16.mxu1 %v1126_v26 }
  0x20   : > { %1013 = vmatpush3.bf16.msra.mxu0 %v1125_v25 }
  0x21   : > { %1014 = vmatprep.subr.bf16.mxu0 %v1128_v28 }
  0x22   : > { %1035 = vmatpush3.bf16.msra.mxu1 %v1127_v27 }
  0x23   : > { %1036 = vmatprep.subr.bf16.mxu1 %v1130_v30 }
  0x24   : > { %1015 = vmatpush3.bf16.msra.mxu0 %v1129_v29 }
  0x25   : > { %1053 = vmatprep.subr.bf16.mxu0 %v1171_v33 }
  0x26   : > { %1037 = vmatpush3.bf16.msra.mxu1 %v1134_v34 }
  0x27   : > { %681 = vmatmul.mubr.bf16.vlgmr.msra.gmra.mrb[0].mxu0 %v1131_v31 }
  0x28   : > { %1069 = vmatprep.mubr.msk.bf16.mxu0 %vm1172_vm0, %v1171_v33  ;;  %1054 = vmatpush3.bf16.msra.mxu0 %v1138_v37 }
  0x29   : > { %722 = vmatmul.mubr.bf16.vlgmr.msra.gmra.mrb[0].mxu1 %v1135_v35  ;;  %1055 = vmatprep.subr.bf16.mxu0 %v1171_v33 }
  0x2c   : > { %1056 = vmatpush3.bf16.msra.mxu0 %v1139_v38 }
  0x2d   : > { %1057 = vmatprep.subr.bf16.mxu0 %v1171_v33 }
  0x30   : > { %1058 = vmatpush3.bf16.msra.mxu0 %v1140_v39 }
  0x31   : > { %1059 = vmatprep.subr.bf16.mxu0 %v1171_v33 }
  0x34   : > { %1060 = vmatpush3.bf16.msra.mxu0 %v1141_v40 }
  0x35   : > { %1061 = vmatprep.subr.bf16.mxu0 %v1171_v33 }
  0x38   : > { %1062 = vmatpush3.bf16.msra.mxu0 %v1142_v41 }
  0x39   : > { %1063 = vmatprep.subr.bf16.mxu0 %v1171_v33 }
  0x3c   : > { %1064 = vmatpush3.bf16.msra.mxu0 %v1143_v42 }
  0x3d   : > { %1065 = vmatprep.subr.bf16.mxu0 %v1171_v33 }
  0x40   : > { %1066 = vmatpush3.bf16.msra.mxu0 %v1144_v43 }
  0x41   : > { %1067 = vmatprep.subr.bf16.mxu0 %v1171_v33 }
  0x44   : > { %1068 = vmatpush3.bf16.msra.mxu0 %v1145_v44 }
  0x47   : > { %1070 = vmatmul.mubr.bf16.vlgmr.msra.gmra.mrb[4].mxu0 %v1146_v45 }
  0xfa   : > { %v1016_v46 = vpop.f32.mrb[0].mxu0 }
  0xfb   : > { %v1017_v48 = vpop.f32.mrb[1].mxu0 }
  0xfc   : > { %v1018_v49 = vadd.f32 %v1017_v48, %v1016_v46  ;;  %v1019_v50 = vpop.f32.mrb[2].mxu0  ;;  %v1038_v51 = vpop.f32.mrb[0].mxu1 }
  0xfd   : > { %v1020_v52 = vpop.f32.mrb[3].mxu0  ;;  %v1039_v55 = vpop.f32.mrb[1].mxu1 }
  0xfe   : > { %v683_v53 = vadd.f32 %v1018_v49, %v951_v47  ;;  %v1021_v54 = vadd.f32 %v1020_v52, %v1019_v50  ;;  %v1040_v56 = vadd.f32 %v1039_v55, %v1038_v51  ;;  %v1041_v57 = vpop.f32.mrb[2].mxu1 }
  0xff   : > { %v1042_v59 = vpop.f32.mrb[3].mxu1 }
 0x100   : > { %v686_v58 = vadd.f32 %v1021_v54, %v951_v47  ;;  %v1043_v60 = vadd.f32 %v1042_v59, %v1041_v57  ;;  %v724_v61 = vadd.f32 %v1040_v56, %v683_v53 }
 0x102   : > { %v727_v62 = vadd.f32 %v1043_v60, %v686_v58 }
 0x11a   : > { %v764_v63 = vpop.f32.mrb[4].mxu0 }
 0x11b   : > { %v765_v0 = vadd.f32 %v764_v63, %v724_v61  ;;  %v1071_v1 = vpop.f32.mrb[5].mxu0 }
 0x11c   : > { %v767_v2 = vpop.f32.mrb[6].mxu0 }
 0x11d   : > { %771 = vst [vmem:[%s278_s27] sm:$0xff] %v765_v0  ;;  %v768_v3 = vadd.f32 %v767_v2, %v727_v62  ;;  %v1072_v4 = vpop.f32.mrb[7].mxu0  ;;  %v784_v5 = vmul.f32 %v765_v0, %v765_v0 }
 0x11f   : > { %772 = vst [vmem:[%s278_s27 + $0x8] sm:$0xff] %v768_v3  ;;  %v780_v6 = vadd.f32 %v768_v3, %v765_v0  ;;  %v785_v7 = vmul.f32 %v768_v3, %v768_v3 }
 0x121   : > { %v786_v8 = vadd.f32 %v785_v7, %v784_v5  ;;  %782 = vst [vmem:[%s283_s6] sm:$0xff] %v780_v6 }
 0x123   : > { %788 = vst [vmem:[%s287_s9] sm:$0xff] %v786_v8 }
 0x124 PF: > { %s16_s20 = sadd.s32 1, %s1169_s20   ;;  %s1387_s18 = smov %s1165_s19 }
 0x125   : > { %p13_p5 = scmp.ge.s32.totalorder %s16_s20, 4   ;;  %s1388_s19 = smov %s1390_s21 }
 0x127   :  { %15 = sbr.rel (!%p13_p5) target bundleno = 2 (0x2), region = 90 }

// kernel: transformer_net.40
= control target key start
LH: loop header
LB: loop body
LE: loop exit
PB: predicated region body
PF: predicated region fallthrough
CT: control target
= control target key end

     0   :  { %s541_s15 = smov 0   ;;  %s543_s16 = smov 0   ;;  %s580_s0 = inlined_call_operand.vmem [shape: f32[2,16,128], index: 0, kind: input, shape index: {}]   ;;  %s581_s1 = inlined_call_operand.vmem [shape: f32[2,1,128], index: 1, kind: input, shape index: {}]   ;;  %s582_s2 = inlined_call_operand.vmem [shape: f32[2,1,128], index: 2, kind: input, shape index: {}]   ;;  %s583_s3 = inlined_call_operand.vmem [shape: f32[2,16,128], index: 3, kind: input, shape index: {}]   ;;  %s584_s4 = inlined_call_operand.vmem [shape: f32[2,16,128], index: 4, kind: output, shape index: {}]  }
   0x1   :  { %s545_s17 = smov 0  }
   0x2 LB: > { %s26_s18 = sadd.s32 1, %s510_s16  ;;  %p454_p0 = scmp.ge.s32.totalorder %s514_s17, 1  ;;  %s514_s17 = sphi %s545_s17, %s14_s17   ;;  %s510_s16 = sphi %s543_s16, %s586_s16   ;;  %s506_s15 = sphi %s541_s15, %s585_s15  }
   0x3   : > { %p28_p1 = scmp.ge.s32.totalorder %s26_s18, 2  ;;  %p216_p2 = scmp.lt.s32.totalorder %s514_s17, 3 }
   0x5   : > { %s588_s18 = smov (%p28_p1, %s26_s18), 0  ;;  %p217_p3 = pnand %p454_p0, %p216_p2 }
   0x6   : > { %p266_p4 = scmp.lt.s32.totalorder (!%p217_p3), %s506_s15, 1 }
   0x7   : > { %220 = sbr.rel (%p217_p3) target bundleno = 25 (0x19), region = 36 }
   0xe   : > { %s590_s15 = smov (!%p266_p4, %s506_s15), 1 }
   0xf   : > { %s465_s19 = sshll.u32 %s590_s15, 4  ;;  %s277_s22 = scalar_lea.vmem %s581_s1, %s590_s15 }
  0x10   : > { %s273_s25 = scalar_lea.vmem %s580_s0, %s465_s19  ;;  %s280_s28 = scalar_lea.vmem %s582_s2, %s590_s15  ;;  %v461_v0 = vld [vmem:[%s277_s22] ss:$0 sm:$0xff] }
  0x11   : > { %s289_s5 = scalar_lea.vmem %s583_s3, %s465_s19  ;;  %v301_v1 = vld [vmem:[%s273_s25] sm:$0xff]  ;;  %v302_v2 = vld [vmem:[%s273_s25 + $0x8] sm:$0xff]  ;;  %s299_s8 = scalar_lea.vmem %s584_s4, %s465_s19 }
  0x12   : > { %v462_v3 = vld [vmem:[%s280_s28] ss:$0 sm:$0xff]  ;;  %v310_v4 = vmul.f32 %v461_v0, %v301_v1  ;;  %v311_v5 = vmul.f32 %v461_v0, %v302_v2  ;;  %v322_v7 = vld [vmem:[%s289_s5 + $0x8] sm:$0xff] }
  0x13   : > { %v321_v6 = vld [vmem:[%s289_s5] sm:$0xff] }
  0x14   : > { %v319_v8 = vadd.f32 %v462_v3, %v310_v4  ;;  %v320_v9 = vadd.f32 %v462_v3, %v311_v5 }
  0x16   : > { %v323_v10 = vadd.f32 %v321_v6, %v319_v8  ;;  %v324_v11 = vadd.f32 %v322_v7, %v320_v9 }
  0x18   : > { %325 = vst [vmem:[%s299_s8] sm:$0xff] %v323_v10  ;;  %326 = vst [vmem:[%s299_s8 + $0x8] sm:$0xff] %v324_v11 }
  0x19 PF: > { %s14_s17 = sadd.s32 1, %s514_s17   ;;  %s585_s15 = smov %s510_s16 }
  0x1a   : > { %p11_p5 = scmp.ge.s32.totalorder %s14_s17, 4   ;;  %s586_s16 = smov %s588_s18 }
  0x1c   :  { %13 = sbr.rel (!%p11_p5) target bundleno = 2 (0x2), region = 75 }

// kernel: transformer_net.37
= control target key start
LH: loop header
LB: loop body
LE: loop exit
PB: predicated region body
PF: predicated region fallthrough
CT: control target
= control target key end

     0   :  { %s1683_s18 = smov 0   ;;  %s1685_s19 = smov 0   ;;  %s1961_s0 = inlined_call_operand.vmem [shape: bf16[2,16,1152], index: 0, kind: input, shape index: {}]   ;;  %s1962_s1 = inlined_call_operand.vmem [shape: bf16[1152,128], index: 1, kind: input, shape index: {}]   ;;  %s1963_s2 = inlined_call_operand.vmem [shape: f32[1,128], index: 2, kind: input, shape index: {}]   ;;  %s1964_s3 = inlined_call_operand.vmem [shape: f32[2,16,128], index: 3, kind: output, shape index: {0}]   ;;  %s1965_s4 = inlined_call_operand.vmem [shape: f32[2,8,128], index: 4, kind: output, shape index: {1}]   ;;  %s1966_s5 = inlined_call_operand.vmem [shape: f32[2,8,128], index: 5, kind: output, shape index: {2}]  }
   0x1   :  { %s1687_s20 = smov 0  }
   0x2 LB: > { %s28_s21 = sadd.s32 1, %s1645_s19  ;;  %p1307_p0 = scmp.ge.s32.totalorder %s1649_s20, 1  ;;  %s1649_s20 = sphi %s1687_s20, %s16_s20   ;;  %s1645_s19 = sphi %s1685_s19, %s1968_s19   ;;  %s1641_s18 = sphi %s1683_s18, %s1967_s18  }
   0x3   : > { %p30_p1 = scmp.ge.s32.totalorder %s28_s21, 2  ;;  %p214_p2 = scmp.lt.s32.totalorder %s1649_s20, 3 }
   0x5   : > { %s1970_s21 = smov (%p30_p1, %s28_s21), 0  ;;  %p215_p3 = pnand %p1307_p0, %p214_p2 }
   0x6   : > { %v1542_v0 = vld [vmem:[%s1962_s1 + $0x40] sm:$0xff] (!%p215_p3)   ;;  %v1546_v4 = vld [vmem:[%s1962_s1 + $0x48] sm:$0xff] (!%p215_p3)   ;;  %v1550_v8 = vld [vmem:[%s1962_s1 + $0x50] sm:$0xff] (!%p215_p3)   ;;  %p260_p4 = scmp.lt.s32.totalorder (!%p215_p3), %s1641_s18, 1  ;;  %vm1652_vm0 = vmmov (!%p215_p3), 0  }
   0x7   : > { %218 = sbr.rel (%p215_p3) target bundleno = 324 (0x144), region = 32  ;;  %v1543_v1 = vld [vmem:[%s1962_s1] sm:$0xff] (!%p215_p3)   ;;  %1398 = vmatprep.subr.bf16.mxu0 (!%p215_p3), %v1542_v0  ;;  %v1547_v5 = vld [vmem:[%s1962_s1 + $0x8] sm:$0xff] (!%p215_p3)   ;;  %v1551_v9 = vld [vmem:[%s1962_s1 + $0x10] sm:$0xff] (!%p215_p3)  }
   0x8   : > { %v1544_v2 = vld [vmem:[%s1962_s1 + $0xc0] sm:$0xff] (!%p215_p3)   ;;  %1399 = vmatpush3.bf16.msra.mxu0 (!%p215_p3), %v1543_v1  ;;  %v1548_v6 = vld [vmem:[%s1962_s1 + $0xc8] sm:$0xff] (!%p215_p3)   ;;  %v1552_v10 = vld [vmem:[%s1962_s1 + $0xd0] sm:$0xff] (!%p215_p3)  }
   0x9   : > { %v1545_v3 = vld [vmem:[%s1962_s1 + $0x80] sm:$0xff] (!%p215_p3)   ;;  %1420 = vmatprep.subr.bf16.mxu1 (!%p215_p3), %v1544_v2  ;;  %1400 = vmatprep.subr.bf16.mxu0 (!%p215_p3), %v1546_v4  ;;  %v1549_v7 = vld [vmem:[%s1962_s1 + $0x88] sm:$0xff] (!%p215_p3)   ;;  %v1553_v11 = vld [vmem:[%s1962_s1 + $0x90] sm:$0xff] (!%p215_p3)  }
   0xa   : > { %1421 = vmatpush3.bf16.msra.mxu1 (!%p215_p3), %v1545_v3  ;;  %v1554_v12 = vld [vmem:[%s1962_s1 + $0x58] sm:$0xff] (!%p215_p3)   ;;  %v1558_v16 = vld [vmem:[%s1962_s1 + $0x60] sm:$0xff] (!%p215_p3)   ;;  %v1562_v20 = vld [vmem:[%s1962_s1 + $0x68] sm:$0xff] (!%p215_p3)  }
   0xb   : > { %1422 = vmatprep.subr.bf16.mxu1 (!%p215_p3), %v1548_v6  ;;  %v1555_v13 = vld [vmem:[%s1962_s1 + $0x18] sm:$0xff] (!%p215_p3)   ;;  %v1559_v17 = vld [vmem:[%s1962_s1 + $0x20] sm:$0xff] (!%p215_p3)   ;;  %v1563_v21 = vld [vmem:[%s1962_s1 + $0x28] sm:$0xff] (!%p215_p3)   ;;  %v1651_v6 = vmov (!%p215_p3), 0.0  }
   0xc   : > { %1401 = vmatpush3.bf16.msra.mxu0 (!%p215_p3), %v1547_v5  ;;  %v1556_v14 = vld [vmem:[%s1962_s1 + $0xd8] sm:$0xff] (!%p215_p3)   ;;  %v1560_v18 = vld [vmem:[%s1962_s1 + $0xe0] sm:$0xff] (!%p215_p3)   ;;  %v1564_v22 = vld [vmem:[%s1962_s1 + $0xe8] sm:$0xff] (!%p215_p3)  }
   0xd   : > { %1402 = vmatprep.subr.bf16.mxu0 (!%p215_p3), %v1550_v8  ;;  %v1557_v15 = vld [vmem:[%s1962_s1 + $0x98] sm:$0xff] (!%p215_p3)   ;;  %v1561_v19 = vld [vmem:[%s1962_s1 + $0xa0] sm:$0xff] (!%p215_p3)   ;;  %v1565_v23 = vld [vmem:[%s1962_s1 + $0xa8] sm:$0xff] (!%p215_p3)  }
   0xe   : > { %1423 = vmatpush3.bf16.msra.mxu1 %v1549_v7  ;;  %s1972_s18 = smov (!%p260_p4, %s1641_s18), 1  ;;  %v1566_v24 = vld [vmem:[%s1962_s1 + $0x70] sm:$0xff]   ;;  %v1570_v28 = vld [vmem:[%s1962_s1 + $0x78] sm:$0xff]   ;;  %v1577_v34 = vld [vmem:[%s1962_s1 + $0x140] sm:$0xff]  }
   0xf   : > { %1424 = vmatprep.subr.bf16.mxu1 %v1552_v10  ;;  %s1515_s30 = smul.u32 72, %s1972_s18  ;;  %v1567_v25 = vld [vmem:[%s1962_s1 + $0x30] sm:$0xff]   ;;  %v1571_v29 = vld [vmem:[%s1962_s1 + $0x38] sm:$0xff]   ;;  %v1581_v37 = vld [vmem:[%s1962_s1 + $0x100] sm:$0xff]   ;;  %s1311_s7 = sshll.u32 %s1972_s18, 3 }
  0x10   : > { %1403 = vmatpush3.bf16.msra.mxu0 %v1551_v9  ;;  %v1568_v26 = vld [vmem:[%s1962_s1 + $0xf0] sm:$0xff]   ;;  %v1572_v30 = vld [vmem:[%s1962_s1 + $0xf8] sm:$0xff]   ;;  %v1582_v38 = vld [vmem:[%s1962_s1 + $0x1c0] sm:$0xff]   ;;  %s283_s10 = scalar_lea.vmem %s1965_s4, %s1311_s7  ;;  %s287_s13 = scalar_lea.vmem %s1966_s5, %s1311_s7 }
  0x11   : > { %1404 = vmatprep.subr.bf16.mxu0 %v1554_v12  ;;  %v1569_v27 = vld [vmem:[%s1962_s1 + $0xb0] sm:$0xff]   ;;  %s1798_s16 = scalar_lea.vmem %s1961_s0, %s1515_s30  ;;  %v1576_v33 = vld [vmem:[%s1962_s1 + $0xb8] sm:$0xff]   ;;  %v1583_v39 = vld [vmem:[%s1962_s1 + $0x180] sm:$0xff]  }
  0x12   : > { %1425 = vmatpush3.bf16.msra.mxu1 %v1553_v11  ;;  %v1573_v31 = vld [vmem:[%s1798_s16] ss:$36 sps:$4 sm:$0xff]   ;;  %v1578_v35 = vld [vmem:[%s1798_s16 + $0x8] ss:$36 sps:$4 sm:$0xff]   ;;  %v1588_v44 = vld [vmem:[%s1962_s1 + $0x150] sm:$0xff]  }
  0x13   : > { %1426 = vmatprep.subr.bf16.mxu1 %v1556_v14  ;;  %v1575_v32 = vld [vmem:[%s1798_s16 + $0x4] ss:$36 sps:$4 sm:$0xff]   ;;  %v1580_v36 = vld [vmem:[%s1798_s16 + $0xc] ss:$36 sps:$4 sm:$0xff]   ;;  %v1592_v48 = vld [vmem:[%s1962_s1 + $0x158] sm:$0xff]  }
  0x14   : > { %1405 = vmatpush3.bf16.msra.mxu0 %v1555_v13  ;;  %960 = vmatprep.mubr.bf16.mxu0 %v1575_v32  ;;  %v1584_v40 = vld [vmem:[%s1962_s1 + $0x148] sm:$0xff]   ;;  %v1589_v45 = vld [vmem:[%s1962_s1 + $0x110] sm:$0xff]   ;;  %v1593_v49 = vld [vmem:[%s1962_s1 + $0x118] sm:$0xff]  }
  0x15   : > { %1406 = vmatprep.subr.bf16.mxu0 %v1558_v16  ;;  %1001 = vmatprep.mubr.bf16.mxu1 %v1580_v36  ;;  %v1585_v41 = vld [vmem:[%s1962_s1 + $0x108] sm:$0xff]   ;;  %v1590_v46 = vld [vmem:[%s1962_s1 + $0x1d0] sm:$0xff]   ;;  %v1594_v50 = vld [vmem:[%s1962_s1 + $0x1d8] sm:$0xff]  }
  0x16   : > { %1427 = vmatpush3.bf16.msra.mxu1 %v1557_v15  ;;  %v1586_v42 = vld [vmem:[%s1962_s1 + $0x1c8] sm:$0xff]   ;;  %v1591_v47 = vld [vmem:[%s1962_s1 + $0x190] sm:$0xff]   ;;  %v1595_v51 = vld [vmem:[%s1962_s1 + $0x198] sm:$0xff]  }
  0x17   : > { %1428 = vmatprep.subr.bf16.mxu1 %v1560_v18  ;;  %v1587_v43 = vld [vmem:[%s1962_s1 + $0x188] sm:$0xff]   ;;  %v1596_v52 = vld [vmem:[%s1962_s1 + $0x160] sm:$0xff]   ;;  %v1604_v60 = vld [vmem:[%s1962_s1 + $0x170] sm:$0xff]  }
  0x18   : > { %1407 = vmatpush3.bf16.msra.mxu0 %v1559_v17  ;;  %v1597_v53 = vld [vmem:[%s1962_s1 + $0x120] sm:$0xff]   ;;  %v1600_v56 = vld [vmem:[%s1962_s1 + $0x168] sm:$0xff]   ;;  %v1605_v61 = vld [vmem:[%s1962_s1 + $0x130] sm:$0xff]  }
  0x19   : > { %1408 = vmatprep.subr.bf16.mxu0 %v1562_v20  ;;  %v1598_v54 = vld [vmem:[%s1962_s1 + $0x1e0] sm:$0xff]   ;;  %v1601_v57 = vld [vmem:[%s1962_s1 + $0x128] sm:$0xff]   ;;  %v1606_v62 = vld [vmem:[%s1962_s1 + $0x1f0] sm:$0xff]  }
  0x1a   : > { %1429 = vmatpush3.bf16.msra.mxu1 %v1561_v19  ;;  %v1599_v55 = vld [vmem:[%s1962_s1 + $0x1a0] sm:$0xff]   ;;  %v1602_v58 = vld [vmem:[%s1962_s1 + $0x1e8] sm:$0xff]   ;;  %v1607_v63 = vld [vmem:[%s1962_s1 + $0x1b0] sm:$0xff]  }
  0x1b   : > { %1430 = vmatprep.subr.bf16.mxu1 %v1564_v22  ;;  %v1603_v59 = vld [vmem:[%s1962_s1 + $0x1a8] sm:$0xff]   ;;  %v1608_v0 = vld [vmem:[%s1962_s1 + $0x178] sm:$0xff]   ;;  %v1611_v3 = vld [vmem:[%s1798_s16 + $0x10] ss:$36 sps:$4 sm:$0xff]  }
  0x1c   : > { %1409 = vmatpush3.bf16.msra.mxu0 %v1563_v21  ;;  %v1609_v1 = vld [vmem:[%s1962_s1 + $0x138] sm:$0xff]   ;;  %v1618_v9 = vld [vmem:[%s1962_s1 + $0x200] sm:$0xff]   ;;  %v1619_v10 = vld [vmem:[%s1962_s1 + $0x208] sm:$0xff]  }
  0x1d   : > { %1410 = vmatprep.subr.bf16.mxu0 %v1566_v24  ;;  %v1610_v2 = vld [vmem:[%s1962_s1 + $0x1f8] sm:$0xff]   ;;  %v1620_v11 = vld [vmem:[%s1962_s1 + $0x210] sm:$0xff]   ;;  %v1622_v13 = vld [vmem:[%s1962_s1 + $0x220] sm:$0xff]  }
  0x1e   : > { %1431 = vmatpush3.bf16.msra.mxu1 %v1565_v23  ;;  %v1613_v4 = vld [vmem:[%s1798_s16 + $0x14] ss:$36 sps:$4 sm:$0xff]   ;;  %v1617_v8 = vld [vmem:[%s1798_s16 + $0x1c] ss:$36 sps:$4 sm:$0xff]   ;;  %v1623_v14 = vld [vmem:[%s1962_s1 + $0x228] sm:$0xff]  }
  0x1f   : > { %1432 = vmatprep.subr.bf16.mxu1 %v1568_v26  ;;  %v1614_v5 = vld [vmem:[%s1962_s1 + $0x1b8] sm:$0xff]   ;;  %v1624_v15 = vld [vmem:[%s1962_s1 + $0x230] sm:$0xff]   ;;  %v1626_v17 = vld [vmem:[%s1798_s16 + $0x20] ss:$36 sps:$4 sm:$0xff]  }
  0x20   : > { %1411 = vmatpush3.bf16.msra.mxu0 %v1567_v25  ;;  %v1615_v7 = vld [vmem:[%s1798_s16 + $0x18] ss:$36 sps:$4 sm:$0xff]   ;;  %v1313_v19 = vld [vmem:[%s1963_s2] ss:$0 sm:$0xff]  ;;  %s1397_s16 = sshll.u32 %s1972_s18, 4 }
  0x21   : > { %1412 = vmatprep.subr.bf16.mxu0 %v1570_v28  ;;  %v1621_v12 = vld [vmem:[%s1962_s1 + $0x218] sm:$0xff]   ;;  %s278_s6 = scalar_lea.vmem %s1964_s3, %s1397_s16 }
  0x22   : > { %1433 = vmatpush3.bf16.msra.mxu1 %v1569_v27  ;;  %v1625_v16 = vld [vmem:[%s1962_s1 + $0x238] sm:$0xff]  }
  0x23   : > { %1434 = vmatprep.subr.bf16.mxu1 %v1572_v30 }
  0x24   : > { %1413 = vmatpush3.bf16.msra.mxu0 %v1571_v29 }
  0x25   : > { %1442 = vmatprep.subr.bf16.mxu0 %v1577_v34 }
  0x26   : > { %1435 = vmatpush3.bf16.msra.mxu1 %v1576_v33 }
  0x27   : > { %961 = vmatmul.mubr.bf16.vlgmr.msra.gmra.mrb[0].mxu0 %v1573_v31  ;;  %1464 = vmatprep.subr.bf16.mxu1 %v1582_v38 }
  0x28   : > { %1443 = vmatpush3.bf16.msra.mxu0 %v1581_v37  ;;  %1042 = vmatprep.mubr.bf16.mxu0 %v1613_v4 }
  0x29   : > { %1002 = vmatmul.mubr.bf16.vlgmr.msra.gmra.mrb[0].mxu1 %v1578_v35  ;;  %1444 = vmatprep.subr.bf16.mxu0 %v1584_v40 }
  0x2a   : > { %1465 = vmatpush3.bf16.msra.mxu1 %v1583_v39  ;;  %1083 = vmatprep.mubr.bf16.mxu1 %v1617_v8 }
  0x2b   : > { %1466 = vmatprep.subr.bf16.mxu1 %v1586_v42 }
  0x2c   : > { %1445 = vmatpush3.bf16.msra.mxu0 %v1585_v41 }
  0x2d   : > { %1446 = vmatprep.subr.bf16.mxu0 %v1588_v44 }
  0x2e   : > { %1467 = vmatpush3.bf16.msra.mxu1 %v1587_v43 }
  0x2f   : > { %1468 = vmatprep.subr.bf16.mxu1 %v1590_v46 }
  0x30   : > { %1447 = vmatpush3.bf16.msra.mxu0 %v1589_v45 }
  0x31   : > { %1448 = vmatprep.subr.bf16.mxu0 %v1592_v48 }
  0x32   : > { %1469 = vmatpush3.bf16.msra.mxu1 %v1591_v47 }
  0x33   : > { %1470 = vmatprep.subr.bf16.mxu1 %v1594_v50 }
  0x34   : > { %1449 = vmatpush3.bf16.msra.mxu0 %v1593_v49 }
  0x35   : > { %1450 = vmatprep.subr.bf16.mxu0 %v1596_v52 }
  0x36   : > { %1471 = vmatpush3.bf16.msra.mxu1 %v1595_v51 }
  0x37   : > { %1472 = vmatprep.subr.bf16.mxu1 %v1598_v54 }
  0x38   : > { %1451 = vmatpush3.bf16.msra.mxu0 %v1597_v53 }
  0x39   : > { %1452 = vmatprep.subr.bf16.mxu0 %v1600_v56 }
  0x3a   : > { %1473 = vmatpush3.bf16.msra.mxu1 %v1599_v55 }
  0x3b   : > { %1474 = vmatprep.subr.bf16.mxu1 %v1602_v58 }
  0x3c   : > { %1453 = vmatpush3.bf16.msra.mxu0 %v1601_v57 }
  0x3d   : > { %1454 = vmatprep.subr.bf16.mxu0 %v1604_v60 }
  0x3e   : > { %1475 = vmatpush3.bf16.msra.mxu1 %v1603_v59 }
  0x3f   : > { %1476 = vmatprep.subr.bf16.mxu1 %v1606_v62 }
  0x40   : > { %1455 = vmatpush3.bf16.msra.mxu0 %v1605_v61 }
  0x41   : > { %1456 = vmatprep.subr.bf16.mxu0 %v1608_v0 }
  0x42   : > { %1477 = vmatpush3.bf16.msra.mxu1 %v1607_v63 }
  0x43   : > { %1478 = vmatprep.subr.bf16.mxu1 %v1610_v2 }
  0x44   : > { %1457 = vmatpush3.bf16.msra.mxu0 %v1609_v1 }
  0x45   : > { %1495 = vmatprep.subr.bf16.mxu0 %v1651_v6 }
  0x46   : > { %1479 = vmatpush3.bf16.msra.mxu1 %v1614_v5 }
  0x47   : > { %1043 = vmatmul.mubr.bf16.vlgmr.msra.gmra.mrb[4].mxu0 %v1611_v3 }
  0x48   : > { %1511 = vmatprep.mubr.msk.bf16.mxu0 %vm1652_vm0, %v1651_v6  ;;  %1496 = vmatpush3.bf16.msra.mxu0 %v1618_v9 }
  0x49   : > { %1084 = vmatmul.mubr.bf16.vlgmr.msra.gmra.mrb[4].mxu1 %v1615_v7  ;;  %1497 = vmatprep.subr.bf16.mxu0 %v1651_v6 }
  0x4c   : > { %1498 = vmatpush3.bf16.msra.mxu0 %v1619_v10 }
  0x4d   : > { %1499 = vmatprep.subr.bf16.mxu0 %v1651_v6 }
  0x50   : > { %1500 = vmatpush3.bf16.msra.mxu0 %v1620_v11 }
  0x51   : > { %1501 = vmatprep.subr.bf16.mxu0 %v1651_v6 }
  0x54   : > { %1502 = vmatpush3.bf16.msra.mxu0 %v1621_v12 }
  0x55   : > { %1503 = vmatprep.subr.bf16.mxu0 %v1651_v6 }
  0x58   : > { %1504 = vmatpush3.bf16.msra.mxu0 %v1622_v13 }
  0x59   : > { %1505 = vmatprep.subr.bf16.mxu0 %v1651_v6 }
  0x5c   : > { %1506 = vmatpush3.bf16.msra.mxu0 %v1623_v14 }
  0x5d   : > { %1507 = vmatprep.subr.bf16.mxu0 %v1651_v6 }
  0x60   : > { %1508 = vmatpush3.bf16.msra.mxu0 %v1624_v15 }
  0x61   : > { %1509 = vmatprep.subr.bf16.mxu0 %v1651_v6 }
  0x64   : > { %1510 = vmatpush3.bf16.msra.mxu0 %v1625_v16 }
  0x67   : > { %1512 = vmatmul.mubr.bf16.vlgmr.msra.gmra.mrb[8].mxu0 %v1626_v17 }
  0xfa   : > { %v1414_v18 = vpop.f32.mrb[0].mxu0 }
  0xfb   : > { %v1415_v20 = vpop.f32.mrb[1].mxu0 }
  0xfc   : > { %v1416_v21 = vadd.f32 %v1415_v20, %v1414_v18  ;;  %v1417_v22 = vpop.f32.mrb[2].mxu0  ;;  %v1436_v23 = vpop.f32.mrb[0].mxu1 }
  0xfd   : > { %v1418_v24 = vpop.f32.mrb[3].mxu0  ;;  %v1437_v27 = vpop.f32.mrb[1].mxu1 }
  0xfe   : > { %v963_v25 = vadd.f32 %v1416_v21, %v1313_v19  ;;  %v1419_v26 = vadd.f32 %v1418_v24, %v1417_v22  ;;  %v1438_v28 = vadd.f32 %v1437_v27, %v1436_v23  ;;  %v1439_v29 = vpop.f32.mrb[2].mxu1 }
  0xff   : > { %v1440_v31 = vpop.f32.mrb[3].mxu1 }
 0x100   : > { %v966_v30 = vadd.f32 %v1419_v26, %v1313_v19  ;;  %v1004_v32 = vadd.f32 %v1438_v28, %v963_v25  ;;  %v1441_v33 = vadd.f32 %v1440_v31, %v1439_v29 }
 0x102   : > { %v1007_v34 = vadd.f32 %v1441_v33, %v966_v30 }
 0x11a   : > { %v1458_v35 = vpop.f32.mrb[4].mxu0 }
 0x11b   : > { %v1459_v36 = vpop.f32.mrb[5].mxu0 }
 0x11c   : > { %v1460_v37 = vadd.f32 %v1459_v36, %v1458_v35  ;;  %v1461_v38 = vpop.f32.mrb[6].mxu0  ;;  %v1480_v39 = vpop.f32.mrb[4].mxu1 }
 0x11d   : > { %v1462_v40 = vpop.f32.mrb[7].mxu0  ;;  %v1481_v43 = vpop.f32.mrb[5].mxu1 }
 0x11e   : > { %v1045_v41 = vadd.f32 %v1460_v37, %v1004_v32  ;;  %v1463_v42 = vadd.f32 %v1462_v40, %v1461_v38  ;;  %v1482_v44 = vadd.f32 %v1481_v43, %v1480_v39  ;;  %v1483_v45 = vpop.f32.mrb[6].mxu1 }
 0x11f   : > { %v1484_v47 = vpop.f32.mrb[7].mxu1 }
 0x120   : > { %v1048_v46 = vadd.f32 %v1463_v42, %v1007_v34  ;;  %v1485_v48 = vadd.f32 %v1484_v47, %v1483_v45  ;;  %v1086_v49 = vadd.f32 %v1482_v44, %v1045_v41 }
 0x122   : > { %v1089_v50 = vadd.f32 %v1485_v48, %v1048_v46 }
 0x13a   : > { %v1126_v51 = vpop.f32.mrb[8].mxu0 }
 0x13b   : > { %v1127_v52 = vadd.f32 %v1126_v51, %v1086_v49  ;;  %v1513_v53 = vpop.f32.mrb[9].mxu0 }
 0x13c   : > { %v1129_v54 = vpop.f32.mrb[10].mxu0 }
 0x13d   : > { %1133 = vst [vmem:[%s278_s6] sm:$0xff] %v1127_v52  ;;  %v1130_v55 = vadd.f32 %v1129_v54, %v1089_v50  ;;  %v1514_v56 = vpop.f32.mrb[11].mxu0  ;;  %v1146_v57 = vmul.f32 %v1127_v52, %v1127_v52 }
 0x13f   : > { %1134 = vst [vmem:[%s278_s6 + $0x8] sm:$0xff] %v1130_v55  ;;  %v1142_v58 = vadd.f32 %v1130_v55, %v1127_v52  ;;  %v1147_v59 = vmul.f32 %v1130_v55, %v1130_v55 }
 0x141   : > { %v1148_v60 = vadd.f32 %v1147_v59, %v1146_v57  ;;  %1144 = vst [vmem:[%s283_s10] sm:$0xff] %v1142_v58 }
 0x143   : > { %1150 = vst [vmem:[%s287_s13] sm:$0xff] %v1148_v60 }
 0x144 PF: > { %s16_s20 = sadd.s32 1, %s1649_s20   ;;  %s1967_s18 = smov %s1645_s19 }
 0x145   : > { %p13_p5 = scmp.ge.s32.totalorder %s16_s20, 4   ;;  %s1968_s19 = smov %s1970_s21 }
 0x147   :  { %15 = sbr.rel (!%p13_p5) target bundleno = 2 (0x2), region = 90 }

// kernel: transformer_net.57
= control target key start
LH: loop header
LB: loop body
LE: loop exit
PB: predicated region body
PF: predicated region fallthrough
CT: control target
= control target key end

     0   :  { %s2153_s18 = smov 0   ;;  %s2155_s19 = smov 0   ;;  %s2461_s0 = inlined_call_operand.vmem [shape: bf16[2,64,1152], index: 0, kind: input, shape index: {}]   ;;  %s2462_s1 = inlined_call_operand.vmem [shape: bf16[1152,128], index: 1, kind: input, shape index: {}]   ;;  %s2463_s2 = inlined_call_operand.vmem [shape: f32[1,128], index: 2, kind: input, shape index: {}]   ;;  %s2464_s3 = inlined_call_operand.vmem [shape: f32[2,64,128], index: 3, kind: output, shape index: {0}]   ;;  %s2465_s4 = inlined_call_operand.vmem [shape: f32[2,8,128], index: 4, kind: output, shape index: {1}]   ;;  %s2466_s5 = inlined_call_operand.vmem [shape: f32[2,8,128], index: 5, kind: output, shape index: {2}]  }
   0x1   :  { %s2157_s20 = smov 0  }
   0x2 LB: > { %s28_s21 = sadd.s32 1, %s2117_s19  ;;  %p1619_p0 = scmp.ge.s32.totalorder %s2121_s20, 1  ;;  %s2121_s20 = sphi %s2157_s20, %s16_s20   ;;  %s2117_s19 = sphi %s2155_s19, %s2468_s19   ;;  %s2113_s18 = sphi %s2153_s18, %s2467_s18  }
   0x3   : > { %p30_p1 = scmp.ge.s32.totalorder %s28_s21, 2  ;;  %p214_p2 = scmp.lt.s32.totalorder %s2121_s20, 3 }
   0x5   : > { %s2470_s21 = smov (%p30_p1, %s28_s21), 0  ;;  %p215_p3 = pnand %p1619_p0, %p214_p2 }
   0x6   : > { %v1975_v0 = vld [vmem:[%s2462_s1 + $0x40] sm:$0xff] (!%p215_p3)   ;;  %v1979_v4 = vld [vmem:[%s2462_s1 + $0x48] sm:$0xff] (!%p215_p3)   ;;  %v1983_v8 = vld [vmem:[%s2462_s1 + $0x50] sm:$0xff] (!%p215_p3)   ;;  %p260_p4 = scmp.lt.s32.totalorder (!%p215_p3), %s2113_s18, 1 }
   0x7   : > { %218 = sbr.rel (%p215_p3) target bundleno = 339 (0x153), region = 32  ;;  %v1976_v1 = vld [vmem:[%s2462_s1 + $0xc0] sm:$0xff] (!%p215_p3)   ;;  %1737 = vmatprep.subr.bf16.mxu0 (!%p215_p3), %v1975_v0  ;;  %v1980_v5 = vld [vmem:[%s2462_s1 + $0xc8] sm:$0xff] (!%p215_p3)   ;;  %v1984_v9 = vld [vmem:[%s2462_s1 + $0xd0] sm:$0xff] (!%p215_p3)  }
   0x8   : > { %v1977_v2 = vld [vmem:[%s2462_s1] sm:$0xff] (!%p215_p3)   ;;  %1777 = vmatprep.subr.bf16.mxu1 (!%p215_p3), %v1976_v1  ;;  %v1981_v6 = vld [vmem:[%s2462_s1 + $0x8] sm:$0xff] (!%p215_p3)   ;;  %v1985_v10 = vld [vmem:[%s2462_s1 + $0x10] sm:$0xff] (!%p215_p3)  }
   0x9   : > { %v1978_v3 = vld [vmem:[%s2462_s1 + $0x80] sm:$0xff] (!%p215_p3)   ;;  %1738 = vmatpush3.bf16.msra.mxu0 (!%p215_p3), %v1977_v2  ;;  %v1982_v7 = vld [vmem:[%s2462_s1 + $0x88] sm:$0xff] (!%p215_p3)   ;;  %v1986_v11 = vld [vmem:[%s2462_s1 + $0x90] sm:$0xff] (!%p215_p3)  }
   0xa   : > { %1778 = vmatpush3.bf16.msra.mxu1 (!%p215_p3), %v1978_v3  ;;  %1739 = vmatprep.subr.bf16.mxu0 (!%p215_p3), %v1979_v4  ;;  %v1987_v12 = vld [vmem:[%s2462_s1 + $0x58] sm:$0xff] (!%p215_p3)   ;;  %v1991_v16 = vld [vmem:[%s2462_s1 + $0x60] sm:$0xff] (!%p215_p3)   ;;  %v1995_v20 = vld [vmem:[%s2462_s1 + $0x68] sm:$0xff] (!%p215_p3)  }
   0xb   : > { %1779 = vmatprep.subr.bf16.mxu1 (!%p215_p3), %v1980_v5  ;;  %v1988_v13 = vld [vmem:[%s2462_s1 + $0xd8] sm:$0xff] (!%p215_p3)   ;;  %v1992_v17 = vld [vmem:[%s2462_s1 + $0xe0] sm:$0xff] (!%p215_p3)   ;;  %v1996_v21 = vld [vmem:[%s2462_s1 + $0xe8] sm:$0xff] (!%p215_p3)  }
   0xc   : > { %v1989_v14 = vld [vmem:[%s2462_s1 + $0x18] sm:$0xff] (!%p215_p3)   ;;  %v1993_v18 = vld [vmem:[%s2462_s1 + $0x20] sm:$0xff] (!%p215_p3)   ;;  %v1997_v22 = vld [vmem:[%s2462_s1 + $0x28] sm:$0xff] (!%p215_p3)  }
   0xd   : > { %1740 = vmatpush3.bf16.msra.mxu0 (!%p215_p3), %v1981_v6  ;;  %v1990_v15 = vld [vmem:[%s2462_s1 + $0x98] sm:$0xff] (!%p215_p3)   ;;  %v1994_v19 = vld [vmem:[%s2462_s1 + $0xa0] sm:$0xff] (!%p215_p3)   ;;  %v1998_v23 = vld [vmem:[%s2462_s1 + $0xa8] sm:$0xff] (!%p215_p3)  }
   0xe   : > { %1780 = vmatpush3.bf16.msra.mxu1 %v1982_v7  ;;  %1741 = vmatprep.subr.bf16.mxu0 %v1983_v8  ;;  %s2472_s18 = smov (!%p260_p4, %s2113_s18), 1  ;;  %v1999_v24 = vld [vmem:[%s2462_s1 + $0x70] sm:$0xff]   ;;  %v2003_v28 = vld [vmem:[%s2462_s1 + $0x78] sm:$0xff]   ;;  %v2013_v36 = vld [vmem:[%s2462_s1 + $0x140] sm:$0xff]  }
   0xf   : > { %1781 = vmatprep.subr.bf16.mxu1 %v1984_v9  ;;  %v2000_v25 = vld [vmem:[%s2462_s1 + $0xf0] sm:$0xff]   ;;  %s1949_s7 = smul.u32 288, %s2472_s18  ;;  %v2004_v29 = vld [vmem:[%s2462_s1 + $0xf8] sm:$0xff]   ;;  %v2014_v37 = vld [vmem:[%s2462_s1 + $0x1c0] sm:$0xff]  }
  0x10   : > { %v2001_v26 = vld [vmem:[%s2462_s1 + $0x30] sm:$0xff]   ;;  %v2005_v30 = vld [vmem:[%s2462_s1 + $0x38] sm:$0xff]   ;;  %v2015_v38 = vld [vmem:[%s2462_s1 + $0x100] sm:$0xff]  }
  0x11   : > { %1742 = vmatpush3.bf16.msra.mxu0 %v1985_v10  ;;  %v2002_v27 = vld [vmem:[%s2462_s1 + $0xb0] sm:$0xff]   ;;  %s2271_s22 = scalar_lea.vmem %s2461_s0, %s1949_s7  ;;  %v2006_v31 = vld [vmem:[%s2462_s1 + $0xb8] sm:$0xff]   ;;  %v2016_v39 = vld [vmem:[%s2462_s1 + $0x180] sm:$0xff]   ;;  %s1623_s7 = sshll.u32 %s2472_s18, 3 }
  0x12   : > { %1782 = vmatpush3.bf16.msra.mxu1 %v1986_v11  ;;  %1743 = vmatprep.subr.bf16.mxu0 %v1987_v12  ;;  %v2007_v32 = vld [vmem:[%s2271_s22] ss:$36 sps:$4 sm:$0xff]   ;;  %v2010_v34 = vld [vmem:[%s2271_s22 + $0x8] ss:$36 sps:$4 sm:$0xff]   ;;  %v2023_v45 = vld [vmem:[%s2271_s22 + $0x54] ss:$36 sps:$4 sm:$0xff]   ;;  %s283_s10 = scalar_lea.vmem %s2465_s4, %s1623_s7  ;;  %s287_s13 = scalar_lea.vmem %s2466_s5, %s1623_s7 }
  0x13   : > { %1783 = vmatprep.subr.bf16.mxu1 %v1988_v13  ;;  %v2009_v33 = vld [vmem:[%s2271_s22 + $0x4] ss:$36 sps:$4 sm:$0xff]   ;;  %v2012_v35 = vld [vmem:[%s2271_s22 + $0xc] ss:$36 sps:$4 sm:$0xff]   ;;  %v2031_v52 = vld [vmem:[%s2462_s1 + $0x158] sm:$0xff]  }
  0x14   : > { %1128 = vmatprep.mubr.bf16.mxu0 %v2009_v33  ;;  %1193 = vmatprep.mubr.bf16.mxu1 %v2012_v35  ;;  %v2017_v40 = vld [vmem:[%s2462_s1 + $0x148] sm:$0xff]   ;;  %v2026_v47 = vld [vmem:[%s2271_s22 + $0x50] ss:$36 sps:$4 sm:$0xff]   ;;  %v2032_v53 = vld [vmem:[%s2462_s1 + $0x1d8] sm:$0xff]  }
  0x15   : > { %1744 = vmatpush3.bf16.msra.mxu0 %v1989_v14  ;;  %v2018_v41 = vld [vmem:[%s2462_s1 + $0x1c8] sm:$0xff]   ;;  %v2027_v48 = vld [vmem:[%s2462_s1 + $0x150] sm:$0xff]   ;;  %v2033_v54 = vld [vmem:[%s2462_s1 + $0x118] sm:$0xff]  }
  0x16   : > { %1784 = vmatpush3.bf16.msra.mxu1 %v1990_v15  ;;  %1745 = vmatprep.subr.bf16.mxu0 %v1991_v16  ;;  %v2019_v42 = vld [vmem:[%s2462_s1 + $0x108] sm:$0xff]   ;;  %v2028_v49 = vld [vmem:[%s2462_s1 + $0x1d0] sm:$0xff]   ;;  %v2034_v55 = vld [vmem:[%s2462_s1 + $0x198] sm:$0xff]  }
  0x17   : > { %1785 = vmatprep.subr.bf16.mxu1 %v1992_v17  ;;  %v2020_v43 = vld [vmem:[%s2462_s1 + $0x188] sm:$0xff]   ;;  %v2029_v50 = vld [vmem:[%s2462_s1 + $0x110] sm:$0xff]   ;;  %v2037_v57 = vld [vmem:[%s2271_s22 + $0x9c] ss:$36 sps:$4 sm:$0xff]  }
  0x18   : > { %v2021_v44 = vld [vmem:[%s2271_s22 + $0x4c] ss:$36 sps:$4 sm:$0xff]   ;;  %v2035_v56 = vld [vmem:[%s2271_s22 + $0x94] ss:$36 sps:$4 sm:$0xff]   ;;  %v2041_v60 = vld [vmem:[%s2462_s1 + $0x160] sm:$0xff]  }
  0x19   : > { %1746 = vmatpush3.bf16.msra.mxu0 %v1993_v18  ;;  %v2025_v46 = vld [vmem:[%s2271_s22 + $0x48] ss:$36 sps:$4 sm:$0xff]   ;;  %v2030_v51 = vld [vmem:[%s2462_s1 + $0x190] sm:$0xff]   ;;  %v2040_v59 = vld [vmem:[%s2271_s22 + $0x98] ss:$36 sps:$4 sm:$0xff]  }
  0x1a   : > { %1786 = vmatpush3.bf16.msra.mxu1 %v1994_v19  ;;  %1747 = vmatprep.subr.bf16.mxu0 %v1995_v20  ;;  %v2039_v58 = vld [vmem:[%s2271_s22 + $0x90] ss:$36 sps:$4 sm:$0xff]   ;;  %v2042_v61 = vld [vmem:[%s2462_s1 + $0x1e0] sm:$0xff]   ;;  %v2045_v0 = vld [vmem:[%s2462_s1 + $0x168] sm:$0xff]  }
  0x1b   : > { %1787 = vmatprep.subr.bf16.mxu1 %v1996_v21  ;;  %v2043_v62 = vld [vmem:[%s2462_s1 + $0x120] sm:$0xff]   ;;  %v2046_v1 = vld [vmem:[%s2462_s1 + $0x1e8] sm:$0xff]   ;;  %v2053_v6 = vld [vmem:[%s2271_s22 + $0xd8] ss:$36 sps:$4 sm:$0xff]  }
  0x1c   : > { %v2044_v63 = vld [vmem:[%s2462_s1 + $0x1a0] sm:$0xff]   ;;  %v2047_v2 = vld [vmem:[%s2462_s1 + $0x128] sm:$0xff]   ;;  %v2055_v8 = vld [vmem:[%s2462_s1 + $0x170] sm:$0xff]  }
  0x1d   : > { %1748 = vmatpush3.bf16.msra.mxu0 %v1997_v22  ;;  %v2048_v3 = vld [vmem:[%s2462_s1 + $0x1a8] sm:$0xff]   ;;  %v2049_v4 = vld [vmem:[%s2271_s22 + $0xdc] ss:$36 sps:$4 sm:$0xff]   ;;  %v2056_v9 = vld [vmem:[%s2462_s1 + $0x1f0] sm:$0xff]  }
  0x1e   : > { %1788 = vmatpush3.bf16.msra.mxu1 %v1998_v23  ;;  %1749 = vmatprep.subr.bf16.mxu0 %v1999_v24  ;;  %v2051_v5 = vld [vmem:[%s2271_s22 + $0xe4] ss:$36 sps:$4 sm:$0xff]   ;;  %v2057_v10 = vld [vmem:[%s2462_s1 + $0x130] sm:$0xff]   ;;  %v2059_v12 = vld [vmem:[%s2462_s1 + $0x178] sm:$0xff]  }
  0x1f   : > { %1789 = vmatprep.subr.bf16.mxu1 %v2000_v25  ;;  %v2054_v7 = vld [vmem:[%s2271_s22 + $0xe0] ss:$36 sps:$4 sm:$0xff]   ;;  %v2058_v11 = vld [vmem:[%s2462_s1 + $0x1b0] sm:$0xff]   ;;  %v2060_v13 = vld [vmem:[%s2462_s1 + $0x1f8] sm:$0xff]  }
  0x20   : > { %v2061_v14 = vld [vmem:[%s2462_s1 + $0x138] sm:$0xff]   ;;  %v2063_v16 = vld [vmem:[%s2271_s22 + $0x10] ss:$36 sps:$4 sm:$0xff]   ;;  %v2069_v20 = vld [vmem:[%s2462_s1 + $0x200] sm:$0xff]  }
  0x21   : > { %1750 = vmatpush3.bf16.msra.mxu0 %v2001_v26  ;;  %v2062_v15 = vld [vmem:[%s2462_s1 + $0x1b8] sm:$0xff]   ;;  %v2070_v21 = vld [vmem:[%s2462_s1 + $0x208] sm:$0xff]   ;;  %v2076_v25 = vld [vmem:[%s2271_s22 + $0x60] ss:$36 sps:$4 sm:$0xff]  }
  0x22   : > { %1790 = vmatpush3.bf16.msra.mxu1 %v2002_v27  ;;  %1751 = vmatprep.subr.bf16.mxu0 %v2003_v28  ;;  %v2065_v17 = vld [vmem:[%s2271_s22 + $0x14] ss:$36 sps:$4 sm:$0xff]   ;;  %v2068_v19 = vld [vmem:[%s2271_s22 + $0x1c] ss:$36 sps:$4 sm:$0xff]   ;;  %v2073_v23 = vld [vmem:[%s2271_s22 + $0x64] ss:$36 sps:$4 sm:$0xff]  }
  0x23   : > { %1791 = vmatprep.subr.bf16.mxu1 %v2004_v29  ;;  %v2066_v18 = vld [vmem:[%s2271_s22 + $0x18] ss:$36 sps:$4 sm:$0xff]   ;;  %v2077_v26 = vld [vmem:[%s2462_s1 + $0x210] sm:$0xff]   ;;  %v2079_v27 = vld [vmem:[%s2271_s22 + $0xa4] ss:$36 sps:$4 sm:$0xff]  }
  0x24   : > { %v2071_v22 = vld [vmem:[%s2271_s22 + $0x5c] ss:$36 sps:$4 sm:$0xff]   ;;  %v2081_v28 = vld [vmem:[%s2271_s22 + $0xac] ss:$36 sps:$4 sm:$0xff]  }
  0x25   : > { %1752 = vmatpush3.bf16.msra.mxu0 %v2005_v30  ;;  %v2075_v24 = vld [vmem:[%s2271_s22 + $0x58] ss:$36 sps:$4 sm:$0xff]   ;;  %v2083_v30 = vld [vmem:[%s2271_s22 + $0xa0] ss:$36 sps:$4 sm:$0xff]   ;;  %v2087_v33 = vld [vmem:[%s2271_s22 + $0xec] ss:$36 sps:$4 sm:$0xff]  }
  0x26   : > { %1792 = vmatpush3.bf16.msra.mxu1 %v2006_v31  ;;  %1817 = vmatprep.subr.bf16.mxu0 %v2013_v36  ;;  %v2078_v29 = vld [vmem:[%s2462_s1 + $0x218] sm:$0xff]   ;;  %v2084_v31 = vld [vmem:[%s2271_s22 + $0xa8] ss:$36 sps:$4 sm:$0xff]  }
  0x27   : > { %1857 = vmatprep.subr.bf16.mxu1 %v2014_v37  ;;  %v2086_v35 = vld [vmem:[%s2462_s1 + $0x228] sm:$0xff]   ;;  %v2093_v37 = vld [vmem:[%s2462_s1 + $0x230] sm:$0xff]  }
  0x28   : > { %1129 = vmatmul.mubr.bf16.vlgmr.msra.gmra.mrb[0].mxu0 %v2007_v32  ;;  %v2085_v32 = vld [vmem:[%s2462_s1 + $0x220] sm:$0xff]   ;;  %v2091_v36 = vld [vmem:[%s2271_s22 + $0xe8] ss:$36 sps:$4 sm:$0xff]  }
  0x29   : > { %1194 = vmatmul.mubr.bf16.vlgmr.msra.gmra.mrb[0].mxu1 %v2010_v34  ;;  %1818 = vmatpush3.bf16.msra.mxu0 %v2015_v38  ;;  %v2089_v34 = vld [vmem:[%s2271_s22 + $0xf4] ss:$36 sps:$4 sm:$0xff]  }
  0x2a   : > { %1858 = vmatpush3.bf16.msra.mxu1 %v2016_v39  ;;  %1819 = vmatprep.subr.bf16.mxu0 %v2017_v40  ;;  %v2092_v38 = vld [vmem:[%s2271_s22 + $0xf0] ss:$36 sps:$4 sm:$0xff]   ;;  %v2095_v39 = vld [vmem:[%s2271_s22 + $0x20] ss:$36 sps:$4 sm:$0xff]  }
  0x2b   : > { %1859 = vmatprep.subr.bf16.mxu1 %v2018_v41  ;;  %1136 = vmatprep.mubr.bf16.mxu0 %v2021_v44  ;;  %v2096_v40 = vld [vmem:[%s2271_s22 + $0xb0] ss:$36 sps:$4 sm:$0xff]   ;;  %v2094_v41 = vld [vmem:[%s2462_s1 + $0x238] sm:$0xff]  }
  0x2c   : > { %1201 = vmatprep.mubr.bf16.mxu1 %v2023_v45  ;;  %v1625_v45 = vld [vmem:[%s2463_s2] ss:$0 sm:$0xff] }
  0x2d   : > { %1820 = vmatpush3.bf16.msra.mxu0 %v2019_v42  ;;  %v2097_v42 = vld [vmem:[%s2271_s22 + $0x68] ss:$36 sps:$4 sm:$0xff]  }
  0x2e   : > { %1860 = vmatpush3.bf16.msra.mxu1 %v2020_v43  ;;  %1821 = vmatprep.subr.bf16.mxu0 %v2027_v48  ;;  %v2098_v43 = vld [vmem:[%s2271_s22 + $0xf8] ss:$36 sps:$4 sm:$0xff]   ;;  %s1736_s22 = sshll.u32 %s2472_s18, 6 }
  0x2f   : > { %1861 = vmatprep.subr.bf16.mxu1 %v2028_v49  ;;  %s278_s6 = scalar_lea.vmem %s2464_s3, %s1736_s22 }
  0x30   : > { %1137 = vmatmul.mubr.bf16.gmra.mrb[4].mxu0 %v2025_v46 }
  0x31   : > { %1202 = vmatmul.mubr.bf16.gmra.mrb[4].mxu1 %v2026_v47  ;;  %1822 = vmatpush3.bf16.msra.mxu0 %v2029_v50 }
  0x32   : > { %1862 = vmatpush3.bf16.msra.mxu1 %v2030_v51  ;;  %1823 = vmatprep.subr.bf16.mxu0 %v2031_v52 }
  0x33   : > { %1863 = vmatprep.subr.bf16.mxu1 %v2032_v53  ;;  %1144 = vmatprep.mubr.bf16.mxu0 %v2035_v56 }
  0x34   : > { %1209 = vmatprep.mubr.bf16.mxu1 %v2037_v57 }
  0x35   : > { %1824 = vmatpush3.bf16.msra.mxu0 %v2033_v54 }
  0x36   : > { %1864 = vmatpush3.bf16.msra.mxu1 %v2034_v55  ;;  %1825 = vmatprep.subr.bf16.mxu0 %v2041_v60 }
  0x37   : > { %1865 = vmatprep.subr.bf16.mxu1 %v2042_v61 }
  0x38   : > { %1145 = vmatmul.mubr.bf16.gmra.mrb[8].mxu0 %v2039_v58 }
  0x39   : > { %1210 = vmatmul.mubr.bf16.gmra.mrb[8].mxu1 %v2040_v59  ;;  %1826 = vmatpush3.bf16.msra.mxu0 %v2043_v62 }
  0x3a   : > { %1866 = vmatpush3.bf16.msra.mxu1 %v2044_v63  ;;  %1827 = vmatprep.subr.bf16.mxu0 %v2045_v0 }
  0x3b   : > { %1867 = vmatprep.subr.bf16.mxu1 %v2046_v1  ;;  %1152 = vmatprep.mubr.bf16.mxu0 %v2049_v4 }
  0x3c   : > { %1217 = vmatprep.mubr.bf16.mxu1 %v2051_v5 }
  0x3d   : > { %1828 = vmatpush3.bf16.msra.mxu0 %v2047_v2 }
  0x3e   : > { %1868 = vmatpush3.bf16.msra.mxu1 %v2048_v3  ;;  %1829 = vmatprep.subr.bf16.mxu0 %v2055_v8 }
  0x3f   : > { %1869 = vmatprep.subr.bf16.mxu1 %v2056_v9 }
  0x40   : > { %1153 = vmatmul.mubr.bf16.gmra.mrb[12].mxu0 %v2053_v6 }
  0x41   : > { %1218 = vmatmul.mubr.bf16.gmra.mrb[12].mxu1 %v2054_v7  ;;  %1830 = vmatpush3.bf16.msra.mxu0 %v2057_v10 }
  0x42   : > { %1870 = vmatpush3.bf16.msra.mxu1 %v2058_v11  ;;  %1831 = vmatprep.subr.bf16.mxu0 %v2059_v12 }
  0x43   : > { %1871 = vmatprep.subr.bf16.mxu1 %v2060_v13  ;;  %1258 = vmatprep.mubr.bf16.mxu0 %v2065_v17 }
  0x44   : > { %1323 = vmatprep.mubr.bf16.mxu1 %v2068_v19 }
  0x45   : > { %1832 = vmatpush3.bf16.msra.mxu0 %v2061_v14 }
  0x46   : > { %1872 = vmatpush3.bf16.msra.mxu1 %v2062_v15  ;;  %1909 = vmatprep.subr.bf16.mxu0 %v2069_v20 }
  0x47   : > { %1933 = vmatprep.subr.bf16.mxu1 %v2069_v20 }
  0x48   : > { %1259 = vmatmul.mubr.bf16.vlgmr.msra.gmra.mrb[16].mxu0 %v2063_v16 }
  0x49   : > { %1324 = vmatmul.mubr.bf16.vlgmr.msra.gmra.mrb[16].mxu1 %v2066_v18  ;;  %1910 = vmatpush3.bf16.msra.mxu0 %v2069_v20 }
  0x4a   : > { %1941 = vmatpush3.bf16.msra.mxu1 %v2069_v20  ;;  %1911 = vmatprep.subr.bf16.mxu0 %v2070_v21 }
  0x4b   : > { %1934 = vmatprep.subr.bf16.mxu1 %v2070_v21  ;;  %1266 = vmatprep.mubr.bf16.mxu0 %v2071_v22 }
  0x4c   : > { %1331 = vmatprep.mubr.bf16.mxu1 %v2073_v23 }
  0x4d   : > { %1912 = vmatpush3.bf16.msra.mxu0 %v2070_v21 }
  0x4e   : > { %1942 = vmatpush3.bf16.msra.mxu1 %v2070_v21  ;;  %1913 = vmatprep.subr.bf16.mxu0 %v2077_v26 }
  0x4f   : > { %1935 = vmatprep.subr.bf16.mxu1 %v2077_v26 }
  0x50   : > { %1267 = vmatmul.mubr.bf16.gmra.mrb[20].mxu0 %v2075_v24 }
  0x51   : > { %1332 = vmatmul.mubr.bf16.gmra.mrb[20].mxu1 %v2076_v25  ;;  %1274 = vmatprep.mubr.bf16.mxu0 %v2079_v27 }
  0x52   : > { %1914 = vmatpush3.bf16.msra.mxu0 %v2077_v26  ;;  %1339 = vmatprep.mubr.bf16.mxu1 %v2081_v28 }
  0x53   : > { %1943 = vmatpush3.bf16.msra.mxu1 %v2077_v26  ;;  %1915 = vmatprep.subr.bf16.mxu0 %v2078_v29 }
  0x54   : > { %1936 = vmatprep.subr.bf16.mxu1 %v2078_v29 }
  0x56   : > { %1916 = vmatpush3.bf16.msra.mxu0 %v2078_v29 }
  0x57   : > { %1944 = vmatpush3.bf16.msra.mxu1 %v2078_v29  ;;  %1917 = vmatprep.subr.bf16.mxu0 %v2085_v32 }
  0x58   : > { %1275 = vmatmul.mubr.bf16.gmra.mrb[24].mxu0 %v2083_v30  ;;  %1937 = vmatprep.subr.bf16.mxu1 %v2085_v32 }
  0x59   : > { %1340 = vmatmul.mubr.bf16.gmra.mrb[24].mxu1 %v2084_v31  ;;  %1282 = vmatprep.mubr.bf16.mxu0 %v2087_v33 }
  0x5a   : > { %1918 = vmatpush3.bf16.msra.mxu0 %v2085_v32  ;;  %1347 = vmatprep.mubr.bf16.mxu1 %v2089_v34 }
  0x5b   : > { %1945 = vmatpush3.bf16.msra.mxu1 %v2085_v32  ;;  %1919 = vmatprep.subr.bf16.mxu0 %v2086_v35 }
  0x5c   : > { %1938 = vmatprep.subr.bf16.mxu1 %v2086_v35 }
  0x5e   : > { %1920 = vmatpush3.bf16.msra.mxu0 %v2086_v35 }
  0x5f   : > { %1946 = vmatpush3.bf16.msra.mxu1 %v2086_v35  ;;  %1921 = vmatprep.subr.bf16.mxu0 %v2093_v37 }
  0x60   : > { %1283 = vmatmul.mubr.bf16.gmra.mrb[28].mxu0 %v2091_v36  ;;  %1939 = vmatprep.subr.bf16.mxu1 %v2093_v37 }
  0x61   : > { %1348 = vmatmul.mubr.bf16.gmra.mrb[28].mxu1 %v2092_v38  ;;  %1925 = vmatprep.mubr.bf16.mxu0 %v2095_v39 }
  0x62   : > { %1922 = vmatpush3.bf16.msra.mxu0 %v2093_v37  ;;  %1929 = vmatprep.mubr.bf16.mxu1 %v2096_v40 }
  0x63   : > { %1947 = vmatpush3.bf16.msra.mxu1 %v2093_v37  ;;  %1923 = vmatprep.subr.bf16.mxu0 %v2094_v41 }
  0x64   : > { %1940 = vmatprep.subr.bf16.mxu1 %v2094_v41 }
  0x66   : > { %1924 = vmatpush3.bf16.msra.mxu0 %v2094_v41 }
  0x67   : > { %1948 = vmatpush3.bf16.msra.mxu1 %v2094_v41 }
  0x69   : > { %1926 = vmatmul.mubr.bf16.vlgmr.msra.gmra.mrb[32].mxu0 %v2097_v42 }
  0x6a   : > { %1930 = vmatmul.mubr.bf16.vlgmr.msra.gmra.mrb[32].mxu1 %v2098_v43 }
  0xfb   : > { %v1753_v44 = vpop.f32.mrb[0].mxu0 }
  0xfc   : > { %v1754_v46 = vpop.f32.mrb[1].mxu0  ;;  %v1793_v47 = vpop.f32.mrb[0].mxu1 }
  0xfd   : > { %v1755_v48 = vadd.f32 %v1754_v46, %v1753_v44  ;;  %v1756_v49 = vpop.f32.mrb[2].mxu0  ;;  %v1794_v50 = vpop.f32.mrb[1].mxu1 }
  0xfe   : > { %v1757_v51 = vpop.f32.mrb[3].mxu0  ;;  %v1795_v52 = vadd.f32 %v1794_v50, %v1793_v47  ;;  %v1796_v53 = vpop.f32.mrb[2].mxu1 }
  0xff   : > { %v1131_v54 = vadd.f32 %v1755_v48, %v1625_v45  ;;  %v1758_v55 = vadd.f32 %v1757_v51, %v1756_v49  ;;  %v1797_v56 = vpop.f32.mrb[3].mxu1 }
 0x100   : > { %v1798_v57 = vadd.f32 %v1797_v56, %v1796_v53 }
 0x101   : > { %v1134_v58 = vadd.f32 %v1758_v55, %v1625_v45  ;;  %v1196_v59 = vadd.f32 %v1795_v52, %v1131_v54 }
 0x103   : > { %v1199_v60 = vadd.f32 %v1798_v57, %v1134_v58  ;;  %v1759_v61 = vpop.f32.mrb[4].mxu0 }
 0x104   : > { %v1760_v62 = vpop.f32.mrb[5].mxu0  ;;  %v1799_v63 = vpop.f32.mrb[4].mxu1 }
 0x105   : > { %v1761_v0 = vadd.f32 %v1760_v62, %v1759_v61  ;;  %v1762_v1 = vpop.f32.mrb[6].mxu0  ;;  %v1800_v2 = vpop.f32.mrb[5].mxu1 }
 0x106   : > { %v1763_v3 = vpop.f32.mrb[7].mxu0  ;;  %v1801_v4 = vadd.f32 %v1800_v2, %v1799_v63  ;;  %v1802_v5 = vpop.f32.mrb[6].mxu1 }
 0x107   : > { %v1139_v6 = vadd.f32 %v1761_v0, %v1625_v45  ;;  %v1764_v7 = vadd.f32 %v1763_v3, %v1762_v1  ;;  %v1803_v8 = vpop.f32.mrb[7].mxu1 }
 0x108   : > { %v1804_v9 = vadd.f32 %v1803_v8, %v1802_v5 }
 0x109   : > { %v1142_v10 = vadd.f32 %v1764_v7, %v1625_v45  ;;  %v1204_v11 = vadd.f32 %v1801_v4, %v1139_v6 }
 0x10b   : > { %v1207_v12 = vadd.f32 %v1804_v9, %v1142_v10  ;;  %v1765_v13 = vpop.f32.mrb[8].mxu0 }
 0x10c   : > { %v1766_v14 = vpop.f32.mrb[9].mxu0  ;;  %v1805_v15 = vpop.f32.mrb[8].mxu1 }
 0x10d   : > { %v1767_v16 = vadd.f32 %v1766_v14, %v1765_v13  ;;  %v1768_v17 = vpop.f32.mrb[10].mxu0  ;;  %v1806_v18 = vpop.f32.mrb[9].mxu1 }
 0x10e   : > { %v1769_v19 = vpop.f32.mrb[11].mxu0  ;;  %v1807_v20 = vadd.f32 %v1806_v18, %v1805_v15  ;;  %v1808_v21 = vpop.f32.mrb[10].mxu1 }
 0x10f   : > { %v1147_v22 = vadd.f32 %v1767_v16, %v1625_v45  ;;  %v1770_v23 = vadd.f32 %v1769_v19, %v1768_v17  ;;  %v1809_v24 = vpop.f32.mrb[11].mxu1 }
 0x110   : > { %v1810_v25 = vadd.f32 %v1809_v24, %v1808_v21 }
 0x111   : > { %v1150_v26 = vadd.f32 %v1770_v23, %v1625_v45  ;;  %v1212_v27 = vadd.f32 %v1807_v20, %v1147_v22 }
 0x113   : > { %v1215_v28 = vadd.f32 %v1810_v25, %v1150_v26  ;;  %v1771_v29 = vpop.f32.mrb[12].mxu0 }
 0x114   : > { %v1811_v30 = vpop.f32.mrb[12].mxu1  ;;  %v1772_v31 = vpop.f32.mrb[13].mxu0 }
 0x115   : > { %v1812_v32 = vpop.f32.mrb[13].mxu1  ;;  %v1773_v33 = vadd.f32 %v1772_v31, %v1771_v29  ;;  %v1774_v34 = vpop.f32.mrb[14].mxu0 }
 0x116   : > { %v1813_v35 = vadd.f32 %v1812_v32, %v1811_v30  ;;  %v1814_v36 = vpop.f32.mrb[14].mxu1  ;;  %v1775_v37 = vpop.f32.mrb[15].mxu0 }
 0x117   : > { %v1815_v38 = vpop.f32.mrb[15].mxu1  ;;  %v1155_v39 = vadd.f32 %v1773_v33, %v1625_v45  ;;  %v1776_v40 = vadd.f32 %v1775_v37, %v1774_v34 }
 0x118   : > { %v1816_v41 = vadd.f32 %v1815_v38, %v1814_v36 }
 0x119   : > { %v1158_v42 = vadd.f32 %v1776_v40, %v1625_v45  ;;  %v1220_v43 = vadd.f32 %v1813_v35, %v1155_v39 }
 0x11b   : > { %v1223_v44 = vadd.f32 %v1816_v41, %v1158_v42  ;;  %v1833_v46 = vpop.f32.mrb[16].mxu0 }
 0x11c   : > { %v1834_v47 = vpop.f32.mrb[17].mxu0  ;;  %v1873_v50 = vpop.f32.mrb[16].mxu1 }
 0x11d   : > { %v1835_v48 = vadd.f32 %v1834_v47, %v1833_v46  ;;  %v1836_v49 = vpop.f32.mrb[18].mxu0  ;;  %v1874_v52 = vpop.f32.mrb[17].mxu1 }
 0x11e   : > { %v1837_v51 = vpop.f32.mrb[19].mxu0  ;;  %v1875_v55 = vadd.f32 %v1874_v52, %v1873_v50  ;;  %v1876_v56 = vpop.f32.mrb[18].mxu1 }
 0x11f   : > { %v1261_v53 = vadd.f32 %v1835_v48, %v1196_v59  ;;  %v1838_v54 = vadd.f32 %v1837_v51, %v1836_v49  ;;  %v1877_v57 = vpop.f32.mrb[19].mxu1 }
 0x120   : > { %v1878_v61 = vadd.f32 %v1877_v57, %v1876_v56 }
 0x121   : > { %v1264_v58 = vadd.f32 %v1838_v54, %v1199_v60  ;;  %v1326_v62 = vadd.f32 %v1875_v55, %v1261_v53 }
 0x123   : > { %v1839_v63 = vpop.f32.mrb[20].mxu0  ;;  %v2438_v0 = vadd.f32 %v1878_v61, %v1264_v58 }
 0x124   : > { %v1840_v45 = vpop.f32.mrb[21].mxu0  ;;  %v1879_v3 = vpop.f32.mrb[20].mxu1 }
 0x125   : > { %v1841_v1 = vadd.f32 %v1840_v45, %v1839_v63  ;;  %v1842_v2 = vpop.f32.mrb[22].mxu0  ;;  %v1880_v5 = vpop.f32.mrb[21].mxu1 }
 0x126   : > { %v1843_v4 = vpop.f32.mrb[23].mxu0  ;;  %v1881_v8 = vadd.f32 %v1880_v5, %v1879_v3  ;;  %v1882_v59 = vpop.f32.mrb[22].mxu1 }
 0x127   : > { %v1269_v6 = vadd.f32 %v1841_v1, %v1204_v11  ;;  %v1844_v7 = vadd.f32 %v1843_v4, %v1842_v2  ;;  %v1883_v9 = vpop.f32.mrb[23].mxu1 }
 0x128   : > { %v1884_v13 = vadd.f32 %v1883_v9, %v1882_v59 }
 0x129   : > { %v1272_v10 = vadd.f32 %v1844_v7, %v1207_v12  ;;  %v1334_v14 = vadd.f32 %v1881_v8, %v1269_v6 }
 0x12b   : > { %v1845_v60 = vpop.f32.mrb[24].mxu0  ;;  %v1337_v15 = vadd.f32 %v1884_v13, %v1272_v10 }
 0x12c   : > { %v1846_v16 = vpop.f32.mrb[25].mxu0  ;;  %v1885_v19 = vpop.f32.mrb[24].mxu1 }
 0x12d   : > { %v1847_v17 = vadd.f32 %v1846_v16, %v1845_v60  ;;  %v1848_v18 = vpop.f32.mrb[26].mxu0  ;;  %v1886_v21 = vpop.f32.mrb[25].mxu1 }
 0x12e   : > { %v1849_v20 = vpop.f32.mrb[27].mxu0  ;;  %v1887_v24 = vadd.f32 %v1886_v21, %v1885_v19  ;;  %v1888_v25 = vpop.f32.mrb[26].mxu1 }
 0x12f   : > { %v1277_v22 = vadd.f32 %v1847_v17, %v1212_v27  ;;  %v1850_v23 = vadd.f32 %v1849_v20, %v1848_v18  ;;  %v1889_v11 = vpop.f32.mrb[27].mxu1 }
 0x130   : > { %v1890_v29 = vadd.f32 %v1889_v11, %v1888_v25 }
 0x131   : > { %v1280_v26 = vadd.f32 %v1850_v23, %v1215_v28  ;;  %v1342_v30 = vadd.f32 %v1887_v24, %v1277_v22 }
 0x133   : > { %v1851_v31 = vpop.f32.mrb[28].mxu0  ;;  %v1345_v12 = vadd.f32 %v1890_v29, %v1280_v26 }
 0x134   : > { %v1852_v32 = vpop.f32.mrb[29].mxu0  ;;  %v1891_v35 = vpop.f32.mrb[28].mxu1 }
 0x135   : > { %v1853_v33 = vadd.f32 %v1852_v32, %v1851_v31  ;;  %v1854_v34 = vpop.f32.mrb[30].mxu0  ;;  %v1892_v37 = vpop.f32.mrb[29].mxu1 }
 0x136   : > { %v1855_v36 = vpop.f32.mrb[31].mxu0  ;;  %v1893_v40 = vadd.f32 %v1892_v37, %v1891_v35  ;;  %v1894_v27 = vpop.f32.mrb[30].mxu1 }
 0x137   : > { %v1285_v38 = vadd.f32 %v1853_v33, %v1220_v43  ;;  %v1856_v39 = vadd.f32 %v1855_v36, %v1854_v34  ;;  %v1895_v41 = vpop.f32.mrb[31].mxu1 }
 0x138   : > { %v1896_v46 = vadd.f32 %v1895_v41, %v1894_v27 }
 0x139   : > { %v1288_v42 = vadd.f32 %v1856_v39, %v1223_v44  ;;  %v1350_v47 = vadd.f32 %v1893_v40, %v1285_v38 }
 0x13b   : > { %v1353_v28 = vadd.f32 %v1896_v46, %v1288_v42 }
 0x13c   : > { %v1927_v48 = vpop.f32.mrb[32].mxu0 }
 0x13d   : > { %v1399_v49 = vadd.f32 %v1927_v48, %v1334_v14  ;;  %v1931_v50 = vpop.f32.mrb[32].mxu1  ;;  %v1390_v51 = vpop.f32.mrb[33].mxu0 }
 0x13e   : > { %v1415_v52 = vadd.f32 %v1931_v50, %v1350_v47  ;;  %v1391_v53 = vadd.f32 %v1390_v51, %v1326_v62  ;;  %v1406_v43 = vpop.f32.mrb[33].mxu1  ;;  %v1928_v54 = vpop.f32.mrb[34].mxu0 }
 0x13f   : > { %1423 = vst [vmem:[%s278_s6 + $0x10] sm:$0xff] %v1399_v49  ;;  %v1407_v55 = vadd.f32 %v1406_v43, %v1342_v30  ;;  %v1402_v56 = vadd.f32 %v1928_v54, %v1337_v15  ;;  %v1932_v44 = vpop.f32.mrb[34].mxu1  ;;  %v1393_v57 = vpop.f32.mrb[35].mxu0  ;;  %v1448_v3 = vmul.f32 %v1399_v49, %v1399_v49 }
 0x140   : > { %1427 = vst [vmem:[%s278_s6 + $0x30] sm:$0xff] %v1415_v52  ;;  %1421 = vst [vmem:[%s278_s6] sm:$0xff] %v1391_v53  ;;  %v1418_v58 = vadd.f32 %v1932_v44, %v1353_v28  ;;  %v1394_v61 = vadd.f32 %v1393_v57, %v2438_v0  ;;  %v1409_v63 = vpop.f32.mrb[35].mxu1  ;;  %v1446_v1 = vmul.f32 %v1391_v53, %v1391_v53 }
 0x141   : > { %1425 = vst [vmem:[%s278_s6 + $0x20] sm:$0xff] %v1407_v55  ;;  %1424 = vst [vmem:[%s278_s6 + $0x18] sm:$0xff] %v1402_v56  ;;  %v1410_v45 = vadd.f32 %v1409_v63, %v1345_v12  ;;  %v1449_v6 = vmul.f32 %v1402_v56, %v1402_v56  ;;  %v1450_v59 = vmul.f32 %v1407_v55, %v1407_v55 }
 0x142   : > { %1428 = vst [vmem:[%s278_s6 + $0x38] sm:$0xff] %v1418_v58  ;;  %1422 = vst [vmem:[%s278_s6 + $0x8] sm:$0xff] %v1394_v61  ;;  %v1436_v62 = vadd.f32 %v1394_v61, %v1391_v53  ;;  %v1447_v2 = vmul.f32 %v1394_v61, %v1394_v61  ;;  %v1452_v60 = vmul.f32 %v1415_v52, %v1415_v52 }
 0x143   : > { %1426 = vst [vmem:[%s278_s6 + $0x28] sm:$0xff] %v1410_v45  ;;  %v1451_v13 = vmul.f32 %v1410_v45, %v1410_v45  ;;  %v1453_v17 = vmul.f32 %v1418_v58, %v1418_v58 }
 0x144   : > { %v1437_v4 = vadd.f32 %v1436_v62, %v1399_v49  ;;  %v1454_v5 = vadd.f32 %v1447_v2, %v1446_v1 }
 0x146   : > { %v1455_v7 = vadd.f32 %v1454_v5, %v1448_v3  ;;  %v1438_v8 = vadd.f32 %v1437_v4, %v1402_v56 }
 0x148   : > { %v1439_v9 = vadd.f32 %v1438_v8, %v1407_v55  ;;  %v1456_v0 = vadd.f32 %v1455_v7, %v1449_v6 }
 0x14a   : > { %v1440_v10 = vadd.f32 %v1439_v9, %v1410_v45  ;;  %v1457_v14 = vadd.f32 %v1456_v0, %v1450_v59 }
 0x14c   : > { %v1441_v15 = vadd.f32 %v1440_v10, %v1415_v52  ;;  %v1458_v16 = vadd.f32 %v1457_v14, %v1451_v13 }
 0x14e   : > { %v1442_v18 = vadd.f32 %v1441_v15, %v1418_v58  ;;  %v1459_v19 = vadd.f32 %v1458_v16, %v1452_v60 }
 0x150   : > { %v1460_v20 = vadd.f32 %v1459_v19, %v1453_v17  ;;  %1444 = vst [vmem:[%s283_s10] sm:$0xff] %v1442_v18 }
 0x152   : > { %1462 = vst [vmem:[%s287_s13] sm:$0xff] %v1460_v20 }
 0x153 PF: > { %s16_s20 = sadd.s32 1, %s2121_s20   ;;  %s2467_s18 = smov %s2117_s19 }
 0x154   : > { %p13_p5 = scmp.ge.s32.totalorder %s16_s20, 4   ;;  %s2468_s19 = smov %s2470_s21 }
 0x156   :  { %15 = sbr.rel (!%p13_p5) target bundleno = 2 (0x2), region = 90 }

// kernel: transformer_net.59
= control target key start
LH: loop header
LB: loop body
LE: loop exit
PB: predicated region body
PF: predicated region fallthrough
CT: control target
= control target key end

     0   :  { %s2579_s18 = smov 0   ;;  %s2581_s19 = smov 0   ;;  %s3034_s0 = inlined_call_operand.vmem [shape: bf16[2,256,640], index: 0, kind: input, shape index: {}]   ;;  %s3035_s1 = inlined_call_operand.vmem [shape: bf16[640,128], index: 1, kind: input, shape index: {}]   ;;  %s3036_s2 = inlined_call_operand.vmem [shape: f32[1,128], index: 2, kind: input, shape index: {}]   ;;  %s3037_s3 = inlined_call_operand.vmem [shape: f32[2,256,128], index: 3, kind: output, shape index: {0}]   ;;  %s3038_s4 = inlined_call_operand.vmem [shape: f32[2,8,128], index: 4, kind: output, shape index: {1}]   ;;  %s3039_s5 = inlined_call_operand.vmem [shape: f32[2,8,128], index: 5, kind: output, shape index: {2}]  }
   0x1   :  { %s2583_s20 = smov 0  }
   0x2 LB: > { %s28_s21 = sadd.s32 1, %s2543_s19  ;;  %p1905_p0 = scmp.ge.s32.totalorder %s2547_s20, 1  ;;  %s2547_s20 = sphi %s2583_s20, %s16_s20   ;;  %s2543_s19 = sphi %s2581_s19, %s3041_s19   ;;  %s2539_s18 = sphi %s2579_s18, %s3040_s18  }
   0x3   : > { %p30_p1 = scmp.ge.s32.totalorder %s28_s21, 2  ;;  %p214_p2 = scmp.lt.s32.totalorder %s2547_s20, 3 }
   0x5   : > { %s3043_s21 = smov (%p30_p1, %s28_s21), 0  ;;  %p215_p3 = pnand %p1905_p0, %p214_p2 }
   0x6   : > { %v2373_v0 = vld [vmem:[%s3035_s1 + $0x40] sm:$0xff] (!%p215_p3)   ;;  %v2375_v2 = vld [vmem:[%s3035_s1 + $0x48] sm:$0xff] (!%p215_p3)   ;;  %p260_p4 = scmp.lt.s32.totalorder (!%p215_p3), %s2539_s18, 1  ;;  %v2377_v4 = vld [vmem:[%s3035_s1 + $0x50] sm:$0xff] (!%p215_p3)  }
   0x7   : > { %218 = sbr.rel (%p215_p3) target bundleno = 418 (0x1a2), region = 32  ;;  %v2374_v1 = vld [vmem:[%s3035_s1] sm:$0xff] (!%p215_p3)   ;;  %2035 = vmatprep.subr.bf16.mxu0 (!%p215_p3), %v2373_v0  ;;  %2331 = vmatprep.subr.bf16.mxu1 (!%p215_p3), %v2373_v0  ;;  %v2376_v3 = vld [vmem:[%s3035_s1 + $0x8] sm:$0xff] (!%p215_p3)   ;;  %v2378_v5 = vld [vmem:[%s3035_s1 + $0x10] sm:$0xff] (!%p215_p3)  }
   0x8   : > { %2036 = vmatpush3.bf16.msra.mxu0 (!%p215_p3), %v2374_v1  ;;  %2339 = vmatpush3.bf16.msra.mxu1 (!%p215_p3), %v2374_v1  ;;  %v2379_v6 = vld [vmem:[%s3035_s1 + $0x58] sm:$0xff] (!%p215_p3)   ;;  %v2381_v8 = vld [vmem:[%s3035_s1 + $0x60] sm:$0xff] (!%p215_p3)   ;;  %v2383_v10 = vld [vmem:[%s3035_s1 + $0x68] sm:$0xff] (!%p215_p3)  }
   0x9   : > { %2037 = vmatprep.subr.bf16.mxu0 (!%p215_p3), %v2375_v2  ;;  %2332 = vmatprep.subr.bf16.mxu1 (!%p215_p3), %v2375_v2  ;;  %v2380_v7 = vld [vmem:[%s3035_s1 + $0x18] sm:$0xff] (!%p215_p3)   ;;  %v2382_v9 = vld [vmem:[%s3035_s1 + $0x20] sm:$0xff] (!%p215_p3)   ;;  %v2384_v13 = vld [vmem:[%s3035_s1 + $0x28] sm:$0xff] (!%p215_p3)  }
   0xa   : > { %v2385_v14 = vld [vmem:[%s3035_s1 + $0x70] sm:$0xff] (!%p215_p3)   ;;  %v2387_v16 = vld [vmem:[%s3035_s1 + $0x78] sm:$0xff] (!%p215_p3)   ;;  %v2395_v18 = vld [vmem:[%s3035_s1 + $0xc0] sm:$0xff] (!%p215_p3)  }
   0xb   : > { %v2386_v15 = vld [vmem:[%s3035_s1 + $0x30] sm:$0xff] (!%p215_p3)   ;;  %v2388_v17 = vld [vmem:[%s3035_s1 + $0x38] sm:$0xff] (!%p215_p3)   ;;  %v2396_v20 = vld [vmem:[%s3035_s1 + $0x100] sm:$0xff] (!%p215_p3)  }
   0xc   : > { %2038 = vmatpush3.bf16.msra.mxu0 (!%p215_p3), %v2376_v3  ;;  %2340 = vmatpush3.bf16.msra.mxu1 (!%p215_p3), %v2376_v3  ;;  %v2397_v22 = vld [vmem:[%s3035_s1 + $0x80] sm:$0xff] (!%p215_p3)   ;;  %v2398_v23 = vld [vmem:[%s3035_s1 + $0xc8] sm:$0xff] (!%p215_p3)   ;;  %v2406_v29 = vld [vmem:[%s3035_s1 + $0xd0] sm:$0xff] (!%p215_p3)  }
   0xd   : > { %2039 = vmatprep.subr.bf16.mxu0 (!%p215_p3), %v2377_v4  ;;  %2333 = vmatprep.subr.bf16.mxu1 (!%p215_p3), %v2377_v4  ;;  %v2409_v26 = vld [vmem:[%s3035_s1 + $0x108] sm:$0xff] (!%p215_p3)   ;;  %v2407_v31 = vld [vmem:[%s3035_s1 + $0x90] sm:$0xff] (!%p215_p3)   ;;  %v2408_v33 = vld [vmem:[%s3035_s1 + $0xd8] sm:$0xff] (!%p215_p3)  }
   0xe   : > { %s3045_s18 = smov (!%p260_p4, %s2539_s18), 1  ;;  %v2399_v27 = vld [vmem:[%s3035_s1 + $0x88] sm:$0xff]   ;;  %v2428_v35 = vld [vmem:[%s3035_s1 + $0x110] sm:$0xff]   ;;  %v2410_v36 = vld [vmem:[%s3035_s1 + $0x98] sm:$0xff]  }
   0xf   : > { %s2347_s11 = smul.u32 640, %s3045_s18  ;;  %v2417_v38 = vld [vmem:[%s3035_s1 + $0xe0] sm:$0xff]   ;;  %v2419_v41 = vld [vmem:[%s3035_s1 + $0xe8] sm:$0xff]   ;;  %v2438_v44 = vld [vmem:[%s3035_s1 + $0x118] sm:$0xff]   ;;  %s2034_s26 = sshll.u32 %s3045_s18, 8 }
  0x10   : > { %2040 = vmatpush3.bf16.msra.mxu0 %v2378_v5  ;;  %2341 = vmatpush3.bf16.msra.mxu1 %v2378_v5  ;;  %v2418_v40 = vld [vmem:[%s3035_s1 + $0xa0] sm:$0xff]   ;;  %v2420_v45 = vld [vmem:[%s3035_s1 + $0xa8] sm:$0xff]   ;;  %v2427_v48 = vld [vmem:[%s3035_s1 + $0xf0] sm:$0xff]   ;;  %s2918_s29 = scalar_lea.vmem %s3037_s3, %s2034_s26  ;;  %s1909_s30 = sshll.u32 %s3045_s18, 3 }
  0x11   : > { %2041 = vmatprep.subr.bf16.mxu0 %v2379_v6  ;;  %2334 = vmatprep.subr.bf16.mxu1 %v2379_v6  ;;  %s2630_s22 = scalar_lea.vmem %s3034_s0, %s2347_s11  ;;  %v2429_v49 = vld [vmem:[%s3035_s1 + $0xb0] sm:$0xff]   ;;  %v2430_v50 = vld [vmem:[%s3035_s1 + $0xf8] sm:$0xff]   ;;  %v2451_v52 = vld [vmem:[%s3035_s1 + $0x120] sm:$0xff]   ;;  %s283_s8 = scalar_lea.vmem %s3038_s4, %s1909_s30 }
  0x12   : > { %v2391_v11 = vld [vmem:[%s2630_s22 + $0x4] ss:$20 sps:$4 sm:$0xff]   ;;  %v2389_v19 = vld [vmem:[%s2630_s22] ss:$20 sps:$4 sm:$0xff]   ;;  %v2404_v28 = vld [vmem:[%s2630_s22 + $0x28] ss:$20 sps:$4 sm:$0xff]   ;;  %s287_s11 = scalar_lea.vmem %s3039_s5, %s1909_s30 }
  0x13   : > { %v2394_v12 = vld [vmem:[%s2630_s22 + $0x1e4] ss:$20 sps:$4 sm:$0xff]   ;;  %1160 = vmatprep.mubr.bf16.mxu0 %v2391_v11  ;;  %v2392_v21 = vld [vmem:[%s2630_s22 + $0x1e0] ss:$20 sps:$4 sm:$0xff]   ;;  %v2405_v30 = vld [vmem:[%s2630_s22 + $0x208] ss:$20 sps:$4 sm:$0xff]  }
  0x14   : > { %2042 = vmatpush3.bf16.msra.mxu0 %v2380_v7  ;;  %2342 = vmatpush3.bf16.msra.mxu1 %v2380_v7  ;;  %v2400_v24 = vld [vmem:[%s2630_s22 + $0x2c] ss:$20 sps:$4 sm:$0xff]   ;;  %v2411_v32 = vld [vmem:[%s2630_s22 + $0x54] ss:$20 sps:$4 sm:$0xff]   ;;  %v2415_v37 = vld [vmem:[%s2630_s22 + $0x50] ss:$20 sps:$4 sm:$0xff]  }
  0x15   : > { %2043 = vmatprep.subr.bf16.mxu0 %v2381_v8  ;;  %2335 = vmatprep.subr.bf16.mxu1 %v2381_v8  ;;  %v2402_v25 = vld [vmem:[%s2630_s22 + $0x20c] ss:$20 sps:$4 sm:$0xff]   ;;  %v2413_v34 = vld [vmem:[%s2630_s22 + $0x234] ss:$20 sps:$4 sm:$0xff]   ;;  %v2416_v39 = vld [vmem:[%s2630_s22 + $0x230] ss:$20 sps:$4 sm:$0xff]  }
  0x16   : > { %1256 = vmatprep.mubr.bf16.mxu1 %v2394_v12  ;;  %v2421_v42 = vld [vmem:[%s2630_s22 + $0x7c] ss:$20 sps:$4 sm:$0xff]   ;;  %v2425_v46 = vld [vmem:[%s2630_s22 + $0x78] ss:$20 sps:$4 sm:$0xff]   ;;  %v2437_v57 = vld [vmem:[%s2630_s22 + $0xa0] ss:$20 sps:$4 sm:$0xff]  }
  0x17   : > { %v2423_v43 = vld [vmem:[%s2630_s22 + $0x25c] ss:$20 sps:$4 sm:$0xff]   ;;  %v2426_v47 = vld [vmem:[%s2630_s22 + $0x258] ss:$20 sps:$4 sm:$0xff]   ;;  %v2441_v59 = vld [vmem:[%s2630_s22 + $0x34] ss:$20 sps:$4 sm:$0xff]  }
  0x18   : > { %2044 = vmatpush3.bf16.msra.mxu0 %v2382_v9  ;;  %2343 = vmatpush3.bf16.msra.mxu1 %v2382_v9  ;;  %v2432_v51 = vld [vmem:[%s2630_s22 + $0xa4] ss:$20 sps:$4 sm:$0xff]   ;;  %v2436_v53 = vld [vmem:[%s2630_s22 + $0xc] ss:$20 sps:$4 sm:$0xff]   ;;  %v2434_v56 = vld [vmem:[%s2630_s22 + $0x8] ss:$20 sps:$4 sm:$0xff]  }
  0x19   : > { %2045 = vmatprep.subr.bf16.mxu0 %v2383_v10  ;;  %2336 = vmatprep.subr.bf16.mxu1 %v2383_v10  ;;  %v2431_v54 = vld [vmem:[%s3035_s1 + $0xb8] sm:$0xff]   ;;  %v2458_v55 = vld [vmem:[%s3035_s1 + $0x128] sm:$0xff]   ;;  %v2471_v60 = vld [vmem:[%s3035_s1 + $0x130] sm:$0xff]  }
  0x1a   : > { %v2439_v58 = vld [vmem:[%s2630_s22 + $0xcc] ss:$20 sps:$4 sm:$0xff]   ;;  %v2443_v61 = vld [vmem:[%s2630_s22 + $0xc8] ss:$20 sps:$4 sm:$0xff]   ;;  %v2444_v63 = vld [vmem:[%s2630_s22 + $0x30] ss:$20 sps:$4 sm:$0xff]  }
  0x1b   : > { %v2478_v62 = vld [vmem:[%s3035_s1 + $0x138] sm:$0xff]   ;;  %v2445_v0 = vld [vmem:[%s2630_s22 + $0xf4] ss:$20 sps:$4 sm:$0xff]   ;;  %v2449_v2 = vld [vmem:[%s2630_s22 + $0xf0] ss:$20 sps:$4 sm:$0xff]  }
  0x1c   : > { %2046 = vmatpush3.bf16.msra.mxu0 %v2384_v13  ;;  %2344 = vmatpush3.bf16.msra.mxu1 %v2384_v13  ;;  %v2447_v1 = vld [vmem:[%s2630_s22 + $0x5c] ss:$20 sps:$4 sm:$0xff]   ;;  %v2450_v3 = vld [vmem:[%s2630_s22 + $0x58] ss:$20 sps:$4 sm:$0xff]   ;;  %v2457_v7 = vld [vmem:[%s2630_s22 + $0x80] ss:$20 sps:$4 sm:$0xff]  }
  0x1d   : > { %2047 = vmatprep.subr.bf16.mxu0 %v2385_v14  ;;  %2337 = vmatprep.subr.bf16.mxu1 %v2385_v14  ;;  %v2452_v4 = vld [vmem:[%s2630_s22 + $0x11c] ss:$20 sps:$4 sm:$0xff]   ;;  %v2454_v5 = vld [vmem:[%s2630_s22 + $0x84] ss:$20 sps:$4 sm:$0xff]   ;;  %v2461_v9 = vld [vmem:[%s2630_s22 + $0xac] ss:$20 sps:$4 sm:$0xff]  }
  0x1e   : > { %v2456_v6 = vld [vmem:[%s2630_s22 + $0x118] ss:$20 sps:$4 sm:$0xff]   ;;  %v2463_v10 = vld [vmem:[%s2630_s22 + $0x140] ss:$20 sps:$4 sm:$0xff]   ;;  %v2464_v11 = vld [vmem:[%s2630_s22 + $0xa8] ss:$20 sps:$4 sm:$0xff]  }
  0x1f   : > { %v2459_v8 = vld [vmem:[%s2630_s22 + $0x144] ss:$20 sps:$4 sm:$0xff]   ;;  %v2465_v12 = vld [vmem:[%s2630_s22 + $0x16c] ss:$20 sps:$4 sm:$0xff]   ;;  %v2467_v13 = vld [vmem:[%s2630_s22 + $0xd4] ss:$20 sps:$4 sm:$0xff]  }
  0x20   : > { %2048 = vmatpush3.bf16.msra.mxu0 %v2386_v15  ;;  %2345 = vmatpush3.bf16.msra.mxu1 %v2386_v15  ;;  %v2469_v14 = vld [vmem:[%s2630_s22 + $0x168] ss:$20 sps:$4 sm:$0xff]   ;;  %v2470_v15 = vld [vmem:[%s2630_s22 + $0xd0] ss:$20 sps:$4 sm:$0xff]  }
  0x21   : > { %2049 = vmatprep.subr.bf16.mxu0 %v2387_v16  ;;  %2338 = vmatprep.subr.bf16.mxu1 %v2387_v16  ;;  %v2472_v16 = vld [vmem:[%s2630_s22 + $0x194] ss:$20 sps:$4 sm:$0xff]  }
  0x24   : > { %2050 = vmatpush3.bf16.msra.mxu0 %v2388_v17  ;;  %2346 = vmatpush3.bf16.msra.mxu1 %v2388_v17  ;;  %v2474_v17 = vld [vmem:[%s2630_s22 + $0xfc] ss:$20 sps:$4 sm:$0xff]  }
  0x25   : > { %2147 = vmatprep.subr.bf16.mxu1 %v2395_v18  ;;  %2283 = vmatprep.subr.bf16.mxu0 %v2396_v20  ;;  %v2476_v18 = vld [vmem:[%s2630_s22 + $0x190] ss:$20 sps:$4 sm:$0xff]  }
  0x27   : > { %1161 = vmatmul.mubr.bf16.vlgmr.msra.gmra.mrb[0].mxu0 %v2389_v19  ;;  %1257 = vmatmul.mubr.bf16.vlgmr.msra.gmra.mrb[0].mxu1 %v2392_v21  ;;  %v2477_v19 = vld [vmem:[%s2630_s22 + $0xf8] ss:$20 sps:$4 sm:$0xff]  }
  0x28   : > { %2148 = vmatpush3.bf16.msra.mxu1 %v2397_v22  ;;  %2284 = vmatpush3.bf16.msra.mxu0 %v2396_v20  ;;  %v2479_v20 = vld [vmem:[%s2630_s22 + $0x1bc] ss:$20 sps:$4 sm:$0xff]   ;;  %v2481_v21 = vld [vmem:[%s2630_s22 + $0x124] ss:$20 sps:$4 sm:$0xff]  }
  0x29   : > { %2149 = vmatprep.subr.bf16.mxu1 %v2398_v23  ;;  %1168 = vmatprep.mubr.bf16.mxu0 %v2400_v24  ;;  %v2483_v22 = vld [vmem:[%s2630_s22 + $0x1b8] ss:$20 sps:$4 sm:$0xff]   ;;  %v2484_v23 = vld [vmem:[%s2630_s22 + $0x120] ss:$20 sps:$4 sm:$0xff]  }
  0x2a   : > { %1264 = vmatprep.mubr.bf16.mxu1 %v2402_v25  ;;  %2285 = vmatprep.subr.bf16.mxu0 %v2409_v26  ;;  %v2485_v24 = vld [vmem:[%s2630_s22 + $0x14c] ss:$20 sps:$4 sm:$0xff]   ;;  %v2487_v25 = vld [vmem:[%s2630_s22 + $0x10] ss:$20 sps:$4 sm:$0xff]  }
  0x2c   : > { %2150 = vmatpush3.bf16.msra.mxu1 %v2399_v27  ;;  %2286 = vmatpush3.bf16.msra.mxu0 %v2409_v26  ;;  %v2488_v26 = vld [vmem:[%s2630_s22 + $0x148] ss:$20 sps:$4 sm:$0xff]   ;;  %v2489_v27 = vld [vmem:[%s2630_s22 + $0x38] ss:$20 sps:$4 sm:$0xff]  }
  0x2d   : > { %2151 = vmatprep.subr.bf16.mxu1 %v2406_v29  ;;  %2287 = vmatprep.subr.bf16.mxu0 %v2428_v35  ;;  %v2492_v29 = vld [vmem:[%s2630_s22 + $0x60] ss:$20 sps:$4 sm:$0xff]  }
  0x2f   : > { %1169 = vmatmul.mubr.bf16.gmra.mrb[4].mxu0 %v2404_v28  ;;  %1265 = vmatmul.mubr.bf16.gmra.mrb[4].mxu1 %v2405_v30  ;;  %v2490_v28 = vld [vmem:[%s2630_s22 + $0x174] ss:$20 sps:$4 sm:$0xff]   ;;  %v2493_v30 = vld [vmem:[%s2630_s22 + $0x170] ss:$20 sps:$4 sm:$0xff]  }
  0x30   : > { %2152 = vmatpush3.bf16.msra.mxu1 %v2407_v31  ;;  %1176 = vmatprep.mubr.bf16.mxu0 %v2411_v32  ;;  %v2494_v31 = vld [vmem:[%s2630_s22 + $0x88] ss:$20 sps:$4 sm:$0xff]  }
  0x31   : > { %2153 = vmatprep.subr.bf16.mxu1 %v2408_v33  ;;  %1272 = vmatprep.mubr.bf16.mxu1 %v2413_v34  ;;  %v2495_v32 = vld [vmem:[%s2630_s22 + $0x19c] ss:$20 sps:$4 sm:$0xff]   ;;  %v2498_v34 = vld [vmem:[%s2630_s22 + $0x198] ss:$20 sps:$4 sm:$0xff]  }
  0x32   : > { %2288 = vmatpush3.bf16.msra.mxu0 %v2428_v35  ;;  %v2497_v33 = vld [vmem:[%s2630_s22 + $0xb0] ss:$20 sps:$4 sm:$0xff]   ;;  %v2499_v35 = vld [vmem:[%s2630_s22 + $0xd8] ss:$20 sps:$4 sm:$0xff]  }
  0x33   : > { %2289 = vmatprep.subr.bf16.mxu0 %v2438_v44 }
  0x34   : > { %2154 = vmatpush3.bf16.msra.mxu1 %v2410_v36  ;;  %v2500_v36 = vld [vmem:[%s2630_s22 + $0x1c4] ss:$20 sps:$4 sm:$0xff]  }
  0x35   : > { %2155 = vmatprep.subr.bf16.mxu1 %v2417_v38  ;;  %v2503_v38 = vld [vmem:[%s2630_s22 + $0x1c0] ss:$20 sps:$4 sm:$0xff]  }
  0x36   : > { %2290 = vmatpush3.bf16.msra.mxu0 %v2438_v44  ;;  %v2510_v44 = vld [vmem:[%s2630_s22 + $0x214] ss:$20 sps:$4 sm:$0xff]  }
  0x37   : > { %1177 = vmatmul.mubr.bf16.gmra.mrb[8].mxu0 %v2415_v37  ;;  %1273 = vmatmul.mubr.bf16.gmra.mrb[8].mxu1 %v2416_v39  ;;  %v2502_v37 = vld [vmem:[%s2630_s22 + $0x100] ss:$20 sps:$4 sm:$0xff]   ;;  %v2504_v39 = vld [vmem:[%s2630_s22 + $0x128] ss:$20 sps:$4 sm:$0xff]  }
  0x38   : > { %2156 = vmatpush3.bf16.msra.mxu1 %v2418_v40  ;;  %1184 = vmatprep.mubr.bf16.mxu0 %v2421_v42  ;;  %v2505_v40 = vld [vmem:[%s2630_s22 + $0x1ec] ss:$20 sps:$4 sm:$0xff]   ;;  %v2508_v42 = vld [vmem:[%s2630_s22 + $0x1e8] ss:$20 sps:$4 sm:$0xff]  }
  0x39   : > { %2157 = vmatprep.subr.bf16.mxu1 %v2419_v41  ;;  %1280 = vmatprep.mubr.bf16.mxu1 %v2423_v43  ;;  %v2507_v41 = vld [vmem:[%s2630_s22 + $0x150] ss:$20 sps:$4 sm:$0xff]   ;;  %v2509_v43 = vld [vmem:[%s2630_s22 + $0x178] ss:$20 sps:$4 sm:$0xff]  }
  0x3a   : > { %2291 = vmatprep.subr.bf16.mxu0 %v2451_v52 }
  0x3b   : > { %2292 = vmatpush3.bf16.msra.mxu0 %v2451_v52  ;;  %v2520_v52 = vld [vmem:[%s2630_s22 + $0x264] ss:$20 sps:$4 sm:$0xff]  }
  0x3c   : > { %2158 = vmatpush3.bf16.msra.mxu1 %v2420_v45  ;;  %2293 = vmatprep.subr.bf16.mxu0 %v2458_v55  ;;  %v2512_v45 = vld [vmem:[%s2630_s22 + $0x1a0] ss:$20 sps:$4 sm:$0xff]  }
  0x3d   : > { %2159 = vmatprep.subr.bf16.mxu1 %v2427_v48  ;;  %v2515_v48 = vld [vmem:[%s2630_s22 + $0x23c] ss:$20 sps:$4 sm:$0xff]  }
  0x3f   : > { %1185 = vmatmul.mubr.bf16.gmra.mrb[12].mxu0 %v2425_v46  ;;  %1281 = vmatmul.mubr.bf16.gmra.mrb[12].mxu1 %v2426_v47  ;;  %v2513_v46 = vld [vmem:[%s2630_s22 + $0x210] ss:$20 sps:$4 sm:$0xff]   ;;  %v2514_v47 = vld [vmem:[%s2630_s22 + $0x1c8] ss:$20 sps:$4 sm:$0xff]  }
  0x40   : > { %2160 = vmatpush3.bf16.msra.mxu1 %v2429_v49  ;;  %1192 = vmatprep.mubr.bf16.mxu0 %v2432_v51  ;;  %v2517_v49 = vld [vmem:[%s2630_s22 + $0x1f0] ss:$20 sps:$4 sm:$0xff]   ;;  %v2519_v51 = vld [vmem:[%s2630_s22 + $0x218] ss:$20 sps:$4 sm:$0xff]  }
  0x41   : > { %2161 = vmatprep.subr.bf16.mxu1 %v2430_v50  ;;  %1321 = vmatprep.mubr.bf16.mxu1 %v2436_v53  ;;  %v2518_v50 = vld [vmem:[%s2630_s22 + $0x238] ss:$20 sps:$4 sm:$0xff]   ;;  %v2522_v53 = vld [vmem:[%s2630_s22 + $0x240] ss:$20 sps:$4 sm:$0xff]  }
  0x42   : > { %2294 = vmatpush3.bf16.msra.mxu0 %v2458_v55  ;;  %v2524_v55 = vld [vmem:[%s2630_s22 + $0x268] ss:$20 sps:$4 sm:$0xff]  }
  0x43   : > { %2295 = vmatprep.subr.bf16.mxu0 %v2471_v60 }
  0x44   : > { %2162 = vmatpush3.bf16.msra.mxu1 %v2431_v54  ;;  %v2523_v54 = vld [vmem:[%s2630_s22 + $0x260] ss:$20 sps:$4 sm:$0xff]  }
  0x46   : > { %2296 = vmatpush3.bf16.msra.mxu0 %v2471_v60 }
  0x47   : > { %1193 = vmatmul.mubr.bf16.gmra.mrb[16].mxu0 %v2437_v57  ;;  %1322 = vmatmul.mubr.bf16.vlgmr.msra.gmra.mrb[16].mxu1 %v2434_v56 }
  0x48   : > { %1200 = vmatprep.mubr.bf16.mxu0 %v2439_v58  ;;  %1329 = vmatprep.mubr.bf16.mxu1 %v2441_v59 }
  0x49   : > { %2297 = vmatprep.subr.bf16.mxu0 %v2478_v62 }
  0x4a   : > { %2298 = vmatpush3.bf16.msra.mxu0 %v2478_v62 }
  0x4f   : > { %1201 = vmatmul.mubr.bf16.gmra.mrb[20].mxu0 %v2443_v61  ;;  %1330 = vmatmul.mubr.bf16.gmra.mrb[20].mxu1 %v2444_v63 }
  0x50   : > { %1208 = vmatprep.mubr.bf16.mxu0 %v2445_v0  ;;  %1337 = vmatprep.mubr.bf16.mxu1 %v2447_v1 }
  0x57   : > { %1209 = vmatmul.mubr.bf16.gmra.mrb[24].mxu0 %v2449_v2  ;;  %1338 = vmatmul.mubr.bf16.gmra.mrb[24].mxu1 %v2450_v3 }
  0x58   : > { %1216 = vmatprep.mubr.bf16.mxu0 %v2452_v4  ;;  %1345 = vmatprep.mubr.bf16.mxu1 %v2454_v5 }
  0x5f   : > { %1217 = vmatmul.mubr.bf16.gmra.mrb[28].mxu0 %v2456_v6  ;;  %1346 = vmatmul.mubr.bf16.gmra.mrb[28].mxu1 %v2457_v7 }
  0x60   : > { %1224 = vmatprep.mubr.bf16.mxu0 %v2459_v8  ;;  %1353 = vmatprep.mubr.bf16.mxu1 %v2461_v9 }
  0x67   : > { %1225 = vmatmul.mubr.bf16.gmra.mrb[32].mxu0 %v2463_v10  ;;  %1354 = vmatmul.mubr.bf16.gmra.mrb[32].mxu1 %v2464_v11 }
  0x68   : > { %1232 = vmatprep.mubr.bf16.mxu0 %v2465_v12  ;;  %1361 = vmatprep.mubr.bf16.mxu1 %v2467_v13 }
  0x6f   : > { %1233 = vmatmul.mubr.bf16.gmra.mrb[36].mxu0 %v2469_v14  ;;  %1362 = vmatmul.mubr.bf16.gmra.mrb[36].mxu1 %v2470_v15 }
  0x70   : > { %1240 = vmatprep.mubr.bf16.mxu0 %v2472_v16  ;;  %1369 = vmatprep.mubr.bf16.mxu1 %v2474_v17 }
  0x77   : > { %1241 = vmatmul.mubr.bf16.gmra.mrb[40].mxu0 %v2476_v18  ;;  %1370 = vmatmul.mubr.bf16.gmra.mrb[40].mxu1 %v2477_v19 }
  0x78   : > { %1248 = vmatprep.mubr.bf16.mxu0 %v2479_v20  ;;  %1377 = vmatprep.mubr.bf16.mxu1 %v2481_v21 }
  0x7f   : > { %1249 = vmatmul.mubr.bf16.gmra.mrb[44].mxu0 %v2483_v22  ;;  %1378 = vmatmul.mubr.bf16.gmra.mrb[44].mxu1 %v2484_v23 }
  0x80   : > { %1385 = vmatprep.mubr.bf16.mxu1 %v2485_v24  ;;  %2299 = vmatprep.mubr.bf16.mxu0 %v2487_v25 }
  0x87   : > { %1386 = vmatmul.mubr.bf16.gmra.mrb[48].mxu1 %v2488_v26  ;;  %2300 = vmatmul.mubr.bf16.vlgmr.msra.gmra.mrb[48].mxu0 %v2489_v27 }
  0x88   : > { %1393 = vmatprep.mubr.bf16.mxu1 %v2490_v28  ;;  %2303 = vmatprep.mubr.bf16.mxu0 %v2492_v29 }
  0x8f   : > { %1394 = vmatmul.mubr.bf16.gmra.mrb[52].mxu1 %v2493_v30  ;;  %2304 = vmatmul.mubr.bf16.gmra.mrb[52].mxu0 %v2494_v31 }
  0x90   : > { %1401 = vmatprep.mubr.bf16.mxu1 %v2495_v32  ;;  %2307 = vmatprep.mubr.bf16.mxu0 %v2497_v33 }
  0x97   : > { %1402 = vmatmul.mubr.bf16.gmra.mrb[56].mxu1 %v2498_v34  ;;  %2308 = vmatmul.mubr.bf16.gmra.mrb[56].mxu0 %v2499_v35 }
  0x98   : > { %1409 = vmatprep.mubr.bf16.mxu1 %v2500_v36  ;;  %2311 = vmatprep.mubr.bf16.mxu0 %v2502_v37 }
  0x9f   : > { %1410 = vmatmul.mubr.bf16.gmra.mrb[60].mxu1 %v2503_v38  ;;  %2312 = vmatmul.mubr.bf16.gmra.mrb[60].mxu0 %v2504_v39 }
  0xa0   : > { %1417 = vmatprep.mubr.bf16.mxu1 %v2505_v40  ;;  %2315 = vmatprep.mubr.bf16.mxu0 %v2507_v41  ;;  %v2824_v40 = vld [vmem:[%s3036_s2] ss:$0 sm:$0xff] }
  0xa7   : > { %1418 = vmatmul.mubr.bf16.gmra.mrb[64].mxu1 %v2508_v42  ;;  %2316 = vmatmul.mubr.bf16.gmra.mrb[64].mxu0 %v2509_v43 }
  0xa8   : > { %1425 = vmatprep.mubr.bf16.mxu1 %v2510_v44  ;;  %2319 = vmatprep.mubr.bf16.mxu0 %v2512_v45 }
  0xaf   : > { %1426 = vmatmul.mubr.bf16.gmra.mrb[68].mxu1 %v2513_v46  ;;  %2320 = vmatmul.mubr.bf16.gmra.mrb[68].mxu0 %v2514_v47 }
  0xb0   : > { %1433 = vmatprep.mubr.bf16.mxu1 %v2515_v48  ;;  %2323 = vmatprep.mubr.bf16.mxu0 %v2517_v49 }
  0xb7   : > { %1434 = vmatmul.mubr.bf16.gmra.mrb[72].mxu1 %v2518_v50  ;;  %2324 = vmatmul.mubr.bf16.gmra.mrb[72].mxu0 %v2519_v51 }
  0xb8   : > { %1441 = vmatprep.mubr.bf16.mxu1 %v2520_v52  ;;  %2327 = vmatprep.mubr.bf16.mxu0 %v2522_v53 }
  0xbf   : > { %1442 = vmatmul.mubr.bf16.gmra.mrb[76].mxu1 %v2523_v54  ;;  %2328 = vmatmul.mubr.bf16.gmra.mrb[76].mxu0 %v2524_v55 }
  0xfa   : > { %v2051_v56 = vpop.f32.mrb[0].mxu0  ;;  %v2123_v57 = vpop.f32.mrb[0].mxu1 }
  0xfb   : > { %v2052_v58 = vpop.f32.mrb[1].mxu0  ;;  %v2124_v59 = vpop.f32.mrb[1].mxu1 }
  0xfc   : > { %v2053_v60 = vadd.f32 %v2052_v58, %v2051_v56  ;;  %v2805_v61 = vadd.f32 %v2124_v59, %v2123_v57  ;;  %v2054_v62 = vpop.f32.mrb[2].mxu0  ;;  %v2126_v63 = vpop.f32.mrb[2].mxu1 }
  0xfd   : > { %v2055_v0 = vpop.f32.mrb[3].mxu0  ;;  %v2127_v1 = vpop.f32.mrb[3].mxu1 }
  0xfe   : > { %v2056_v2 = vadd.f32 %v2055_v0, %v2054_v62  ;;  %v2807_v3 = vadd.f32 %v2127_v1, %v2126_v63  ;;  %v1163_v45 = vadd.f32 %v2053_v60, %v2824_v40 }
 0x100   : > { %v1166_v52 = vadd.f32 %v2056_v2, %v2824_v40 }
 0x102   : > { %v2057_v4 = vpop.f32.mrb[4].mxu0  ;;  %v2129_v5 = vpop.f32.mrb[4].mxu1 }
 0x103   : > { %v2058_v6 = vpop.f32.mrb[5].mxu0  ;;  %v2130_v7 = vpop.f32.mrb[5].mxu1 }
 0x104   : > { %v2059_v8 = vadd.f32 %v2058_v6, %v2057_v4  ;;  %v2809_v9 = vadd.f32 %v2130_v7, %v2129_v5  ;;  %v2060_v10 = vpop.f32.mrb[6].mxu0  ;;  %v2132_v11 = vpop.f32.mrb[6].mxu1 }
 0x105   : > { %v2061_v12 = vpop.f32.mrb[7].mxu0  ;;  %v2133_v13 = vpop.f32.mrb[7].mxu1 }
 0x106   : > { %v2062_v14 = vadd.f32 %v2061_v12, %v2060_v10  ;;  %v2811_v15 = vadd.f32 %v2133_v13, %v2132_v11  ;;  %v1171_v62 = vadd.f32 %v2059_v8, %v2824_v40 }
 0x108   : > { %v1174_v6 = vadd.f32 %v2062_v14, %v2824_v40 }
 0x10a   : > { %v2063_v16 = vpop.f32.mrb[8].mxu0  ;;  %v2135_v17 = vpop.f32.mrb[8].mxu1 }
 0x10b   : > { %v2064_v18 = vpop.f32.mrb[9].mxu0  ;;  %v2136_v19 = vpop.f32.mrb[9].mxu1 }
 0x10c   : > { %v2065_v20 = vadd.f32 %v2064_v18, %v2063_v16  ;;  %v2813_v21 = vadd.f32 %v2136_v19, %v2135_v17  ;;  %v2066_v22 = vpop.f32.mrb[10].mxu0  ;;  %v2138_v23 = vpop.f32.mrb[10].mxu1 }
 0x10d   : > { %v2067_v24 = vpop.f32.mrb[11].mxu0  ;;  %v2139_v25 = vpop.f32.mrb[11].mxu1 }
 0x10e   : > { %v2068_v26 = vadd.f32 %v2067_v24, %v2066_v22  ;;  %v2815_v27 = vadd.f32 %v2139_v25, %v2138_v23  ;;  %v1179_v18 = vadd.f32 %v2065_v20, %v2824_v40 }
 0x112   : > { %v2069_v28 = vpop.f32.mrb[12].mxu0  ;;  %v2141_v29 = vpop.f32.mrb[12].mxu1 }
 0x113   : > { %v2070_v30 = vpop.f32.mrb[13].mxu0  ;;  %v2142_v31 = vpop.f32.mrb[13].mxu1 }
 0x114   : > { %v2071_v32 = vadd.f32 %v2070_v30, %v2069_v28  ;;  %v2817_v33 = vadd.f32 %v2142_v31, %v2141_v29  ;;  %v2072_v34 = vpop.f32.mrb[14].mxu0  ;;  %v2144_v35 = vpop.f32.mrb[14].mxu1  ;;  %v1182_v28 = vadd.f32 %v2068_v26, %v2824_v40 }
 0x115   : > { %v2073_v36 = vpop.f32.mrb[15].mxu0  ;;  %v2145_v37 = vpop.f32.mrb[15].mxu1 }
 0x116   : > { %v2074_v38 = vadd.f32 %v2073_v36, %v2072_v34  ;;  %v2819_v39 = vadd.f32 %v2145_v37, %v2144_v35 }
 0x11a   : > { %v2075_v41 = vpop.f32.mrb[16].mxu0  ;;  %v2163_v42 = vpop.f32.mrb[16].mxu1 }
 0x11b   : > { %v2076_v43 = vpop.f32.mrb[17].mxu0  ;;  %v2164_v44 = vpop.f32.mrb[17].mxu1 }
 0x11c   : > { %v2827_v46 = vadd.f32 %v2076_v43, %v2075_v41  ;;  %v2165_v47 = vadd.f32 %v2164_v44, %v2163_v42  ;;  %v2078_v48 = vpop.f32.mrb[18].mxu0  ;;  %v2166_v49 = vpop.f32.mrb[18].mxu1  ;;  %v1187_v41 = vadd.f32 %v2071_v32, %v2824_v40 }
 0x11d   : > { %v2079_v50 = vpop.f32.mrb[19].mxu0  ;;  %v2167_v51 = vpop.f32.mrb[19].mxu1 }
 0x11e   : > { %v2830_v53 = vadd.f32 %v2079_v50, %v2078_v48  ;;  %v2168_v54 = vadd.f32 %v2167_v51, %v2166_v49  ;;  %v2832_v55 = vadd.f32 %v2165_v47, %v1163_v45  ;;  %v1190_v48 = vadd.f32 %v2074_v38, %v2824_v40 }
 0x120   : > { %v2834_v56 = vadd.f32 %v2168_v54, %v1166_v52 }
 0x122   : > { %v2081_v57 = vpop.f32.mrb[20].mxu0  ;;  %v2169_v58 = vpop.f32.mrb[20].mxu1 }
 0x123   : > { %v2082_v59 = vpop.f32.mrb[21].mxu0  ;;  %v2170_v60 = vpop.f32.mrb[21].mxu1 }
 0x124   : > { %v2837_v63 = vadd.f32 %v2082_v59, %v2081_v57  ;;  %v2171_v0 = vadd.f32 %v2170_v60, %v2169_v58  ;;  %v2084_v1 = vpop.f32.mrb[22].mxu0  ;;  %v2172_v4 = vpop.f32.mrb[22].mxu1  ;;  %v1195_v59 = vadd.f32 %v2827_v46, %v2824_v40 }
 0x125   : > { %v2085_v5 = vpop.f32.mrb[23].mxu0  ;;  %v2173_v2 = vpop.f32.mrb[23].mxu1 }
 0x126   : > { %v2840_v7 = vadd.f32 %v2085_v5, %v2084_v1  ;;  %v2174_v10 = vadd.f32 %v2173_v2, %v2172_v4  ;;  %v2842_v11 = vadd.f32 %v2171_v0, %v1171_v62  ;;  %v1198_v5 = vadd.f32 %v2830_v53, %v2824_v40 }
 0x128   : > { %v2844_v12 = vadd.f32 %v2174_v10, %v1174_v6 }
 0x12a   : > { %v2087_v13 = vpop.f32.mrb[24].mxu0  ;;  %v2175_v16 = vpop.f32.mrb[24].mxu1 }
 0x12b   : > { %v2088_v17 = vpop.f32.mrb[25].mxu0  ;;  %v2176_v8 = vpop.f32.mrb[25].mxu1 }
 0x12c   : > { %v2847_v19 = vadd.f32 %v2088_v17, %v2087_v13  ;;  %v2177_v22 = vadd.f32 %v2176_v8, %v2175_v16  ;;  %v2090_v23 = vpop.f32.mrb[26].mxu0  ;;  %v2178_v24 = vpop.f32.mrb[26].mxu1 }
 0x12d   : > { %v2091_v25 = vpop.f32.mrb[27].mxu0  ;;  %v2179_v14 = vpop.f32.mrb[27].mxu1 }
 0x12e   : > { %v2850_v29 = vadd.f32 %v2091_v25, %v2090_v23  ;;  %v2180_v30 = vadd.f32 %v2179_v14, %v2178_v24  ;;  %v2852_v31 = vadd.f32 %v2177_v22, %v1179_v18  ;;  %v1203_v18 = vadd.f32 %v2837_v63, %v2824_v40 }
 0x130   : > { %v2854_v34 = vadd.f32 %v2180_v30, %v1182_v28  ;;  %v1206_v28 = vadd.f32 %v2840_v7, %v2824_v40 }
 0x132   : > { %v2093_v35 = vpop.f32.mrb[28].mxu0  ;;  %v2181_v36 = vpop.f32.mrb[28].mxu1 }
 0x133   : > { %v2094_v37 = vpop.f32.mrb[29].mxu0  ;;  %v2182_v20 = vpop.f32.mrb[29].mxu1 }
 0x134   : > { %v2857_v42 = vadd.f32 %v2094_v37, %v2093_v35  ;;  %v2183_v43 = vadd.f32 %v2182_v20, %v2181_v36  ;;  %v2096_v44 = vpop.f32.mrb[30].mxu0  ;;  %v2184_v45 = vpop.f32.mrb[30].mxu1 }
 0x135   : > { %v2097_v47 = vpop.f32.mrb[31].mxu0  ;;  %v2185_v26 = vpop.f32.mrb[31].mxu1 }
 0x136   : > { %v2860_v49 = vadd.f32 %v2097_v47, %v2096_v44  ;;  %v2186_v50 = vadd.f32 %v2185_v26, %v2184_v45  ;;  %v2862_v51 = vadd.f32 %v2183_v43, %v1187_v41  ;;  %v1211_v44 = vadd.f32 %v2847_v19, %v2824_v40 }
 0x138   : > { %v2864_v52 = vadd.f32 %v2186_v50, %v1190_v48 }
 0x13a   : > { %v2099_v54 = vpop.f32.mrb[32].mxu0  ;;  %v2187_v57 = vpop.f32.mrb[32].mxu1 }
 0x13b   : > { %v2100_v58 = vpop.f32.mrb[33].mxu0  ;;  %v2188_v32 = vpop.f32.mrb[33].mxu1 }
 0x13c   : > { %v2868_v60 = vadd.f32 %v2100_v58, %v2099_v54  ;;  %v2189_v62 = vadd.f32 %v2188_v32, %v2187_v57  ;;  %v2102_v0 = vpop.f32.mrb[34].mxu0  ;;  %v2190_v1 = vpop.f32.mrb[34].mxu1  ;;  %v1214_v54 = vadd.f32 %v2850_v29, %v2824_v40 }
 0x13d   : > { %v2103_v38 = vpop.f32.mrb[35].mxu0  ;;  %v2191_v4 = vpop.f32.mrb[35].mxu1 }
 0x13e   : > { %v2872_v2 = vadd.f32 %v2103_v38, %v2102_v0  ;;  %v2192_v6 = vadd.f32 %v2191_v4, %v2190_v1  ;;  %v2874_v10 = vadd.f32 %v2189_v62, %v1195_v59  ;;  %v1219_v38 = vadd.f32 %v2857_v42, %v2824_v40 }
 0x140   : > { %v2876_v13 = vadd.f32 %v2192_v6, %v1198_v5 }
 0x142   : > { %v2105_v16 = vpop.f32.mrb[36].mxu0  ;;  %v2193_v17 = vpop.f32.mrb[36].mxu1 }
 0x143   : > { %v2106_v46 = vpop.f32.mrb[37].mxu0  ;;  %v2194_v8 = vpop.f32.mrb[37].mxu1 }
 0x144   : > { %v2880_v22 = vadd.f32 %v2106_v46, %v2105_v16  ;;  %v2195_v23 = vadd.f32 %v2194_v8, %v2193_v17  ;;  %v2108_v24 = vpop.f32.mrb[38].mxu0  ;;  %v2196_v25 = vpop.f32.mrb[38].mxu1  ;;  %v1222_v46 = vadd.f32 %v2860_v49, %v2824_v40 }
 0x145   : > { %v2109_v53 = vpop.f32.mrb[39].mxu0  ;;  %v2197_v14 = vpop.f32.mrb[39].mxu1 }
 0x146   : > { %v2884_v30 = vadd.f32 %v2109_v53, %v2108_v24  ;;  %v2198_v35 = vadd.f32 %v2197_v14, %v2196_v25  ;;  %v2886_v36 = vadd.f32 %v2195_v23, %v1203_v18 }
 0x148   : > { %v2888_v37 = vadd.f32 %v2198_v35, %v1206_v28  ;;  %v1227_v28 = vadd.f32 %v2868_v60, %v2824_v40 }
 0x14a   : > { %v2111_v20 = vpop.f32.mrb[40].mxu0  ;;  %v2199_v41 = vpop.f32.mrb[40].mxu1 }
 0x14b   : > { %v2112_v63 = vpop.f32.mrb[41].mxu0  ;;  %v2200_v43 = vpop.f32.mrb[41].mxu1 }
 0x14c   : > { %v2892_v45 = vadd.f32 %v2112_v63, %v2111_v20  ;;  %v2201_v47 = vadd.f32 %v2200_v43, %v2199_v41  ;;  %v2114_v26 = vpop.f32.mrb[42].mxu0  ;;  %v2202_v48 = vpop.f32.mrb[42].mxu1 }
 0x14d   : > { %v2115_v7 = vpop.f32.mrb[43].mxu0  ;;  %v2203_v50 = vpop.f32.mrb[43].mxu1 }
 0x14e   : > { %v2896_v57 = vadd.f32 %v2115_v7, %v2114_v26  ;;  %v2204_v58 = vadd.f32 %v2203_v50, %v2202_v48  ;;  %v2898_v32 = vadd.f32 %v2201_v47, %v1211_v44 }
 0x150   : > { %v2900_v59 = vadd.f32 %v2204_v58, %v1214_v54 }
 0x152   : > { %v2117_v62 = vpop.f32.mrb[44].mxu0  ;;  %v2205_v19 = vpop.f32.mrb[44].mxu1 }
 0x153   : > { %v2118_v0 = vpop.f32.mrb[45].mxu0  ;;  %v2206_v1 = vpop.f32.mrb[45].mxu1 }
 0x154   : > { %v2904_v4 = vadd.f32 %v2118_v0, %v2117_v62  ;;  %v2207_v5 = vadd.f32 %v2206_v1, %v2205_v19  ;;  %v2120_v6 = vpop.f32.mrb[46].mxu0  ;;  %v2208_v29 = vpop.f32.mrb[46].mxu1 }
 0x155   : > { %v2121_v16 = vpop.f32.mrb[47].mxu0  ;;  %v2209_v17 = vpop.f32.mrb[47].mxu1 }
 0x156   : > { %v2908_v8 = vadd.f32 %v2121_v16, %v2120_v6  ;;  %v2210_v18 = vadd.f32 %v2209_v17, %v2208_v29  ;;  %v2910_v23 = vadd.f32 %v2207_v5, %v1219_v38 }
 0x158   : > { %v2913_v24 = vadd.f32 %v2210_v18, %v1222_v46  ;;  %v1235_v18 = vadd.f32 %v2880_v22, %v2824_v40 }
 0x15a   : > { %v2211_v25 = vpop.f32.mrb[48].mxu1  ;;  %v2301_v42 = vpop.f32.mrb[48].mxu0 }
 0x15b   : > { %v1493_v53 = vadd.f32 %v2301_v42, %v2842_v11  ;;  %v2212_v49 = vpop.f32.mrb[49].mxu1  ;;  %v1484_v14 = vpop.f32.mrb[49].mxu0  ;;  %v1230_v11 = vadd.f32 %v2872_v2, %v2824_v40 }
 0x15c   : > { %v2213_v35 = vadd.f32 %v2212_v49, %v2211_v25  ;;  %v1485_v20 = vadd.f32 %v1484_v14, %v2832_v55  ;;  %v2214_v41 = vpop.f32.mrb[50].mxu1  ;;  %v2302_v63 = vpop.f32.mrb[50].mxu0  ;;  %v1238_v25 = vadd.f32 %v2884_v30, %v2824_v40 }
 0x15d   : > { %1613 = vst [vmem:[%s2918_s29 + $0x10] sm:$0xff] %v1493_v53  ;;  %v1496_v43 = vadd.f32 %v2302_v63, %v2844_v12  ;;  %v2215_v44 = vpop.f32.mrb[51].mxu1  ;;  %v1487_v47 = vpop.f32.mrb[51].mxu0  ;;  %v1686_v58 = vmul.f32 %v1493_v53, %v1493_v53 }
 0x15e   : > { %1611 = vst [vmem:[%s2918_s29] sm:$0xff] %v1485_v20  ;;  %v2216_v26 = vadd.f32 %v2215_v44, %v2214_v41  ;;  %v1488_v48 = vadd.f32 %v1487_v47, %v2834_v56  ;;  %v2930_v7 = vadd.f32 %v2213_v35, %v1227_v28  ;;  %v1684_v60 = vmul.f32 %v1485_v20, %v1485_v20 }
 0x15f   : > { %1614 = vst [vmem:[%s2918_s29 + $0x18] sm:$0xff] %v1496_v43  ;;  %v1687_v2 = vmul.f32 %v1496_v43, %v1496_v43 }
 0x160   : > { %1612 = vst [vmem:[%s2918_s29 + $0x8] sm:$0xff] %v1488_v48  ;;  %v1650_v55 = vadd.f32 %v1488_v48, %v1485_v20  ;;  %v1685_v50 = vmul.f32 %v1488_v48, %v1488_v48  ;;  %v2934_v54 = vadd.f32 %v2216_v26, %v1230_v11 }
 0x162   : > { %v1651_v12 = vadd.f32 %v1650_v55, %v1493_v53  ;;  %v1716_v62 = vadd.f32 %v1685_v50, %v1684_v60  ;;  %v2217_v19 = vpop.f32.mrb[52].mxu1  ;;  %v2305_v0 = vpop.f32.mrb[52].mxu0  ;;  %v1246_v55 = vadd.f32 %v2896_v57, %v2824_v40 }
 0x163   : > { %v1509_v1 = vadd.f32 %v2305_v0, %v2862_v51  ;;  %v2218_v56 = vpop.f32.mrb[53].mxu1  ;;  %v1500_v38 = vpop.f32.mrb[53].mxu0 }
 0x164   : > { %v1717_v5 = vadd.f32 %v1716_v62, %v1686_v58  ;;  %v2219_v6 = vadd.f32 %v2218_v56, %v2217_v19  ;;  %v1501_v29 = vadd.f32 %v1500_v38, %v2852_v31  ;;  %v1652_v16 = vadd.f32 %v1651_v12, %v1496_v43  ;;  %v2220_v17 = vpop.f32.mrb[54].mxu1  ;;  %v2306_v46 = vpop.f32.mrb[54].mxu0 }
 0x165   : > { %1617 = vst [vmem:[%s2918_s29 + $0x30] sm:$0xff] %v1509_v1  ;;  %v1512_v51 = vadd.f32 %v2306_v46, %v2864_v52  ;;  %v2221_v42 = vpop.f32.mrb[55].mxu1  ;;  %v1503_v53 = vpop.f32.mrb[55].mxu0  ;;  %v1690_v44 = vmul.f32 %v1509_v1, %v1509_v1 }
 0x166   : > { %1615 = vst [vmem:[%s2918_s29 + $0x20] sm:$0xff] %v1501_v29  ;;  %v1653_v49 = vadd.f32 %v1652_v16, %v1501_v29  ;;  %v1688_v14 = vmul.f32 %v1501_v29, %v1501_v29  ;;  %v1718_v28 = vadd.f32 %v1717_v5, %v1687_v2  ;;  %v2222_v31 = vadd.f32 %v2221_v42, %v2220_v17 }
 0x167   : > { %1618 = vst [vmem:[%s2918_s29 + $0x38] sm:$0xff] %v1512_v51  ;;  %v1504_v35 = vadd.f32 %v1503_v53, %v2854_v34  ;;  %v2947_v20 = vadd.f32 %v2219_v6, %v1235_v18  ;;  %v1243_v34 = vadd.f32 %v2892_v45, %v2824_v40  ;;  %v1691_v19 = vmul.f32 %v1512_v51, %v1512_v51 }
 0x168   : > { %v1719_v22 = vadd.f32 %v1718_v28, %v1688_v14  ;;  %v2949_v41 = vadd.f32 %v2222_v31, %v1238_v25  ;;  %v1251_v14 = vadd.f32 %v2904_v4, %v2824_v40  ;;  %v1254_v28 = vadd.f32 %v2908_v8, %v2824_v40 }
 0x169   : > { %1616 = vst [vmem:[%s2918_s29 + $0x28] sm:$0xff] %v1504_v35  ;;  %v1654_v30 = vadd.f32 %v1653_v49, %v1504_v35  ;;  %v1689_v63 = vmul.f32 %v1504_v35, %v1504_v35 }
 0x16a   : > { %v2223_v43 = vpop.f32.mrb[56].mxu1  ;;  %v2309_v52 = vpop.f32.mrb[56].mxu0 }
 0x16b   : > { %v1655_v47 = vadd.f32 %v1654_v30, %v1509_v1  ;;  %v1720_v11 = vadd.f32 %v1719_v22, %v1689_v63  ;;  %v1525_v26 = vadd.f32 %v2309_v52, %v2886_v36  ;;  %v2224_v48 = vpop.f32.mrb[57].mxu1  ;;  %v1516_v60 = vpop.f32.mrb[57].mxu0 }
 0x16c   : > { %v2225_v50 = vadd.f32 %v2224_v48, %v2223_v43  ;;  %v1517_v58 = vadd.f32 %v1516_v60, %v2874_v10  ;;  %v2226_v12 = vpop.f32.mrb[58].mxu1  ;;  %v2310_v62 = vpop.f32.mrb[58].mxu0 }
 0x16d   : > { %v1721_v0 = vadd.f32 %v1720_v11, %v1690_v44  ;;  %1621 = vst [vmem:[%s2918_s29 + $0x50] sm:$0xff] %v1525_v26  ;;  %v1656_v36 = vadd.f32 %v1655_v47, %v1512_v51  ;;  %v1528_v2 = vadd.f32 %v2310_v62, %v2888_v37  ;;  %v2227_v1 = vpop.f32.mrb[59].mxu1  ;;  %v1519_v56 = vpop.f32.mrb[59].mxu0  ;;  %v1694_v25 = vmul.f32 %v1525_v26, %v1525_v26 }
 0x16e   : > { %1619 = vst [vmem:[%s2918_s29 + $0x40] sm:$0xff] %v1517_v58  ;;  %v1692_v45 = vmul.f32 %v1517_v58, %v1517_v58  ;;  %v2228_v38 = vadd.f32 %v2227_v1, %v2226_v12  ;;  %v1520_v57 = vadd.f32 %v1519_v56, %v2876_v13  ;;  %v2962_v5 = vadd.f32 %v2225_v50, %v1243_v34 }
 0x16f   : > { %v1657_v10 = vadd.f32 %v1656_v36, %v1517_v58  ;;  %v1722_v6 = vadd.f32 %v1721_v0, %v1691_v19  ;;  %1622 = vst [vmem:[%s2918_s29 + $0x58] sm:$0xff] %v1528_v2  ;;  %v1695_v63 = vmul.f32 %v1528_v2, %v1528_v2  ;;  %v1262_v1 = vadd.f32 %v2807_v3, %v2824_v40 }
 0x170   : > { %1620 = vst [vmem:[%s2918_s29 + $0x48] sm:$0xff] %v1520_v57  ;;  %v1693_v29 = vmul.f32 %v1520_v57, %v1520_v57  ;;  %v2966_v16 = vadd.f32 %v2228_v38, %v1246_v55 }
 0x171   : > { %v1723_v17 = vadd.f32 %v1722_v6, %v1692_v45  ;;  %v1658_v46 = vadd.f32 %v1657_v10, %v1520_v57 }
 0x172   : > { %v2229_v18 = vpop.f32.mrb[60].mxu1  ;;  %v2313_v37 = vpop.f32.mrb[60].mxu0 }
 0x173   : > { %v1659_v51 = vadd.f32 %v1658_v46, %v1525_v26  ;;  %v1724_v42 = vadd.f32 %v1723_v17, %v1693_v29  ;;  %v1541_v53 = vadd.f32 %v2313_v37, %v2910_v23  ;;  %v2230_v13 = vpop.f32.mrb[61].mxu1  ;;  %v1532_v49 = vpop.f32.mrb[61].mxu0 }
 0x174   : > { %v2231_v31 = vadd.f32 %v2230_v13, %v2229_v18  ;;  %v1533_v35 = vadd.f32 %v1532_v49, %v2898_v32  ;;  %v2232_v22 = vpop.f32.mrb[62].mxu1  ;;  %v2314_v30 = vpop.f32.mrb[62].mxu0 }
 0x175   : > { %v1725_v43 = vadd.f32 %v1724_v42, %v1694_v25  ;;  %1625 = vst [vmem:[%s2918_s29 + $0x70] sm:$0xff] %v1541_v53  ;;  %v1660_v23 = vadd.f32 %v1659_v51, %v1528_v2  ;;  %v1544_v52 = vadd.f32 %v2314_v30, %v2913_v24  ;;  %v2233_v44 = vpop.f32.mrb[63].mxu1  ;;  %v1535_v47 = vpop.f32.mrb[63].mxu0  ;;  %v1698_v24 = vmul.f32 %v1541_v53, %v1541_v53 }
 0x176   : > { %1623 = vst [vmem:[%s2918_s29 + $0x60] sm:$0xff] %v1533_v35  ;;  %v1696_v4 = vmul.f32 %v1533_v35, %v1533_v35  ;;  %v2234_v11 = vadd.f32 %v2233_v44, %v2232_v22  ;;  %v1536_v8 = vadd.f32 %v1535_v47, %v2900_v59  ;;  %v1412_v26 = vadd.f32 %v2231_v31, %v1251_v14 }
 0x177   : > { %v1661_v48 = vadd.f32 %v1660_v23, %v1533_v35  ;;  %v1726_v32 = vadd.f32 %v1725_v43, %v1695_v63  ;;  %1626 = vst [vmem:[%s2918_s29 + $0x78] sm:$0xff] %v1544_v52  ;;  %v1259_v2 = vadd.f32 %v2805_v61, %v2824_v40  ;;  %v1699_v10 = vmul.f32 %v1544_v52, %v1544_v52 }
 0x178   : > { %1624 = vst [vmem:[%s2918_s29 + $0x68] sm:$0xff] %v1536_v8  ;;  %v1697_v60 = vmul.f32 %v1536_v8, %v1536_v8  ;;  %v1415_v34 = vadd.f32 %v2234_v11, %v1254_v28  ;;  %v1270_v63 = vadd.f32 %v2811_v15, %v2824_v40 }
 0x179   : > { %v1727_v55 = vadd.f32 %v1726_v32, %v1696_v4  ;;  %v1662_v50 = vadd.f32 %v1661_v48, %v1536_v8 }
 0x17a   : > { %v2235_v58 = vpop.f32.mrb[64].mxu1  ;;  %v2317_v12 = vpop.f32.mrb[64].mxu0 }
 0x17b   : > { %v1663_v62 = vadd.f32 %v1662_v50, %v1541_v53  ;;  %v1728_v19 = vadd.f32 %v1727_v55, %v1697_v60  ;;  %v1557_v0 = vadd.f32 %v2317_v12, %v2947_v20  ;;  %v2236_v36 = vpop.f32.mrb[65].mxu1  ;;  %v1548_v59 = vpop.f32.mrb[65].mxu0 }
 0x17c   : > { %v2237_v56 = vadd.f32 %v2236_v36, %v2235_v58  ;;  %v1549_v45 = vadd.f32 %v1548_v59, %v2930_v7  ;;  %v2238_v38 = vpop.f32.mrb[66].mxu1  ;;  %v2318_v57 = vpop.f32.mrb[66].mxu0 }
 0x17d   : > { %v1729_v6 = vadd.f32 %v1728_v19, %v1698_v24  ;;  %1629 = vst [vmem:[%s2918_s29 + $0x90] sm:$0xff] %v1557_v0  ;;  %v1664_v20 = vadd.f32 %v1663_v62, %v1544_v52  ;;  %v1560_v29 = vadd.f32 %v2318_v57, %v2949_v41  ;;  %v2239_v17 = vpop.f32.mrb[67].mxu1  ;;  %v1551_v46 = vpop.f32.mrb[67].mxu0  ;;  %v1702_v41 = vmul.f32 %v1557_v0, %v1557_v0 }
 0x17e   : > { %1627 = vst [vmem:[%s2918_s29 + $0x80] sm:$0xff] %v1549_v45  ;;  %v1700_v61 = vmul.f32 %v1549_v45, %v1549_v45  ;;  %v2240_v18 = vadd.f32 %v2239_v17, %v2238_v38  ;;  %v1552_v3 = vadd.f32 %v1551_v46, %v2934_v54  ;;  %v1420_v37 = vadd.f32 %v2237_v56, %v1259_v2 }
 0x17f   : > { %v1665_v25 = vadd.f32 %v1664_v20, %v1549_v45  ;;  %v1730_v7 = vadd.f32 %v1729_v6, %v1699_v10  ;;  %1630 = vst [vmem:[%s2918_s29 + $0x98] sm:$0xff] %v1560_v29  ;;  %v1267_v54 = vadd.f32 %v2809_v9, %v2824_v40  ;;  %v1703_v47 = vmul.f32 %v1560_v29, %v1560_v29 }
 0x180   : > { %1628 = vst [vmem:[%s2918_s29 + $0x88] sm:$0xff] %v1552_v3  ;;  %v1701_v51 = vmul.f32 %v1552_v3, %v1552_v3  ;;  %v1423_v42 = vadd.f32 %v2240_v18, %v1262_v1  ;;  %v1278_v56 = vadd.f32 %v2815_v27, %v2824_v40 }
 0x181   : > { %v1731_v53 = vadd.f32 %v1730_v7, %v1700_v61  ;;  %v1666_v13 = vadd.f32 %v1665_v25, %v1552_v3 }
 0x182   : > { %v2241_v49 = vpop.f32.mrb[68].mxu1  ;;  %v2321_v14 = vpop.f32.mrb[68].mxu0 }
 0x183   : > { %v1667_v28 = vadd.f32 %v1666_v13, %v1557_v0  ;;  %v1732_v31 = vadd.f32 %v1731_v53, %v1701_v51  ;;  %v1573_v35 = vadd.f32 %v2321_v14, %v1412_v26  ;;  %v2242_v22 = vpop.f32.mrb[69].mxu1  ;;  %v1564_v30 = vpop.f32.mrb[69].mxu0 }
 0x184   : > { %v2243_v43 = vadd.f32 %v2242_v22, %v2241_v49  ;;  %v1565_v23 = vadd.f32 %v1564_v30, %v2962_v5  ;;  %v2244_v52 = vpop.f32.mrb[70].mxu1  ;;  %v2322_v44 = vpop.f32.mrb[70].mxu0 }
 0x185   : > { %v1733_v4 = vadd.f32 %v1732_v31, %v1702_v41  ;;  %1633 = vst [vmem:[%s2918_s29 + $0xb0] sm:$0xff] %v1573_v35  ;;  %v1668_v11 = vadd.f32 %v1667_v28, %v1560_v29  ;;  %v1576_v8 = vadd.f32 %v2322_v44, %v1415_v34  ;;  %v2245_v26 = vpop.f32.mrb[71].mxu1  ;;  %v1567_v48 = vpop.f32.mrb[71].mxu0  ;;  %v1706_v34 = vmul.f32 %v1573_v35, %v1573_v35 }
 0x186   : > { %1631 = vst [vmem:[%s2918_s29 + $0xa0] sm:$0xff] %v1565_v23  ;;  %v1704_v32 = vmul.f32 %v1565_v23, %v1565_v23  ;;  %v2246_v9 = vadd.f32 %v2245_v26, %v2244_v52  ;;  %v1568_v60 = vadd.f32 %v1567_v48, %v2966_v16  ;;  %v1428_v15 = vadd.f32 %v2243_v43, %v1267_v54 }
 0x187   : > { %v1669_v55 = vadd.f32 %v1668_v11, %v1565_v23  ;;  %v1734_v50 = vadd.f32 %v1733_v4, %v1703_v47  ;;  %1634 = vst [vmem:[%s2918_s29 + $0xb8] sm:$0xff] %v1576_v8  ;;  %v1275_v16 = vadd.f32 %v2813_v21, %v2824_v40  ;;  %v1707_v6 = vmul.f32 %v1576_v8, %v1576_v8 }
 0x188   : > { %1632 = vst [vmem:[%s2918_s29 + $0xa8] sm:$0xff] %v1568_v60  ;;  %v1705_v5 = vmul.f32 %v1568_v60, %v1568_v60  ;;  %v1431_v58 = vadd.f32 %v2246_v9, %v1270_v63  ;;  %v1286_v23 = vadd.f32 %v2819_v39, %v2824_v40 }
 0x189   : > { %v1735_v12 = vadd.f32 %v1734_v50, %v1704_v32  ;;  %v1670_v24 = vadd.f32 %v1669_v55, %v1568_v60 }
 0x18a   : > { %v2247_v62 = vpop.f32.mrb[72].mxu1  ;;  %v2325_v19 = vpop.f32.mrb[72].mxu0 }
 0x18b   : > { %v1671_v0 = vadd.f32 %v1670_v24, %v1573_v35  ;;  %v1736_v36 = vadd.f32 %v1735_v12, %v1705_v5  ;;  %v1589_v59 = vadd.f32 %v2325_v19, %v1428_v15  ;;  %v2248_v2 = vpop.f32.mrb[73].mxu1  ;;  %v1580_v1 = vpop.f32.mrb[73].mxu0 }
 0x18c   : > { %v2249_v45 = vadd.f32 %v2248_v2, %v2247_v62  ;;  %v1581_v38 = vadd.f32 %v1580_v1, %v1420_v37  ;;  %v2250_v57 = vpop.f32.mrb[74].mxu1  ;;  %v2326_v10 = vpop.f32.mrb[74].mxu0 }
 0x18d   : > { %v1737_v20 = vadd.f32 %v1736_v36, %v1706_v34  ;;  %1637 = vst [vmem:[%s2918_s29 + $0xd0] sm:$0xff] %v1589_v59  ;;  %v1672_v29 = vadd.f32 %v1671_v0, %v1576_v8  ;;  %v1592_v17 = vadd.f32 %v2326_v10, %v1431_v58  ;;  %v2251_v46 = vpop.f32.mrb[75].mxu1  ;;  %v1583_v61 = vpop.f32.mrb[75].mxu0  ;;  %v1710_v41 = vmul.f32 %v1589_v59, %v1589_v59 }
 0x18e   : > { %1635 = vst [vmem:[%s2918_s29 + $0xc0] sm:$0xff] %v1581_v38  ;;  %v1708_v18 = vmul.f32 %v1581_v38, %v1581_v38  ;;  %v2252_v3 = vadd.f32 %v2251_v46, %v2250_v57  ;;  %v1584_v21 = vadd.f32 %v1583_v61, %v1423_v42  ;;  %v1436_v25 = vadd.f32 %v2249_v45, %v1275_v16 }
 0x18f   : > { %v1673_v7 = vadd.f32 %v1672_v29, %v1581_v38  ;;  %v1738_v27 = vadd.f32 %v1737_v20, %v1707_v6  ;;  %1638 = vst [vmem:[%s2918_s29 + $0xd8] sm:$0xff] %v1592_v17  ;;  %v1283_v42 = vadd.f32 %v2817_v33, %v2824_v40  ;;  %v1711_v52 = vmul.f32 %v1592_v17, %v1592_v17 }
 0x190   : > { %1636 = vst [vmem:[%s2918_s29 + $0xc8] sm:$0xff] %v1584_v21  ;;  %v1709_v37 = vmul.f32 %v1584_v21, %v1584_v21  ;;  %v1439_v51 = vadd.f32 %v2252_v3, %v1278_v56 }
 0x191   : > { %v1739_v53 = vadd.f32 %v1738_v27, %v1708_v18  ;;  %v1674_v13 = vadd.f32 %v1673_v7, %v1584_v21 }
 0x192   : > { %v2253_v49 = vpop.f32.mrb[76].mxu1  ;;  %v2329_v14 = vpop.f32.mrb[76].mxu0 }
 0x193   : > { %v1675_v28 = vadd.f32 %v1674_v13, %v1589_v59  ;;  %v1740_v31 = vadd.f32 %v1739_v53, %v1709_v37  ;;  %v2254_v35 = vpop.f32.mrb[77].mxu1  ;;  %v1596_v22 = vpop.f32.mrb[77].mxu0 }
 0x194   : > { %v2255_v30 = vadd.f32 %v2254_v35, %v2253_v49  ;;  %v1597_v54 = vadd.f32 %v1596_v22, %v1436_v25  ;;  %v2256_v63 = vpop.f32.mrb[78].mxu1  ;;  %v2330_v43 = vpop.f32.mrb[78].mxu0 }
 0x195   : > { %v1741_v44 = vadd.f32 %v1740_v31, %v1710_v41  ;;  %v1676_v47 = vadd.f32 %v1675_v28, %v1592_v17  ;;  %v2257_v4 = vpop.f32.mrb[79].mxu1  ;;  %v1599_v11 = vpop.f32.mrb[79].mxu0 }
 0x196   : > { %v1444_v8 = vadd.f32 %v2255_v30, %v1283_v42  ;;  %1639 = vst [vmem:[%s2918_s29 + $0xe0] sm:$0xff] %v1597_v54  ;;  %v1712_v26 = vmul.f32 %v1597_v54, %v1597_v54  ;;  %v2258_v48 = vadd.f32 %v2257_v4, %v2256_v63  ;;  %v1600_v33 = vadd.f32 %v1599_v11, %v1439_v51 }
 0x197   : > { %v1677_v32 = vadd.f32 %v1676_v47, %v1597_v54  ;;  %v1742_v9 = vadd.f32 %v1741_v44, %v1711_v52 }
 0x198   : > { %v1605_v60 = vadd.f32 %v2329_v14, %v1444_v8  ;;  %v1447_v15 = vadd.f32 %v2258_v48, %v1286_v23  ;;  %1640 = vst [vmem:[%s2918_s29 + $0xe8] sm:$0xff] %v1600_v33  ;;  %v1713_v55 = vmul.f32 %v1600_v33, %v1600_v33 }
 0x199   : > { %v1743_v39 = vadd.f32 %v1742_v9, %v1712_v26  ;;  %v1678_v40 = vadd.f32 %v1677_v32, %v1600_v33 }
 0x19a   : > { %1641 = vst [vmem:[%s2918_s29 + $0xf0] sm:$0xff] %v1605_v60  ;;  %v1714_v50 = vmul.f32 %v1605_v60, %v1605_v60  ;;  %v1608_v5 = vadd.f32 %v2330_v43, %v1447_v15 }
 0x19b   : > { %v1679_v58 = vadd.f32 %v1678_v40, %v1605_v60  ;;  %v1744_v12 = vadd.f32 %v1743_v39, %v1713_v55 }
 0x19c   : > { %1642 = vst [vmem:[%s2918_s29 + $0xf8] sm:$0xff] %v1608_v5  ;;  %v1715_v24 = vmul.f32 %v1608_v5, %v1608_v5 }
 0x19d   : > { %v1680_v62 = vadd.f32 %v1679_v58, %v1608_v5  ;;  %v1745_v19 = vadd.f32 %v1744_v12, %v1714_v50 }
 0x19f   : > { %v1746_v34 = vadd.f32 %v1745_v19, %v1715_v24  ;;  %1682 = vst [vmem:[%s283_s8] sm:$0xff] %v1680_v62 }
 0x1a1   : > { %1748 = vst [vmem:[%s287_s11] sm:$0xff] %v1746_v34 }
 0x1a2 PF: > { %s16_s20 = sadd.s32 1, %s2547_s20   ;;  %s3040_s18 = smov %s2543_s19 }
 0x1a3   : > { %p13_p5 = scmp.ge.s32.totalorder %s16_s20, 4   ;;  %s3041_s19 = smov %s3043_s21 }
 0x1a5   :  { %15 = sbr.rel (!%p13_p5) target bundleno = 2 (0x2), region = 90 }

// kernel: transformer_net.61
= control target key start
LH: loop header
LB: loop body
LE: loop exit
PB: predicated region body
PF: predicated region fallthrough
CT: control target
= control target key end

     0   :  { %s7964_s12 = smov 0   ;;  %s7966_s13 = smov 0   ;;  %s9841_s0 = inlined_call_operand.vmem [shape: bf16[2,256,2688], index: 0, kind: input, shape index: {}]   ;;  %s9842_s1 = inlined_call_operand.vmem [shape: bf16[2688,128], index: 1, kind: input, shape index: {}]   ;;  %s9843_s2 = inlined_call_operand.vmem [shape: f32[1,128], index: 2, kind: input, shape index: {}]   ;;  %s9844_s3 = inlined_call_operand.vmem [shape: f32[2,256,128], index: 3, kind: output, shape index: {}]  }
   0x1   :  { %s7968_s14 = smov 0  }
   0x2 LB: > { %s25_s15 = sadd.s32 1, %s7938_s13  ;;  %p5510_p0 = scmp.ge.s32.totalorder %s7942_s14, 1  ;;  %s7942_s14 = sphi %s7968_s14, %s13_s14   ;;  %s7938_s13 = sphi %s7966_s13, %s9846_s13   ;;  %s7934_s12 = sphi %s7964_s12, %s9845_s12  }
   0x3   : > { %p27_p1 = scmp.ge.s32.totalorder %s25_s15, 2  ;;  %p159_p2 = scmp.lt.s32.totalorder %s7942_s14, 3 }
   0x5   : > { %s9848_s15 = smov (%p27_p1, %s25_s15), 0  ;;  %p160_p3 = pnand %p5510_p0, %p159_p2 }
   0x6   : > { %v7255_v0 = vld [vmem:[%s9842_s1 + $0x40] sm:$0xff] (!%p160_p3)   ;;  %v7257_v2 = vld [vmem:[%s9842_s1 + $0x48] sm:$0xff] (!%p160_p3)   ;;  %p193_p4 = scmp.lt.s32.totalorder (!%p160_p3), %s7934_s12, 1  ;;  %v7259_v4 = vld [vmem:[%s9842_s1 + $0x50] sm:$0xff] (!%p160_p3)  }
   0x7   : > { %163 = sbr.rel (%p160_p3) target bundleno = 925 (0x39d), region = 32  ;;  %v7256_v1 = vld [vmem:[%s9842_s1] sm:$0xff] (!%p160_p3)   ;;  %6022 = vmatprep.subr.bf16.mxu0 (!%p160_p3), %v7255_v0  ;;  %7214 = vmatprep.subr.bf16.mxu1 (!%p160_p3), %v7255_v0  ;;  %v7258_v3 = vld [vmem:[%s9842_s1 + $0x8] sm:$0xff] (!%p160_p3)   ;;  %v7260_v5 = vld [vmem:[%s9842_s1 + $0x10] sm:$0xff] (!%p160_p3)  }
   0x8   : > { %6023 = vmatpush3.bf16.msra.mxu0 (!%p160_p3), %v7256_v1  ;;  %7222 = vmatpush3.bf16.msra.mxu1 (!%p160_p3), %v7256_v1  ;;  %v7261_v6 = vld [vmem:[%s9842_s1 + $0x58] sm:$0xff] (!%p160_p3)   ;;  %v7263_v8 = vld [vmem:[%s9842_s1 + $0x60] sm:$0xff] (!%p160_p3)   ;;  %v7265_v10 = vld [vmem:[%s9842_s1 + $0x68] sm:$0xff] (!%p160_p3)  }
   0x9   : > { %6024 = vmatprep.subr.bf16.mxu0 (!%p160_p3), %v7257_v2  ;;  %7215 = vmatprep.subr.bf16.mxu1 (!%p160_p3), %v7257_v2  ;;  %v7262_v7 = vld [vmem:[%s9842_s1 + $0x18] sm:$0xff] (!%p160_p3)   ;;  %v7264_v9 = vld [vmem:[%s9842_s1 + $0x20] sm:$0xff] (!%p160_p3)   ;;  %v7266_v13 = vld [vmem:[%s9842_s1 + $0x28] sm:$0xff] (!%p160_p3)  }
   0xa   : > { %v7267_v14 = vld [vmem:[%s9842_s1 + $0x70] sm:$0xff] (!%p160_p3)   ;;  %v7269_v16 = vld [vmem:[%s9842_s1 + $0x78] sm:$0xff] (!%p160_p3)   ;;  %v7277_v18 = vld [vmem:[%s9842_s1 + $0xc0] sm:$0xff] (!%p160_p3)  }
   0xb   : > { %v7268_v15 = vld [vmem:[%s9842_s1 + $0x30] sm:$0xff] (!%p160_p3)   ;;  %v7270_v17 = vld [vmem:[%s9842_s1 + $0x38] sm:$0xff] (!%p160_p3)   ;;  %v7280_v21 = vld [vmem:[%s9842_s1 + $0x140] sm:$0xff] (!%p160_p3)  }
   0xc   : > { %6025 = vmatpush3.bf16.msra.mxu0 (!%p160_p3), %v7258_v3  ;;  %7223 = vmatpush3.bf16.msra.mxu1 (!%p160_p3), %v7258_v3  ;;  %v7278_v22 = vld [vmem:[%s9842_s1 + $0x80] sm:$0xff] (!%p160_p3)   ;;  %v7279_v23 = vld [vmem:[%s9842_s1 + $0xc8] sm:$0xff] (!%p160_p3)   ;;  %v7289_v31 = vld [vmem:[%s9842_s1 + $0xd0] sm:$0xff] (!%p160_p3)  }
   0xd   : > { %6026 = vmatprep.subr.bf16.mxu0 (!%p160_p3), %v7259_v4  ;;  %7216 = vmatprep.subr.bf16.mxu1 (!%p160_p3), %v7259_v4  ;;  %v7282_v24 = vld [vmem:[%s9842_s1 + $0x100] sm:$0xff] (!%p160_p3)   ;;  %v7281_v27 = vld [vmem:[%s9842_s1 + $0x88] sm:$0xff] (!%p160_p3)   ;;  %v7290_v32 = vld [vmem:[%s9842_s1 + $0x90] sm:$0xff] (!%p160_p3)  }
   0xe   : > { %s9850_s12 = smov (!%p193_p4, %s7934_s12), 1  ;;  %v7300_v28 = vld [vmem:[%s9842_s1 + $0x148] sm:$0xff]   ;;  %v7291_v34 = vld [vmem:[%s9842_s1 + $0xd8] sm:$0xff]   ;;  %v7299_v40 = vld [vmem:[%s9842_s1 + $0xe0] sm:$0xff]  }
   0xf   : > { %s7230_s30 = smul.u32 2688, %s9850_s12  ;;  %v7302_v33 = vld [vmem:[%s9842_s1 + $0x108] sm:$0xff]   ;;  %v7292_v37 = vld [vmem:[%s9842_s1 + $0x98] sm:$0xff]   ;;  %v7301_v41 = vld [vmem:[%s9842_s1 + $0xa0] sm:$0xff]  }
  0x10   : > { %6027 = vmatpush3.bf16.msra.mxu0 %v7260_v5  ;;  %7224 = vmatpush3.bf16.msra.mxu1 %v7260_v5  ;;  %v7303_v42 = vld [vmem:[%s9842_s1 + $0xe8] sm:$0xff]   ;;  %v7314_v43 = vld [vmem:[%s9842_s1 + $0x150] sm:$0xff]   ;;  %v7313_v52 = vld [vmem:[%s9842_s1 + $0xf8] sm:$0xff]  }
  0x11   : > { %6028 = vmatprep.subr.bf16.mxu0 %v7261_v6  ;;  %7217 = vmatprep.subr.bf16.mxu1 %v7261_v6  ;;  %s8015_s10 = scalar_lea.vmem %s9841_s0, %s7230_s30  ;;  %v7316_v46 = vld [vmem:[%s9842_s1 + $0x110] sm:$0xff]   ;;  %v7304_v47 = vld [vmem:[%s9842_s1 + $0xa8] sm:$0xff]   ;;  %v7331_v55 = vld [vmem:[%s9842_s1 + $0x158] sm:$0xff]  }
  0x12   : > { %v7273_v11 = vld [vmem:[%s8015_s10 + $0x4] ss:$84 sps:$4 sm:$0xff]   ;;  %v7271_v19 = vld [vmem:[%s8015_s10] ss:$84 sps:$4 sm:$0xff]   ;;  %v7287_v29 = vld [vmem:[%s8015_s10 + $0xa8] ss:$84 sps:$4 sm:$0xff]  }
  0x13   : > { %v7276_v12 = vld [vmem:[%s8015_s10 + $0x7e4] ss:$84 sps:$4 sm:$0xff]   ;;  %3645 = vmatprep.mubr.bf16.mxu0 %v7273_v11  ;;  %v7274_v20 = vld [vmem:[%s8015_s10 + $0x7e0] ss:$84 sps:$4 sm:$0xff]   ;;  %v7288_v30 = vld [vmem:[%s8015_s10 + $0x888] ss:$84 sps:$4 sm:$0xff]  }
  0x14   : > { %6029 = vmatpush3.bf16.msra.mxu0 %v7262_v7  ;;  %7225 = vmatpush3.bf16.msra.mxu1 %v7262_v7  ;;  %v7283_v25 = vld [vmem:[%s8015_s10 + $0xac] ss:$84 sps:$4 sm:$0xff]   ;;  %v7293_v35 = vld [vmem:[%s8015_s10 + $0x154] ss:$84 sps:$4 sm:$0xff]   ;;  %v7297_v38 = vld [vmem:[%s8015_s10 + $0x150] ss:$84 sps:$4 sm:$0xff]  }
  0x15   : > { %6030 = vmatprep.subr.bf16.mxu0 %v7263_v8  ;;  %7218 = vmatprep.subr.bf16.mxu1 %v7263_v8  ;;  %v7285_v26 = vld [vmem:[%s8015_s10 + $0x88c] ss:$84 sps:$4 sm:$0xff]   ;;  %v7295_v36 = vld [vmem:[%s8015_s10 + $0x934] ss:$84 sps:$4 sm:$0xff]   ;;  %v7298_v39 = vld [vmem:[%s8015_s10 + $0x930] ss:$84 sps:$4 sm:$0xff]  }
  0x16   : > { %3741 = vmatprep.mubr.bf16.mxu1 %v7276_v12  ;;  %v7305_v44 = vld [vmem:[%s8015_s10 + $0x1fc] ss:$84 sps:$4 sm:$0xff]   ;;  %v7309_v49 = vld [vmem:[%s8015_s10 + $0x1f8] ss:$84 sps:$4 sm:$0xff]   ;;  %v7322_v59 = vld [vmem:[%s8015_s10 + $0x2a0] ss:$84 sps:$4 sm:$0xff]  }
  0x17   : > { %v7307_v45 = vld [vmem:[%s8015_s10 + $0x9dc] ss:$84 sps:$4 sm:$0xff]   ;;  %v7310_v50 = vld [vmem:[%s8015_s10 + $0x9d8] ss:$84 sps:$4 sm:$0xff]   ;;  %v7323_v60 = vld [vmem:[%s9842_s1 + $0x1c0] sm:$0xff]  }
  0x18   : > { %6031 = vmatpush3.bf16.msra.mxu0 %v7264_v9  ;;  %7226 = vmatpush3.bf16.msra.mxu1 %v7264_v9  ;;  %v7311_v48 = vld [vmem:[%s9842_s1 + $0xf0] sm:$0xff]   ;;  %v7317_v53 = vld [vmem:[%s8015_s10 + $0x2a4] ss:$84 sps:$4 sm:$0xff]   ;;  %v7321_v54 = vld [vmem:[%s8015_s10 + $0xc] ss:$84 sps:$4 sm:$0xff]  }
  0x19   : > { %6032 = vmatprep.subr.bf16.mxu0 %v7265_v10  ;;  %7219 = vmatprep.subr.bf16.mxu1 %v7265_v10  ;;  %v7312_v51 = vld [vmem:[%s9842_s1 + $0xb0] sm:$0xff]   ;;  %v7332_v56 = vld [vmem:[%s9842_s1 + $0x118] sm:$0xff]   ;;  %v7324_v61 = vld [vmem:[%s9842_s1 + $0x180] sm:$0xff]  }
  0x1a   : > { %v7315_v57 = vld [vmem:[%s9842_s1 + $0xb8] sm:$0xff]   ;;  %v7325_v62 = vld [vmem:[%s8015_s10 + $0x34c] ss:$84 sps:$4 sm:$0xff]   ;;  %v7327_v63 = vld [vmem:[%s8015_s10 + $0xb4] ss:$84 sps:$4 sm:$0xff]  }
  0x1b   : > { %v7319_v58 = vld [vmem:[%s8015_s10 + $0x8] ss:$84 sps:$4 sm:$0xff]   ;;  %v7341_v0 = vld [vmem:[%s9842_s1 + $0x160] sm:$0xff]   ;;  %v7356_v9 = vld [vmem:[%s9842_s1 + $0x1d0] sm:$0xff]  }
  0x1c   : > { %6033 = vmatpush3.bf16.msra.mxu0 %v7266_v13  ;;  %7227 = vmatpush3.bf16.msra.mxu1 %v7266_v13  ;;  %v7339_v1 = vld [vmem:[%s9842_s1 + $0x1c8] sm:$0xff]   ;;  %v7342_v2 = vld [vmem:[%s9842_s1 + $0x120] sm:$0xff]   ;;  %v7335_v7 = vld [vmem:[%s8015_s10 + $0x15c] ss:$84 sps:$4 sm:$0xff]  }
  0x1d   : > { %6034 = vmatprep.subr.bf16.mxu0 %v7267_v14  ;;  %7220 = vmatprep.subr.bf16.mxu1 %v7267_v14  ;;  %v7340_v3 = vld [vmem:[%s9842_s1 + $0x188] sm:$0xff]   ;;  %v7330_v5 = vld [vmem:[%s8015_s10 + $0xb0] ss:$84 sps:$4 sm:$0xff]  }
  0x1e   : > { %v7329_v4 = vld [vmem:[%s8015_s10 + $0x348] ss:$84 sps:$4 sm:$0xff]   ;;  %v7358_v11 = vld [vmem:[%s9842_s1 + $0x190] sm:$0xff]   ;;  %v7338_v13 = vld [vmem:[%s8015_s10 + $0x158] ss:$84 sps:$4 sm:$0xff]  }
  0x1f   : > { %v7333_v6 = vld [vmem:[%s8015_s10 + $0x3f4] ss:$84 sps:$4 sm:$0xff]   ;;  %v7337_v12 = vld [vmem:[%s8015_s10 + $0x3f0] ss:$84 sps:$4 sm:$0xff]  }
  0x20   : > { %6035 = vmatpush3.bf16.msra.mxu0 %v7268_v15  ;;  %7228 = vmatpush3.bf16.msra.mxu1 %v7268_v15  ;;  %v7355_v8 = vld [vmem:[%s9842_s1 + $0x168] sm:$0xff]   ;;  %v7343_v14 = vld [vmem:[%s8015_s10 + $0x49c] ss:$84 sps:$4 sm:$0xff]  }
  0x21   : > { %6036 = vmatprep.subr.bf16.mxu0 %v7269_v16  ;;  %7221 = vmatprep.subr.bf16.mxu1 %v7269_v16  ;;  %v7357_v10 = vld [vmem:[%s9842_s1 + $0x128] sm:$0xff]   ;;  %v7365_v15 = vld [vmem:[%s9842_s1 + $0x170] sm:$0xff]  }
  0x22   : > { %v7366_v16 = vld [vmem:[%s9842_s1 + $0x130] sm:$0xff]  }
  0x24   : > { %6037 = vmatpush3.bf16.msra.mxu0 %v7270_v17  ;;  %7229 = vmatpush3.bf16.msra.mxu1 %v7270_v17  ;;  %v7345_v17 = vld [vmem:[%s8015_s10 + $0x204] ss:$84 sps:$4 sm:$0xff]  }
  0x25   : > { %6134 = vmatprep.subr.bf16.mxu1 %v7277_v18  ;;  %6246 = vmatprep.subr.bf16.mxu0 %v7280_v21  ;;  %v7373_v18 = vld [vmem:[%s9842_s1 + $0x1d8] sm:$0xff]   ;;  %v7348_v21 = vld [vmem:[%s8015_s10 + $0x200] ss:$84 sps:$4 sm:$0xff]  }
  0x27   : > { %3646 = vmatmul.mubr.bf16.vlgmr.msra.gmra.mrb[0].mxu0 %v7271_v19  ;;  %3742 = vmatmul.mubr.bf16.vlgmr.msra.gmra.mrb[0].mxu1 %v7274_v20  ;;  %v7374_v19 = vld [vmem:[%s9842_s1 + $0x198] sm:$0xff]  }
  0x28   : > { %6135 = vmatpush3.bf16.msra.mxu1 %v7278_v22  ;;  %6247 = vmatpush3.bf16.msra.mxu0 %v7282_v24  ;;  %v7347_v20 = vld [vmem:[%s8015_s10 + $0x498] ss:$84 sps:$4 sm:$0xff]  }
  0x29   : > { %6136 = vmatprep.subr.bf16.mxu1 %v7279_v23  ;;  %3653 = vmatprep.mubr.bf16.mxu0 %v7283_v25  ;;  %v7349_v22 = vld [vmem:[%s8015_s10 + $0x544] ss:$84 sps:$4 sm:$0xff]   ;;  %v7351_v23 = vld [vmem:[%s8015_s10 + $0x2ac] ss:$84 sps:$4 sm:$0xff]  }
  0x2a   : > { %3749 = vmatprep.mubr.bf16.mxu1 %v7285_v26  ;;  %6248 = vmatprep.subr.bf16.mxu0 %v7300_v28  ;;  %v7381_v24 = vld [vmem:[%s9842_s1 + $0x178] sm:$0xff]   ;;  %v7389_v26 = vld [vmem:[%s9842_s1 + $0x1e0] sm:$0xff]  }
  0x2b   : > { %v7382_v25 = vld [vmem:[%s9842_s1 + $0x138] sm:$0xff]  }
  0x2c   : > { %6137 = vmatpush3.bf16.msra.mxu1 %v7281_v27  ;;  %6249 = vmatpush3.bf16.msra.mxu0 %v7302_v33  ;;  %v7353_v27 = vld [vmem:[%s8015_s10 + $0x540] ss:$84 sps:$4 sm:$0xff]   ;;  %v7354_v28 = vld [vmem:[%s8015_s10 + $0x2a8] ss:$84 sps:$4 sm:$0xff]  }
  0x2d   : > { %6138 = vmatprep.subr.bf16.mxu1 %v7289_v31  ;;  %6250 = vmatprep.subr.bf16.mxu0 %v7314_v43  ;;  %v7359_v31 = vld [vmem:[%s8015_s10 + $0x5ec] ss:$84 sps:$4 sm:$0xff]   ;;  %v7363_v33 = vld [vmem:[%s8015_s10 + $0x5e8] ss:$84 sps:$4 sm:$0xff]   ;;  %v7421_v43 = vld [vmem:[%s9842_s1 + $0x1f0] sm:$0xff]  }
  0x2f   : > { %3654 = vmatmul.mubr.bf16.gmra.mrb[4].mxu0 %v7287_v29  ;;  %3750 = vmatmul.mubr.bf16.gmra.mrb[4].mxu1 %v7288_v30  ;;  %v7390_v29 = vld [vmem:[%s9842_s1 + $0x1a0] sm:$0xff]  }
  0x30   : > { %6139 = vmatpush3.bf16.msra.mxu1 %v7290_v32  ;;  %3661 = vmatprep.mubr.bf16.mxu0 %v7293_v35  ;;  %v7391_v30 = vld [vmem:[%s9842_s1 + $0x240] sm:$0xff]   ;;  %v7361_v32 = vld [vmem:[%s8015_s10 + $0x354] ss:$84 sps:$4 sm:$0xff]  }
  0x31   : > { %6140 = vmatprep.subr.bf16.mxu1 %v7291_v34  ;;  %3757 = vmatprep.mubr.bf16.mxu1 %v7295_v36  ;;  %v7364_v34 = vld [vmem:[%s8015_s10 + $0x350] ss:$84 sps:$4 sm:$0xff]   ;;  %v7405_v35 = vld [vmem:[%s9842_s1 + $0x1e8] sm:$0xff]  }
  0x32   : > { %6251 = vmatpush3.bf16.msra.mxu0 %v7316_v46  ;;  %v7406_v36 = vld [vmem:[%s9842_s1 + $0x1a8] sm:$0xff]   ;;  %v7380_v46 = vld [vmem:[%s8015_s10 + $0x4a0] ss:$84 sps:$4 sm:$0xff]  }
  0x33   : > { %6252 = vmatprep.subr.bf16.mxu0 %v7331_v55  ;;  %v7395_v55 = vld [vmem:[%s8015_s10 + $0xbc] ss:$84 sps:$4 sm:$0xff]  }
  0x34   : > { %6141 = vmatpush3.bf16.msra.mxu1 %v7292_v37  ;;  %v7367_v37 = vld [vmem:[%s8015_s10 + $0x694] ss:$84 sps:$4 sm:$0xff]  }
  0x35   : > { %6142 = vmatprep.subr.bf16.mxu1 %v7299_v40  ;;  %v7372_v40 = vld [vmem:[%s8015_s10 + $0x3f8] ss:$84 sps:$4 sm:$0xff]  }
  0x36   : > { %6253 = vmatpush3.bf16.msra.mxu0 %v7332_v56  ;;  %v7407_v56 = vld [vmem:[%s9842_s1 + $0x248] sm:$0xff]  }
  0x37   : > { %3662 = vmatmul.mubr.bf16.gmra.mrb[8].mxu0 %v7297_v38  ;;  %3758 = vmatmul.mubr.bf16.gmra.mrb[8].mxu1 %v7298_v39  ;;  %v7369_v38 = vld [vmem:[%s8015_s10 + $0x3fc] ss:$84 sps:$4 sm:$0xff]  }
  0x38   : > { %6143 = vmatpush3.bf16.msra.mxu1 %v7301_v41  ;;  %3669 = vmatprep.mubr.bf16.mxu0 %v7305_v44  ;;  %v7371_v39 = vld [vmem:[%s8015_s10 + $0x690] ss:$84 sps:$4 sm:$0xff]  }
  0x39   : > { %6144 = vmatprep.subr.bf16.mxu1 %v7303_v42  ;;  %3765 = vmatprep.mubr.bf16.mxu1 %v7307_v45  ;;  %v7375_v41 = vld [vmem:[%s8015_s10 + $0x73c] ss:$84 sps:$4 sm:$0xff]   ;;  %v7377_v42 = vld [vmem:[%s8015_s10 + $0x4a4] ss:$84 sps:$4 sm:$0xff]  }
  0x3a   : > { %6254 = vmatprep.subr.bf16.mxu0 %v7341_v0  ;;  %v7422_v44 = vld [vmem:[%s9842_s1 + $0x1b0] sm:$0xff]   ;;  %v7379_v45 = vld [vmem:[%s8015_s10 + $0x738] ss:$84 sps:$4 sm:$0xff]  }
  0x3b   : > { %6255 = vmatpush3.bf16.msra.mxu0 %v7342_v2  ;;  %v7424_v0 = vld [vmem:[%s9842_s1 + $0x210] sm:$0xff]   ;;  %v7403_v2 = vld [vmem:[%s8015_s10 + $0x698] ss:$84 sps:$4 sm:$0xff]  }
  0x3c   : > { %6145 = vmatpush3.bf16.msra.mxu1 %v7304_v47  ;;  %6256 = vmatprep.subr.bf16.mxu0 %v7355_v8  ;;  %v7383_v47 = vld [vmem:[%s8015_s10 + $0x54c] ss:$84 sps:$4 sm:$0xff]  }
  0x3d   : > { %6146 = vmatprep.subr.bf16.mxu1 %v7311_v48  ;;  %v7387_v48 = vld [vmem:[%s8015_s10 + $0x14] ss:$84 sps:$4 sm:$0xff]   ;;  %v7456_v8 = vld [vmem:[%s9842_s1 + $0x220] sm:$0xff]  }
  0x3f   : > { %3670 = vmatmul.mubr.bf16.gmra.mrb[12].mxu0 %v7309_v49  ;;  %3766 = vmatmul.mubr.bf16.gmra.mrb[12].mxu1 %v7310_v50  ;;  %v7437_v49 = vld [vmem:[%s9842_s1 + $0x1f8] sm:$0xff]  }
  0x40   : > { %6147 = vmatpush3.bf16.msra.mxu1 %v7312_v51  ;;  %3677 = vmatprep.mubr.bf16.mxu0 %v7317_v53  ;;  %v7438_v50 = vld [vmem:[%s9842_s1 + $0x1b8] sm:$0xff]   ;;  %v7385_v51 = vld [vmem:[%s8015_s10 + $0x10] ss:$84 sps:$4 sm:$0xff]  }
  0x41   : > { %6148 = vmatprep.subr.bf16.mxu1 %v7313_v52  ;;  %3806 = vmatprep.mubr.bf16.mxu1 %v7321_v54  ;;  %v7388_v52 = vld [vmem:[%s8015_s10 + $0x548] ss:$84 sps:$4 sm:$0xff]   ;;  %v7392_v53 = vld [vmem:[%s9842_s1 + $0x200] sm:$0xff]  }
  0x42   : > { %6257 = vmatpush3.bf16.msra.mxu0 %v7357_v10  ;;  %v7393_v54 = vld [vmem:[%s8015_s10 + $0x5f4] ss:$84 sps:$4 sm:$0xff]  }
  0x43   : > { %6258 = vmatprep.subr.bf16.mxu0 %v7365_v15  ;;  %v7413_v10 = vld [vmem:[%s8015_s10 + $0x740] ss:$84 sps:$4 sm:$0xff]  }
  0x44   : > { %6149 = vmatpush3.bf16.msra.mxu1 %v7315_v57  ;;  %v7453_v57 = vld [vmem:[%s9842_s1 + $0x2c0] sm:$0xff]   ;;  %v7417_v15 = vld [vmem:[%s8015_s10 + $0x2b4] ss:$84 sps:$4 sm:$0xff]  }
  0x45   : > { %6358 = vmatprep.subr.bf16.mxu1 %v7323_v60  ;;  %v7397_v60 = vld [vmem:[%s8015_s10 + $0x5f0] ss:$84 sps:$4 sm:$0xff]  }
  0x46   : > { %6259 = vmatpush3.bf16.msra.mxu0 %v7366_v16  ;;  %v7488_v16 = vld [vmem:[%s9842_s1 + $0x230] sm:$0xff]  }
  0x47   : > { %3678 = vmatmul.mubr.bf16.gmra.mrb[16].mxu0 %v7322_v59  ;;  %3807 = vmatmul.mubr.bf16.vlgmr.msra.gmra.mrb[16].mxu1 %v7319_v58  ;;  %v7408_v58 = vld [vmem:[%s9842_s1 + $0x208] sm:$0xff]   ;;  %v7423_v59 = vld [vmem:[%s9842_s1 + $0x250] sm:$0xff]  }
  0x48   : > { %6359 = vmatpush3.bf16.msra.mxu1 %v7324_v61  ;;  %3685 = vmatprep.mubr.bf16.mxu0 %v7325_v62  ;;  %v7398_v61 = vld [vmem:[%s8015_s10 + $0xb8] ss:$84 sps:$4 sm:$0xff]   ;;  %v7399_v62 = vld [vmem:[%s8015_s10 + $0x69c] ss:$84 sps:$4 sm:$0xff]  }
  0x49   : > { %3814 = vmatprep.mubr.bf16.mxu1 %v7327_v63  ;;  %6360 = vmatprep.subr.bf16.mxu1 %v7339_v1  ;;  %v7401_v63 = vld [vmem:[%s8015_s10 + $0x164] ss:$84 sps:$4 sm:$0xff]  }
  0x4a   : > { %6260 = vmatprep.subr.bf16.mxu0 %v7381_v24  ;;  %v7439_v1 = vld [vmem:[%s9842_s1 + $0x258] sm:$0xff]  }
  0x4b   : > { %6261 = vmatpush3.bf16.msra.mxu0 %v7382_v25  ;;  %v7430_v24 = vld [vmem:[%s8015_s10 + $0x358] ss:$84 sps:$4 sm:$0xff]   ;;  %v7431_v25 = vld [vmem:[%s8015_s10 + $0x93c] ss:$84 sps:$4 sm:$0xff]  }
  0x4c   : > { %6361 = vmatpush3.bf16.msra.mxu1 %v7340_v3  ;;  %6470 = vmatprep.subr.bf16.mxu0 %v7391_v30  ;;  %v7440_v3 = vld [vmem:[%s9842_s1 + $0x218] sm:$0xff]  }
  0x4d   : > { %6362 = vmatprep.subr.bf16.mxu1 %v7356_v9  ;;  %v7471_v9 = vld [vmem:[%s9842_s1 + $0x268] sm:$0xff]   ;;  %v7441_v30 = vld [vmem:[%s8015_s10 + $0x9e4] ss:$84 sps:$4 sm:$0xff]  }
  0x4f   : > { %3686 = vmatmul.mubr.bf16.gmra.mrb[20].mxu0 %v7329_v4  ;;  %3815 = vmatmul.mubr.bf16.gmra.mrb[20].mxu1 %v7330_v5  ;;  %v7455_v4 = vld [vmem:[%s9842_s1 + $0x260] sm:$0xff]  }
  0x50   : > { %3693 = vmatprep.mubr.bf16.mxu0 %v7333_v6  ;;  %3822 = vmatprep.mubr.bf16.mxu1 %v7335_v7  ;;  %v7404_v5 = vld [vmem:[%s8015_s10 + $0x160] ss:$84 sps:$4 sm:$0xff]   ;;  %v7409_v6 = vld [vmem:[%s8015_s10 + $0x744] ss:$84 sps:$4 sm:$0xff]  }
  0x51   : > { %6363 = vmatpush3.bf16.msra.mxu1 %v7358_v11  ;;  %v7411_v7 = vld [vmem:[%s8015_s10 + $0x20c] ss:$84 sps:$4 sm:$0xff]   ;;  %v7414_v11 = vld [vmem:[%s8015_s10 + $0x208] ss:$84 sps:$4 sm:$0xff]  }
  0x52   : > { %6364 = vmatprep.subr.bf16.mxu1 %v7373_v18  ;;  %v7420_v18 = vld [vmem:[%s8015_s10 + $0x2b0] ss:$84 sps:$4 sm:$0xff]  }
  0x55   : > { %6365 = vmatpush3.bf16.msra.mxu1 %v7374_v19  ;;  %v7425_v19 = vld [vmem:[%s8015_s10 + $0x894] ss:$84 sps:$4 sm:$0xff]  }
  0x56   : > { %6366 = vmatprep.subr.bf16.mxu1 %v7389_v26  ;;  %v7433_v26 = vld [vmem:[%s8015_s10 + $0x404] ss:$84 sps:$4 sm:$0xff]  }
  0x57   : > { %3694 = vmatmul.mubr.bf16.gmra.mrb[24].mxu0 %v7337_v12  ;;  %3823 = vmatmul.mubr.bf16.gmra.mrb[24].mxu1 %v7338_v13  ;;  %v7472_v12 = vld [vmem:[%s9842_s1 + $0x228] sm:$0xff]   ;;  %v7487_v13 = vld [vmem:[%s9842_s1 + $0x270] sm:$0xff]  }
  0x58   : > { %3701 = vmatprep.mubr.bf16.mxu0 %v7343_v14  ;;  %3830 = vmatprep.mubr.bf16.mxu1 %v7345_v17  ;;  %v7415_v14 = vld [vmem:[%s8015_s10 + $0x7ec] ss:$84 sps:$4 sm:$0xff]   ;;  %v7419_v17 = vld [vmem:[%s8015_s10 + $0x7e8] ss:$84 sps:$4 sm:$0xff]  }
  0x59   : > { %6367 = vmatpush3.bf16.msra.mxu1 %v7390_v29  ;;  %v7436_v29 = vld [vmem:[%s8015_s10 + $0x400] ss:$84 sps:$4 sm:$0xff]  }
  0x5a   : > { %6368 = vmatprep.subr.bf16.mxu1 %v7405_v35  ;;  %v7451_v35 = vld [vmem:[%s8015_s10 + $0x1c] ss:$84 sps:$4 sm:$0xff]  }
  0x5d   : > { %6369 = vmatpush3.bf16.msra.mxu1 %v7406_v36  ;;  %v7449_v36 = vld [vmem:[%s8015_s10 + $0x18] ss:$84 sps:$4 sm:$0xff]  }
  0x5e   : > { %6370 = vmatprep.subr.bf16.mxu1 %v7421_v43  ;;  %v7485_v43 = vld [vmem:[%s9842_s1 + $0x2d0] sm:$0xff]  }
  0x5f   : > { %3702 = vmatmul.mubr.bf16.gmra.mrb[28].mxu0 %v7347_v20  ;;  %3831 = vmatmul.mubr.bf16.gmra.mrb[28].mxu1 %v7348_v21  ;;  %v7427_v20 = vld [vmem:[%s8015_s10 + $0x35c] ss:$84 sps:$4 sm:$0xff]  }
  0x60   : > { %3709 = vmatprep.mubr.bf16.mxu0 %v7349_v22  ;;  %3838 = vmatprep.mubr.bf16.mxu1 %v7351_v23  ;;  %v7503_v21 = vld [vmem:[%s9842_s1 + $0x278] sm:$0xff]   ;;  %v7429_v23 = vld [vmem:[%s8015_s10 + $0x890] ss:$84 sps:$4 sm:$0xff]  }
  0x61   : > { %6371 = vmatpush3.bf16.msra.mxu1 %v7422_v44  ;;  %v7504_v22 = vld [vmem:[%s9842_s1 + $0x238] sm:$0xff]  }
  0x62   : > { %6372 = vmatprep.subr.bf16.mxu1 %v7437_v49  ;;  %v7461_v44 = vld [vmem:[%s8015_s10 + $0x5f8] ss:$84 sps:$4 sm:$0xff]  }
  0x63   : > { %v7501_v49 = vld [vmem:[%s9842_s1 + $0x2d8] sm:$0xff]  }
  0x65   : > { %6373 = vmatpush3.bf16.msra.mxu1 %v7438_v50  ;;  %v7467_v50 = vld [vmem:[%s8015_s10 + $0x6a0] ss:$84 sps:$4 sm:$0xff]  }
  0x66   : > { %6582 = vmatprep.subr.bf16.mxu1 %v7453_v57  ;;  %v7533_v57 = vld [vmem:[%s9842_s1 + $0x2e8] sm:$0xff]  }
  0x67   : > { %3710 = vmatmul.mubr.bf16.gmra.mrb[32].mxu0 %v7353_v27  ;;  %3839 = vmatmul.mubr.bf16.gmra.mrb[32].mxu1 %v7354_v28  ;;  %v7519_v27 = vld [vmem:[%s9842_s1 + $0x340] sm:$0xff]   ;;  %v7435_v28 = vld [vmem:[%s8015_s10 + $0x938] ss:$84 sps:$4 sm:$0xff]  }
  0x68   : > { %3717 = vmatprep.mubr.bf16.mxu0 %v7359_v31  ;;  %3846 = vmatprep.mubr.bf16.mxu1 %v7361_v32  ;;  %v7443_v31 = vld [vmem:[%s8015_s10 + $0x4ac] ss:$84 sps:$4 sm:$0xff]  }
  0x69   : > { %v7445_v32 = vld [vmem:[%s8015_s10 + $0x9e0] ss:$84 sps:$4 sm:$0xff]  }
  0x6f   : > { %3718 = vmatmul.mubr.bf16.gmra.mrb[36].mxu0 %v7363_v33  ;;  %3847 = vmatmul.mubr.bf16.gmra.mrb[36].mxu1 %v7364_v34  ;;  %v7446_v33 = vld [vmem:[%s8015_s10 + $0x4a8] ss:$84 sps:$4 sm:$0xff]  }
  0x70   : > { %3725 = vmatprep.mubr.bf16.mxu0 %v7367_v37  ;;  %3854 = vmatprep.mubr.bf16.mxu1 %v7369_v38  ;;  %v7447_v34 = vld [vmem:[%s8015_s10 + $0x554] ss:$84 sps:$4 sm:$0xff]   ;;  %v7452_v37 = vld [vmem:[%s8015_s10 + $0x550] ss:$84 sps:$4 sm:$0xff]  }
  0x71   : > { %v7454_v38 = vld [vmem:[%s9842_s1 + $0x280] sm:$0xff]  }
  0x77   : > { %3726 = vmatmul.mubr.bf16.gmra.mrb[40].mxu0 %v7371_v39  ;;  %3855 = vmatmul.mubr.bf16.gmra.mrb[40].mxu1 %v7372_v40  ;;  %v7457_v39 = vld [vmem:[%s8015_s10 + $0x5fc] ss:$84 sps:$4 sm:$0xff]   ;;  %v7459_v40 = vld [vmem:[%s8015_s10 + $0xc4] ss:$84 sps:$4 sm:$0xff]  }
  0x78   : > { %3733 = vmatprep.mubr.bf16.mxu0 %v7375_v41  ;;  %3862 = vmatprep.mubr.bf16.mxu1 %v7377_v42  ;;  %v7469_v41 = vld [vmem:[%s9842_s1 + $0x2c8] sm:$0xff]  }
  0x79   : > { %v7470_v42 = vld [vmem:[%s9842_s1 + $0x288] sm:$0xff]  }
  0x7f   : > { %3734 = vmatmul.mubr.bf16.gmra.mrb[44].mxu0 %v7379_v45  ;;  %3863 = vmatmul.mubr.bf16.gmra.mrb[44].mxu1 %v7380_v46  ;;  %v7462_v45 = vld [vmem:[%s8015_s10 + $0xc0] ss:$84 sps:$4 sm:$0xff]   ;;  %v7463_v46 = vld [vmem:[%s8015_s10 + $0x6a4] ss:$84 sps:$4 sm:$0xff]  }
  0x80   : > { %3870 = vmatprep.mubr.bf16.mxu1 %v7383_v47  ;;  %3967 = vmatprep.mubr.bf16.mxu0 %v7387_v48  ;;  %v7465_v47 = vld [vmem:[%s8015_s10 + $0x16c] ss:$84 sps:$4 sm:$0xff]   ;;  %v7486_v48 = vld [vmem:[%s9842_s1 + $0x290] sm:$0xff]  }
  0x87   : > { %3871 = vmatmul.mubr.bf16.gmra.mrb[48].mxu1 %v7388_v52  ;;  %3968 = vmatmul.mubr.bf16.vlgmr.msra.gmra.mrb[48].mxu0 %v7385_v51  ;;  %v7468_v51 = vld [vmem:[%s8015_s10 + $0x168] ss:$84 sps:$4 sm:$0xff]  }
  0x88   : > { %6471 = vmatpush3.bf16.msra.mxu0 %v7392_v53  ;;  %3878 = vmatprep.mubr.bf16.mxu1 %v7393_v54  ;;  %v7502_v52 = vld [vmem:[%s9842_s1 + $0x298] sm:$0xff]   ;;  %v7517_v53 = vld [vmem:[%s9842_s1 + $0x2e0] sm:$0xff]  }
  0x89   : > { %3975 = vmatprep.mubr.bf16.mxu0 %v7395_v55  ;;  %6472 = vmatprep.subr.bf16.mxu0 %v7407_v56  ;;  %v7473_v54 = vld [vmem:[%s8015_s10 + $0x74c] ss:$84 sps:$4 sm:$0xff]   ;;  %v7475_v55 = vld [vmem:[%s8015_s10 + $0x214] ss:$84 sps:$4 sm:$0xff]  }
  0x8a   : > { %v7518_v56 = vld [vmem:[%s9842_s1 + $0x2a0] sm:$0xff]  }
  0x8c   : > { %6473 = vmatpush3.bf16.msra.mxu0 %v7408_v58  ;;  %v7477_v58 = vld [vmem:[%s8015_s10 + $0x748] ss:$84 sps:$4 sm:$0xff]  }
  0x8d   : > { %6474 = vmatprep.subr.bf16.mxu0 %v7423_v59  ;;  %v7478_v59 = vld [vmem:[%s8015_s10 + $0x210] ss:$84 sps:$4 sm:$0xff]  }
  0x8f   : > { %3879 = vmatmul.mubr.bf16.gmra.mrb[52].mxu1 %v7397_v60  ;;  %3976 = vmatmul.mubr.bf16.gmra.mrb[52].mxu0 %v7398_v61  ;;  %v7534_v60 = vld [vmem:[%s9842_s1 + $0x2a8] sm:$0xff]   ;;  %v7549_v61 = vld [vmem:[%s9842_s1 + $0x2f0] sm:$0xff]  }
  0x90   : > { %3886 = vmatprep.mubr.bf16.mxu1 %v7399_v62  ;;  %3983 = vmatprep.mubr.bf16.mxu0 %v7401_v63  ;;  %v7479_v62 = vld [vmem:[%s8015_s10 + $0x7f4] ss:$84 sps:$4 sm:$0xff]   ;;  %v7481_v63 = vld [vmem:[%s8015_s10 + $0x2bc] ss:$84 sps:$4 sm:$0xff]  }
  0x91   : > { %6475 = vmatpush3.bf16.msra.mxu0 %v7424_v0  ;;  %v7550_v0 = vld [vmem:[%s9842_s1 + $0x2b0] sm:$0xff]  }
  0x92   : > { %6476 = vmatprep.subr.bf16.mxu0 %v7439_v1  ;;  %v7565_v1 = vld [vmem:[%s9842_s1 + $0x2f8] sm:$0xff]  }
  0x95   : > { %6477 = vmatpush3.bf16.msra.mxu0 %v7440_v3  ;;  %v7581_v3 = vld [vmem:[%s9842_s1 + $0x3c0] sm:$0xff]  }
  0x96   : > { %6478 = vmatprep.subr.bf16.mxu0 %v7455_v4  ;;  %v7483_v4 = vld [vmem:[%s8015_s10 + $0x7f0] ss:$84 sps:$4 sm:$0xff]  }
  0x97   : > { %3887 = vmatmul.mubr.bf16.gmra.mrb[56].mxu1 %v7403_v2  ;;  %3984 = vmatmul.mubr.bf16.gmra.mrb[56].mxu0 %v7404_v5  ;;  %v7566_v2 = vld [vmem:[%s9842_s1 + $0x2b8] sm:$0xff]  }
  0x98   : > { %3894 = vmatprep.mubr.bf16.mxu1 %v7409_v6  ;;  %3991 = vmatprep.mubr.bf16.mxu0 %v7411_v7  ;;  %v7484_v5 = vld [vmem:[%s8015_s10 + $0x2b8] ss:$84 sps:$4 sm:$0xff]   ;;  %v7489_v6 = vld [vmem:[%s8015_s10 + $0x89c] ss:$84 sps:$4 sm:$0xff]  }
  0x99   : > { %6479 = vmatpush3.bf16.msra.mxu0 %v7456_v8  ;;  %v7491_v7 = vld [vmem:[%s8015_s10 + $0x364] ss:$84 sps:$4 sm:$0xff]  }
  0x9a   : > { %6480 = vmatprep.subr.bf16.mxu0 %v7471_v9  ;;  %v7493_v8 = vld [vmem:[%s8015_s10 + $0x898] ss:$84 sps:$4 sm:$0xff]   ;;  %v7494_v9 = vld [vmem:[%s8015_s10 + $0x360] ss:$84 sps:$4 sm:$0xff]  }
  0x9d   : > { %6481 = vmatpush3.bf16.msra.mxu0 %v7472_v12  ;;  %v7499_v12 = vld [vmem:[%s8015_s10 + $0x940] ss:$84 sps:$4 sm:$0xff]  }
  0x9e   : > { %6482 = vmatprep.subr.bf16.mxu0 %v7487_v13  ;;  %v7500_v13 = vld [vmem:[%s8015_s10 + $0x408] ss:$84 sps:$4 sm:$0xff]  }
  0x9f   : > { %3895 = vmatmul.mubr.bf16.gmra.mrb[60].mxu1 %v7413_v10  ;;  %3992 = vmatmul.mubr.bf16.gmra.mrb[60].mxu0 %v7414_v11  ;;  %v7495_v10 = vld [vmem:[%s8015_s10 + $0x944] ss:$84 sps:$4 sm:$0xff]   ;;  %v7497_v11 = vld [vmem:[%s8015_s10 + $0x40c] ss:$84 sps:$4 sm:$0xff]  }
  0xa0   : > { %3902 = vmatprep.mubr.bf16.mxu1 %v7415_v14  ;;  %3999 = vmatprep.mubr.bf16.mxu0 %v7417_v15  ;;  %v7505_v14 = vld [vmem:[%s8015_s10 + $0x9ec] ss:$84 sps:$4 sm:$0xff]   ;;  %v7507_v15 = vld [vmem:[%s8015_s10 + $0x4b4] ss:$84 sps:$4 sm:$0xff]  }
  0xa1   : > { %6483 = vmatpush3.bf16.msra.mxu0 %v7488_v16  ;;  %v7509_v16 = vld [vmem:[%s8015_s10 + $0x9e8] ss:$84 sps:$4 sm:$0xff]  }
  0xa2   : > { %6484 = vmatprep.subr.bf16.mxu0 %v7503_v21 }
  0xa5   : > { %6485 = vmatpush3.bf16.msra.mxu0 %v7504_v22 }
  0xa6   : > { %6694 = vmatprep.subr.bf16.mxu0 %v7519_v27  ;;  %v7515_v27 = vld [vmem:[%s8015_s10 + $0x24] ss:$84 sps:$4 sm:$0xff]  }
  0xa7   : > { %3903 = vmatmul.mubr.bf16.gmra.mrb[64].mxu1 %v7419_v17  ;;  %4000 = vmatmul.mubr.bf16.gmra.mrb[64].mxu0 %v7420_v18  ;;  %v7510_v17 = vld [vmem:[%s8015_s10 + $0x4b0] ss:$84 sps:$4 sm:$0xff]  }
  0xa8   : > { %3910 = vmatprep.mubr.bf16.mxu1 %v7425_v19  ;;  %4007 = vmatprep.mubr.bf16.mxu0 %v7427_v20 }
  0xaf   : > { %3911 = vmatmul.mubr.bf16.gmra.mrb[68].mxu1 %v7429_v23  ;;  %4008 = vmatmul.mubr.bf16.gmra.mrb[68].mxu0 %v7430_v24 }
  0xb0   : > { %3918 = vmatprep.mubr.bf16.mxu1 %v7431_v25  ;;  %4015 = vmatprep.mubr.bf16.mxu0 %v7433_v26  ;;  %v7511_v26 = vld [vmem:[%s8015_s10 + $0x55c] ss:$84 sps:$4 sm:$0xff]  }
  0xb7   : > { %3919 = vmatmul.mubr.bf16.gmra.mrb[72].mxu1 %v7435_v28  ;;  %4016 = vmatmul.mubr.bf16.gmra.mrb[72].mxu0 %v7436_v29 }
  0xb8   : > { %3926 = vmatprep.mubr.bf16.mxu1 %v7441_v30  ;;  %4023 = vmatprep.mubr.bf16.mxu0 %v7443_v31 }
  0xbf   : > { %3927 = vmatmul.mubr.bf16.gmra.mrb[76].mxu1 %v7445_v32  ;;  %4024 = vmatmul.mubr.bf16.gmra.mrb[76].mxu0 %v7446_v33  ;;  %v7513_v32 = vld [vmem:[%s8015_s10 + $0x20] ss:$84 sps:$4 sm:$0xff]   ;;  %v7516_v33 = vld [vmem:[%s8015_s10 + $0x558] ss:$84 sps:$4 sm:$0xff]  }
  0xc0   : > { %4031 = vmatprep.mubr.bf16.mxu0 %v7447_v34  ;;  %4128 = vmatprep.mubr.bf16.mxu1 %v7451_v35 }
  0xc7   : > { %4032 = vmatmul.mubr.bf16.gmra.mrb[80].mxu0 %v7452_v37  ;;  %4129 = vmatmul.mubr.bf16.vlgmr.msra.gmra.mrb[80].mxu1 %v7449_v36 }
  0xc8   : > { %6583 = vmatpush3.bf16.msra.mxu1 %v7454_v38  ;;  %4039 = vmatprep.mubr.bf16.mxu0 %v7457_v39 }
  0xc9   : > { %4136 = vmatprep.mubr.bf16.mxu1 %v7459_v40  ;;  %6584 = vmatprep.subr.bf16.mxu1 %v7469_v41 }
  0xcc   : > { %6585 = vmatpush3.bf16.msra.mxu1 %v7470_v42  ;;  %v7520_v42 = vld [vmem:[%s9842_s1 + $0x300] sm:$0xff]  }
  0xcd   : > { %6586 = vmatprep.subr.bf16.mxu1 %v7485_v43  ;;  %v7521_v43 = vld [vmem:[%s8015_s10 + $0x604] ss:$84 sps:$4 sm:$0xff]  }
  0xcf   : > { %4040 = vmatmul.mubr.bf16.gmra.mrb[84].mxu0 %v7461_v44  ;;  %4137 = vmatmul.mubr.bf16.gmra.mrb[84].mxu1 %v7462_v45 }
  0xd0   : > { %4047 = vmatprep.mubr.bf16.mxu0 %v7463_v46  ;;  %4144 = vmatprep.mubr.bf16.mxu1 %v7465_v47  ;;  %v7523_v46 = vld [vmem:[%s8015_s10 + $0xcc] ss:$84 sps:$4 sm:$0xff]  }
  0xd1   : > { %6587 = vmatpush3.bf16.msra.mxu1 %v7486_v48  ;;  %v7535_v47 = vld [vmem:[%s9842_s1 + $0x348] sm:$0xff]  }
  0xd2   : > { %6588 = vmatprep.subr.bf16.mxu1 %v7501_v49 }
  0xd5   : > { %6589 = vmatpush3.bf16.msra.mxu1 %v7502_v52  ;;  %v7525_v52 = vld [vmem:[%s8015_s10 + $0x600] ss:$84 sps:$4 sm:$0xff]  }
  0xd6   : > { %6590 = vmatprep.subr.bf16.mxu1 %v7517_v53  ;;  %v7526_v53 = vld [vmem:[%s8015_s10 + $0xc8] ss:$84 sps:$4 sm:$0xff]  }
  0xd7   : > { %4048 = vmatmul.mubr.bf16.gmra.mrb[88].mxu0 %v7467_v50  ;;  %4145 = vmatmul.mubr.bf16.gmra.mrb[88].mxu1 %v7468_v51  ;;  %v7536_v50 = vld [vmem:[%s9842_s1 + $0x308] sm:$0xff]   ;;  %v7551_v51 = vld [vmem:[%s9842_s1 + $0x350] sm:$0xff]  }
  0xd8   : > { %4055 = vmatprep.mubr.bf16.mxu0 %v7473_v54  ;;  %4152 = vmatprep.mubr.bf16.mxu1 %v7475_v55 }
  0xd9   : > { %6591 = vmatpush3.bf16.msra.mxu1 %v7518_v56 }
  0xda   : > { %6592 = vmatprep.subr.bf16.mxu1 %v7533_v57 }
  0xdd   : > { %6593 = vmatpush3.bf16.msra.mxu1 %v7534_v60 }
  0xde   : > { %6594 = vmatprep.subr.bf16.mxu1 %v7549_v61 }
  0xdf   : > { %4056 = vmatmul.mubr.bf16.gmra.mrb[92].mxu0 %v7477_v58  ;;  %4153 = vmatmul.mubr.bf16.gmra.mrb[92].mxu1 %v7478_v59 }
  0xe0   : > { %4063 = vmatprep.mubr.bf16.mxu0 %v7479_v62  ;;  %4160 = vmatprep.mubr.bf16.mxu1 %v7481_v63  ;;  %v7527_v62 = vld [vmem:[%s8015_s10 + $0x6ac] ss:$84 sps:$4 sm:$0xff]   ;;  %v7529_v63 = vld [vmem:[%s8015_s10 + $0x174] ss:$84 sps:$4 sm:$0xff]  }
  0xe1   : > { %6595 = vmatpush3.bf16.msra.mxu1 %v7550_v0 }
  0xe2   : > { %6596 = vmatprep.subr.bf16.mxu1 %v7565_v1 }
  0xe5   : > { %6597 = vmatpush3.bf16.msra.mxu1 %v7566_v2  ;;  %v7552_v2 = vld [vmem:[%s9842_s1 + $0x310] sm:$0xff]  }
  0xe6   : > { %6806 = vmatprep.subr.bf16.mxu1 %v7581_v3 }
  0xe7   : > { %4064 = vmatmul.mubr.bf16.gmra.mrb[96].mxu0 %v7483_v4  ;;  %4161 = vmatmul.mubr.bf16.gmra.mrb[96].mxu1 %v7484_v5  ;;  %v7567_v5 = vld [vmem:[%s9842_s1 + $0x358] sm:$0xff]  }
  0xe8   : > { %4071 = vmatprep.mubr.bf16.mxu0 %v7489_v6  ;;  %4168 = vmatprep.mubr.bf16.mxu1 %v7491_v7  ;;  %v7568_v6 = vld [vmem:[%s9842_s1 + $0x318] sm:$0xff]   ;;  %v7583_v7 = vld [vmem:[%s9842_s1 + $0x360] sm:$0xff]  }
  0xef   : > { %4072 = vmatmul.mubr.bf16.gmra.mrb[100].mxu0 %v7493_v8  ;;  %4169 = vmatmul.mubr.bf16.gmra.mrb[100].mxu1 %v7494_v9  ;;  %v7531_v8 = vld [vmem:[%s8015_s10 + $0x6a8] ss:$84 sps:$4 sm:$0xff]   ;;  %v7532_v9 = vld [vmem:[%s8015_s10 + $0x170] ss:$84 sps:$4 sm:$0xff]  }
  0xf0   : > { %4079 = vmatprep.mubr.bf16.mxu0 %v7495_v10  ;;  %4176 = vmatprep.mubr.bf16.mxu1 %v7497_v11 }
  0xf7   : > { %4080 = vmatmul.mubr.bf16.gmra.mrb[104].mxu0 %v7499_v12  ;;  %4177 = vmatmul.mubr.bf16.gmra.mrb[104].mxu1 %v7500_v13 }
  0xf8   : > { %4087 = vmatprep.mubr.bf16.mxu0 %v7505_v14  ;;  %4184 = vmatprep.mubr.bf16.mxu1 %v7507_v15 }
  0xfa   : > { %v6110_v18 = vpop.f32.mrb[0].mxu1  ;;  %v6038_v19 = vpop.f32.mrb[0].mxu0 }
  0xfb   : > { %v6111_v20 = vpop.f32.mrb[1].mxu1  ;;  %v6039_v21 = vpop.f32.mrb[1].mxu0 }
  0xfc   : > { %v8396_v22 = vadd.f32 %v6111_v20, %v6110_v18  ;;  %v6113_v23 = vpop.f32.mrb[2].mxu1  ;;  %v8398_v24 = vadd.f32 %v6039_v21, %v6038_v19  ;;  %v6041_v25 = vpop.f32.mrb[2].mxu0  ;;  %v7537_v18 = vld [vmem:[%s8015_s10 + $0x754] ss:$84 sps:$4 sm:$0xff]   ;;  %v7539_v19 = vld [vmem:[%s8015_s10 + $0x21c] ss:$84 sps:$4 sm:$0xff]  }
  0xfd   : > { %v6114_v28 = vpop.f32.mrb[3].mxu1  ;;  %v6042_v29 = vpop.f32.mrb[3].mxu0 }
  0xfe   : > { %v8402_v30 = vadd.f32 %v6114_v28, %v6113_v23  ;;  %v8404_v31 = vadd.f32 %v6042_v29, %v6041_v25  ;;  %v7584_v23 = vld [vmem:[%s9842_s1 + $0x320] sm:$0xff]   ;;  %v7599_v25 = vld [vmem:[%s9842_s1 + $0x368] sm:$0xff]   ;;  %v7615_v29 = vld [vmem:[%s9842_s1 + $0x370] sm:$0xff]  }
  0xff   : > { %4088 = vmatmul.mubr.bf16.gmra.mrb[108].mxu0 %v7509_v16  ;;  %4185 = vmatmul.mubr.bf16.gmra.mrb[108].mxu1 %v7510_v17  ;;  %v7600_v28 = vld [vmem:[%s9842_s1 + $0x328] sm:$0xff]  }
 0x100   : > { %4192 = vmatprep.mubr.bf16.mxu1 %v7511_v26  ;;  %4289 = vmatprep.mubr.bf16.mxu0 %v7515_v27 }
 0x102   : > { %v6116_v34 = vpop.f32.mrb[4].mxu1  ;;  %v6044_v35 = vpop.f32.mrb[4].mxu0 }
 0x103   : > { %v6117_v36 = vpop.f32.mrb[5].mxu1  ;;  %v6045_v37 = vpop.f32.mrb[5].mxu0 }
 0x104   : > { %v8408_v38 = vadd.f32 %v6117_v36, %v6116_v34  ;;  %v6119_v39 = vpop.f32.mrb[6].mxu1  ;;  %v8410_v40 = vadd.f32 %v6045_v37, %v6044_v35  ;;  %v6047_v41 = vpop.f32.mrb[6].mxu0  ;;  %v7542_v34 = vld [vmem:[%s8015_s10 + $0x218] ss:$84 sps:$4 sm:$0xff]  }
 0x105   : > { %v6120_v44 = vpop.f32.mrb[7].mxu1  ;;  %v6048_v45 = vpop.f32.mrb[7].mxu0 }
 0x106   : > { %v8420_v48 = vadd.f32 %v6120_v44, %v6119_v39  ;;  %v8422_v49 = vadd.f32 %v6048_v45, %v6047_v41 }
 0x107   : > { %4193 = vmatmul.mubr.bf16.gmra.mrb[112].mxu1 %v7516_v33  ;;  %4290 = vmatmul.mubr.bf16.vlgmr.msra.gmra.mrb[112].mxu0 %v7513_v32  ;;  %v8481_v32 = vld [vmem:[%s9843_s2] ss:$0 sm:$0xff]  ;;  %v7541_v33 = vld [vmem:[%s8015_s10 + $0x750] ss:$84 sps:$4 sm:$0xff]  }
 0x108   : > { %6695 = vmatpush3.bf16.msra.mxu0 %v7520_v42  ;;  %4200 = vmatprep.mubr.bf16.mxu1 %v7521_v43  ;;  %v3648_v41 = vadd.f32 %v8398_v24, %v8481_v32 }
 0x109   : > { %4297 = vmatprep.mubr.bf16.mxu0 %v7523_v46  ;;  %6696 = vmatprep.subr.bf16.mxu0 %v7535_v47  ;;  %v7543_v46 = vld [vmem:[%s8015_s10 + $0x7fc] ss:$84 sps:$4 sm:$0xff]   ;;  %v7545_v47 = vld [vmem:[%s8015_s10 + $0x2c4] ss:$84 sps:$4 sm:$0xff]  }
 0x10a   : > { %v6122_v54 = vpop.f32.mrb[8].mxu1  ;;  %v6050_v55 = vpop.f32.mrb[8].mxu0 }
 0x10b   : > { %v6123_v56 = vpop.f32.mrb[9].mxu1  ;;  %v6051_v57 = vpop.f32.mrb[9].mxu0 }
 0x10c   : > { %v8432_v58 = vadd.f32 %v6123_v56, %v6122_v54  ;;  %v6125_v59 = vpop.f32.mrb[10].mxu1  ;;  %v8434_v60 = vadd.f32 %v6051_v57, %v6050_v55  ;;  %v6053_v61 = vpop.f32.mrb[10].mxu0  ;;  %6697 = vmatpush3.bf16.msra.mxu0 %v7536_v50  ;;  %v7631_v56 = vld [vmem:[%s9842_s1 + $0x378] sm:$0xff]  }
 0x10d   : > { %v6126_v0 = vpop.f32.mrb[11].mxu1  ;;  %v6054_v1 = vpop.f32.mrb[11].mxu0  ;;  %6698 = vmatprep.subr.bf16.mxu0 %v7551_v51  ;;  %v7632_v57 = vld [vmem:[%s9842_s1 + $0x338] sm:$0xff]  }
 0x10e   : > { %v8441_v3 = vadd.f32 %v6126_v0, %v6125_v59  ;;  %v8443_v4 = vadd.f32 %v6054_v1, %v6053_v61  ;;  %v7547_v61 = vld [vmem:[%s8015_s10 + $0x7f8] ss:$84 sps:$4 sm:$0xff]  }
 0x10f   : > { %4201 = vmatmul.mubr.bf16.gmra.mrb[116].mxu1 %v7525_v52  ;;  %4298 = vmatmul.mubr.bf16.gmra.mrb[116].mxu0 %v7526_v53  ;;  %v7616_v52 = vld [vmem:[%s9842_s1 + $0x330] sm:$0xff]   ;;  %v3651_v53 = vadd.f32 %v8404_v31, %v8481_v32  ;;  %v7647_v31 = vld [vmem:[%s9842_s1 + $0x440] sm:$0xff]  }
 0x110   : > { %4208 = vmatprep.mubr.bf16.mxu1 %v7527_v62  ;;  %4305 = vmatprep.mubr.bf16.mxu0 %v7529_v63  ;;  %v7548_v62 = vld [vmem:[%s8015_s10 + $0x2c0] ss:$84 sps:$4 sm:$0xff]  }
 0x111   : > { %6699 = vmatpush3.bf16.msra.mxu0 %v7552_v2 }
 0x112   : > { %v6128_v10 = vpop.f32.mrb[12].mxu1  ;;  %v6056_v11 = vpop.f32.mrb[12].mxu0  ;;  %6700 = vmatprep.subr.bf16.mxu0 %v7567_v5  ;;  %v3656_v5 = vadd.f32 %v8410_v40, %v8481_v32 }
 0x113   : > { %v6129_v12 = vpop.f32.mrb[13].mxu1  ;;  %v6057_v13 = vpop.f32.mrb[13].mxu0 }
 0x114   : > { %v8456_v14 = vadd.f32 %v6129_v12, %v6128_v10  ;;  %v6131_v15 = vpop.f32.mrb[14].mxu1  ;;  %v8458_v16 = vadd.f32 %v6057_v13, %v6056_v11  ;;  %v6059_v17 = vpop.f32.mrb[14].mxu0  ;;  %v7553_v10 = vld [vmem:[%s8015_s10 + $0x8a4] ss:$84 sps:$4 sm:$0xff]   ;;  %v7555_v11 = vld [vmem:[%s8015_s10 + $0x36c] ss:$84 sps:$4 sm:$0xff]  }
 0x115   : > { %v6132_v20 = vpop.f32.mrb[15].mxu1  ;;  %v6060_v21 = vpop.f32.mrb[15].mxu0  ;;  %6701 = vmatpush3.bf16.msra.mxu0 %v7568_v6 }
 0x116   : > { %v8468_v26 = vadd.f32 %v6132_v20, %v6131_v15  ;;  %v8470_v27 = vadd.f32 %v6060_v21, %v6059_v17  ;;  %6702 = vmatprep.subr.bf16.mxu0 %v7583_v7  ;;  %v3659_v15 = vadd.f32 %v8422_v49, %v8481_v32  ;;  %v7557_v20 = vld [vmem:[%s8015_s10 + $0x8a0] ss:$84 sps:$4 sm:$0xff]   ;;  %v7558_v21 = vld [vmem:[%s8015_s10 + $0x368] ss:$84 sps:$4 sm:$0xff]  }
 0x117   : > { %4209 = vmatmul.mubr.bf16.gmra.mrb[120].mxu1 %v7531_v8  ;;  %4306 = vmatmul.mubr.bf16.gmra.mrb[120].mxu0 %v7532_v9 }
 0x118   : > { %4216 = vmatprep.mubr.bf16.mxu1 %v7537_v18  ;;  %4313 = vmatprep.mubr.bf16.mxu0 %v7539_v19 }
 0x119   : > { %6703 = vmatpush3.bf16.msra.mxu0 %v7584_v23 }
 0x11a   : > { %v6150_v35 = vpop.f32.mrb[16].mxu1  ;;  %v6062_v36 = vpop.f32.mrb[16].mxu0  ;;  %6704 = vmatprep.subr.bf16.mxu0 %v7599_v25 }
 0x11b   : > { %v6151_v37 = vpop.f32.mrb[17].mxu1  ;;  %v6063_v39 = vpop.f32.mrb[17].mxu0 }
 0x11c   : > { %v6152_v42 = vadd.f32 %v6151_v37, %v6150_v35  ;;  %v6153_v43 = vpop.f32.mrb[18].mxu1  ;;  %v8487_v44 = vadd.f32 %v6063_v39, %v6062_v36  ;;  %v6065_v45 = vpop.f32.mrb[18].mxu0  ;;  %v7559_v37 = vld [vmem:[%s8015_s10 + $0x94c] ss:$84 sps:$4 sm:$0xff]   ;;  %v7561_v39 = vld [vmem:[%s8015_s10 + $0x414] ss:$84 sps:$4 sm:$0xff]  }
 0x11d   : > { %v6154_v50 = vpop.f32.mrb[19].mxu1  ;;  %v6066_v51 = vpop.f32.mrb[19].mxu0  ;;  %6705 = vmatpush3.bf16.msra.mxu0 %v7600_v28 }
 0x11e   : > { %v8496_v24 = vadd.f32 %v6152_v42, %v3648_v41  ;;  %v6155_v54 = vadd.f32 %v6154_v50, %v6153_v43  ;;  %v8498_v55 = vadd.f32 %v6066_v51, %v6065_v45  ;;  %6706 = vmatprep.subr.bf16.mxu0 %v7615_v29  ;;  %v3664_v29 = vadd.f32 %v8434_v60, %v8481_v32  ;;  %v7563_v50 = vld [vmem:[%s8015_s10 + $0x948] ss:$84 sps:$4 sm:$0xff]   ;;  %v7564_v51 = vld [vmem:[%s8015_s10 + $0x410] ss:$84 sps:$4 sm:$0xff]  }
 0x11f   : > { %4217 = vmatmul.mubr.bf16.gmra.mrb[124].mxu1 %v7541_v33  ;;  %4314 = vmatmul.mubr.bf16.gmra.mrb[124].mxu0 %v7542_v34  ;;  %v3667_v43 = vadd.f32 %v8443_v4, %v8481_v32  ;;  %v3672_v4 = vadd.f32 %v8458_v16, %v8481_v32 }
 0x120   : > { %v8506_v59 = vadd.f32 %v6155_v54, %v3651_v53  ;;  %4224 = vmatprep.mubr.bf16.mxu1 %v7543_v46  ;;  %4321 = vmatprep.mubr.bf16.mxu0 %v7545_v47 }
 0x121   : > { %6707 = vmatpush3.bf16.msra.mxu0 %v7616_v52 }
 0x122   : > { %v6156_v63 = vpop.f32.mrb[20].mxu1  ;;  %v6068_v0 = vpop.f32.mrb[20].mxu0  ;;  %6708 = vmatprep.subr.bf16.mxu0 %v7631_v56 }
 0x123   : > { %v6157_v1 = vpop.f32.mrb[21].mxu1  ;;  %v6069_v2 = vpop.f32.mrb[21].mxu0 }
 0x124   : > { %v6158_v6 = vadd.f32 %v6157_v1, %v6156_v63  ;;  %v6159_v7 = vpop.f32.mrb[22].mxu1  ;;  %v8515_v8 = vadd.f32 %v6069_v2, %v6068_v0  ;;  %v6071_v9 = vpop.f32.mrb[22].mxu0  ;;  %v7569_v63 = vld [vmem:[%s8015_s10 + $0x9f4] ss:$84 sps:$4 sm:$0xff]   ;;  %v7571_v0 = vld [vmem:[%s8015_s10 + $0x4bc] ss:$84 sps:$4 sm:$0xff]  }
 0x125   : > { %v6160_v12 = vpop.f32.mrb[23].mxu1  ;;  %v6072_v13 = vpop.f32.mrb[23].mxu0  ;;  %6709 = vmatpush3.bf16.msra.mxu0 %v7632_v57 }
 0x126   : > { %v8521_v17 = vadd.f32 %v6158_v6, %v3656_v5  ;;  %v6161_v18 = vadd.f32 %v6160_v12, %v6159_v7  ;;  %v8523_v19 = vadd.f32 %v6072_v13, %v6071_v9  ;;  %6918 = vmatprep.subr.bf16.mxu0 %v7647_v31  ;;  %v3675_v5 = vadd.f32 %v8470_v27, %v8481_v32 }
 0x127   : > { %4225 = vmatmul.mubr.bf16.gmra.mrb[128].mxu1 %v7547_v61  ;;  %4322 = vmatmul.mubr.bf16.gmra.mrb[128].mxu0 %v7548_v62  ;;  %v3680_v27 = vadd.f32 %v8487_v44, %v8481_v32 }
 0x128   : > { %v8525_v40 = vadd.f32 %v6161_v18, %v3659_v15  ;;  %4232 = vmatprep.mubr.bf16.mxu1 %v7553_v10  ;;  %4329 = vmatprep.mubr.bf16.mxu0 %v7555_v11  ;;  %v7573_v10 = vld [vmem:[%s8015_s10 + $0x9f0] ss:$84 sps:$4 sm:$0xff]   ;;  %v7574_v11 = vld [vmem:[%s8015_s10 + $0x4b8] ss:$84 sps:$4 sm:$0xff]  }
 0x12a   : > { %v6162_v23 = vpop.f32.mrb[24].mxu1  ;;  %v6074_v25 = vpop.f32.mrb[24].mxu0 }
 0x12b   : > { %v6163_v28 = vpop.f32.mrb[25].mxu1  ;;  %v6075_v49 = vpop.f32.mrb[25].mxu0 }
 0x12c   : > { %v6164_v33 = vadd.f32 %v6163_v28, %v6162_v23  ;;  %v6165_v34 = vpop.f32.mrb[26].mxu1  ;;  %v8531_v35 = vadd.f32 %v6075_v49, %v6074_v25  ;;  %v6077_v36 = vpop.f32.mrb[26].mxu0  ;;  %v7575_v28 = vld [vmem:[%s8015_s10 + $0x564] ss:$84 sps:$4 sm:$0xff]   ;;  %v7579_v49 = vld [vmem:[%s8015_s10 + $0x2c] ss:$84 sps:$4 sm:$0xff]  }
 0x12d   : > { %v6166_v41 = vpop.f32.mrb[27].mxu1  ;;  %v6078_v42 = vpop.f32.mrb[27].mxu0 }
 0x12e   : > { %v8537_v45 = vadd.f32 %v6164_v33, %v3664_v29  ;;  %v6167_v46 = vadd.f32 %v6166_v41, %v6165_v34  ;;  %v8539_v47 = vadd.f32 %v6078_v42, %v6077_v36  ;;  %v3683_v34 = vadd.f32 %v8498_v55, %v8481_v32  ;;  %v7577_v41 = vld [vmem:[%s8015_s10 + $0x28] ss:$84 sps:$4 sm:$0xff]   ;;  %v7580_v42 = vld [vmem:[%s8015_s10 + $0x560] ss:$84 sps:$4 sm:$0xff]  }
 0x12f   : > { %4233 = vmatmul.mubr.bf16.gmra.mrb[132].mxu1 %v7557_v20  ;;  %4330 = vmatmul.mubr.bf16.gmra.mrb[132].mxu0 %v7558_v21  ;;  %v3688_v55 = vadd.f32 %v8515_v8, %v8481_v32  ;;  %v3691_v8 = vadd.f32 %v8523_v19, %v8481_v32  ;;  %v7613_v19 = vld [vmem:[%s9842_s1 + $0x3d0] sm:$0xff]  }
 0x130   : > { %v8541_v60 = vadd.f32 %v6167_v46, %v3667_v43  ;;  %4240 = vmatprep.mubr.bf16.mxu1 %v7559_v37  ;;  %4337 = vmatprep.mubr.bf16.mxu0 %v7561_v39 }
 0x132   : > { %v6168_v52 = vpop.f32.mrb[28].mxu1  ;;  %v6080_v53 = vpop.f32.mrb[28].mxu0 }
 0x133   : > { %v6169_v54 = vpop.f32.mrb[29].mxu1  ;;  %v6081_v56 = vpop.f32.mrb[29].mxu0 }
 0x134   : > { %v6170_v57 = vadd.f32 %v6169_v54, %v6168_v52  ;;  %v6171_v31 = vpop.f32.mrb[30].mxu1  ;;  %v8547_v61 = vadd.f32 %v6081_v56, %v6080_v53  ;;  %v6083_v62 = vpop.f32.mrb[30].mxu0 }
 0x135   : > { %v6172_v1 = vpop.f32.mrb[31].mxu1  ;;  %v6084_v2 = vpop.f32.mrb[31].mxu0 }
 0x136   : > { %v8553_v6 = vadd.f32 %v6170_v57, %v3672_v4  ;;  %v6173_v7 = vadd.f32 %v6172_v1, %v6171_v31  ;;  %v8555_v9 = vadd.f32 %v6084_v2, %v6083_v62  ;;  %v7582_v4 = vld [vmem:[%s9842_s1 + $0x380] sm:$0xff]  }
 0x137   : > { %4241 = vmatmul.mubr.bf16.gmra.mrb[136].mxu1 %v7563_v50  ;;  %4338 = vmatmul.mubr.bf16.gmra.mrb[136].mxu0 %v7564_v51  ;;  %v7585_v57 = vld [vmem:[%s8015_s10 + $0x60c] ss:$84 sps:$4 sm:$0xff]  }
 0x138   : > { %v8557_v16 = vadd.f32 %v6173_v7, %v3675_v5  ;;  %4248 = vmatprep.mubr.bf16.mxu1 %v7569_v63  ;;  %4345 = vmatprep.mubr.bf16.mxu0 %v7571_v0  ;;  %v7587_v63 = vld [vmem:[%s8015_s10 + $0xd4] ss:$84 sps:$4 sm:$0xff]  }
 0x139   : > { %v7597_v0 = vld [vmem:[%s9842_s1 + $0x3c8] sm:$0xff]  }
 0x13a   : > { %v6174_v12 = vpop.f32.mrb[32].mxu1  ;;  %v6086_v13 = vpop.f32.mrb[32].mxu0 }
 0x13b   : > { %v6175_v15 = vpop.f32.mrb[33].mxu1  ;;  %v6087_v18 = vpop.f32.mrb[33].mxu0 }
 0x13c   : > { %v6176_v20 = vadd.f32 %v6175_v15, %v6174_v12  ;;  %v6177_v21 = vpop.f32.mrb[34].mxu1  ;;  %v8563_v23 = vadd.f32 %v6087_v18, %v6086_v13  ;;  %v6089_v25 = vpop.f32.mrb[34].mxu0  ;;  %v7590_v12 = vld [vmem:[%s8015_s10 + $0xd0] ss:$84 sps:$4 sm:$0xff]  }
 0x13d   : > { %v6178_v29 = vpop.f32.mrb[35].mxu1  ;;  %v6090_v33 = vpop.f32.mrb[35].mxu0 }
 0x13e   : > { %v8569_v36 = vadd.f32 %v6176_v20, %v3680_v27  ;;  %v6179_v37 = vadd.f32 %v6178_v29, %v6177_v21  ;;  %v8571_v39 = vadd.f32 %v6090_v33, %v6089_v25  ;;  %v3696_v20 = vadd.f32 %v8531_v35, %v8481_v32  ;;  %v7591_v29 = vld [vmem:[%s8015_s10 + $0x6b4] ss:$84 sps:$4 sm:$0xff]   ;;  %v7593_v33 = vld [vmem:[%s8015_s10 + $0x17c] ss:$84 sps:$4 sm:$0xff]  }
 0x13f   : > { %4249 = vmatmul.mubr.bf16.gmra.mrb[140].mxu1 %v7573_v10  ;;  %4346 = vmatmul.mubr.bf16.gmra.mrb[140].mxu0 %v7574_v11  ;;  %v7598_v10 = vld [vmem:[%s9842_s1 + $0x388] sm:$0xff]   ;;  %v3699_v35 = vadd.f32 %v8539_v47, %v8481_v32  ;;  %v7645_v47 = vld [vmem:[%s9842_s1 + $0x3e0] sm:$0xff]  }
 0x140   : > { %v8573_v44 = vadd.f32 %v6179_v37, %v3683_v34  ;;  %4353 = vmatprep.mubr.bf16.mxu0 %v7575_v28  ;;  %4450 = vmatprep.mubr.bf16.mxu1 %v7579_v49  ;;  %v7589_v11 = vld [vmem:[%s8015_s10 + $0x608] ss:$84 sps:$4 sm:$0xff]  }
 0x142   : > { %v6180_v43 = vpop.f32.mrb[36].mxu1  ;;  %v6092_v46 = vpop.f32.mrb[36].mxu0 }
 0x143   : > { %v6181_v50 = vpop.f32.mrb[37].mxu1  ;;  %v6093_v51 = vpop.f32.mrb[37].mxu0 }
 0x144   : > { %v6182_v52 = vadd.f32 %v6181_v50, %v6180_v43  ;;  %v6183_v53 = vpop.f32.mrb[38].mxu1  ;;  %v8579_v54 = vadd.f32 %v6093_v51, %v6092_v46  ;;  %v6095_v56 = vpop.f32.mrb[38].mxu0  ;;  %v7629_v50 = vld [vmem:[%s9842_s1 + $0x3d8] sm:$0xff]  }
 0x145   : > { %v6184_v31 = vpop.f32.mrb[39].mxu1  ;;  %v6096_v62 = vpop.f32.mrb[39].mxu0  ;;  %v7630_v51 = vld [vmem:[%s9842_s1 + $0x398] sm:$0xff]  }
 0x146   : > { %v8591_v1 = vadd.f32 %v6182_v52, %v3688_v55  ;;  %v6185_v2 = vadd.f32 %v6184_v31, %v6183_v53  ;;  %v8593_v5 = vadd.f32 %v6096_v62, %v6095_v56  ;;  %v7595_v52 = vld [vmem:[%s8015_s10 + $0x6b0] ss:$84 sps:$4 sm:$0xff]   ;;  %v7596_v53 = vld [vmem:[%s8015_s10 + $0x178] ss:$84 sps:$4 sm:$0xff]   ;;  %v3704_v62 = vadd.f32 %v8547_v61, %v8481_v32 }
 0x147   : > { %4354 = vmatmul.mubr.bf16.gmra.mrb[144].mxu0 %v7580_v42  ;;  %4451 = vmatmul.mubr.bf16.vlgmr.msra.gmra.mrb[144].mxu1 %v7577_v41  ;;  %v7614_v41 = vld [vmem:[%s9842_s1 + $0x390] sm:$0xff]   ;;  %v7661_v61 = vld [vmem:[%s9842_s1 + $0x3e8] sm:$0xff]  }
 0x148   : > { %v8595_v7 = vadd.f32 %v6185_v2, %v3691_v8  ;;  %6807 = vmatpush3.bf16.msra.mxu1 %v7582_v4  ;;  %4361 = vmatprep.mubr.bf16.mxu0 %v7585_v57 }
 0x149   : > { %4458 = vmatprep.mubr.bf16.mxu1 %v7587_v63  ;;  %6808 = vmatprep.subr.bf16.mxu1 %v7597_v0 }
 0x14a   : > { %v6186_v13 = vpop.f32.mrb[40].mxu1  ;;  %v6098_v15 = vpop.f32.mrb[40].mxu0 }
 0x14b   : > { %v6187_v18 = vpop.f32.mrb[41].mxu1  ;;  %v6099_v27 = vpop.f32.mrb[41].mxu0 }
 0x14c   : > { %v6188_v21 = vadd.f32 %v6187_v18, %v6186_v13  ;;  %v6189_v25 = vpop.f32.mrb[42].mxu1  ;;  %v8607_v28 = vadd.f32 %v6099_v27, %v6098_v15  ;;  %v6101_v49 = vpop.f32.mrb[42].mxu0  ;;  %6809 = vmatpush3.bf16.msra.mxu1 %v7598_v10  ;;  %v7601_v10 = vld [vmem:[%s8015_s10 + $0x75c] ss:$84 sps:$4 sm:$0xff]   ;;  %v7646_v13 = vld [vmem:[%s9842_s1 + $0x3a0] sm:$0xff]   ;;  %v3707_v15 = vadd.f32 %v8555_v9, %v8481_v32 }
 0x14d   : > { %v6190_v34 = vpop.f32.mrb[43].mxu1  ;;  %v6102_v37 = vpop.f32.mrb[43].mxu0  ;;  %6810 = vmatprep.subr.bf16.mxu1 %v7613_v19  ;;  %v7603_v19 = vld [vmem:[%s8015_s10 + $0x224] ss:$84 sps:$4 sm:$0xff]   ;;  %v7677_v9 = vld [vmem:[%s9842_s1 + $0x3f0] sm:$0xff]  }
 0x14e   : > { %v8616_v42 = vadd.f32 %v6188_v21, %v3696_v20  ;;  %v6191_v43 = vadd.f32 %v6190_v34, %v6189_v25  ;;  %v8618_v46 = vadd.f32 %v6102_v37, %v6101_v49  ;;  %v7662_v25 = vld [vmem:[%s9842_s1 + $0x3a8] sm:$0xff]  }
 0x14f   : > { %4362 = vmatmul.mubr.bf16.gmra.mrb[148].mxu0 %v7589_v11  ;;  %4459 = vmatmul.mubr.bf16.gmra.mrb[148].mxu1 %v7590_v12  ;;  %v7605_v49 = vld [vmem:[%s8015_s10 + $0x758] ss:$84 sps:$4 sm:$0xff]  }
 0x150   : > { %v8626_v55 = vadd.f32 %v6191_v43, %v3699_v35  ;;  %4369 = vmatprep.mubr.bf16.mxu0 %v7591_v29  ;;  %4466 = vmatprep.mubr.bf16.mxu1 %v7593_v33  ;;  %v7606_v29 = vld [vmem:[%s8015_s10 + $0x220] ss:$84 sps:$4 sm:$0xff]   ;;  %v3712_v35 = vadd.f32 %v8563_v23, %v8481_v32 }
 0x151   : > { %6811 = vmatpush3.bf16.msra.mxu1 %v7614_v41 }
 0x152   : > { %v6192_v56 = vpop.f32.mrb[44].mxu1  ;;  %v6104_v4 = vpop.f32.mrb[44].mxu0  ;;  %6812 = vmatprep.subr.bf16.mxu1 %v7629_v50 }
 0x153   : > { %v6193_v57 = vpop.f32.mrb[45].mxu1  ;;  %v6105_v31 = vpop.f32.mrb[45].mxu0 }
 0x154   : > { %v6194_v63 = vadd.f32 %v6193_v57, %v6192_v56  ;;  %v6195_v0 = vpop.f32.mrb[46].mxu1  ;;  %v8635_v8 = vadd.f32 %v6105_v31, %v6104_v4  ;;  %v6107_v2 = vpop.f32.mrb[46].mxu0  ;;  %v3715_v56 = vadd.f32 %v8571_v39, %v8481_v32  ;;  %v7678_v31 = vld [vmem:[%s9842_s1 + $0x3b0] sm:$0xff]   ;;  %v7693_v39 = vld [vmem:[%s9842_s1 + $0x3f8] sm:$0xff]  }
 0x155   : > { %v6196_v11 = vpop.f32.mrb[47].mxu1  ;;  %v6108_v12 = vpop.f32.mrb[47].mxu0  ;;  %6813 = vmatpush3.bf16.msra.mxu1 %v7630_v51 }
 0x156   : > { %v8647_v18 = vadd.f32 %v6194_v63, %v3704_v62  ;;  %v6197_v27 = vadd.f32 %v6196_v11, %v6195_v0  ;;  %v8649_v20 = vadd.f32 %v6108_v12, %v6107_v2  ;;  %6814 = vmatprep.subr.bf16.mxu1 %v7645_v47  ;;  %v7694_v2 = vld [vmem:[%s9842_s1 + $0x3b8] sm:$0xff]   ;;  %v7611_v11 = vld [vmem:[%s8015_s10 + $0x800] ss:$84 sps:$4 sm:$0xff]  }
 0x157   : > { %4370 = vmatmul.mubr.bf16.gmra.mrb[152].mxu0 %v7595_v52  ;;  %4467 = vmatmul.mubr.bf16.gmra.mrb[152].mxu1 %v7596_v53  ;;  %v7607_v52 = vld [vmem:[%s8015_s10 + $0x804] ss:$84 sps:$4 sm:$0xff]   ;;  %v7609_v53 = vld [vmem:[%s8015_s10 + $0x2cc] ss:$84 sps:$4 sm:$0xff]   ;;  %v7612_v12 = vld [vmem:[%s8015_s10 + $0x2c8] ss:$84 sps:$4 sm:$0xff]  }
 0x158   : > { %v8651_v21 = vadd.f32 %v6197_v27, %v3707_v15  ;;  %4377 = vmatprep.mubr.bf16.mxu0 %v7601_v10  ;;  %4474 = vmatprep.mubr.bf16.mxu1 %v7603_v19 }
 0x159   : > { %6815 = vmatpush3.bf16.msra.mxu1 %v7646_v13 }
 0x15a   : > { %v6198_v33 = vpop.f32.mrb[48].mxu1  ;;  %v6262_v34 = vpop.f32.mrb[48].mxu0  ;;  %6816 = vmatprep.subr.bf16.mxu1 %v7661_v61 }
 0x15b   : > { %v6199_v37 = vpop.f32.mrb[49].mxu1  ;;  %v6263_v41 = vpop.f32.mrb[49].mxu0 }
 0x15c   : > { %v6200_v43 = vadd.f32 %v6199_v37, %v6198_v33  ;;  %v6264_v50 = vadd.f32 %v6263_v41, %v6262_v34  ;;  %v6201_v51 = vpop.f32.mrb[50].mxu1  ;;  %v6265_v47 = vpop.f32.mrb[50].mxu0  ;;  %v7617_v33 = vld [vmem:[%s8015_s10 + $0x8ac] ss:$84 sps:$4 sm:$0xff]   ;;  %v7619_v34 = vld [vmem:[%s8015_s10 + $0x374] ss:$84 sps:$4 sm:$0xff]   ;;  %v3723_v37 = vadd.f32 %v8593_v5, %v8481_v32 }
 0x15d   : > { %v6202_v4 = vpop.f32.mrb[51].mxu1  ;;  %v6266_v57 = vpop.f32.mrb[51].mxu0  ;;  %6817 = vmatpush3.bf16.msra.mxu1 %v7662_v25  ;;  %v3720_v25 = vadd.f32 %v8579_v54, %v8481_v32 }
 0x15e   : > { %v6203_v62 = vadd.f32 %v6202_v4, %v6201_v51  ;;  %v6267_v23 = vadd.f32 %v6266_v57, %v6265_v47  ;;  %v8670_v63 = vadd.f32 %v6200_v43, %v3712_v35  ;;  %v8673_v0 = vadd.f32 %v6264_v50, %v8496_v24  ;;  %6818 = vmatprep.subr.bf16.mxu1 %v7677_v9  ;;  %v7709_v24 = vld [vmem:[%s9842_s1 + $0x4c0] sm:$0xff]  }
 0x15f   : > { %4378 = vmatmul.mubr.bf16.gmra.mrb[156].mxu0 %v7605_v49  ;;  %4475 = vmatmul.mubr.bf16.gmra.mrb[156].mxu1 %v7606_v29 }
 0x160   : > { %4385 = vmatprep.mubr.bf16.mxu0 %v7607_v52  ;;  %4482 = vmatprep.mubr.bf16.mxu1 %v7609_v53  ;;  %v8681_v10 = vadd.f32 %v6203_v62, %v3715_v56  ;;  %v8684_v19 = vadd.f32 %v6267_v23, %v8506_v59  ;;  %v7621_v52 = vld [vmem:[%s8015_s10 + $0x8a8] ss:$84 sps:$4 sm:$0xff]   ;;  %v7622_v53 = vld [vmem:[%s8015_s10 + $0x370] ss:$84 sps:$4 sm:$0xff]  }
 0x161   : > { %6819 = vmatpush3.bf16.msra.mxu1 %v7678_v31 }
 0x162   : > { %v6204_v13 = vpop.f32.mrb[52].mxu1  ;;  %v6268_v61 = vpop.f32.mrb[52].mxu0  ;;  %6820 = vmatprep.subr.bf16.mxu1 %v7693_v39 }
 0x163   : > { %v6205_v15 = vpop.f32.mrb[53].mxu1  ;;  %v6269_v27 = vpop.f32.mrb[53].mxu0 }
 0x164   : > { %v6206_v9 = vadd.f32 %v6205_v15, %v6204_v13  ;;  %v6270_v49 = vadd.f32 %v6269_v27, %v6268_v61  ;;  %v6207_v59 = vpop.f32.mrb[54].mxu1  ;;  %v6271_v29 = vpop.f32.mrb[54].mxu0 }
 0x165   : > { %v6208_v41 = vpop.f32.mrb[55].mxu1  ;;  %v6272_v35 = vpop.f32.mrb[55].mxu0  ;;  %6821 = vmatpush3.bf16.msra.mxu1 %v7694_v2 }
 0x166   : > { %v6209_v43 = vadd.f32 %v6208_v41, %v6207_v59  ;;  %v6273_v50 = vadd.f32 %v6272_v35, %v6271_v29  ;;  %v8697_v51 = vadd.f32 %v6206_v9, %v3720_v25  ;;  %v8700_v54 = vadd.f32 %v6270_v49, %v8521_v17  ;;  %7030 = vmatprep.subr.bf16.mxu1 %v7709_v24  ;;  %v7623_v24 = vld [vmem:[%s8015_s10 + $0x954] ss:$84 sps:$4 sm:$0xff]   ;;  %v7628_v49 = vld [vmem:[%s8015_s10 + $0x418] ss:$84 sps:$4 sm:$0xff]  }
 0x167   : > { %4386 = vmatmul.mubr.bf16.gmra.mrb[160].mxu0 %v7611_v11  ;;  %4483 = vmatmul.mubr.bf16.gmra.mrb[160].mxu1 %v7612_v12  ;;  %v3728_v17 = vadd.f32 %v8607_v28, %v8481_v32  ;;  %v7625_v11 = vld [vmem:[%s8015_s10 + $0x41c] ss:$84 sps:$4 sm:$0xff]  }
 0x168   : > { %4393 = vmatprep.mubr.bf16.mxu0 %v7617_v33  ;;  %4490 = vmatprep.mubr.bf16.mxu1 %v7619_v34  ;;  %v8702_v47 = vadd.f32 %v6209_v43, %v3723_v37  ;;  %v8705_v5 = vadd.f32 %v6273_v50, %v8525_v40  ;;  %v3731_v40 = vadd.f32 %v8618_v46, %v8481_v32  ;;  %v7627_v46 = vld [vmem:[%s8015_s10 + $0x950] ss:$84 sps:$4 sm:$0xff]  }
 0x169   : > { %v7633_v50 = vld [vmem:[%s8015_s10 + $0x9fc] ss:$84 sps:$4 sm:$0xff]  }
 0x16a   : > { %v6210_v56 = vpop.f32.mrb[56].mxu1  ;;  %v6274_v4 = vpop.f32.mrb[56].mxu0 }
 0x16b   : > { %v6211_v57 = vpop.f32.mrb[57].mxu1  ;;  %v6275_v31 = vpop.f32.mrb[57].mxu0 }
 0x16c   : > { %v6212_v62 = vadd.f32 %v6211_v57, %v6210_v56  ;;  %v6276_v23 = vadd.f32 %v6275_v31, %v6274_v4  ;;  %v6213_v39 = vpop.f32.mrb[58].mxu1  ;;  %v6277_v2 = vpop.f32.mrb[58].mxu0 }
 0x16d   : > { %v6214_v12 = vpop.f32.mrb[59].mxu1  ;;  %v6278_v13 = vpop.f32.mrb[59].mxu0 }
 0x16e   : > { %v6215_v61 = vadd.f32 %v6214_v12, %v6213_v39  ;;  %v6279_v15 = vadd.f32 %v6278_v13, %v6277_v2  ;;  %v8715_v27 = vadd.f32 %v6212_v62, %v3728_v17  ;;  %v8718_v25 = vadd.f32 %v6276_v23, %v8537_v45  ;;  %v7637_v2 = vld [vmem:[%s8015_s10 + $0x9f8] ss:$84 sps:$4 sm:$0xff]  }
 0x16f   : > { %4394 = vmatmul.mubr.bf16.gmra.mrb[164].mxu0 %v7621_v52  ;;  %4491 = vmatmul.mubr.bf16.gmra.mrb[164].mxu1 %v7622_v53  ;;  %v3736_v45 = vadd.f32 %v8635_v8, %v8481_v32  ;;  %v7635_v52 = vld [vmem:[%s8015_s10 + $0x4c4] ss:$84 sps:$4 sm:$0xff]   ;;  %v3739_v53 = vadd.f32 %v8649_v20, %v8481_v32 }
 0x170   : > { %4401 = vmatprep.mubr.bf16.mxu0 %v7623_v24  ;;  %4498 = vmatprep.mubr.bf16.mxu1 %v7625_v11  ;;  %v8720_v28 = vadd.f32 %v6215_v61, %v3731_v40  ;;  %v8723_v9 = vadd.f32 %v6279_v15, %v8541_v60  ;;  %v7638_v24 = vld [vmem:[%s8015_s10 + $0x4c0] ss:$84 sps:$4 sm:$0xff]  }
 0x171   : > { %v7643_v15 = vld [vmem:[%s8015_s10 + $0x34] ss:$84 sps:$4 sm:$0xff]  }
 0x172   : > { %v6216_v59 = vpop.f32.mrb[60].mxu1  ;;  %v6280_v29 = vpop.f32.mrb[60].mxu0 }
 0x173   : > { %v6217_v33 = vpop.f32.mrb[61].mxu1  ;;  %v6281_v34 = vpop.f32.mrb[61].mxu0 }
 0x174   : > { %v6218_v37 = vadd.f32 %v6217_v33, %v6216_v59  ;;  %v6282_v41 = vadd.f32 %v6281_v34, %v6280_v29  ;;  %v6219_v35 = vpop.f32.mrb[62].mxu1  ;;  %v6283_v43 = vpop.f32.mrb[62].mxu0 }
 0x175   : > { %v6220_v60 = vpop.f32.mrb[63].mxu1  ;;  %v6284_v56 = vpop.f32.mrb[63].mxu0 }
 0x176   : > { %v6221_v4 = vadd.f32 %v6220_v60, %v6219_v35  ;;  %v6285_v57 = vadd.f32 %v6284_v56, %v6283_v43  ;;  %v8733_v31 = vadd.f32 %v6218_v37, %v3736_v45  ;;  %v8736_v17 = vadd.f32 %v6282_v41, %v8553_v6  ;;  %v8748_v6 = vld [vmem:[%s9843_s2] ss:$0 sm:$0xff] }
 0x177   : > { %4402 = vmatmul.mubr.bf16.gmra.mrb[168].mxu0 %v7627_v46  ;;  %4499 = vmatmul.mubr.bf16.gmra.mrb[168].mxu1 %v7628_v49  ;;  %v3744_v11 = vadd.f32 %v8748_v6, %v8396_v22  ;;  %v3747_v46 = vadd.f32 %v8748_v6, %v8402_v30 }
 0x178   : > { %4409 = vmatprep.mubr.bf16.mxu0 %v7633_v50  ;;  %4506 = vmatprep.mubr.bf16.mxu1 %v7635_v52  ;;  %v8738_v8 = vadd.f32 %v6221_v4, %v3739_v53  ;;  %v8741_v32 = vadd.f32 %v6285_v57, %v8557_v16  ;;  %v7639_v16 = vld [vmem:[%s8015_s10 + $0x56c] ss:$84 sps:$4 sm:$0xff]   ;;  %v7641_v50 = vld [vmem:[%s8015_s10 + $0x30] ss:$84 sps:$4 sm:$0xff]   ;;  %v7644_v52 = vld [vmem:[%s8015_s10 + $0x568] ss:$84 sps:$4 sm:$0xff]  }
 0x179   : > { %v7648_v57 = vld [vmem:[%s9842_s1 + $0x400] sm:$0xff]  }
 0x17a   : > { %v6222_v20 = vpop.f32.mrb[64].mxu1  ;;  %v6286_v62 = vpop.f32.mrb[64].mxu0 }
 0x17b   : > { %v6223_v23 = vpop.f32.mrb[65].mxu1  ;;  %v6287_v39 = vpop.f32.mrb[65].mxu0 }
 0x17c   : > { %v6224_v40 = vadd.f32 %v6223_v23, %v6222_v20  ;;  %v6288_v12 = vadd.f32 %v6287_v39, %v6286_v62  ;;  %v6225_v13 = vpop.f32.mrb[66].mxu1  ;;  %v6289_v61 = vpop.f32.mrb[66].mxu0  ;;  %v3755_v20 = vadd.f32 %v8748_v6, %v8420_v48  ;;  %v7651_v39 = vld [vmem:[%s8015_s10 + $0xdc] ss:$84 sps:$4 sm:$0xff]   ;;  %v7664_v48 = vld [vmem:[%s9842_s1 + $0x408] sm:$0xff]  }
 0x17d   : > { %v6226_v49 = vpop.f32.mrb[67].mxu1  ;;  %v6290_v59 = vpop.f32.mrb[67].mxu0 }
 0x17e   : > { %v6227_v29 = vadd.f32 %v6226_v49, %v6225_v13  ;;  %v6291_v33 = vadd.f32 %v6290_v59, %v6289_v61  ;;  %v8756_v34 = vadd.f32 %v6224_v40, %v3744_v11  ;;  %v8759_v45 = vadd.f32 %v6288_v12, %v8569_v36  ;;  %v7653_v49 = vld [vmem:[%s8015_s10 + $0x610] ss:$84 sps:$4 sm:$0xff]   ;;  %v7654_v59 = vld [vmem:[%s8015_s10 + $0xd8] ss:$84 sps:$4 sm:$0xff]  }
 0x17f   : > { %4410 = vmatmul.mubr.bf16.gmra.mrb[172].mxu0 %v7637_v2  ;;  %4507 = vmatmul.mubr.bf16.gmra.mrb[172].mxu1 %v7638_v24  ;;  %v3752_v36 = vadd.f32 %v8748_v6, %v8408_v38  ;;  %v7663_v2 = vld [vmem:[%s9842_s1 + $0x448] sm:$0xff]  }
 0x180   : > { %4514 = vmatprep.mubr.bf16.mxu1 %v7639_v16  ;;  %4611 = vmatprep.mubr.bf16.mxu0 %v7643_v15  ;;  %v8761_v22 = vadd.f32 %v6227_v29, %v3747_v46  ;;  %v8764_v30 = vadd.f32 %v6291_v33, %v8573_v44  ;;  %v7649_v44 = vld [vmem:[%s8015_s10 + $0x614] ss:$84 sps:$4 sm:$0xff]   ;;  %v3760_v29 = vadd.f32 %v8748_v6, %v8432_v58  ;;  %v7695_v58 = vld [vmem:[%s9842_s1 + $0x458] sm:$0xff]  }
 0x182   : > { %v6228_v37 = vpop.f32.mrb[68].mxu1  ;;  %v6292_v41 = vpop.f32.mrb[68].mxu0 }
 0x183   : > { %v6229_v35 = vpop.f32.mrb[69].mxu1  ;;  %v6293_v43 = vpop.f32.mrb[69].mxu0 }
 0x184   : > { %v6230_v53 = vadd.f32 %v6229_v35, %v6228_v37  ;;  %v6294_v60 = vadd.f32 %v6293_v43, %v6292_v41  ;;  %v6231_v56 = vpop.f32.mrb[70].mxu1  ;;  %v6295_v4 = vpop.f32.mrb[70].mxu0  ;;  %v7655_v35 = vld [vmem:[%s8015_s10 + $0x6bc] ss:$84 sps:$4 sm:$0xff]   ;;  %v7657_v43 = vld [vmem:[%s8015_s10 + $0x184] ss:$84 sps:$4 sm:$0xff]  }
 0x185   : > { %v6232_v62 = vpop.f32.mrb[71].mxu1  ;;  %v6296_v23 = vpop.f32.mrb[71].mxu0 }
 0x186   : > { %v6233_v38 = vadd.f32 %v6232_v62, %v6231_v56  ;;  %v6297_v24 = vadd.f32 %v6296_v23, %v6295_v4  ;;  %v8780_v11 = vadd.f32 %v6230_v53, %v3752_v36  ;;  %v8783_v40 = vadd.f32 %v6294_v60, %v8591_v1  ;;  %v7679_v1 = vld [vmem:[%s9842_s1 + $0x450] sm:$0xff]   ;;  %v7711_v23 = vld [vmem:[%s9842_s1 + $0x460] sm:$0xff]  }
 0x187   : > { %4515 = vmatmul.mubr.bf16.gmra.mrb[176].mxu1 %v7644_v52  ;;  %4612 = vmatmul.mubr.bf16.vlgmr.msra.gmra.mrb[176].mxu0 %v7641_v50  ;;  %v3763_v50 = vadd.f32 %v8748_v6, %v8441_v3  ;;  %v7680_v53 = vld [vmem:[%s9842_s1 + $0x410] sm:$0xff]  }
 0x188   : > { %6919 = vmatpush3.bf16.msra.mxu0 %v7648_v57  ;;  %4522 = vmatprep.mubr.bf16.mxu1 %v7649_v44  ;;  %v8788_v12 = vadd.f32 %v6233_v38, %v3755_v20  ;;  %v8791_v13 = vadd.f32 %v6297_v24, %v8595_v7  ;;  %v7696_v20 = vld [vmem:[%s9842_s1 + $0x418] sm:$0xff]   ;;  %v7660_v24 = vld [vmem:[%s8015_s10 + $0x180] ss:$84 sps:$4 sm:$0xff]  }
 0x189   : > { %4619 = vmatprep.mubr.bf16.mxu0 %v7651_v39  ;;  %6920 = vmatprep.subr.bf16.mxu0 %v7663_v2  ;;  %v7659_v38 = vld [vmem:[%s8015_s10 + $0x6b8] ss:$84 sps:$4 sm:$0xff]  }
 0x18a   : > { %v6234_v61 = vpop.f32.mrb[72].mxu1  ;;  %v6298_v16 = vpop.f32.mrb[72].mxu0 }
 0x18b   : > { %v6235_v15 = vpop.f32.mrb[73].mxu1  ;;  %v6299_v46 = vpop.f32.mrb[73].mxu0 }
 0x18c   : > { %v6236_v33 = vadd.f32 %v6235_v15, %v6234_v61  ;;  %v6300_v37 = vadd.f32 %v6299_v46, %v6298_v16  ;;  %v6237_v7 = vpop.f32.mrb[74].mxu1  ;;  %v6301_v41 = vpop.f32.mrb[74].mxu0  ;;  %6921 = vmatpush3.bf16.msra.mxu0 %v7664_v48  ;;  %v7665_v15 = vld [vmem:[%s8015_s10 + $0x764] ss:$84 sps:$4 sm:$0xff]   ;;  %v7667_v46 = vld [vmem:[%s8015_s10 + $0x22c] ss:$84 sps:$4 sm:$0xff]  }
 0x18d   : > { %v6238_v52 = vpop.f32.mrb[75].mxu1  ;;  %v6302_v36 = vpop.f32.mrb[75].mxu0  ;;  %6922 = vmatprep.subr.bf16.mxu0 %v7679_v1 }
 0x18e   : > { %v6239_v60 = vadd.f32 %v6238_v52, %v6237_v7  ;;  %v6303_v56 = vadd.f32 %v6302_v36, %v6301_v41  ;;  %v8810_v4 = vadd.f32 %v6236_v33, %v3760_v29  ;;  %v8813_v57 = vadd.f32 %v6300_v37, %v8616_v42  ;;  %v7712_v33 = vld [vmem:[%s9842_s1 + $0x420] sm:$0xff]   ;;  %v7743_v52 = vld [vmem:[%s9842_s1 + $0x470] sm:$0xff]  }
 0x18f   : > { %4523 = vmatmul.mubr.bf16.gmra.mrb[180].mxu1 %v7653_v49  ;;  %4620 = vmatmul.mubr.bf16.gmra.mrb[180].mxu0 %v7654_v59  ;;  %v3771_v49 = vadd.f32 %v8748_v6, %v8468_v26  ;;  %v7727_v26 = vld [vmem:[%s9842_s1 + $0x468] sm:$0xff]  }
 0x190   : > { %4530 = vmatprep.mubr.bf16.mxu1 %v7655_v35  ;;  %4627 = vmatprep.mubr.bf16.mxu0 %v7657_v43  ;;  %v8815_v3 = vadd.f32 %v6239_v60, %v3763_v50  ;;  %v8818_v44 = vadd.f32 %v6303_v56, %v8626_v55  ;;  %v3768_v55 = vadd.f32 %v8748_v6, %v8456_v14  ;;  %v7669_v60 = vld [vmem:[%s8015_s10 + $0x760] ss:$84 sps:$4 sm:$0xff]   ;;  %v7670_v56 = vld [vmem:[%s8015_s10 + $0x228] ss:$84 sps:$4 sm:$0xff]  }
 0x191   : > { %6923 = vmatpush3.bf16.msra.mxu0 %v7680_v53 }
 0x192   : > { %v6240_v62 = vpop.f32.mrb[76].mxu1  ;;  %v6304_v42 = vpop.f32.mrb[76].mxu0  ;;  %6924 = vmatprep.subr.bf16.mxu0 %v7695_v58 }
 0x193   : > { %v6241_v39 = vpop.f32.mrb[77].mxu1  ;;  %v6305_v2 = vpop.f32.mrb[77].mxu0 }
 0x194   : > { %v6242_v48 = vadd.f32 %v6241_v39, %v6240_v62  ;;  %v6306_v1 = vadd.f32 %v6305_v2, %v6304_v42  ;;  %v6243_v61 = vpop.f32.mrb[78].mxu1  ;;  %v6307_v16 = vpop.f32.mrb[78].mxu0  ;;  %v7671_v42 = vld [vmem:[%s8015_s10 + $0x80c] ss:$84 sps:$4 sm:$0xff]  }
 0x195   : > { %v6244_v59 = vpop.f32.mrb[79].mxu1  ;;  %v6308_v29 = vpop.f32.mrb[79].mxu0  ;;  %6925 = vmatpush3.bf16.msra.mxu0 %v7696_v20 }
 0x196   : > { %v6245_v37 = vadd.f32 %v6244_v59, %v6243_v61  ;;  %v6309_v7 = vadd.f32 %v6308_v29, %v6307_v16  ;;  %6926 = vmatprep.subr.bf16.mxu0 %v7711_v23  ;;  %v8837_v14 = vadd.f32 %v6242_v48, %v3768_v55  ;;  %v8840_v41 = vadd.f32 %v6306_v1, %v8647_v18  ;;  %v7728_v18 = vld [vmem:[%s9842_s1 + $0x428] sm:$0xff]   ;;  %v7759_v61 = vld [vmem:[%s9842_s1 + $0x478] sm:$0xff]   ;;  %v7676_v29 = vld [vmem:[%s8015_s10 + $0x2d0] ss:$84 sps:$4 sm:$0xff]  }
 0x197   : > { %4531 = vmatmul.mubr.bf16.gmra.mrb[184].mxu1 %v7659_v38  ;;  %4628 = vmatmul.mubr.bf16.gmra.mrb[184].mxu0 %v7660_v24  ;;  %v7673_v23 = vld [vmem:[%s8015_s10 + $0x2d4] ss:$84 sps:$4 sm:$0xff]  }
 0x198   : > { %4538 = vmatprep.mubr.bf16.mxu1 %v7665_v15  ;;  %4635 = vmatprep.mubr.bf16.mxu0 %v7667_v46  ;;  %v8845_v6 = vadd.f32 %v6245_v37, %v3771_v49  ;;  %v8848_v35 = vadd.f32 %v6309_v7, %v8651_v21  ;;  %v7744_v38 = vld [vmem:[%s9842_s1 + $0x430] sm:$0xff]   ;;  %v7675_v59 = vld [vmem:[%s8015_s10 + $0x808] ss:$84 sps:$4 sm:$0xff]  }
 0x199   : > { %6927 = vmatpush3.bf16.msra.mxu0 %v7712_v33 }
 0x19a   : > { %v6310_v43 = vpop.f32.mrb[80].mxu0  ;;  %v6374_v50 = vpop.f32.mrb[80].mxu1  ;;  %6928 = vmatprep.subr.bf16.mxu0 %v7727_v26 }
 0x19b   : > { %v6311_v36 = vpop.f32.mrb[81].mxu0  ;;  %v6375_v53 = vpop.f32.mrb[81].mxu1 }
 0x19c   : > { %v6312_v58 = vadd.f32 %v6311_v36, %v6310_v43  ;;  %v6376_v21 = vadd.f32 %v6375_v53, %v6374_v50  ;;  %v6313_v20 = vpop.f32.mrb[82].mxu0  ;;  %v6377_v62 = vpop.f32.mrb[82].mxu1  ;;  %v7683_v43 = vld [vmem:[%s8015_s10 + $0x37c] ss:$84 sps:$4 sm:$0xff]  }
 0x19d   : > { %v6314_v39 = vpop.f32.mrb[83].mxu0  ;;  %v6378_v2 = vpop.f32.mrb[83].mxu1  ;;  %6929 = vmatpush3.bf16.msra.mxu0 %v7728_v18  ;;  %v7681_v18 = vld [vmem:[%s8015_s10 + $0x8b4] ss:$84 sps:$4 sm:$0xff]  }
 0x19e   : > { %v8864_v24 = vadd.f32 %v6312_v58, %v8670_v63  ;;  %v8867_v55 = vadd.f32 %v6376_v21, %v8673_v0  ;;  %v6315_v48 = vadd.f32 %v6314_v39, %v6313_v20  ;;  %v6379_v1 = vadd.f32 %v6378_v2, %v6377_v62  ;;  %6930 = vmatprep.subr.bf16.mxu0 %v7743_v52  ;;  %v7760_v0 = vld [vmem:[%s9842_s1 + $0x438] sm:$0xff]  }
 0x19f   : > { %4539 = vmatmul.mubr.bf16.gmra.mrb[188].mxu1 %v7669_v60  ;;  %4636 = vmatmul.mubr.bf16.gmra.mrb[188].mxu0 %v7670_v56 }
 0x1a0   : > { %v8873_v16 = vadd.f32 %v6315_v48, %v8681_v10  ;;  %v8876_v63 = vadd.f32 %v6379_v1, %v8684_v19  ;;  %4546 = vmatprep.mubr.bf16.mxu1 %v7671_v42  ;;  %4643 = vmatprep.mubr.bf16.mxu0 %v7673_v23  ;;  %v8884_v10 = vld [vmem:[%s9842_s1 + $0x500] sm:$0xff]   ;;  %v7686_v23 = vld [vmem:[%s8015_s10 + $0x378] ss:$84 sps:$4 sm:$0xff]   ;;  %v7687_v1 = vld [vmem:[%s8015_s10 + $0x95c] ss:$84 sps:$4 sm:$0xff]  }
 0x1a1   : > { %6931 = vmatpush3.bf16.msra.mxu0 %v7744_v38  ;;  %v7685_v42 = vld [vmem:[%s8015_s10 + $0x8b0] ss:$84 sps:$4 sm:$0xff]  }
 0x1a2   : > { %v6316_v15 = vpop.f32.mrb[84].mxu0  ;;  %v6380_v46 = vpop.f32.mrb[84].mxu1  ;;  %6932 = vmatprep.subr.bf16.mxu0 %v7759_v61  ;;  %v7689_v61 = vld [vmem:[%s8015_s10 + $0x424] ss:$84 sps:$4 sm:$0xff]  }
 0x1a3   : > { %v6317_v49 = vpop.f32.mrb[85].mxu0  ;;  %v6381_v19 = vpop.f32.mrb[85].mxu1 }
 0x1a4   : > { %v6318_v33 = vadd.f32 %v6317_v49, %v6316_v15  ;;  %v6382_v37 = vadd.f32 %v6381_v19, %v6380_v46  ;;  %v6319_v7 = vpop.f32.mrb[86].mxu0  ;;  %v6383_v26 = vpop.f32.mrb[86].mxu1 }
 0x1a5   : > { %v6320_v50 = vpop.f32.mrb[87].mxu0  ;;  %v6384_v52 = vpop.f32.mrb[87].mxu1  ;;  %6933 = vmatpush3.bf16.msra.mxu0 %v7760_v0 }
 0x1a6   : > { %v8891_v36 = vadd.f32 %v6318_v33, %v8697_v51  ;;  %v8894_v53 = vadd.f32 %v6382_v37, %v8700_v54  ;;  %v6321_v60 = vadd.f32 %v6320_v50, %v6319_v7  ;;  %v6385_v56 = vadd.f32 %v6384_v52, %v6383_v26  ;;  %7166 = vmatprep.subr.bf16.mxu0 %v8884_v10  ;;  %v7692_v7 = vld [vmem:[%s8015_s10 + $0x420] ss:$84 sps:$4 sm:$0xff]   ;;  %v7697_v52 = vld [vmem:[%s8015_s10 + $0xa04] ss:$84 sps:$4 sm:$0xff]  }
 0x1a7   : > { %4547 = vmatmul.mubr.bf16.gmra.mrb[192].mxu1 %v7675_v59  ;;  %4644 = vmatmul.mubr.bf16.gmra.mrb[192].mxu0 %v7676_v29 }
 0x1a8   : > { %v8898_v58 = vadd.f32 %v6321_v60, %v8702_v47  ;;  %v8901_v21 = vadd.f32 %v6385_v56, %v8705_v5  ;;  %4554 = vmatprep.mubr.bf16.mxu1 %v7681_v18  ;;  %4651 = vmatprep.mubr.bf16.mxu0 %v7683_v43  ;;  %v7699_v60 = vld [vmem:[%s8015_s10 + $0x4cc] ss:$84 sps:$4 sm:$0xff]  }
 0x1aa   : > { %v6322_v51 = vpop.f32.mrb[88].mxu0  ;;  %v6386_v20 = vpop.f32.mrb[88].mxu1 }
 0x1ab   : > { %v6323_v54 = vpop.f32.mrb[89].mxu0  ;;  %v6387_v62 = vpop.f32.mrb[89].mxu1 }
 0x1ac   : > { %v6324_v39 = vadd.f32 %v6323_v54, %v6322_v51  ;;  %v6388_v2 = vadd.f32 %v6387_v62, %v6386_v20  ;;  %v6325_v38 = vpop.f32.mrb[90].mxu0  ;;  %v6389_v48 = vpop.f32.mrb[90].mxu1 }
 0x1ad   : > { %v6326_v0 = vpop.f32.mrb[91].mxu0  ;;  %v6390_v47 = vpop.f32.mrb[91].mxu1 }
 0x1ae   : > { %v8908_v5 = vadd.f32 %v6324_v39, %v8715_v27  ;;  %v8911_v15 = vadd.f32 %v6388_v2, %v8718_v25  ;;  %v6327_v46 = vadd.f32 %v6326_v0, %v6325_v38  ;;  %v6391_v49 = vadd.f32 %v6390_v47, %v6389_v48  ;;  %v7691_v25 = vld [vmem:[%s8015_s10 + $0x958] ss:$84 sps:$4 sm:$0xff]   ;;  %v7702_v38 = vld [vmem:[%s8015_s10 + $0x4c8] ss:$84 sps:$4 sm:$0xff]  }
 0x1af   : > { %4555 = vmatmul.mubr.bf16.gmra.mrb[196].mxu1 %v7685_v42  ;;  %4652 = vmatmul.mubr.bf16.gmra.mrb[196].mxu0 %v7686_v23  ;;  %v7703_v47 = vld [vmem:[%s8015_s10 + $0x574] ss:$84 sps:$4 sm:$0xff]  }
 0x1b0   : > { %v8914_v19 = vadd.f32 %v6327_v46, %v8720_v28  ;;  %v8917_v59 = vadd.f32 %v6391_v49, %v8723_v9  ;;  %4562 = vmatprep.mubr.bf16.mxu1 %v7687_v1  ;;  %4659 = vmatprep.mubr.bf16.mxu0 %v7689_v61  ;;  %v7707_v46 = vld [vmem:[%s8015_s10 + $0x3c] ss:$84 sps:$4 sm:$0xff]  }
 0x1b2   : > { %v6328_v29 = vpop.f32.mrb[92].mxu0  ;;  %v6392_v27 = vpop.f32.mrb[92].mxu1 }
 0x1b3   : > { %v6329_v33 = vpop.f32.mrb[93].mxu0  ;;  %v6393_v37 = vpop.f32.mrb[93].mxu1 }
 0x1b4   : > { %v6330_v26 = vadd.f32 %v6329_v33, %v6328_v29  ;;  %v6394_v18 = vadd.f32 %v6393_v37, %v6392_v27  ;;  %v6331_v43 = vpop.f32.mrb[94].mxu0  ;;  %v6395_v50 = vpop.f32.mrb[94].mxu1 }
 0x1b5   : > { %v6332_v56 = vpop.f32.mrb[95].mxu0  ;;  %v6396_v28 = vpop.f32.mrb[95].mxu1 }
 0x1b6   : > { %v8924_v9 = vadd.f32 %v6330_v26, %v8733_v31  ;;  %v8927_v51 = vadd.f32 %v6394_v18, %v8736_v17  ;;  %v6333_v20 = vadd.f32 %v6332_v56, %v6331_v43  ;;  %v6397_v54 = vadd.f32 %v6396_v28, %v6395_v50  ;;  %v7701_v17 = vld [vmem:[%s8015_s10 + $0xa00] ss:$84 sps:$4 sm:$0xff]   ;;  %v7708_v43 = vld [vmem:[%s8015_s10 + $0x570] ss:$84 sps:$4 sm:$0xff]  }
 0x1b7   : > { %4563 = vmatmul.mubr.bf16.gmra.mrb[200].mxu1 %v7691_v25  ;;  %4660 = vmatmul.mubr.bf16.gmra.mrb[200].mxu0 %v7692_v7  ;;  %v7713_v28 = vld [vmem:[%s8015_s10 + $0x61c] ss:$84 sps:$4 sm:$0xff]  }
 0x1b8   : > { %v8930_v62 = vadd.f32 %v6333_v20, %v8738_v8  ;;  %v8933_v42 = vadd.f32 %v6397_v54, %v8741_v32  ;;  %4570 = vmatprep.mubr.bf16.mxu1 %v7697_v52  ;;  %4667 = vmatprep.mubr.bf16.mxu0 %v7699_v60  ;;  %v7715_v54 = vld [vmem:[%s8015_s10 + $0xe4] ss:$84 sps:$4 sm:$0xff]  }
 0x1ba   : > { %v6334_v23 = vpop.f32.mrb[96].mxu0  ;;  %v6398_v31 = vpop.f32.mrb[96].mxu1 }
 0x1bb   : > { %v6335_v39 = vpop.f32.mrb[97].mxu0  ;;  %v6399_v2 = vpop.f32.mrb[97].mxu1 }
 0x1bc   : > { %v6336_v48 = vadd.f32 %v6335_v39, %v6334_v23  ;;  %v6400_v1 = vadd.f32 %v6399_v2, %v6398_v31  ;;  %v6337_v61 = vpop.f32.mrb[98].mxu0  ;;  %v6401_v0 = vpop.f32.mrb[98].mxu1  ;;  %v7725_v23 = vld [vmem:[%s9842_s1 + $0x4c8] sm:$0xff]  }
 0x1bd   : > { %v6338_v49 = vpop.f32.mrb[99].mxu0  ;;  %v6402_v8 = vpop.f32.mrb[99].mxu1 }
 0x1be   : > { %v8940_v32 = vadd.f32 %v6336_v48, %v8756_v34  ;;  %v8943_v29 = vadd.f32 %v6400_v1, %v8759_v45  ;;  %v6339_v27 = vadd.f32 %v6338_v49, %v6337_v61  ;;  %v6403_v33 = vadd.f32 %v6402_v8, %v6401_v0  ;;  %v7705_v45 = vld [vmem:[%s8015_s10 + $0x38] ss:$84 sps:$4 sm:$0xff]  }
 0x1bf   : > { %4571 = vmatmul.mubr.bf16.gmra.mrb[204].mxu1 %v7701_v17  ;;  %4668 = vmatmul.mubr.bf16.gmra.mrb[204].mxu0 %v7702_v38 }
 0x1c0   : > { %v8946_v37 = vadd.f32 %v6339_v27, %v8761_v22  ;;  %v8949_v25 = vadd.f32 %v6403_v33, %v8764_v30  ;;  %4675 = vmatprep.mubr.bf16.mxu0 %v7703_v47  ;;  %4772 = vmatprep.mubr.bf16.mxu1 %v7707_v46  ;;  %v7710_v22 = vld [vmem:[%s9842_s1 + $0x480] sm:$0xff]  }
 0x1c1   : > { %v7718_v47 = vld [vmem:[%s8015_s10 + $0xe0] ss:$84 sps:$4 sm:$0xff]   ;;  %v7719_v33 = vld [vmem:[%s8015_s10 + $0x6c4] ss:$84 sps:$4 sm:$0xff]  }
 0x1c2   : > { %v6340_v7 = vpop.f32.mrb[100].mxu0  ;;  %v6404_v34 = vpop.f32.mrb[100].mxu1 }
 0x1c3   : > { %v6341_v26 = vpop.f32.mrb[101].mxu0  ;;  %v6405_v18 = vpop.f32.mrb[101].mxu1 }
 0x1c4   : > { %v6342_v50 = vadd.f32 %v6341_v26, %v6340_v7  ;;  %v6406_v52 = vadd.f32 %v6405_v18, %v6404_v34  ;;  %v6343_v60 = vpop.f32.mrb[102].mxu0  ;;  %v6407_v56 = vpop.f32.mrb[102].mxu1  ;;  %v7721_v7 = vld [vmem:[%s8015_s10 + $0x18c] ss:$84 sps:$4 sm:$0xff]   ;;  %v7742_v18 = vld [vmem:[%s9842_s1 + $0x490] sm:$0xff]  }
 0x1c5   : > { %v6344_v30 = vpop.f32.mrb[103].mxu0  ;;  %v6408_v20 = vpop.f32.mrb[103].mxu1 }
 0x1c6   : > { %v8962_v31 = vadd.f32 %v6342_v50, %v8780_v11  ;;  %v8965_v39 = vadd.f32 %v6406_v52, %v8783_v40  ;;  %v6345_v2 = vadd.f32 %v6344_v30, %v6343_v60  ;;  %v6409_v17 = vadd.f32 %v6408_v20, %v6407_v56  ;;  %v7726_v11 = vld [vmem:[%s9842_s1 + $0x488] sm:$0xff]   ;;  %v7741_v40 = vld [vmem:[%s9842_s1 + $0x4d0] sm:$0xff]   ;;  %v7757_v60 = vld [vmem:[%s9842_s1 + $0x4d8] sm:$0xff]  }
 0x1c7   : > { %4676 = vmatmul.mubr.bf16.gmra.mrb[208].mxu0 %v7708_v43  ;;  %4773 = vmatmul.mubr.bf16.vlgmr.msra.gmra.mrb[208].mxu1 %v7705_v45 }
 0x1c8   : > { %v8968_v38 = vadd.f32 %v6345_v2, %v8788_v12  ;;  %v8971_v48 = vadd.f32 %v6409_v17, %v8791_v13  ;;  %7031 = vmatpush3.bf16.msra.mxu1 %v7710_v22  ;;  %4683 = vmatprep.mubr.bf16.mxu0 %v7713_v28  ;;  %v7717_v13 = vld [vmem:[%s8015_s10 + $0x618] ss:$84 sps:$4 sm:$0xff]  }
 0x1c9   : > { %4780 = vmatprep.mubr.bf16.mxu1 %v7715_v54  ;;  %7032 = vmatprep.subr.bf16.mxu1 %v7725_v23  ;;  %v7724_v54 = vld [vmem:[%s8015_s10 + $0x188] ss:$84 sps:$4 sm:$0xff]  }
 0x1ca   : > { %v6346_v1 = vpop.f32.mrb[104].mxu0  ;;  %v6410_v12 = vpop.f32.mrb[104].mxu1 }
 0x1cb   : > { %v6347_v61 = vpop.f32.mrb[105].mxu0  ;;  %v6411_v0 = vpop.f32.mrb[105].mxu1 }
 0x1cc   : > { %v6348_v46 = vadd.f32 %v6347_v61, %v6346_v1  ;;  %v6412_v49 = vadd.f32 %v6411_v0, %v6410_v12  ;;  %v6349_v8 = vpop.f32.mrb[106].mxu0  ;;  %v6413_v27 = vpop.f32.mrb[106].mxu1  ;;  %7033 = vmatpush3.bf16.msra.mxu1 %v7726_v11  ;;  %v7731_v1 = vld [vmem:[%s8015_s10 + $0x234] ss:$84 sps:$4 sm:$0xff]   ;;  %v7774_v0 = vld [vmem:[%s9842_s1 + $0x4a0] sm:$0xff]  }
 0x1cd   : > { %v6350_v34 = vpop.f32.mrb[107].mxu0  ;;  %v6414_v26 = vpop.f32.mrb[107].mxu1  ;;  %7034 = vmatprep.subr.bf16.mxu1 %v7741_v40  ;;  %v7729_v40 = vld [vmem:[%s8015_s10 + $0x76c] ss:$84 sps:$4 sm:$0xff]  }
 0x1ce   : > { %v8987_v45 = vadd.f32 %v6348_v46, %v8810_v4  ;;  %v8990_v43 = vadd.f32 %v6412_v49, %v8813_v57  ;;  %v6351_v50 = vadd.f32 %v6350_v34, %v6349_v8  ;;  %v6415_v52 = vadd.f32 %v6414_v26, %v6413_v27  ;;  %v7758_v4 = vld [vmem:[%s9842_s1 + $0x498] sm:$0xff]   ;;  %v7788_v8 = vld [vmem:[%s9842_s1 + $0x4e8] sm:$0xff]  }
 0x1cf   : > { %4684 = vmatmul.mubr.bf16.gmra.mrb[212].mxu0 %v7717_v13  ;;  %4781 = vmatmul.mubr.bf16.gmra.mrb[212].mxu1 %v7718_v47 }
 0x1d0   : > { %v8996_v56 = vadd.f32 %v6351_v50, %v8815_v3  ;;  %v8999_v22 = vadd.f32 %v6415_v52, %v8818_v44  ;;  %4691 = vmatprep.mubr.bf16.mxu0 %v7719_v33  ;;  %4788 = vmatprep.mubr.bf16.mxu1 %v7721_v7  ;;  %v7773_v3 = vld [vmem:[%s9842_s1 + $0x4e0] sm:$0xff]  }
 0x1d1   : > { %7035 = vmatpush3.bf16.msra.mxu1 %v7742_v18  ;;  %v7723_v44 = vld [vmem:[%s8015_s10 + $0x6c0] ss:$84 sps:$4 sm:$0xff]   ;;  %v7734_v18 = vld [vmem:[%s8015_s10 + $0x230] ss:$84 sps:$4 sm:$0xff]  }
 0x1d2   : > { %v6352_v57 = vpop.f32.mrb[108].mxu0  ;;  %v6416_v28 = vpop.f32.mrb[108].mxu1  ;;  %7036 = vmatprep.subr.bf16.mxu1 %v7757_v60 }
 0x1d3   : > { %v6353_v30 = vpop.f32.mrb[109].mxu0  ;;  %v6417_v20 = vpop.f32.mrb[109].mxu1 }
 0x1d4   : > { %v6354_v23 = vadd.f32 %v6353_v30, %v6352_v57  ;;  %v6418_v2 = vadd.f32 %v6417_v20, %v6416_v28  ;;  %v6355_v17 = vpop.f32.mrb[110].mxu0  ;;  %v6419_v11 = vpop.f32.mrb[110].mxu1  ;;  %v7735_v57 = vld [vmem:[%s8015_s10 + $0x814] ss:$84 sps:$4 sm:$0xff]   ;;  %v7737_v28 = vld [vmem:[%s8015_s10 + $0x2dc] ss:$84 sps:$4 sm:$0xff]  }
 0x1d5   : > { %v6356_v12 = vpop.f32.mrb[111].mxu0  ;;  %v6420_v61 = vpop.f32.mrb[111].mxu1  ;;  %7037 = vmatpush3.bf16.msra.mxu1 %v7758_v4  ;;  %v7804_v20 = vld [vmem:[%s9842_s1 + $0x4b0] sm:$0xff]  }
 0x1d6   : > { %v9015_v13 = vadd.f32 %v6354_v23, %v8837_v14  ;;  %v9018_v47 = vadd.f32 %v6418_v2, %v8840_v41  ;;  %v6357_v46 = vadd.f32 %v6356_v12, %v6355_v17  ;;  %v6421_v49 = vadd.f32 %v6420_v61, %v6419_v11  ;;  %7038 = vmatprep.subr.bf16.mxu1 %v7773_v3  ;;  %v7789_v41 = vld [vmem:[%s9842_s1 + $0x4a8] sm:$0xff]   ;;  %v7818_v17 = vld [vmem:[%s9842_s1 + $0x4f8] sm:$0xff]  }
 0x1d7   : > { %4692 = vmatmul.mubr.bf16.gmra.mrb[216].mxu0 %v7723_v44  ;;  %4789 = vmatmul.mubr.bf16.gmra.mrb[216].mxu1 %v7724_v54 }
 0x1d8   : > { %v9024_v27 = vadd.f32 %v6357_v46, %v8845_v6  ;;  %v9027_v14 = vadd.f32 %v6421_v49, %v8848_v35  ;;  %4699 = vmatprep.mubr.bf16.mxu0 %v7729_v40  ;;  %4796 = vmatprep.mubr.bf16.mxu1 %v7731_v1  ;;  %v7803_v6 = vld [vmem:[%s9842_s1 + $0x4f0] sm:$0xff]   ;;  %v7733_v35 = vld [vmem:[%s8015_s10 + $0x768] ss:$84 sps:$4 sm:$0xff]  }
 0x1d9   : > { %7039 = vmatpush3.bf16.msra.mxu1 %v7774_v0  ;;  %v7739_v0 = vld [vmem:[%s8015_s10 + $0x810] ss:$84 sps:$4 sm:$0xff]  }
 0x1da   : > { %v6422_v33 = vpop.f32.mrb[112].mxu1  ;;  %v6486_v7 = vpop.f32.mrb[112].mxu0  ;;  %7040 = vmatprep.subr.bf16.mxu1 %v7788_v8 }
 0x1db   : > { %v6423_v34 = vpop.f32.mrb[113].mxu1  ;;  %v6487_v26 = vpop.f32.mrb[113].mxu0 }
 0x1dc   : > { %v6424_v50 = vadd.f32 %v6423_v34, %v6422_v33  ;;  %v6488_v52 = vadd.f32 %v6487_v26, %v6486_v7  ;;  %v6425_v60 = vpop.f32.mrb[114].mxu1  ;;  %v6489_v4 = vpop.f32.mrb[114].mxu0  ;;  %v7747_v33 = vld [vmem:[%s8015_s10 + $0x384] ss:$84 sps:$4 sm:$0xff]  }
 0x1dd   : > { %v6426_v3 = vpop.f32.mrb[115].mxu1  ;;  %v6490_v30 = vpop.f32.mrb[115].mxu0  ;;  %7041 = vmatpush3.bf16.msra.mxu1 %v7789_v41  ;;  %v7745_v41 = vld [vmem:[%s8015_s10 + $0x8bc] ss:$84 sps:$4 sm:$0xff]  }
 0x1de   : > { %v9043_v44 = vadd.f32 %v6424_v50, %v8864_v24  ;;  %v9046_v54 = vadd.f32 %v6488_v52, %v8867_v55  ;;  %v6427_v23 = vadd.f32 %v6426_v3, %v6425_v60  ;;  %v6491_v2 = vadd.f32 %v6490_v30, %v6489_v4  ;;  %7042 = vmatprep.subr.bf16.mxu1 %v7803_v6  ;;  %v7819_v55 = vld [vmem:[%s9842_s1 + $0x4b8] sm:$0xff]  }
 0x1df   : > { %4700 = vmatmul.mubr.bf16.gmra.mrb[220].mxu0 %v7733_v35  ;;  %4797 = vmatmul.mubr.bf16.gmra.mrb[220].mxu1 %v7734_v18 }
 0x1e0   : > { %v9052_v11 = vadd.f32 %v6427_v23, %v8873_v16  ;;  %v9055_v24 = vadd.f32 %v6491_v2, %v8876_v63  ;;  %4707 = vmatprep.mubr.bf16.mxu0 %v7735_v57  ;;  %4804 = vmatprep.mubr.bf16.mxu1 %v7737_v28  ;;  %v7740_v16 = vld [vmem:[%s8015_s10 + $0x2d8] ss:$84 sps:$4 sm:$0xff]   ;;  %v7750_v28 = vld [vmem:[%s8015_s10 + $0x380] ss:$84 sps:$4 sm:$0xff]  }
 0x1e1   : > { %7043 = vmatpush3.bf16.msra.mxu1 %v7804_v20  ;;  %v7751_v2 = vld [vmem:[%s8015_s10 + $0x964] ss:$84 sps:$4 sm:$0xff]  }
 0x1e2   : > { %v6428_v40 = vpop.f32.mrb[116].mxu1  ;;  %v6492_v1 = vpop.f32.mrb[116].mxu0  ;;  %7044 = vmatprep.subr.bf16.mxu1 %v7818_v17  ;;  %v7753_v17 = vld [vmem:[%s8015_s10 + $0x42c] ss:$84 sps:$4 sm:$0xff]  }
 0x1e3   : > { %v6429_v12 = vpop.f32.mrb[117].mxu1  ;;  %v6493_v61 = vpop.f32.mrb[117].mxu0 }
 0x1e4   : > { %v6430_v46 = vadd.f32 %v6429_v12, %v6428_v40  ;;  %v6494_v49 = vadd.f32 %v6493_v61, %v6492_v1  ;;  %v6431_v63 = vpop.f32.mrb[118].mxu1  ;;  %v6495_v8 = vpop.f32.mrb[118].mxu0 }
 0x1e5   : > { %v6432_v7 = vpop.f32.mrb[119].mxu1  ;;  %v6496_v6 = vpop.f32.mrb[119].mxu0  ;;  %7045 = vmatpush3.bf16.msra.mxu1 %v7819_v55 }
 0x1e6   : > { %v9065_v34 = vadd.f32 %v6430_v46, %v8891_v36  ;;  %v9068_v26 = vadd.f32 %v6494_v49, %v8894_v53  ;;  %v6433_v35 = vadd.f32 %v6432_v7, %v6431_v63  ;;  %v6497_v18 = vadd.f32 %v6496_v6, %v6495_v8  ;;  %v7749_v53 = vld [vmem:[%s8015_s10 + $0x8b8] ss:$84 sps:$4 sm:$0xff]   ;;  %v7756_v63 = vld [vmem:[%s8015_s10 + $0x428] ss:$84 sps:$4 sm:$0xff]  }
 0x1e7   : > { %4708 = vmatmul.mubr.bf16.gmra.mrb[224].mxu0 %v7739_v0  ;;  %4805 = vmatmul.mubr.bf16.gmra.mrb[224].mxu1 %v7740_v16  ;;  %v7761_v6 = vld [vmem:[%s8015_s10 + $0xa0c] ss:$84 sps:$4 sm:$0xff]  }
 0x1e8   : > { %v9071_v50 = vadd.f32 %v6433_v35, %v8898_v58  ;;  %v9074_v52 = vadd.f32 %v6497_v18, %v8901_v21  ;;  %4715 = vmatprep.mubr.bf16.mxu0 %v7745_v41  ;;  %4812 = vmatprep.mubr.bf16.mxu1 %v7747_v33  ;;  %v7763_v35 = vld [vmem:[%s8015_s10 + $0x4d4] ss:$84 sps:$4 sm:$0xff]  }
 0x1ea   : > { %v6434_v60 = vpop.f32.mrb[120].mxu1  ;;  %v6498_v36 = vpop.f32.mrb[120].mxu0 }
 0x1eb   : > { %v6435_v4 = vpop.f32.mrb[121].mxu1  ;;  %v6499_v57 = vpop.f32.mrb[121].mxu0 }
 0x1ec   : > { %v6436_v3 = vadd.f32 %v6435_v4, %v6434_v60  ;;  %v6500_v30 = vadd.f32 %v6499_v57, %v6498_v36  ;;  %v6437_v20 = vpop.f32.mrb[122].mxu1  ;;  %v6501_v23 = vpop.f32.mrb[122].mxu0 }
 0x1ed   : > { %v6438_v55 = vpop.f32.mrb[123].mxu1  ;;  %v6502_v58 = vpop.f32.mrb[123].mxu0 }
 0x1ee   : > { %v9081_v21 = vadd.f32 %v6436_v3, %v8908_v5  ;;  %v9084_v40 = vadd.f32 %v6500_v30, %v8911_v15  ;;  %v6439_v1 = vadd.f32 %v6438_v55, %v6437_v20  ;;  %v6503_v12 = vadd.f32 %v6502_v58, %v6501_v23  ;;  %v7755_v15 = vld [vmem:[%s8015_s10 + $0x960] ss:$84 sps:$4 sm:$0xff]   ;;  %v7766_v20 = vld [vmem:[%s8015_s10 + $0x4d0] ss:$84 sps:$4 sm:$0xff]  }
 0x1ef   : > { %4716 = vmatmul.mubr.bf16.gmra.mrb[228].mxu0 %v7749_v53  ;;  %4813 = vmatmul.mubr.bf16.gmra.mrb[228].mxu1 %v7750_v28  ;;  %v7767_v58 = vld [vmem:[%s8015_s10 + $0x57c] ss:$84 sps:$4 sm:$0xff]  }
 0x1f0   : > { %v9087_v61 = vadd.f32 %v6439_v1, %v8914_v19  ;;  %v9090_v0 = vadd.f32 %v6503_v12, %v8917_v59  ;;  %4723 = vmatprep.mubr.bf16.mxu0 %v7751_v2  ;;  %4820 = vmatprep.mubr.bf16.mxu1 %v7753_v17  ;;  %v7771_v1 = vld [vmem:[%s8015_s10 + $0x44] ss:$84 sps:$4 sm:$0xff]  }
 0x1f2   : > { %v6440_v16 = vpop.f32.mrb[124].mxu1  ;;  %v6504_v5 = vpop.f32.mrb[124].mxu0 }
 0x1f3   : > { %v6441_v46 = vpop.f32.mrb[125].mxu1  ;;  %v6505_v49 = vpop.f32.mrb[125].mxu0 }
 0x1f4   : > { %v6442_v8 = vadd.f32 %v6441_v46, %v6440_v16  ;;  %v6506_v41 = vadd.f32 %v6505_v49, %v6504_v5  ;;  %v6443_v33 = vpop.f32.mrb[126].mxu1  ;;  %v6507_v7 = vpop.f32.mrb[126].mxu0 }
 0x1f5   : > { %v6444_v18 = vpop.f32.mrb[127].mxu1  ;;  %v6508_v19 = vpop.f32.mrb[127].mxu0 }
 0x1f6   : > { %v9097_v59 = vadd.f32 %v6442_v8, %v8924_v9  ;;  %v9100_v60 = vadd.f32 %v6506_v41, %v8927_v51  ;;  %v6445_v36 = vadd.f32 %v6444_v18, %v6443_v33  ;;  %v6509_v4 = vadd.f32 %v6508_v19, %v6507_v7  ;;  %v7765_v51 = vld [vmem:[%s8015_s10 + $0xa08] ss:$84 sps:$4 sm:$0xff]   ;;  %v7772_v33 = vld [vmem:[%s8015_s10 + $0x578] ss:$84 sps:$4 sm:$0xff]  }
 0x1f7   : > { %4724 = vmatmul.mubr.bf16.gmra.mrb[232].mxu0 %v7755_v15  ;;  %4821 = vmatmul.mubr.bf16.gmra.mrb[232].mxu1 %v7756_v63  ;;  %v7776_v19 = vld [vmem:[%s8015_s10 + $0x624] ss:$84 sps:$4 sm:$0xff]  }
 0x1f8   : > { %v9103_v57 = vadd.f32 %v6445_v36, %v8930_v62  ;;  %v9106_v53 = vadd.f32 %v6509_v4, %v8933_v42  ;;  %4731 = vmatprep.mubr.bf16.mxu0 %v7761_v6  ;;  %4828 = vmatprep.mubr.bf16.mxu1 %v7763_v35  ;;  %v7778_v4 = vld [vmem:[%s8015_s10 + $0xec] ss:$84 sps:$4 sm:$0xff]  }
 0x1fa   : > { %v6446_v28 = vpop.f32.mrb[128].mxu1  ;;  %v6510_v9 = vpop.f32.mrb[128].mxu0 }
 0x1fb   : > { %v6447_v3 = vpop.f32.mrb[129].mxu1  ;;  %v6511_v30 = vpop.f32.mrb[129].mxu0 }
 0x1fc   : > { %v6448_v23 = vadd.f32 %v6447_v3, %v6446_v28  ;;  %v6512_v2 = vadd.f32 %v6511_v30, %v6510_v9  ;;  %v6449_v17 = vpop.f32.mrb[130].mxu1  ;;  %v6513_v55 = vpop.f32.mrb[130].mxu0 }
 0x1fd   : > { %v6450_v12 = vpop.f32.mrb[131].mxu1  ;;  %v6514_v62 = vpop.f32.mrb[131].mxu0 }
 0x1fe   : > { %v9113_v42 = vadd.f32 %v6448_v23, %v8940_v32  ;;  %v9116_v16 = vadd.f32 %v6512_v2, %v8943_v29  ;;  %v6451_v5 = vadd.f32 %v6450_v12, %v6449_v17  ;;  %v6515_v46 = vadd.f32 %v6514_v62, %v6513_v55  ;;  %v7769_v29 = vld [vmem:[%s8015_s10 + $0x40] ss:$84 sps:$4 sm:$0xff]   ;;  %v7781_v55 = vld [vmem:[%s8015_s10 + $0xe8] ss:$84 sps:$4 sm:$0xff]  }
 0x1ff   : > { %4732 = vmatmul.mubr.bf16.gmra.mrb[236].mxu0 %v7765_v51  ;;  %4829 = vmatmul.mubr.bf16.gmra.mrb[236].mxu1 %v7766_v20  ;;  %v7782_v62 = vld [vmem:[%s8015_s10 + $0x6cc] ss:$84 sps:$4 sm:$0xff]  }
 0x200   : > { %v9119_v49 = vadd.f32 %v6451_v5, %v8946_v37  ;;  %v9122_v15 = vadd.f32 %v6515_v46, %v8949_v25  ;;  %4836 = vmatprep.mubr.bf16.mxu1 %v7767_v58  ;;  %4933 = vmatprep.mubr.bf16.mxu0 %v7771_v1  ;;  %v7790_v25 = vld [vmem:[%s9842_s1 + $0x508] sm:$0xff]  }
 0x202   : > { %v6452_v63 = vpop.f32.mrb[132].mxu1  ;;  %v6516_v32 = vpop.f32.mrb[132].mxu0 }
 0x203   : > { %v6453_v8 = vpop.f32.mrb[133].mxu1  ;;  %v6517_v41 = vpop.f32.mrb[133].mxu0 }
 0x204   : > { %v6454_v7 = vadd.f32 %v6453_v8, %v6452_v63  ;;  %v6518_v6 = vadd.f32 %v6517_v41, %v6516_v32  ;;  %v6455_v35 = vpop.f32.mrb[134].mxu1  ;;  %v6519_v18 = vpop.f32.mrb[134].mxu0 }
 0x205   : > { %v6456_v36 = vpop.f32.mrb[135].mxu1  ;;  %v6520_v37 = vpop.f32.mrb[135].mxu0 }
 0x206   : > { %v9132_v28 = vadd.f32 %v6454_v7, %v8962_v31  ;;  %v9135_v9 = vadd.f32 %v6518_v6, %v8965_v39  ;;  %v6457_v3 = vadd.f32 %v6456_v36, %v6455_v35  ;;  %v6521_v30 = vadd.f32 %v6520_v37, %v6519_v18  ;;  %v7805_v31 = vld [vmem:[%s9842_s1 + $0x510] sm:$0xff]   ;;  %v7833_v6 = vld [vmem:[%s9842_s1 + $0x520] sm:$0xff]  }
 0x207   : > { %4837 = vmatmul.mubr.bf16.gmra.mrb[240].mxu1 %v7772_v33  ;;  %4934 = vmatmul.mubr.bf16.vlgmr.msra.gmra.mrb[240].mxu0 %v7769_v29  ;;  %v7820_v29 = vld [vmem:[%s9842_s1 + $0x518] sm:$0xff]  }
 0x208   : > { %v9138_v51 = vadd.f32 %v6457_v3, %v8968_v38  ;;  %v9141_v20 = vadd.f32 %v6521_v30, %v8971_v48  ;;  %7167 = vmatpush3.bf16.msra.mxu0 %v8884_v10  ;;  %4844 = vmatprep.mubr.bf16.mxu1 %v7776_v19  ;;  %v7780_v38 = vld [vmem:[%s8015_s10 + $0x620] ss:$84 sps:$4 sm:$0xff]   ;;  %v7786_v19 = vld [vmem:[%s8015_s10 + $0x6c8] ss:$84 sps:$4 sm:$0xff]  }
 0x209   : > { %4941 = vmatprep.mubr.bf16.mxu0 %v7778_v4  ;;  %7168 = vmatprep.subr.bf16.mxu0 %v7790_v25  ;;  %v7784_v10 = vld [vmem:[%s8015_s10 + $0x194] ss:$84 sps:$4 sm:$0xff]   ;;  %v7793_v3 = vld [vmem:[%s8015_s10 + $0x23c] ss:$84 sps:$4 sm:$0xff]  }
 0x20a   : > { %v6458_v39 = vpop.f32.mrb[136].mxu1  ;;  %v6522_v23 = vpop.f32.mrb[136].mxu0 }
 0x20b   : > { %v6459_v2 = vpop.f32.mrb[137].mxu1  ;;  %v6523_v17 = vpop.f32.mrb[137].mxu0 }
 0x20c   : > { %v6460_v58 = vadd.f32 %v6459_v2, %v6458_v39  ;;  %v6524_v48 = vadd.f32 %v6523_v17, %v6522_v23  ;;  %v6461_v1 = vpop.f32.mrb[138].mxu1  ;;  %v6525_v12 = vpop.f32.mrb[138].mxu0  ;;  %7169 = vmatpush3.bf16.msra.mxu0 %v7790_v25  ;;  %v7791_v25 = vld [vmem:[%s8015_s10 + $0x774] ss:$84 sps:$4 sm:$0xff]  }
 0x20d   : > { %v6462_v5 = vpop.f32.mrb[139].mxu1  ;;  %v6526_v46 = vpop.f32.mrb[139].mxu0  ;;  %7170 = vmatprep.subr.bf16.mxu0 %v7805_v31 }
 0x20e   : > { %v9152_v63 = vadd.f32 %v6460_v58, %v8987_v45  ;;  %v9155_v32 = vadd.f32 %v6524_v48, %v8990_v43  ;;  %v6463_v8 = vadd.f32 %v6462_v5, %v6461_v1  ;;  %v6527_v41 = vadd.f32 %v6526_v46, %v6525_v12  ;;  %v7859_v48 = vld [vmem:[%s9842_s1 + $0x530] sm:$0xff]  }
 0x20f   : > { %4845 = vmatmul.mubr.bf16.gmra.mrb[244].mxu1 %v7780_v38  ;;  %4942 = vmatmul.mubr.bf16.gmra.mrb[244].mxu0 %v7781_v55  ;;  %v7846_v38 = vld [vmem:[%s9842_s1 + $0x528] sm:$0xff]  }
 0x210   : > { %v9161_v33 = vadd.f32 %v6463_v8, %v8996_v56  ;;  %v9164_v7 = vadd.f32 %v6527_v41, %v8999_v22  ;;  %4852 = vmatprep.mubr.bf16.mxu1 %v7782_v62  ;;  %4949 = vmatprep.mubr.bf16.mxu0 %v7784_v10  ;;  %v7787_v56 = vld [vmem:[%s8015_s10 + $0x190] ss:$84 sps:$4 sm:$0xff]  }
 0x211   : > { %7171 = vmatpush3.bf16.msra.mxu0 %v7805_v31  ;;  %v7795_v62 = vld [vmem:[%s8015_s10 + $0x770] ss:$84 sps:$4 sm:$0xff]  }
 0x212   : > { %v6464_v45 = vpop.f32.mrb[140].mxu1  ;;  %v6528_v43 = vpop.f32.mrb[140].mxu0  ;;  %7172 = vmatprep.subr.bf16.mxu0 %v7820_v29  ;;  %v7799_v8 = vld [vmem:[%s8015_s10 + $0x81c] ss:$84 sps:$4 sm:$0xff]   ;;  %v7802_v41 = vld [vmem:[%s8015_s10 + $0x2e4] ss:$84 sps:$4 sm:$0xff]  }
 0x213   : > { %v6465_v35 = vpop.f32.mrb[141].mxu1  ;;  %v6529_v18 = vpop.f32.mrb[141].mxu0 }
 0x214   : > { %v6466_v36 = vadd.f32 %v6465_v35, %v6464_v45  ;;  %v6530_v37 = vadd.f32 %v6529_v18, %v6528_v43  ;;  %v6467_v22 = vpop.f32.mrb[142].mxu1  ;;  %v6531_v4 = vpop.f32.mrb[142].mxu0 }
 0x215   : > { %v6468_v30 = vpop.f32.mrb[143].mxu1  ;;  %v6532_v39 = vpop.f32.mrb[143].mxu0  ;;  %7173 = vmatpush3.bf16.msra.mxu0 %v7820_v29 }
 0x216   : > { %v9174_v31 = vadd.f32 %v6466_v36, %v9015_v13  ;;  %v9177_v23 = vadd.f32 %v6530_v37, %v9018_v47  ;;  %v6469_v2 = vadd.f32 %v6468_v30, %v6467_v22  ;;  %v6533_v17 = vadd.f32 %v6532_v39, %v6531_v4  ;;  %7174 = vmatprep.subr.bf16.mxu0 %v7833_v6  ;;  %v7797_v4 = vld [vmem:[%s8015_s10 + $0x818] ss:$84 sps:$4 sm:$0xff]  }
 0x217   : > { %4853 = vmatmul.mubr.bf16.gmra.mrb[248].mxu1 %v7786_v19  ;;  %4950 = vmatmul.mubr.bf16.gmra.mrb[248].mxu0 %v7787_v56  ;;  %v7872_v19 = vld [vmem:[%s9842_s1 + $0x538] sm:$0xff]  }
 0x218   : > { %v9183_v55 = vadd.f32 %v6469_v2, %v9024_v27  ;;  %v9186_v13 = vadd.f32 %v6533_v17, %v9027_v14  ;;  %4860 = vmatprep.mubr.bf16.mxu1 %v7791_v25  ;;  %4957 = vmatprep.mubr.bf16.mxu0 %v7793_v3  ;;  %v7796_v27 = vld [vmem:[%s8015_s10 + $0x238] ss:$84 sps:$4 sm:$0xff]   ;;  %v7800_v25 = vld [vmem:[%s8015_s10 + $0x2e0] ss:$84 sps:$4 sm:$0xff]  }
 0x219   : > { %7175 = vmatpush3.bf16.msra.mxu0 %v7833_v6  ;;  %v7808_v2 = vld [vmem:[%s8015_s10 + $0x8c4] ss:$84 sps:$4 sm:$0xff]   ;;  %v7811_v17 = vld [vmem:[%s8015_s10 + $0x38c] ss:$84 sps:$4 sm:$0xff]  }
 0x21a   : > { %v6534_v47 = vpop.f32.mrb[144].mxu0  ;;  %v6598_v58 = vpop.f32.mrb[144].mxu1  ;;  %7176 = vmatprep.subr.bf16.mxu0 %v7846_v38 }
 0x21b   : > { %v6535_v1 = vpop.f32.mrb[145].mxu0  ;;  %v6599_v12 = vpop.f32.mrb[145].mxu1 }
 0x21c   : > { %v6536_v10 = vadd.f32 %v6535_v1, %v6534_v47  ;;  %v6600_v5 = vadd.f32 %v6599_v12, %v6598_v58  ;;  %v6537_v14 = vpop.f32.mrb[146].mxu0  ;;  %v6601_v46 = vpop.f32.mrb[146].mxu1 }
 0x21d   : > { %v6538_v29 = vpop.f32.mrb[147].mxu0  ;;  %v6602_v45 = vpop.f32.mrb[147].mxu1  ;;  %7177 = vmatpush3.bf16.msra.mxu0 %v7846_v38 }
 0x21e   : > { %v9196_v43 = vadd.f32 %v6536_v10, %v9043_v44  ;;  %v9199_v6 = vadd.f32 %v6600_v5, %v9046_v54  ;;  %v6539_v35 = vadd.f32 %v6538_v29, %v6537_v14  ;;  %v6603_v18 = vadd.f32 %v6602_v45, %v6601_v46  ;;  %7178 = vmatprep.subr.bf16.mxu0 %v7859_v48  ;;  %v7809_v14 = vld [vmem:[%s8015_s10 + $0x388] ss:$84 sps:$4 sm:$0xff]   ;;  %v7814_v45 = vld [vmem:[%s8015_s10 + $0x96c] ss:$84 sps:$4 sm:$0xff]  }
 0x21f   : > { %4861 = vmatmul.mubr.bf16.gmra.mrb[252].mxu1 %v7795_v62  ;;  %4958 = vmatmul.mubr.bf16.gmra.mrb[252].mxu0 %v7796_v27 }
 0x220   : > { %v9205_v56 = vadd.f32 %v6539_v35, %v9052_v11  ;;  %v9208_v44 = vadd.f32 %v6603_v18, %v9055_v24  ;;  %4868 = vmatprep.mubr.bf16.mxu1 %v7799_v8  ;;  %4965 = vmatprep.mubr.bf16.mxu0 %v7802_v41  ;;  %v7817_v35 = vld [vmem:[%s8015_s10 + $0x434] ss:$84 sps:$4 sm:$0xff]  }
 0x221   : > { %7179 = vmatpush3.bf16.msra.mxu0 %v7859_v48 }
 0x222   : > { %v6540_v54 = vpop.f32.mrb[148].mxu0  ;;  %v6604_v36 = vpop.f32.mrb[148].mxu1  ;;  %7180 = vmatprep.subr.bf16.mxu0 %v7872_v19 }
 0x223   : > { %v6541_v37 = vpop.f32.mrb[149].mxu0  ;;  %v6605_v22 = vpop.f32.mrb[149].mxu1 }
 0x224   : > { %v6542_v3 = vadd.f32 %v6541_v37, %v6540_v54  ;;  %v6606_v30 = vadd.f32 %v6605_v22, %v6604_v36  ;;  %v6543_v39 = vpop.f32.mrb[150].mxu0  ;;  %v6607_v11 = vpop.f32.mrb[150].mxu1 }
 0x225   : > { %v6544_v38 = vpop.f32.mrb[151].mxu0  ;;  %v6608_v24 = vpop.f32.mrb[151].mxu1  ;;  %7181 = vmatpush3.bf16.msra.mxu0 %v7872_v19 }
 0x226   : > { %v9215_v47 = vadd.f32 %v6542_v3, %v9065_v34  ;;  %v9218_v58 = vadd.f32 %v6606_v30, %v9068_v26  ;;  %v6545_v48 = vadd.f32 %v6544_v38, %v6543_v39  ;;  %v6609_v1 = vadd.f32 %v6608_v24, %v6607_v11  ;;  %v7806_v26 = vld [vmem:[%s8015_s10 + $0x8c0] ss:$84 sps:$4 sm:$0xff]   ;;  %v7815_v30 = vld [vmem:[%s8015_s10 + $0x430] ss:$84 sps:$4 sm:$0xff]  }
 0x227   : > { %4869 = vmatmul.mubr.bf16.gmra.mrb[0].mxu1 %v7797_v4  ;;  %4966 = vmatmul.mubr.bf16.gmra.mrb[0].mxu0 %v7800_v25  ;;  %v7823_v38 = vld [vmem:[%s8015_s10 + $0xa14] ss:$84 sps:$4 sm:$0xff]   ;;  %v7826_v24 = vld [vmem:[%s8015_s10 + $0x4dc] ss:$84 sps:$4 sm:$0xff]  }
 0x228   : > { %v9221_v12 = vadd.f32 %v6545_v48, %v9071_v50  ;;  %v9224_v62 = vadd.f32 %v6609_v1, %v9074_v52  ;;  %4876 = vmatprep.mubr.bf16.mxu1 %v7808_v2  ;;  %4973 = vmatprep.mubr.bf16.mxu0 %v7811_v17 }
 0x22a   : > { %v6546_v27 = vpop.f32.mrb[152].mxu0  ;;  %v6610_v34 = vpop.f32.mrb[152].mxu1 }
 0x22b   : > { %v6547_v10 = vpop.f32.mrb[153].mxu0  ;;  %v6611_v5 = vpop.f32.mrb[153].mxu1 }
 0x22c   : > { %v6548_v46 = vadd.f32 %v6547_v10, %v6546_v27  ;;  %v6612_v8 = vadd.f32 %v6611_v5, %v6610_v34  ;;  %v6549_v41 = vpop.f32.mrb[154].mxu0  ;;  %v6613_v29 = vpop.f32.mrb[154].mxu1 }
 0x22d   : > { %v6550_v18 = vpop.f32.mrb[155].mxu0  ;;  %v6614_v50 = vpop.f32.mrb[155].mxu1 }
 0x22e   : > { %v9231_v52 = vadd.f32 %v6548_v46, %v9081_v21  ;;  %v9234_v19 = vadd.f32 %v6612_v8, %v9084_v40  ;;  %v6551_v54 = vadd.f32 %v6550_v18, %v6549_v41  ;;  %v6615_v36 = vadd.f32 %v6614_v50, %v6613_v29  ;;  %v7812_v40 = vld [vmem:[%s8015_s10 + $0x968] ss:$84 sps:$4 sm:$0xff]   ;;  %v7824_v8 = vld [vmem:[%s8015_s10 + $0x4d8] ss:$84 sps:$4 sm:$0xff]  }
 0x22f   : > { %4877 = vmatmul.mubr.bf16.gmra.mrb[4].mxu1 %v7806_v26  ;;  %4974 = vmatmul.mubr.bf16.gmra.mrb[4].mxu0 %v7809_v14  ;;  %v7829_v18 = vld [vmem:[%s8015_s10 + $0x584] ss:$84 sps:$4 sm:$0xff]   ;;  %v7832_v50 = vld [vmem:[%s8015_s10 + $0x4c] ss:$84 sps:$4 sm:$0xff]  }
 0x230   : > { %v9237_v37 = vadd.f32 %v6551_v54, %v9087_v61  ;;  %v9240_v22 = vadd.f32 %v6615_v36, %v9090_v0  ;;  %4884 = vmatprep.mubr.bf16.mxu1 %v7814_v45  ;;  %4981 = vmatprep.mubr.bf16.mxu0 %v7817_v35 }
 0x232   : > { %v6552_v4 = vpop.f32.mrb[156].mxu0  ;;  %v6616_v21 = vpop.f32.mrb[156].mxu1 }
 0x233   : > { %v6553_v25 = vpop.f32.mrb[157].mxu0  ;;  %v6617_v3 = vpop.f32.mrb[157].mxu1 }
 0x234   : > { %v6554_v39 = vadd.f32 %v6553_v25, %v6552_v4  ;;  %v6618_v11 = vadd.f32 %v6617_v3, %v6616_v21  ;;  %v6555_v2 = vpop.f32.mrb[158].mxu0  ;;  %v6619_v17 = vpop.f32.mrb[158].mxu1 }
 0x235   : > { %v6556_v48 = vpop.f32.mrb[159].mxu0  ;;  %v6620_v61 = vpop.f32.mrb[159].mxu1 }
 0x236   : > { %v9247_v0 = vadd.f32 %v6554_v39, %v9097_v59  ;;  %v9250_v1 = vadd.f32 %v6618_v11, %v9100_v60  ;;  %v6557_v27 = vadd.f32 %v6556_v48, %v6555_v2  ;;  %v6621_v34 = vadd.f32 %v6620_v61, %v6619_v17  ;;  %v7821_v60 = vld [vmem:[%s8015_s10 + $0xa10] ss:$84 sps:$4 sm:$0xff]   ;;  %v7830_v11 = vld [vmem:[%s8015_s10 + $0x48] ss:$84 sps:$4 sm:$0xff]   ;;  %v7836_v48 = vld [vmem:[%s8015_s10 + $0x62c] ss:$84 sps:$4 sm:$0xff]  }
 0x237   : > { %4885 = vmatmul.mubr.bf16.gmra.mrb[8].mxu1 %v7812_v40  ;;  %4982 = vmatmul.mubr.bf16.gmra.mrb[8].mxu0 %v7815_v30  ;;  %v7839_v61 = vld [vmem:[%s8015_s10 + $0xf4] ss:$84 sps:$4 sm:$0xff]  }
 0x238   : > { %v9253_v10 = vadd.f32 %v6557_v27, %v9103_v57  ;;  %v9256_v5 = vadd.f32 %v6621_v34, %v9106_v53  ;;  %4892 = vmatprep.mubr.bf16.mxu1 %v7823_v38  ;;  %4989 = vmatprep.mubr.bf16.mxu0 %v7826_v24 }
 0x23a   : > { %v6558_v26 = vpop.f32.mrb[160].mxu0  ;;  %v6622_v59 = vpop.f32.mrb[160].mxu1 }
 0x23b   : > { %v6559_v14 = vpop.f32.mrb[161].mxu0  ;;  %v6623_v46 = vpop.f32.mrb[161].mxu1 }
 0x23c   : > { %v6560_v41 = vadd.f32 %v6559_v14, %v6558_v26  ;;  %v6624_v29 = vadd.f32 %v6623_v46, %v6622_v59  ;;  %v6561_v45 = vpop.f32.mrb[162].mxu0  ;;  %v6625_v35 = vpop.f32.mrb[162].mxu1 }
 0x23d   : > { %v6562_v54 = vpop.f32.mrb[163].mxu0  ;;  %v6626_v57 = vpop.f32.mrb[163].mxu1 }
 0x23e   : > { %v9263_v53 = vadd.f32 %v6560_v41, %v9113_v42  ;;  %v9266_v36 = vadd.f32 %v6624_v29, %v9116_v16  ;;  %v6563_v4 = vadd.f32 %v6562_v54, %v6561_v45  ;;  %v6627_v21 = vadd.f32 %v6626_v57, %v6625_v35  ;;  %v7827_v16 = vld [vmem:[%s8015_s10 + $0x580] ss:$84 sps:$4 sm:$0xff]   ;;  %v7837_v29 = vld [vmem:[%s8015_s10 + $0xf0] ss:$84 sps:$4 sm:$0xff]  }
 0x23f   : > { %4893 = vmatmul.mubr.bf16.gmra.mrb[12].mxu1 %v7821_v60  ;;  %4990 = vmatmul.mubr.bf16.gmra.mrb[12].mxu0 %v7824_v8  ;;  %v7842_v54 = vld [vmem:[%s8015_s10 + $0x6d4] ss:$84 sps:$4 sm:$0xff]   ;;  %v7845_v57 = vld [vmem:[%s8015_s10 + $0x19c] ss:$84 sps:$4 sm:$0xff]  }
 0x240   : > { %v9269_v25 = vadd.f32 %v6563_v4, %v9119_v49  ;;  %v9272_v3 = vadd.f32 %v6627_v21, %v9122_v15  ;;  %4997 = vmatprep.mubr.bf16.mxu0 %v7829_v18  ;;  %5094 = vmatprep.mubr.bf16.mxu1 %v7832_v50 }
 0x242   : > { %v6564_v40 = vpop.f32.mrb[164].mxu0  ;;  %v6628_v42 = vpop.f32.mrb[164].mxu1 }
 0x243   : > { %v6565_v30 = vpop.f32.mrb[165].mxu0  ;;  %v6629_v39 = vpop.f32.mrb[165].mxu1 }
 0x244   : > { %v6566_v2 = vadd.f32 %v6565_v30, %v6564_v40  ;;  %v6630_v17 = vadd.f32 %v6629_v39, %v6628_v42  ;;  %v6567_v38 = vpop.f32.mrb[166].mxu0  ;;  %v6631_v24 = vpop.f32.mrb[166].mxu1 }
 0x245   : > { %v6568_v27 = vpop.f32.mrb[167].mxu0  ;;  %v6632_v49 = vpop.f32.mrb[167].mxu1 }
 0x246   : > { %v9279_v15 = vadd.f32 %v6566_v2, %v9132_v28  ;;  %v9282_v34 = vadd.f32 %v6630_v17, %v9135_v9  ;;  %v6569_v26 = vadd.f32 %v6568_v27, %v6567_v38  ;;  %v6633_v59 = vadd.f32 %v6632_v49, %v6631_v24  ;;  %v7834_v9 = vld [vmem:[%s8015_s10 + $0x628] ss:$84 sps:$4 sm:$0xff]   ;;  %v7843_v17 = vld [vmem:[%s8015_s10 + $0x198] ss:$84 sps:$4 sm:$0xff]  }
 0x247   : > { %4998 = vmatmul.mubr.bf16.gmra.mrb[16].mxu0 %v7827_v16  ;;  %5095 = vmatmul.mubr.bf16.vlgmr.msra.gmra.mrb[16].mxu1 %v7830_v11  ;;  %v7849_v27 = vld [vmem:[%s8015_s10 + $0x77c] ss:$84 sps:$4 sm:$0xff]   ;;  %v7852_v49 = vld [vmem:[%s8015_s10 + $0x244] ss:$84 sps:$4 sm:$0xff]  }
 0x248   : > { %v9285_v14 = vadd.f32 %v6569_v26, %v9138_v51  ;;  %v9288_v46 = vadd.f32 %v6633_v59, %v9141_v20  ;;  %5005 = vmatprep.mubr.bf16.mxu0 %v7836_v48  ;;  %5102 = vmatprep.mubr.bf16.mxu1 %v7839_v61 }
 0x24a   : > { %v6570_v60 = vpop.f32.mrb[168].mxu0  ;;  %v6634_v28 = vpop.f32.mrb[168].mxu1 }
 0x24b   : > { %v6571_v8 = vpop.f32.mrb[169].mxu0  ;;  %v6635_v41 = vpop.f32.mrb[169].mxu1 }
 0x24c   : > { %v6572_v45 = vadd.f32 %v6571_v8, %v6570_v60  ;;  %v6636_v35 = vadd.f32 %v6635_v41, %v6634_v28  ;;  %v6573_v18 = vpop.f32.mrb[170].mxu0  ;;  %v6637_v50 = vpop.f32.mrb[170].mxu1 }
 0x24d   : > { %v6574_v4 = vpop.f32.mrb[171].mxu0  ;;  %v6638_v51 = vpop.f32.mrb[171].mxu1 }
 0x24e   : > { %v9295_v20 = vadd.f32 %v6572_v45, %v9152_v63  ;;  %v9298_v21 = vadd.f32 %v6636_v35, %v9155_v32  ;;  %v6575_v40 = vadd.f32 %v6574_v4, %v6573_v18  ;;  %v6639_v42 = vadd.f32 %v6638_v51, %v6637_v50  ;;  %v7840_v32 = vld [vmem:[%s8015_s10 + $0x6d0] ss:$84 sps:$4 sm:$0xff]   ;;  %v7850_v35 = vld [vmem:[%s8015_s10 + $0x240] ss:$84 sps:$4 sm:$0xff]  }
 0x24f   : > { %5006 = vmatmul.mubr.bf16.gmra.mrb[20].mxu0 %v7834_v9  ;;  %5103 = vmatmul.mubr.bf16.gmra.mrb[20].mxu1 %v7837_v29  ;;  %v7855_v4 = vld [vmem:[%s8015_s10 + $0x824] ss:$84 sps:$4 sm:$0xff]   ;;  %v7858_v51 = vld [vmem:[%s8015_s10 + $0x2ec] ss:$84 sps:$4 sm:$0xff]  }
 0x250   : > { %v9301_v30 = vadd.f32 %v6575_v40, %v9161_v33  ;;  %v9304_v39 = vadd.f32 %v6639_v42, %v9164_v7  ;;  %5013 = vmatprep.mubr.bf16.mxu0 %v7842_v54  ;;  %5110 = vmatprep.mubr.bf16.mxu1 %v7845_v57 }
 0x252   : > { %v6576_v16 = vpop.f32.mrb[172].mxu0  ;;  %v6640_v63 = vpop.f32.mrb[172].mxu1 }
 0x253   : > { %v6577_v11 = vpop.f32.mrb[173].mxu0  ;;  %v6641_v2 = vpop.f32.mrb[173].mxu1 }
 0x254   : > { %v6578_v38 = vadd.f32 %v6577_v11, %v6576_v16  ;;  %v6642_v24 = vadd.f32 %v6641_v2, %v6640_v63  ;;  %v6579_v48 = vpop.f32.mrb[174].mxu0  ;;  %v6643_v61 = vpop.f32.mrb[174].mxu1 }
 0x255   : > { %v6580_v26 = vpop.f32.mrb[175].mxu0  ;;  %v6644_v33 = vpop.f32.mrb[175].mxu1 }
 0x256   : > { %v9311_v7 = vadd.f32 %v6578_v38, %v9174_v31  ;;  %v9314_v59 = vadd.f32 %v6642_v24, %v9177_v23  ;;  %v6581_v60 = vadd.f32 %v6580_v26, %v6579_v48  ;;  %v6645_v28 = vadd.f32 %v6644_v33, %v6643_v61  ;;  %v7847_v23 = vld [vmem:[%s8015_s10 + $0x778] ss:$84 sps:$4 sm:$0xff]   ;;  %v7856_v24 = vld [vmem:[%s8015_s10 + $0x2e8] ss:$84 sps:$4 sm:$0xff]  }
 0x257   : > { %5014 = vmatmul.mubr.bf16.gmra.mrb[24].mxu0 %v7840_v32  ;;  %5111 = vmatmul.mubr.bf16.gmra.mrb[24].mxu1 %v7843_v17  ;;  %v7862_v26 = vld [vmem:[%s8015_s10 + $0x8cc] ss:$84 sps:$4 sm:$0xff]   ;;  %v7865_v33 = vld [vmem:[%s8015_s10 + $0x394] ss:$84 sps:$4 sm:$0xff]  }
 0x258   : > { %v9317_v8 = vadd.f32 %v6581_v60, %v9183_v55  ;;  %v9320_v41 = vadd.f32 %v6645_v28, %v9186_v13  ;;  %5021 = vmatprep.mubr.bf16.mxu0 %v7849_v27  ;;  %5118 = vmatprep.mubr.bf16.mxu1 %v7852_v49 }
 0x25a   : > { %v6646_v9 = vpop.f32.mrb[176].mxu1  ;;  %v6710_v31 = vpop.f32.mrb[176].mxu0 }
 0x25b   : > { %v6647_v29 = vpop.f32.mrb[177].mxu1  ;;  %v6711_v45 = vpop.f32.mrb[177].mxu0 }
 0x25c   : > { %v6648_v18 = vadd.f32 %v6647_v29, %v6646_v9  ;;  %v6712_v50 = vadd.f32 %v6711_v45, %v6710_v31  ;;  %v6649_v54 = vpop.f32.mrb[178].mxu1  ;;  %v6713_v57 = vpop.f32.mrb[178].mxu0 }
 0x25d   : > { %v6650_v40 = vpop.f32.mrb[179].mxu1  ;;  %v6714_v55 = vpop.f32.mrb[179].mxu0 }
 0x25e   : > { %v9327_v13 = vadd.f32 %v6648_v18, %v9196_v43  ;;  %v9330_v42 = vadd.f32 %v6712_v50, %v9199_v6  ;;  %v6651_v16 = vadd.f32 %v6650_v40, %v6649_v54  ;;  %v6715_v63 = vadd.f32 %v6714_v55, %v6713_v57  ;;  %v7853_v6 = vld [vmem:[%s8015_s10 + $0x820] ss:$84 sps:$4 sm:$0xff]   ;;  %v7863_v50 = vld [vmem:[%s8015_s10 + $0x390] ss:$84 sps:$4 sm:$0xff]  }
 0x25f   : > { %5022 = vmatmul.mubr.bf16.gmra.mrb[28].mxu0 %v7847_v23  ;;  %5119 = vmatmul.mubr.bf16.gmra.mrb[28].mxu1 %v7850_v35  ;;  %v7868_v40 = vld [vmem:[%s8015_s10 + $0x974] ss:$84 sps:$4 sm:$0xff]   ;;  %v7871_v55 = vld [vmem:[%s8015_s10 + $0x43c] ss:$84 sps:$4 sm:$0xff]  }
 0x260   : > { %v9333_v11 = vadd.f32 %v6651_v16, %v9205_v56  ;;  %v9336_v2 = vadd.f32 %v6715_v63, %v9208_v44  ;;  %5029 = vmatprep.mubr.bf16.mxu0 %v7855_v4  ;;  %5126 = vmatprep.mubr.bf16.mxu1 %v7858_v51 }
 0x262   : > { %v6652_v32 = vpop.f32.mrb[180].mxu1  ;;  %v6716_v43 = vpop.f32.mrb[180].mxu0 }
 0x263   : > { %v6653_v17 = vpop.f32.mrb[181].mxu1  ;;  %v6717_v38 = vpop.f32.mrb[181].mxu0 }
 0x264   : > { %v6654_v48 = vadd.f32 %v6653_v17, %v6652_v32  ;;  %v6718_v61 = vadd.f32 %v6717_v38, %v6716_v43  ;;  %v6655_v27 = vpop.f32.mrb[182].mxu1  ;;  %v6719_v49 = vpop.f32.mrb[182].mxu0 }
 0x265   : > { %v6656_v60 = vpop.f32.mrb[183].mxu1  ;;  %v6720_v56 = vpop.f32.mrb[183].mxu0 }
 0x266   : > { %v9343_v44 = vadd.f32 %v6654_v48, %v9215_v47  ;;  %v9346_v28 = vadd.f32 %v6718_v61, %v9218_v58  ;;  %v6657_v9 = vadd.f32 %v6656_v60, %v6655_v27  ;;  %v6721_v31 = vadd.f32 %v6720_v56, %v6719_v49  ;;  %v7860_v58 = vld [vmem:[%s8015_s10 + $0x8c8] ss:$84 sps:$4 sm:$0xff]   ;;  %v7869_v61 = vld [vmem:[%s8015_s10 + $0x438] ss:$84 sps:$4 sm:$0xff]  }
 0x267   : > { %5030 = vmatmul.mubr.bf16.gmra.mrb[32].mxu0 %v7853_v6  ;;  %5127 = vmatmul.mubr.bf16.gmra.mrb[32].mxu1 %v7856_v24  ;;  %v7875_v60 = vld [vmem:[%s8015_s10 + $0xa1c] ss:$84 sps:$4 sm:$0xff]   ;;  %v7878_v56 = vld [vmem:[%s8015_s10 + $0x4e4] ss:$84 sps:$4 sm:$0xff]  }
 0x268   : > { %v9349_v29 = vadd.f32 %v6657_v9, %v9221_v12  ;;  %v9352_v45 = vadd.f32 %v6721_v31, %v9224_v62  ;;  %5037 = vmatprep.mubr.bf16.mxu0 %v7862_v26  ;;  %5134 = vmatprep.mubr.bf16.mxu1 %v7865_v33 }
 0x26a   : > { %v6658_v23 = vpop.f32.mrb[184].mxu1  ;;  %v6722_v47 = vpop.f32.mrb[184].mxu0 }
 0x26b   : > { %v6659_v35 = vpop.f32.mrb[185].mxu1  ;;  %v6723_v18 = vpop.f32.mrb[185].mxu0 }
 0x26c   : > { %v6660_v54 = vadd.f32 %v6659_v35, %v6658_v23  ;;  %v6724_v57 = vadd.f32 %v6723_v18, %v6722_v47  ;;  %v6661_v4 = vpop.f32.mrb[186].mxu1  ;;  %v6725_v51 = vpop.f32.mrb[186].mxu0 }
 0x26d   : > { %v6662_v16 = vpop.f32.mrb[187].mxu1  ;;  %v6726_v12 = vpop.f32.mrb[187].mxu0 }
 0x26e   : > { %v9359_v62 = vadd.f32 %v6660_v54, %v9231_v52  ;;  %v9362_v63 = vadd.f32 %v6724_v57, %v9234_v19  ;;  %v6663_v32 = vadd.f32 %v6662_v16, %v6661_v4  ;;  %v6727_v43 = vadd.f32 %v6726_v12, %v6725_v51  ;;  %v7866_v19 = vld [vmem:[%s8015_s10 + $0x970] ss:$84 sps:$4 sm:$0xff]   ;;  %v7876_v57 = vld [vmem:[%s8015_s10 + $0x4e0] ss:$84 sps:$4 sm:$0xff]  }
 0x26f   : > { %5038 = vmatmul.mubr.bf16.gmra.mrb[36].mxu0 %v7860_v58  ;;  %5135 = vmatmul.mubr.bf16.gmra.mrb[36].mxu1 %v7863_v50  ;;  %v7881_v16 = vld [vmem:[%s8015_s10 + $0x58c] ss:$84 sps:$4 sm:$0xff]   ;;  %v7882_v12 = vld [vmem:[%s8015_s10 + $0x50] ss:$84 sps:$4 sm:$0xff]  }
 0x270   : > { %v9365_v17 = vadd.f32 %v6663_v32, %v9237_v37  ;;  %v9368_v38 = vadd.f32 %v6727_v43, %v9240_v22  ;;  %5045 = vmatprep.mubr.bf16.mxu0 %v7868_v40  ;;  %5142 = vmatprep.mubr.bf16.mxu1 %v7871_v55 }
 0x272   : > { %v6664_v6 = vpop.f32.mrb[188].mxu1  ;;  %v6728_v52 = vpop.f32.mrb[188].mxu0 }
 0x273   : > { %v6665_v24 = vpop.f32.mrb[189].mxu1  ;;  %v6729_v48 = vpop.f32.mrb[189].mxu0 }
 0x274   : > { %v6666_v27 = vadd.f32 %v6665_v24, %v6664_v6  ;;  %v6730_v49 = vadd.f32 %v6729_v48, %v6728_v52  ;;  %v6667_v26 = vpop.f32.mrb[190].mxu1  ;;  %v6731_v33 = vpop.f32.mrb[190].mxu0 }
 0x275   : > { %v6668_v9 = vpop.f32.mrb[191].mxu1  ;;  %v6732_v37 = vpop.f32.mrb[191].mxu0 }
 0x276   : > { %v9375_v22 = vadd.f32 %v6666_v27, %v9247_v0  ;;  %v9378_v31 = vadd.f32 %v6730_v49, %v9250_v1  ;;  %v6669_v23 = vadd.f32 %v6668_v9, %v6667_v26  ;;  %v6733_v47 = vadd.f32 %v6732_v37, %v6731_v33  ;;  %v7873_v1 = vld [vmem:[%s8015_s10 + $0xa18] ss:$84 sps:$4 sm:$0xff]   ;;  %v7886_v9 = vld [vmem:[%s8015_s10 + $0x634] ss:$84 sps:$4 sm:$0xff]  }
 0x277   : > { %5046 = vmatmul.mubr.bf16.gmra.mrb[40].mxu0 %v7866_v19  ;;  %5143 = vmatmul.mubr.bf16.gmra.mrb[40].mxu1 %v7869_v61  ;;  %v7883_v49 = vld [vmem:[%s8015_s10 + $0xf8] ss:$84 sps:$4 sm:$0xff]   ;;  %v7887_v37 = vld [vmem:[%s8015_s10 + $0x1a0] ss:$84 sps:$4 sm:$0xff]  }
 0x278   : > { %v9381_v35 = vadd.f32 %v6669_v23, %v9253_v10  ;;  %v9384_v18 = vadd.f32 %v6733_v47, %v9256_v5  ;;  %5053 = vmatprep.mubr.bf16.mxu0 %v7875_v60  ;;  %5150 = vmatprep.mubr.bf16.mxu1 %v7878_v56 }
 0x27a   : > { %v6670_v58 = vpop.f32.mrb[192].mxu1  ;;  %v6734_v0 = vpop.f32.mrb[192].mxu0 }
 0x27b   : > { %v6671_v50 = vpop.f32.mrb[193].mxu1  ;;  %v6735_v54 = vpop.f32.mrb[193].mxu0 }
 0x27c   : > { %v6672_v4 = vadd.f32 %v6671_v50, %v6670_v58  ;;  %v6736_v51 = vadd.f32 %v6735_v54, %v6734_v0  ;;  %v6673_v40 = vpop.f32.mrb[194].mxu1  ;;  %v6737_v55 = vpop.f32.mrb[194].mxu0 }
 0x27d   : > { %v6674_v32 = vpop.f32.mrb[195].mxu1  ;;  %v6738_v10 = vpop.f32.mrb[195].mxu0 }
 0x27e   : > { %v9391_v5 = vadd.f32 %v6672_v4, %v9263_v53  ;;  %v9394_v43 = vadd.f32 %v6736_v51, %v9266_v36  ;;  %v6675_v6 = vadd.f32 %v6674_v32, %v6673_v40  ;;  %v6739_v52 = vadd.f32 %v6738_v10, %v6737_v55  ;;  %v7879_v36 = vld [vmem:[%s8015_s10 + $0x588] ss:$84 sps:$4 sm:$0xff]   ;;  %v7892_v10 = vld [vmem:[%s8015_s10 + $0x2f0] ss:$84 sps:$4 sm:$0xff]  }
 0x27f   : > { %5054 = vmatmul.mubr.bf16.gmra.mrb[44].mxu0 %v7873_v1  ;;  %5151 = vmatmul.mubr.bf16.gmra.mrb[44].mxu1 %v7876_v57  ;;  %v7888_v51 = vld [vmem:[%s8015_s10 + $0x248] ss:$84 sps:$4 sm:$0xff]  }
 0x280   : > { %v9397_v24 = vadd.f32 %v6675_v6, %v9269_v25  ;;  %v9400_v48 = vadd.f32 %v6739_v52, %v9272_v3  ;;  %5158 = vmatprep.mubr.bf16.mxu1 %v7881_v16  ;;  %7182 = vmatprep.mubr.bf16.mxu0 %v7882_v12  ;;  %v7891_v32 = vld [vmem:[%s8015_s10 + $0x6dc] ss:$84 sps:$4 sm:$0xff]  }
 0x282   : > { %v6676_v19 = vpop.f32.mrb[196].mxu1  ;;  %v6740_v53 = vpop.f32.mrb[196].mxu0 }
 0x283   : > { %v6677_v61 = vpop.f32.mrb[197].mxu1  ;;  %v6741_v27 = vpop.f32.mrb[197].mxu0 }
 0x284   : > { %v6678_v26 = vadd.f32 %v6677_v61, %v6676_v19  ;;  %v6742_v33 = vadd.f32 %v6741_v27, %v6740_v53  ;;  %v6679_v60 = vpop.f32.mrb[198].mxu1  ;;  %v6743_v56 = vpop.f32.mrb[198].mxu0 }
 0x285   : > { %v6680_v23 = vpop.f32.mrb[199].mxu1  ;;  %v6744_v25 = vpop.f32.mrb[199].mxu0 }
 0x286   : > { %v9407_v3 = vadd.f32 %v6678_v26, %v9279_v15  ;;  %v9410_v47 = vadd.f32 %v6742_v33, %v9282_v34  ;;  %v6681_v58 = vadd.f32 %v6680_v23, %v6679_v60  ;;  %v6745_v0 = vadd.f32 %v6744_v25, %v6743_v56  ;;  %v7884_v34 = vld [vmem:[%s8015_s10 + $0x630] ss:$84 sps:$4 sm:$0xff]   ;;  %v7893_v33 = vld [vmem:[%s8015_s10 + $0x398] ss:$84 sps:$4 sm:$0xff]   ;;  %v7897_v25 = vld [vmem:[%s8015_s10 + $0x440] ss:$84 sps:$4 sm:$0xff]  }
 0x287   : > { %5159 = vmatmul.mubr.bf16.gmra.mrb[48].mxu1 %v7879_v36  ;;  %7183 = vmatmul.mubr.bf16.vlgmr.msra.gmra.mrb[48].mxu0 %v7883_v49  ;;  %v7896_v23 = vld [vmem:[%s8015_s10 + $0x784] ss:$84 sps:$4 sm:$0xff]  }
 0x288   : > { %v9413_v50 = vadd.f32 %v6681_v58, %v9285_v14  ;;  %v9416_v54 = vadd.f32 %v6745_v0, %v9288_v46  ;;  %5166 = vmatprep.mubr.bf16.mxu1 %v7886_v9  ;;  %7186 = vmatprep.mubr.bf16.mxu0 %v7887_v37 }
 0x28a   : > { %v6682_v1 = vpop.f32.mrb[200].mxu1  ;;  %v6746_v15 = vpop.f32.mrb[200].mxu0 }
 0x28b   : > { %v6683_v57 = vpop.f32.mrb[201].mxu1  ;;  %v6747_v4 = vpop.f32.mrb[201].mxu0 }
 0x28c   : > { %v6684_v40 = vadd.f32 %v6683_v57, %v6682_v1  ;;  %v6748_v55 = vadd.f32 %v6747_v4, %v6746_v15  ;;  %v6685_v16 = vpop.f32.mrb[202].mxu1  ;;  %v6749_v12 = vpop.f32.mrb[202].mxu0 }
 0x28d   : > { %v6686_v6 = vpop.f32.mrb[203].mxu1  ;;  %v6750_v14 = vpop.f32.mrb[203].mxu0 }
 0x28e   : > { %v9423_v46 = vadd.f32 %v6684_v40, %v9295_v20  ;;  %v9426_v52 = vadd.f32 %v6748_v55, %v9298_v21  ;;  %v6687_v19 = vadd.f32 %v6686_v6, %v6685_v16  ;;  %v6751_v53 = vadd.f32 %v6750_v14, %v6749_v12  ;;  %v7889_v21 = vld [vmem:[%s8015_s10 + $0x6d8] ss:$84 sps:$4 sm:$0xff]   ;;  %v7898_v55 = vld [vmem:[%s8015_s10 + $0x4e8] ss:$84 sps:$4 sm:$0xff]   ;;  %v7902_v14 = vld [vmem:[%s8015_s10 + $0x590] ss:$84 sps:$4 sm:$0xff]  }
 0x28f   : > { %5167 = vmatmul.mubr.bf16.gmra.mrb[52].mxu1 %v7884_v34  ;;  %7187 = vmatmul.mubr.bf16.gmra.mrb[52].mxu0 %v7888_v51  ;;  %v7901_v6 = vld [vmem:[%s8015_s10 + $0x82c] ss:$84 sps:$4 sm:$0xff]  }
 0x290   : > { %v9429_v61 = vadd.f32 %v6687_v19, %v9301_v30  ;;  %v9432_v27 = vadd.f32 %v6751_v53, %v9304_v39  ;;  %5174 = vmatprep.mubr.bf16.mxu1 %v7891_v32  ;;  %7190 = vmatprep.mubr.bf16.mxu0 %v7892_v10 }
 0x292   : > { %v6688_v36 = vpop.f32.mrb[204].mxu1  ;;  %v6752_v20 = vpop.f32.mrb[204].mxu0 }
 0x293   : > { %v6689_v49 = vpop.f32.mrb[205].mxu1  ;;  %v6753_v26 = vpop.f32.mrb[205].mxu0 }
 0x294   : > { %v6690_v60 = vadd.f32 %v6689_v49, %v6688_v36  ;;  %v6754_v56 = vadd.f32 %v6753_v26, %v6752_v20  ;;  %v6691_v9 = vpop.f32.mrb[206].mxu1  ;;  %v6755_v37 = vpop.f32.mrb[206].mxu0 }
 0x295   : > { %v6692_v58 = vpop.f32.mrb[207].mxu1  ;;  %v6756_v30 = vpop.f32.mrb[207].mxu0 }
 0x296   : > { %v9439_v39 = vadd.f32 %v6690_v60, %v9311_v7  ;;  %v9442_v0 = vadd.f32 %v6754_v56, %v9314_v59  ;;  %v6693_v1 = vadd.f32 %v6692_v58, %v6691_v9  ;;  %v6757_v15 = vadd.f32 %v6756_v30, %v6755_v37  ;;  %v7894_v59 = vld [vmem:[%s8015_s10 + $0x780] ss:$84 sps:$4 sm:$0xff]   ;;  %v7903_v56 = vld [vmem:[%s8015_s10 + $0x638] ss:$84 sps:$4 sm:$0xff]  }
 0x297   : > { %5175 = vmatmul.mubr.bf16.gmra.mrb[56].mxu1 %v7889_v21  ;;  %7191 = vmatmul.mubr.bf16.gmra.mrb[56].mxu0 %v7893_v33  ;;  %v7906_v58 = vld [vmem:[%s8015_s10 + $0x8d4] ss:$84 sps:$4 sm:$0xff]  }
 0x298   : > { %v9445_v57 = vadd.f32 %v6693_v1, %v9317_v8  ;;  %v9448_v4 = vadd.f32 %v6757_v15, %v9320_v41  ;;  %5182 = vmatprep.mubr.bf16.mxu1 %v7896_v23  ;;  %7194 = vmatprep.mubr.bf16.mxu0 %v7897_v25  ;;  %v7907_v30 = vld [vmem:[%s8015_s10 + $0x6e0] ss:$84 sps:$4 sm:$0xff]  }
 0x29a   : > { %v6758_v34 = vpop.f32.mrb[208].mxu0  ;;  %v6822_v7 = vpop.f32.mrb[208].mxu1 }
 0x29b   : > { %v6759_v51 = vpop.f32.mrb[209].mxu0  ;;  %v6823_v40 = vpop.f32.mrb[209].mxu1 }
 0x29c   : > { %v6760_v16 = vadd.f32 %v6759_v51, %v6758_v34  ;;  %v6824_v12 = vadd.f32 %v6823_v40, %v6822_v7  ;;  %v6761_v32 = vpop.f32.mrb[210].mxu0  ;;  %v6825_v10 = vpop.f32.mrb[210].mxu1 }
 0x29d   : > { %v6762_v19 = vpop.f32.mrb[211].mxu0  ;;  %v6826_v8 = vpop.f32.mrb[211].mxu1 }
 0x29e   : > { %v9455_v41 = vadd.f32 %v6760_v16, %v9327_v13  ;;  %v9458_v53 = vadd.f32 %v6824_v12, %v9330_v42  ;;  %v6763_v36 = vadd.f32 %v6762_v19, %v6761_v32  ;;  %v6827_v20 = vadd.f32 %v6826_v8, %v6825_v10  ;;  %v7899_v42 = vld [vmem:[%s8015_s10 + $0x828] ss:$84 sps:$4 sm:$0xff]   ;;  %v7912_v8 = vld [vmem:[%s8015_s10 + $0x830] ss:$84 sps:$4 sm:$0xff]  }
 0x29f   : > { %5183 = vmatmul.mubr.bf16.gmra.mrb[60].mxu1 %v7894_v59  ;;  %7195 = vmatmul.mubr.bf16.gmra.mrb[60].mxu0 %v7898_v55  ;;  %v7908_v12 = vld [vmem:[%s8015_s10 + $0x788] ss:$84 sps:$4 sm:$0xff]  }
 0x2a0   : > { %v9461_v49 = vadd.f32 %v6763_v36, %v9333_v11  ;;  %v9464_v26 = vadd.f32 %v6827_v20, %v9336_v2  ;;  %5190 = vmatprep.mubr.bf16.mxu1 %v7901_v6  ;;  %7198 = vmatprep.mubr.bf16.mxu0 %v7902_v14  ;;  %v7911_v19 = vld [vmem:[%s8015_s10 + $0x97c] ss:$84 sps:$4 sm:$0xff]  }
 0x2a2   : > { %v6764_v21 = vpop.f32.mrb[212].mxu0  ;;  %v6828_v13 = vpop.f32.mrb[212].mxu1 }
 0x2a3   : > { %v6765_v33 = vpop.f32.mrb[213].mxu0  ;;  %v6829_v60 = vpop.f32.mrb[213].mxu1 }
 0x2a4   : > { %v6766_v9 = vadd.f32 %v6765_v33, %v6764_v21  ;;  %v6830_v37 = vadd.f32 %v6829_v60, %v6828_v13  ;;  %v6767_v23 = vpop.f32.mrb[214].mxu0  ;;  %v6831_v25 = vpop.f32.mrb[214].mxu1 }
 0x2a5   : > { %v6768_v1 = vpop.f32.mrb[215].mxu0  ;;  %v6832_v11 = vpop.f32.mrb[215].mxu1 }
 0x2a6   : > { %v9471_v2 = vadd.f32 %v6766_v9, %v9343_v44  ;;  %v9474_v15 = vadd.f32 %v6830_v37, %v9346_v28  ;;  %v6769_v34 = vadd.f32 %v6768_v1, %v6767_v23  ;;  %v6833_v7 = vadd.f32 %v6832_v11, %v6831_v25  ;;  %v7904_v28 = vld [vmem:[%s8015_s10 + $0x8d0] ss:$84 sps:$4 sm:$0xff]   ;;  %v7913_v37 = vld [vmem:[%s8015_s10 + $0x8d8] ss:$84 sps:$4 sm:$0xff]   ;;  %v7917_v11 = vld [vmem:[%s8015_s10 + $0x980] ss:$84 sps:$4 sm:$0xff]  }
 0x2a7   : > { %5191 = vmatmul.mubr.bf16.gmra.mrb[64].mxu1 %v7899_v42  ;;  %7199 = vmatmul.mubr.bf16.gmra.mrb[64].mxu0 %v7903_v56  ;;  %v7916_v1 = vld [vmem:[%s8015_s10 + $0xa24] ss:$84 sps:$4 sm:$0xff]  }
 0x2a8   : > { %v9477_v51 = vadd.f32 %v6769_v34, %v9349_v29  ;;  %v9480_v40 = vadd.f32 %v6833_v7, %v9352_v45  ;;  %5198 = vmatprep.mubr.bf16.mxu1 %v7906_v58  ;;  %7202 = vmatprep.mubr.bf16.mxu0 %v7907_v30 }
 0x2aa   : > { %v6770_v59 = vpop.f32.mrb[216].mxu0  ;;  %v6834_v44 = vpop.f32.mrb[216].mxu1 }
 0x2ab   : > { %v6771_v55 = vpop.f32.mrb[217].mxu0  ;;  %v6835_v16 = vpop.f32.mrb[217].mxu1 }
 0x2ac   : > { %v6772_v32 = vadd.f32 %v6771_v55, %v6770_v59  ;;  %v6836_v10 = vadd.f32 %v6835_v16, %v6834_v44  ;;  %v6773_v6 = vpop.f32.mrb[218].mxu0  ;;  %v6837_v14 = vpop.f32.mrb[218].mxu1 }
 0x2ad   : > { %v6774_v36 = vpop.f32.mrb[219].mxu0  ;;  %v6838_v29 = vpop.f32.mrb[219].mxu1 }
 0x2ae   : > { %v9487_v45 = vadd.f32 %v6772_v32, %v9359_v62  ;;  %v9490_v20 = vadd.f32 %v6836_v10, %v9362_v63  ;;  %v6775_v21 = vadd.f32 %v6774_v36, %v6773_v6  ;;  %v6839_v13 = vadd.f32 %v6838_v29, %v6837_v14  ;;  %v7909_v63 = vld [vmem:[%s8015_s10 + $0x978] ss:$84 sps:$4 sm:$0xff]   ;;  %v7914_v10 = vld [vmem:[%s8015_s10 + $0xa20] ss:$84 sps:$4 sm:$0xff]   ;;  %v7918_v6 = vld [vmem:[%s8015_s10 + $0xa28] ss:$84 sps:$4 sm:$0xff]  }
 0x2af   : > { %5199 = vmatmul.mubr.bf16.gmra.mrb[68].mxu1 %v7904_v28  ;;  %7203 = vmatmul.mubr.bf16.gmra.mrb[68].mxu0 %v7908_v12  ;;  %s6021_s10 = sshll.u32 %s9850_s12, 8 }
 0x2b0   : > { %v9493_v33 = vadd.f32 %v6775_v21, %v9365_v17  ;;  %v9496_v60 = vadd.f32 %v6839_v13, %v9368_v38  ;;  %5206 = vmatprep.mubr.bf16.mxu1 %v7911_v19  ;;  %7206 = vmatprep.mubr.bf16.mxu0 %v7912_v8  ;;  %s9760_s4 = scalar_lea.vmem %s9844_s3, %s6021_s10 }
 0x2b2   : > { %v6776_v42 = vpop.f32.mrb[220].mxu0  ;;  %v6840_v62 = vpop.f32.mrb[220].mxu1 }
 0x2b3   : > { %v6777_v56 = vpop.f32.mrb[221].mxu0  ;;  %v6841_v9 = vpop.f32.mrb[221].mxu1 }
 0x2b4   : > { %v6778_v23 = vadd.f32 %v6777_v56, %v6776_v42  ;;  %v6842_v25 = vadd.f32 %v6841_v9, %v6840_v62  ;;  %v6779_v58 = vpop.f32.mrb[222].mxu0  ;;  %v6843_v30 = vpop.f32.mrb[222].mxu1 }
 0x2b5   : > { %v6780_v34 = vpop.f32.mrb[223].mxu0  ;;  %v6844_v17 = vpop.f32.mrb[223].mxu1 }
 0x2b6   : > { %v9503_v38 = vadd.f32 %v6778_v23, %v9375_v22  ;;  %v9506_v7 = vadd.f32 %v6842_v25, %v9378_v31  ;;  %v6781_v59 = vadd.f32 %v6780_v34, %v6779_v58  ;;  %v6845_v44 = vadd.f32 %v6844_v17, %v6843_v30 }
 0x2b7   : > { %5207 = vmatmul.mubr.bf16.gmra.mrb[72].mxu1 %v7909_v63  ;;  %7207 = vmatmul.mubr.bf16.gmra.mrb[72].mxu0 %v7913_v37 }
 0x2b8   : > { %v9509_v55 = vadd.f32 %v6781_v59, %v9381_v35  ;;  %v9512_v16 = vadd.f32 %v6845_v44, %v9384_v18  ;;  %5214 = vmatprep.mubr.bf16.mxu1 %v7916_v1  ;;  %7210 = vmatprep.mubr.bf16.mxu0 %v7917_v11 }
 0x2ba   : > { %v6782_v28 = vpop.f32.mrb[224].mxu0  ;;  %v6846_v12 = vpop.f32.mrb[224].mxu1 }
 0x2bb   : > { %v6783_v32 = vpop.f32.mrb[225].mxu0  ;;  %v6847_v22 = vpop.f32.mrb[225].mxu1 }
 0x2bc   : > { %v6784_v31 = vadd.f32 %v6783_v32, %v6782_v28  ;;  %v6848_v14 = vadd.f32 %v6847_v22, %v6846_v12  ;;  %v6785_v19 = vpop.f32.mrb[226].mxu0  ;;  %v6849_v8 = vpop.f32.mrb[226].mxu1 }
 0x2bd   : > { %v6786_v36 = vpop.f32.mrb[227].mxu0  ;;  %v6850_v29 = vpop.f32.mrb[227].mxu1 }
 0x2be   : > { %v9517_v35 = vadd.f32 %v6784_v31, %v9391_v5  ;;  %v9520_v18 = vadd.f32 %v6848_v14, %v9394_v43  ;;  %v6787_v21 = vadd.f32 %v6786_v36, %v6785_v19  ;;  %v6851_v13 = vadd.f32 %v6850_v29, %v6849_v8 }
 0x2bf   : > { %5215 = vmatmul.mubr.bf16.gmra.mrb[76].mxu1 %v7914_v10  ;;  %7211 = vmatmul.mubr.bf16.gmra.mrb[76].mxu0 %v7918_v6 }
 0x2c0   : > { %v9523_v42 = vadd.f32 %v6787_v21, %v9397_v24  ;;  %v9526_v62 = vadd.f32 %v6851_v13, %v9400_v48 }
 0x2c2   : > { %v6788_v56 = vpop.f32.mrb[228].mxu0  ;;  %v6852_v9 = vpop.f32.mrb[228].mxu1 }
 0x2c3   : > { %v6789_v63 = vpop.f32.mrb[229].mxu0  ;;  %v6853_v37 = vpop.f32.mrb[229].mxu1 }
 0x2c4   : > { %v6790_v23 = vadd.f32 %v6789_v63, %v6788_v56  ;;  %v6854_v5 = vadd.f32 %v6853_v37, %v6852_v9  ;;  %v6791_v25 = vpop.f32.mrb[230].mxu0  ;;  %v6855_v58 = vpop.f32.mrb[230].mxu1 }
 0x2c5   : > { %v6792_v43 = vpop.f32.mrb[231].mxu0  ;;  %v6856_v30 = vpop.f32.mrb[231].mxu1 }
 0x2c6   : > { %v9529_v1 = vadd.f32 %v6790_v23, %v9407_v3  ;;  %v9532_v11 = vadd.f32 %v6854_v5, %v9410_v47  ;;  %v6793_v24 = vadd.f32 %v6792_v43, %v6791_v25  ;;  %v6857_v34 = vadd.f32 %v6856_v30, %v6855_v58 }
 0x2c8   : > { %v9535_v48 = vadd.f32 %v6793_v24, %v9413_v50  ;;  %v9538_v17 = vadd.f32 %v6857_v34, %v9416_v54 }
 0x2ca   : > { %v6794_v59 = vpop.f32.mrb[232].mxu0  ;;  %v6858_v44 = vpop.f32.mrb[232].mxu1 }
 0x2cb   : > { %v6795_v28 = vpop.f32.mrb[233].mxu0  ;;  %v6859_v12 = vpop.f32.mrb[233].mxu1 }
 0x2cc   : > { %v6796_v32 = vadd.f32 %v6795_v28, %v6794_v59  ;;  %v6860_v22 = vadd.f32 %v6859_v12, %v6858_v44  ;;  %v6797_v10 = vpop.f32.mrb[234].mxu0  ;;  %v6861_v3 = vpop.f32.mrb[234].mxu1 }
 0x2cd   : > { %v6798_v6 = vpop.f32.mrb[235].mxu0  ;;  %v6862_v31 = vpop.f32.mrb[235].mxu1 }
 0x2ce   : > { %v9541_v47 = vadd.f32 %v6796_v32, %v9423_v46  ;;  %v9544_v14 = vadd.f32 %v6860_v22, %v9426_v52  ;;  %v6799_v50 = vadd.f32 %v6798_v6, %v6797_v10  ;;  %v6863_v19 = vadd.f32 %v6862_v31, %v6861_v3 }
 0x2d0   : > { %v9547_v54 = vadd.f32 %v6799_v50, %v9429_v61  ;;  %v9550_v8 = vadd.f32 %v6863_v19, %v9432_v27 }
 0x2d2   : > { %v6800_v36 = vpop.f32.mrb[236].mxu0  ;;  %v6864_v29 = vpop.f32.mrb[236].mxu1 }
 0x2d3   : > { %v6801_v21 = vpop.f32.mrb[237].mxu0  ;;  %v6865_v13 = vpop.f32.mrb[237].mxu1 }
 0x2d4   : > { %v6802_v56 = vadd.f32 %v6801_v21, %v6800_v36  ;;  %v6866_v9 = vadd.f32 %v6865_v13, %v6864_v29  ;;  %v6803_v63 = vpop.f32.mrb[238].mxu0  ;;  %v6867_v46 = vpop.f32.mrb[238].mxu1 }
 0x2d5   : > { %v6804_v37 = vpop.f32.mrb[239].mxu0  ;;  %v6868_v23 = vpop.f32.mrb[239].mxu1 }
 0x2d6   : > { %v9553_v52 = vadd.f32 %v6802_v56, %v9439_v39  ;;  %v9556_v5 = vadd.f32 %v6866_v9, %v9442_v0  ;;  %v6805_v61 = vadd.f32 %v6804_v37, %v6803_v63  ;;  %v6869_v25 = vadd.f32 %v6868_v23, %v6867_v46 }
 0x2d8   : > { %v9559_v27 = vadd.f32 %v6805_v61, %v9445_v57  ;;  %v9562_v58 = vadd.f32 %v6869_v25, %v9448_v4 }
 0x2da   : > { %v6870_v43 = vpop.f32.mrb[240].mxu1  ;;  %v6934_v30 = vpop.f32.mrb[240].mxu0 }
 0x2db   : > { %v6871_v24 = vpop.f32.mrb[241].mxu1  ;;  %v6935_v34 = vpop.f32.mrb[241].mxu0 }
 0x2dc   : > { %v6872_v59 = vadd.f32 %v6871_v24, %v6870_v43  ;;  %v6936_v44 = vadd.f32 %v6935_v34, %v6934_v30  ;;  %v6873_v28 = vpop.f32.mrb[242].mxu1  ;;  %v6937_v39 = vpop.f32.mrb[242].mxu0 }
 0x2dd   : > { %v6874_v12 = vpop.f32.mrb[243].mxu1  ;;  %v6938_v32 = vpop.f32.mrb[243].mxu0 }
 0x2de   : > { %v9565_v0 = vadd.f32 %v6872_v59, %v9455_v41  ;;  %v9568_v22 = vadd.f32 %v6936_v44, %v9458_v53  ;;  %v6875_v57 = vadd.f32 %v6874_v12, %v6873_v28  ;;  %v6939_v10 = vadd.f32 %v6938_v32, %v6937_v39 }
 0x2e0   : > { %v9571_v4 = vadd.f32 %v6875_v57, %v9461_v49  ;;  %v9574_v3 = vadd.f32 %v6939_v10, %v9464_v26 }
 0x2e2   : > { %v6876_v6 = vpop.f32.mrb[244].mxu1  ;;  %v6940_v31 = vpop.f32.mrb[244].mxu0 }
 0x2e3   : > { %v6877_v50 = vpop.f32.mrb[245].mxu1  ;;  %v6941_v19 = vpop.f32.mrb[245].mxu0 }
 0x2e4   : > { %v6878_v36 = vadd.f32 %v6877_v50, %v6876_v6  ;;  %v6942_v29 = vadd.f32 %v6941_v19, %v6940_v31  ;;  %v6879_v21 = vpop.f32.mrb[246].mxu1  ;;  %v6943_v41 = vpop.f32.mrb[246].mxu0 }
 0x2e5   : > { %v6880_v13 = vpop.f32.mrb[247].mxu1  ;;  %v6944_v56 = vpop.f32.mrb[247].mxu0 }
 0x2e6   : > { %v9577_v53 = vadd.f32 %v6878_v36, %v9471_v2  ;;  %v9580_v9 = vadd.f32 %v6942_v29, %v9474_v15  ;;  %v6881_v49 = vadd.f32 %v6880_v13, %v6879_v21  ;;  %v6945_v63 = vadd.f32 %v6944_v56, %v6943_v41 }
 0x2e8   : > { %v9583_v26 = vadd.f32 %v6881_v49, %v9477_v51  ;;  %v9586_v46 = vadd.f32 %v6945_v63, %v9480_v40 }
 0x2ea   : > { %v6882_v37 = vpop.f32.mrb[248].mxu1  ;;  %v6946_v23 = vpop.f32.mrb[248].mxu0 }
 0x2eb   : > { %v6883_v61 = vpop.f32.mrb[249].mxu1  ;;  %v6947_v25 = vpop.f32.mrb[249].mxu0 }
 0x2ec   : > { %v6884_v43 = vadd.f32 %v6883_v61, %v6882_v37  ;;  %v6948_v30 = vadd.f32 %v6947_v25, %v6946_v23  ;;  %v6885_v24 = vpop.f32.mrb[250].mxu1  ;;  %v6949_v2 = vpop.f32.mrb[250].mxu0 }
 0x2ed   : > { %v6886_v34 = vpop.f32.mrb[251].mxu1  ;;  %v6950_v59 = vpop.f32.mrb[251].mxu0 }
 0x2ee   : > { %v9589_v15 = vadd.f32 %v6884_v43, %v9487_v45  ;;  %v9592_v44 = vadd.f32 %v6948_v30, %v9490_v20  ;;  %v6887_v51 = vadd.f32 %v6886_v34, %v6885_v24  ;;  %v6951_v28 = vadd.f32 %v6950_v59, %v6949_v2 }
 0x2f0   : > { %v9595_v40 = vadd.f32 %v6887_v51, %v9493_v33  ;;  %v9598_v39 = vadd.f32 %v6951_v28, %v9496_v60 }
 0x2f2   : > { %v6888_v12 = vpop.f32.mrb[252].mxu1  ;;  %v6952_v32 = vpop.f32.mrb[252].mxu0 }
 0x2f3   : > { %v6889_v57 = vpop.f32.mrb[253].mxu1  ;;  %v6953_v10 = vpop.f32.mrb[253].mxu0 }
 0x2f4   : > { %v6890_v6 = vadd.f32 %v6889_v57, %v6888_v12  ;;  %v6954_v31 = vadd.f32 %v6953_v10, %v6952_v32  ;;  %v6891_v50 = vpop.f32.mrb[254].mxu1  ;;  %v6955_v45 = vpop.f32.mrb[254].mxu0 }
 0x2f5   : > { %v6892_v19 = vpop.f32.mrb[255].mxu1  ;;  %v6956_v36 = vpop.f32.mrb[255].mxu0 }
 0x2f6   : > { %v9601_v20 = vadd.f32 %v6890_v6, %v9503_v38  ;;  %v9604_v29 = vadd.f32 %v6954_v31, %v9506_v7  ;;  %v6893_v33 = vadd.f32 %v6892_v19, %v6891_v50  ;;  %v6957_v21 = vadd.f32 %v6956_v36, %v6955_v45 }
 0x2f8   : > { %v9607_v60 = vadd.f32 %v6893_v33, %v9509_v55  ;;  %v9610_v41 = vadd.f32 %v6957_v21, %v9512_v16 }
 0x2fa   : > { %v6894_v13 = vpop.f32.mrb[0].mxu1  ;;  %v6958_v56 = vpop.f32.mrb[0].mxu0 }
 0x2fb   : > { %v6895_v49 = vpop.f32.mrb[1].mxu1  ;;  %v6959_v63 = vpop.f32.mrb[1].mxu0 }
 0x2fc   : > { %v6896_v37 = vadd.f32 %v6895_v49, %v6894_v13  ;;  %v6960_v23 = vadd.f32 %v6959_v63, %v6958_v56  ;;  %v6897_v61 = vpop.f32.mrb[2].mxu1  ;;  %v6961_v38 = vpop.f32.mrb[2].mxu0 }
 0x2fd   : > { %v6898_v25 = vpop.f32.mrb[3].mxu1  ;;  %v6962_v43 = vpop.f32.mrb[3].mxu0 }
 0x2fe   : > { %v9613_v7 = vadd.f32 %v6896_v37, %v9517_v35  ;;  %v9616_v30 = vadd.f32 %v6960_v23, %v9520_v18  ;;  %v6899_v55 = vadd.f32 %v6898_v25, %v6897_v61  ;;  %v6963_v24 = vadd.f32 %v6962_v43, %v6961_v38 }
 0x300   : > { %v9619_v16 = vadd.f32 %v6899_v55, %v9523_v42  ;;  %v9622_v2 = vadd.f32 %v6963_v24, %v9526_v62 }
 0x302   : > { %v6900_v34 = vpop.f32.mrb[4].mxu1  ;;  %v6964_v59 = vpop.f32.mrb[4].mxu0 }
 0x303   : > { %v6901_v51 = vpop.f32.mrb[5].mxu1  ;;  %v6965_v28 = vpop.f32.mrb[5].mxu0 }
 0x304   : > { %v6902_v12 = vadd.f32 %v6901_v51, %v6900_v34  ;;  %v6966_v32 = vadd.f32 %v6965_v28, %v6964_v59  ;;  %v6903_v57 = vpop.f32.mrb[6].mxu1  ;;  %v6967_v35 = vpop.f32.mrb[6].mxu0 }
 0x305   : > { %v6904_v10 = vpop.f32.mrb[7].mxu1  ;;  %v6968_v6 = vpop.f32.mrb[7].mxu0 }
 0x306   : > { %v9625_v18 = vadd.f32 %v6902_v12, %v9529_v1  ;;  %v9628_v31 = vadd.f32 %v6966_v32, %v9532_v11  ;;  %v6905_v42 = vadd.f32 %v6904_v10, %v6903_v57  ;;  %v6969_v50 = vadd.f32 %v6968_v6, %v6967_v35 }
 0x308   : > { %v9631_v62 = vadd.f32 %v6905_v42, %v9535_v48  ;;  %v9634_v45 = vadd.f32 %v6969_v50, %v9538_v17 }
 0x30a   : > { %v6906_v19 = vpop.f32.mrb[8].mxu1  ;;  %v6970_v36 = vpop.f32.mrb[8].mxu0 }
 0x30b   : > { %v6907_v33 = vpop.f32.mrb[9].mxu1  ;;  %v6971_v21 = vpop.f32.mrb[9].mxu0 }
 0x30c   : > { %v6908_v13 = vadd.f32 %v6907_v33, %v6906_v19  ;;  %v6972_v56 = vadd.f32 %v6971_v21, %v6970_v36  ;;  %v6909_v49 = vpop.f32.mrb[10].mxu1  ;;  %v6973_v1 = vpop.f32.mrb[10].mxu0 }
 0x30d   : > { %v6910_v63 = vpop.f32.mrb[11].mxu1  ;;  %v6974_v37 = vpop.f32.mrb[11].mxu0 }
 0x30e   : > { %v9637_v11 = vadd.f32 %v6908_v13, %v9541_v47  ;;  %v9640_v23 = vadd.f32 %v6972_v56, %v9544_v14  ;;  %v6911_v48 = vadd.f32 %v6910_v63, %v6909_v49  ;;  %v6975_v61 = vadd.f32 %v6974_v37, %v6973_v1 }
 0x310   : > { %v9643_v17 = vadd.f32 %v6911_v48, %v9547_v54  ;;  %v9646_v38 = vadd.f32 %v6975_v61, %v9550_v8 }
 0x312   : > { %v6912_v25 = vpop.f32.mrb[12].mxu1  ;;  %v6976_v43 = vpop.f32.mrb[12].mxu0 }
 0x313   : > { %v6913_v55 = vpop.f32.mrb[13].mxu1  ;;  %v6977_v24 = vpop.f32.mrb[13].mxu0 }
 0x314   : > { %v6914_v34 = vadd.f32 %v6913_v55, %v6912_v25  ;;  %v6978_v59 = vadd.f32 %v6977_v24, %v6976_v43  ;;  %v6915_v51 = vpop.f32.mrb[14].mxu1  ;;  %v6979_v47 = vpop.f32.mrb[14].mxu0 }
 0x315   : > { %v6916_v28 = vpop.f32.mrb[15].mxu1  ;;  %v6980_v12 = vpop.f32.mrb[15].mxu0 }
 0x316   : > { %v9649_v14 = vadd.f32 %v6914_v34, %v9553_v52  ;;  %v9652_v32 = vadd.f32 %v6978_v59, %v9556_v5  ;;  %v6917_v54 = vadd.f32 %v6916_v28, %v6915_v51  ;;  %v6981_v57 = vadd.f32 %v6980_v12, %v6979_v47 }
 0x318   : > { %v9655_v8 = vadd.f32 %v6917_v54, %v9559_v27  ;;  %v9658_v35 = vadd.f32 %v6981_v57, %v9562_v58 }
 0x31a   : > { %v6982_v10 = vpop.f32.mrb[16].mxu0  ;;  %v7046_v6 = vpop.f32.mrb[16].mxu1 }
 0x31b   : > { %v6983_v42 = vpop.f32.mrb[17].mxu0  ;;  %v7047_v50 = vpop.f32.mrb[17].mxu1 }
 0x31c   : > { %v6984_v19 = vadd.f32 %v6983_v42, %v6982_v10  ;;  %v7048_v36 = vadd.f32 %v7047_v50, %v7046_v6  ;;  %v6985_v33 = vpop.f32.mrb[18].mxu0  ;;  %v7049_v52 = vpop.f32.mrb[18].mxu1 }
 0x31d   : > { %v6986_v21 = vpop.f32.mrb[19].mxu0  ;;  %v7050_v13 = vpop.f32.mrb[19].mxu1 }
 0x31e   : > { %v9661_v5 = vadd.f32 %v6984_v19, %v9565_v0  ;;  %v6987_v56 = vadd.f32 %v6986_v21, %v6985_v33  ;;  %v7051_v49 = vadd.f32 %v7050_v13, %v7049_v52  ;;  %v9664_v27 = vadd.f32 %v7048_v36, %v9568_v22 }
 0x320   : > { %v9667_v58 = vadd.f32 %v6987_v56, %v9571_v4  ;;  %v9670_v1 = vadd.f32 %v7051_v49, %v9574_v3 }
 0x322   : > { %v6988_v63 = vpop.f32.mrb[20].mxu0  ;;  %v7052_v37 = vpop.f32.mrb[20].mxu1 }
 0x323   : > { %v6989_v48 = vpop.f32.mrb[21].mxu0  ;;  %v7053_v61 = vpop.f32.mrb[21].mxu1 }
 0x324   : > { %v6990_v25 = vadd.f32 %v6989_v48, %v6988_v63  ;;  %v7054_v43 = vadd.f32 %v7053_v61, %v7052_v37  ;;  %v6991_v55 = vpop.f32.mrb[22].mxu0  ;;  %v7055_v0 = vpop.f32.mrb[22].mxu1 }
 0x325   : > { %v6992_v24 = vpop.f32.mrb[23].mxu0  ;;  %v7056_v34 = vpop.f32.mrb[23].mxu1 }
 0x326   : > { %v9673_v59 = vadd.f32 %v6990_v25, %v9577_v53  ;;  %v6993_v22 = vadd.f32 %v6992_v24, %v6991_v55  ;;  %v7057_v51 = vadd.f32 %v7056_v34, %v7055_v0  ;;  %v9676_v4 = vadd.f32 %v7054_v43, %v9580_v9 }
 0x328   : > { %v9679_v3 = vadd.f32 %v6993_v22, %v9583_v26  ;;  %v9682_v47 = vadd.f32 %v7057_v51, %v9586_v46 }
 0x32a   : > { %v6994_v28 = vpop.f32.mrb[24].mxu0  ;;  %v7058_v12 = vpop.f32.mrb[24].mxu1 }
 0x32b   : > { %v6995_v54 = vpop.f32.mrb[25].mxu0  ;;  %v7059_v57 = vpop.f32.mrb[25].mxu1 }
 0x32c   : > { %v6996_v10 = vadd.f32 %v6995_v54, %v6994_v28  ;;  %v7060_v6 = vadd.f32 %v7059_v57, %v7058_v12  ;;  %v6997_v42 = vpop.f32.mrb[26].mxu0  ;;  %v7061_v53 = vpop.f32.mrb[26].mxu1 }
 0x32d   : > { %v6998_v50 = vpop.f32.mrb[27].mxu0  ;;  %v7062_v19 = vpop.f32.mrb[27].mxu1 }
 0x32e   : > { %v9685_v36 = vadd.f32 %v6996_v10, %v9589_v15  ;;  %v6999_v9 = vadd.f32 %v6998_v50, %v6997_v42  ;;  %v7063_v33 = vadd.f32 %v7062_v19, %v7061_v53  ;;  %v9688_v26 = vadd.f32 %v7060_v6, %v9592_v44 }
 0x330   : > { %v9691_v46 = vadd.f32 %v6999_v9, %v9595_v40  ;;  %v9694_v52 = vadd.f32 %v7063_v33, %v9598_v39 }
 0x332   : > { %v7000_v21 = vpop.f32.mrb[28].mxu0  ;;  %v7064_v13 = vpop.f32.mrb[28].mxu1 }
 0x333   : > { %v7001_v56 = vpop.f32.mrb[29].mxu0  ;;  %v7065_v49 = vpop.f32.mrb[29].mxu1 }
 0x334   : > { %v7002_v63 = vadd.f32 %v7001_v56, %v7000_v21  ;;  %v7066_v37 = vadd.f32 %v7065_v49, %v7064_v13  ;;  %v7003_v48 = vpop.f32.mrb[30].mxu0  ;;  %v7067_v15 = vpop.f32.mrb[30].mxu1 }
 0x335   : > { %v7004_v61 = vpop.f32.mrb[31].mxu0  ;;  %v7068_v25 = vpop.f32.mrb[31].mxu1 }
 0x336   : > { %v9697_v43 = vadd.f32 %v7002_v63, %v9601_v20  ;;  %v7005_v44 = vadd.f32 %v7004_v61, %v7003_v48  ;;  %v7069_v55 = vadd.f32 %v7068_v25, %v7067_v15  ;;  %v9700_v40 = vadd.f32 %v7066_v37, %v9604_v29 }
 0x338   : > { %v9703_v39 = vadd.f32 %v7005_v44, %v9607_v60  ;;  %v9706_v0 = vadd.f32 %v7069_v55, %v9610_v41 }
 0x33a   : > { %v7006_v24 = vpop.f32.mrb[32].mxu0  ;;  %v7070_v34 = vpop.f32.mrb[32].mxu1 }
 0x33b   : > { %v7007_v22 = vpop.f32.mrb[33].mxu0  ;;  %v7071_v51 = vpop.f32.mrb[33].mxu1 }
 0x33c   : > { %v7008_v28 = vadd.f32 %v7007_v22, %v7006_v24  ;;  %v7072_v12 = vadd.f32 %v7071_v51, %v7070_v34  ;;  %v7009_v54 = vpop.f32.mrb[34].mxu0  ;;  %v7073_v20 = vpop.f32.mrb[34].mxu1 }
 0x33d   : > { %v7010_v57 = vpop.f32.mrb[35].mxu0  ;;  %v7074_v10 = vpop.f32.mrb[35].mxu1 }
 0x33e   : > { %v9709_v6 = vadd.f32 %v7008_v28, %v9613_v7  ;;  %v7011_v29 = vadd.f32 %v7010_v57, %v7009_v54  ;;  %v7075_v42 = vadd.f32 %v7074_v10, %v7073_v20  ;;  %v9712_v60 = vadd.f32 %v7072_v12, %v9616_v30 }
 0x340   : > { %v9715_v41 = vadd.f32 %v7011_v29, %v9619_v16  ;;  %v9718_v53 = vadd.f32 %v7075_v42, %v9622_v2 }
 0x342   : > { %v7012_v50 = vpop.f32.mrb[36].mxu0  ;;  %v7076_v19 = vpop.f32.mrb[36].mxu1 }
 0x343   : > { %v7013_v9 = vpop.f32.mrb[37].mxu0  ;;  %v7077_v33 = vpop.f32.mrb[37].mxu1 }
 0x344   : > { %v7014_v21 = vadd.f32 %v7013_v9, %v7012_v50  ;;  %v7078_v13 = vadd.f32 %v7077_v33, %v7076_v19  ;;  %v7015_v56 = vpop.f32.mrb[38].mxu0  ;;  %v7079_v7 = vpop.f32.mrb[38].mxu1 }
 0x345   : > { %v7016_v49 = vpop.f32.mrb[39].mxu0  ;;  %v7080_v63 = vpop.f32.mrb[39].mxu1 }
 0x346   : > { %v9721_v37 = vadd.f32 %v7014_v21, %v9625_v18  ;;  %v7017_v30 = vadd.f32 %v7016_v49, %v7015_v56  ;;  %v7081_v48 = vadd.f32 %v7080_v63, %v7079_v7  ;;  %v9724_v16 = vadd.f32 %v7078_v13, %v9628_v31 }
 0x348   : > { %v9727_v2 = vadd.f32 %v7017_v30, %v9631_v62  ;;  %v9730_v15 = vadd.f32 %v7081_v48, %v9634_v45 }
 0x34a   : > { %v7018_v61 = vpop.f32.mrb[40].mxu0  ;;  %v7082_v25 = vpop.f32.mrb[40].mxu1 }
 0x34b   : > { %v7019_v44 = vpop.f32.mrb[41].mxu0  ;;  %v7083_v55 = vpop.f32.mrb[41].mxu1 }
 0x34c   : > { %v7020_v24 = vadd.f32 %v7019_v44, %v7018_v61  ;;  %v7084_v34 = vadd.f32 %v7083_v55, %v7082_v25  ;;  %v7021_v22 = vpop.f32.mrb[42].mxu0  ;;  %v7085_v18 = vpop.f32.mrb[42].mxu1 }
 0x34d   : > { %v7022_v51 = vpop.f32.mrb[43].mxu0  ;;  %v7086_v28 = vpop.f32.mrb[43].mxu1 }
 0x34e   : > { %v9733_v12 = vadd.f32 %v7020_v24, %v9637_v11  ;;  %v7023_v31 = vadd.f32 %v7022_v51, %v7021_v22  ;;  %v7087_v54 = vadd.f32 %v7086_v28, %v7085_v18  ;;  %v9736_v62 = vadd.f32 %v7084_v34, %v9640_v23 }
 0x350   : > { %v9739_v45 = vadd.f32 %v7023_v31, %v9643_v17  ;;  %v9742_v20 = vadd.f32 %v7087_v54, %v9646_v38 }
 0x352   : > { %v7024_v57 = vpop.f32.mrb[44].mxu0  ;;  %v7088_v10 = vpop.f32.mrb[44].mxu1 }
 0x353   : > { %v7025_v29 = vpop.f32.mrb[45].mxu0  ;;  %v7089_v42 = vpop.f32.mrb[45].mxu1 }
 0x354   : > { %v7026_v50 = vadd.f32 %v7025_v29, %v7024_v57  ;;  %v7090_v19 = vadd.f32 %v7089_v42, %v7088_v10  ;;  %v7027_v11 = vpop.f32.mrb[46].mxu0  ;;  %v7091_v9 = vpop.f32.mrb[46].mxu1 }
 0x355   : > { %v7028_v33 = vpop.f32.mrb[47].mxu0  ;;  %v7092_v21 = vpop.f32.mrb[47].mxu1 }
 0x356   : > { %v9745_v23 = vadd.f32 %v7026_v50, %v9649_v14  ;;  %v7029_v13 = vadd.f32 %v7028_v33, %v7027_v11  ;;  %v7093_v17 = vadd.f32 %v7092_v21, %v7091_v9  ;;  %v9748_v56 = vadd.f32 %v7090_v19, %v9652_v32 }
 0x358   : > { %v9752_v38 = vadd.f32 %v7029_v13, %v9655_v8  ;;  %v9755_v7 = vadd.f32 %v7093_v17, %v9658_v35 }
 0x35a   : > { %v7094_v49 = vpop.f32.mrb[48].mxu1  ;;  %v7184_v14 = vpop.f32.mrb[48].mxu0 }
 0x35b   : > { %v5266_v32 = vadd.f32 %v7184_v14, %v9676_v4  ;;  %v7095_v63 = vpop.f32.mrb[49].mxu1  ;;  %v5257_v30 = vpop.f32.mrb[49].mxu0 }
 0x35c   : > { %v7096_v8 = vadd.f32 %v7095_v63, %v7094_v49  ;;  %v5258_v48 = vadd.f32 %v5257_v30, %v9664_v27  ;;  %v7097_v35 = vpop.f32.mrb[50].mxu1  ;;  %v7185_v61 = vpop.f32.mrb[50].mxu0 }
 0x35d   : > { %5386 = vst [vmem:[%s9760_s4 + $0x10] sm:$0xff] %v5266_v32  ;;  %v5269_v25 = vadd.f32 %v7185_v61, %v9682_v47  ;;  %v7098_v44 = vpop.f32.mrb[51].mxu1  ;;  %v5260_v55 = vpop.f32.mrb[51].mxu0 }
 0x35e   : > { %5384 = vst [vmem:[%s9760_s4] sm:$0xff] %v5258_v48  ;;  %v7099_v24 = vadd.f32 %v7098_v44, %v7097_v35  ;;  %v5261_v34 = vadd.f32 %v5260_v55, %v9670_v1  ;;  %v9769_v4 = vadd.f32 %v7096_v8, %v9661_v5 }
 0x35f   : > { %5387 = vst [vmem:[%s9760_s4 + $0x18] sm:$0xff] %v5269_v25 }
 0x360   : > { %5385 = vst [vmem:[%s9760_s4 + $0x8] sm:$0xff] %v5261_v34  ;;  %v9774_v27 = vadd.f32 %v7099_v24, %v9667_v58 }
 0x362   : > { %v7100_v22 = vpop.f32.mrb[52].mxu1  ;;  %v7188_v18 = vpop.f32.mrb[52].mxu0 }
 0x363   : > { %v5282_v47 = vadd.f32 %v7188_v18, %v9700_v40  ;;  %v7101_v51 = vpop.f32.mrb[53].mxu1  ;;  %v5273_v28 = vpop.f32.mrb[53].mxu0 }
 0x364   : > { %v7102_v31 = vadd.f32 %v7101_v51, %v7100_v22  ;;  %v5274_v1 = vadd.f32 %v5273_v28, %v9688_v26  ;;  %v7103_v54 = vpop.f32.mrb[54].mxu1  ;;  %v7189_v5 = vpop.f32.mrb[54].mxu0 }
 0x365   : > { %5390 = vst [vmem:[%s9760_s4 + $0x30] sm:$0xff] %v5282_v47  ;;  %v5285_v57 = vadd.f32 %v7189_v5, %v9706_v0  ;;  %v7104_v10 = vpop.f32.mrb[55].mxu1  ;;  %v5276_v29 = vpop.f32.mrb[55].mxu0 }
 0x366   : > { %5388 = vst [vmem:[%s9760_s4 + $0x20] sm:$0xff] %v5274_v1  ;;  %v7105_v58 = vadd.f32 %v7104_v10, %v7103_v54  ;;  %v5277_v42 = vadd.f32 %v5276_v29, %v9694_v52  ;;  %v5169_v40 = vadd.f32 %v7102_v31, %v9673_v59 }
 0x367   : > { %5391 = vst [vmem:[%s9760_s4 + $0x38] sm:$0xff] %v5285_v57 }
 0x368   : > { %5389 = vst [vmem:[%s9760_s4 + $0x28] sm:$0xff] %v5277_v42  ;;  %v5172_v50 = vadd.f32 %v7105_v58, %v9679_v3 }
 0x36a   : > { %v7106_v26 = vpop.f32.mrb[56].mxu1  ;;  %v7192_v19 = vpop.f32.mrb[56].mxu0 }
 0x36b   : > { %v5298_v11 = vadd.f32 %v7192_v19, %v9724_v16  ;;  %v7107_v0 = vpop.f32.mrb[57].mxu1  ;;  %v5289_v9 = vpop.f32.mrb[57].mxu0 }
 0x36c   : > { %v7108_v33 = vadd.f32 %v7107_v0, %v7106_v26  ;;  %v5290_v21 = vadd.f32 %v5289_v9, %v9712_v60  ;;  %v7109_v13 = vpop.f32.mrb[58].mxu1  ;;  %v7193_v52 = vpop.f32.mrb[58].mxu0 }
 0x36d   : > { %5394 = vst [vmem:[%s9760_s4 + $0x50] sm:$0xff] %v5298_v11  ;;  %v5301_v59 = vadd.f32 %v7193_v52, %v9730_v15  ;;  %v7110_v17 = vpop.f32.mrb[59].mxu1  ;;  %v5292_v49 = vpop.f32.mrb[59].mxu0 }
 0x36e   : > { %5392 = vst [vmem:[%s9760_s4 + $0x40] sm:$0xff] %v5290_v21  ;;  %v7111_v3 = vadd.f32 %v7110_v17, %v7109_v13  ;;  %v5293_v14 = vadd.f32 %v5292_v49, %v9718_v53  ;;  %v5177_v16 = vadd.f32 %v7108_v33, %v9685_v36 }
 0x36f   : > { %5395 = vst [vmem:[%s9760_s4 + $0x58] sm:$0xff] %v5301_v59 }
 0x370   : > { %5393 = vst [vmem:[%s9760_s4 + $0x48] sm:$0xff] %v5293_v14  ;;  %v5180_v32 = vadd.f32 %v7111_v3, %v9691_v46 }
 0x372   : > { %v7112_v60 = vpop.f32.mrb[60].mxu1  ;;  %v7196_v63 = vpop.f32.mrb[60].mxu0 }
 0x373   : > { %v5314_v30 = vadd.f32 %v7196_v63, %v9748_v56  ;;  %v7113_v15 = vpop.f32.mrb[61].mxu1  ;;  %v5305_v8 = vpop.f32.mrb[61].mxu0 }
 0x374   : > { %v7114_v48 = vadd.f32 %v7113_v15, %v7112_v60  ;;  %v5306_v35 = vadd.f32 %v5305_v8, %v9736_v62  ;;  %v7115_v61 = vpop.f32.mrb[62].mxu1  ;;  %v7197_v53 = vpop.f32.mrb[62].mxu0 }
 0x375   : > { %5398 = vst [vmem:[%s9760_s4 + $0x70] sm:$0xff] %v5314_v30  ;;  %v5317_v36 = vadd.f32 %v7197_v53, %v9755_v7  ;;  %v7116_v25 = vpop.f32.mrb[63].mxu1  ;;  %v5308_v44 = vpop.f32.mrb[63].mxu0 }
 0x376   : > { %5396 = vst [vmem:[%s9760_s4 + $0x60] sm:$0xff] %v5306_v35  ;;  %v7117_v46 = vadd.f32 %v7116_v25, %v7115_v61  ;;  %v5309_v55 = vadd.f32 %v5308_v44, %v9742_v20  ;;  %v5185_v56 = vadd.f32 %v7114_v48, %v9697_v43 }
 0x377   : > { %5399 = vst [vmem:[%s9760_s4 + $0x78] sm:$0xff] %v5317_v36 }
 0x378   : > { %5397 = vst [vmem:[%s9760_s4 + $0x68] sm:$0xff] %v5309_v55  ;;  %v5188_v24 = vadd.f32 %v7117_v46, %v9703_v39 }
 0x37a   : > { %v7118_v62 = vpop.f32.mrb[64].mxu1  ;;  %v7200_v34 = vpop.f32.mrb[64].mxu0 }
 0x37b   : > { %v5330_v22 = vadd.f32 %v7200_v34, %v5169_v40  ;;  %v7119_v7 = vpop.f32.mrb[65].mxu1  ;;  %v5321_v18 = vpop.f32.mrb[65].mxu0 }
 0x37c   : > { %v7120_v47 = vadd.f32 %v7119_v7, %v7118_v62  ;;  %v5322_v51 = vadd.f32 %v5321_v18, %v9769_v4  ;;  %v7121_v28 = vpop.f32.mrb[66].mxu1  ;;  %v7201_v31 = vpop.f32.mrb[66].mxu0 }
 0x37d   : > { %5402 = vst [vmem:[%s9760_s4 + $0x90] sm:$0xff] %v5330_v22  ;;  %v5333_v20 = vadd.f32 %v7201_v31, %v5172_v50  ;;  %v7122_v43 = vpop.f32.mrb[67].mxu1  ;;  %v5324_v1 = vpop.f32.mrb[67].mxu0 }
 0x37e   : > { %5400 = vst [vmem:[%s9760_s4 + $0x80] sm:$0xff] %v5322_v51  ;;  %v7123_v54 = vadd.f32 %v7122_v43, %v7121_v28  ;;  %v5325_v39 = vadd.f32 %v5324_v1, %v9774_v27  ;;  %v5193_v5 = vadd.f32 %v7120_v47, %v9709_v6 }
 0x37f   : > { %5403 = vst [vmem:[%s9760_s4 + $0x98] sm:$0xff] %v5333_v20 }
 0x380   : > { %5401 = vst [vmem:[%s9760_s4 + $0x88] sm:$0xff] %v5325_v39  ;;  %v5196_v57 = vadd.f32 %v7123_v54, %v9715_v41 }
 0x382   : > { %v7124_v10 = vpop.f32.mrb[68].mxu1  ;;  %v7204_v4 = vpop.f32.mrb[68].mxu0 }
 0x383   : > { %v5346_v29 = vadd.f32 %v7204_v4, %v5185_v56  ;;  %v7125_v58 = vpop.f32.mrb[69].mxu1  ;;  %v5337_v42 = vpop.f32.mrb[69].mxu0 }
 0x384   : > { %v7126_v40 = vadd.f32 %v7125_v58, %v7124_v10  ;;  %v5338_v50 = vadd.f32 %v5337_v42, %v5177_v16  ;;  %v7127_v26 = vpop.f32.mrb[70].mxu1  ;;  %v7205_v19 = vpop.f32.mrb[70].mxu0 }
 0x385   : > { %5406 = vst [vmem:[%s9760_s4 + $0xb0] sm:$0xff] %v5346_v29  ;;  %v5349_v27 = vadd.f32 %v7205_v19, %v5188_v24  ;;  %v7128_v11 = vpop.f32.mrb[71].mxu1  ;;  %v5340_v6 = vpop.f32.mrb[71].mxu0 }
 0x386   : > { %5404 = vst [vmem:[%s9760_s4 + $0xa0] sm:$0xff] %v5338_v50  ;;  %v7129_v0 = vadd.f32 %v7128_v11, %v7127_v26  ;;  %v5341_v9 = vadd.f32 %v5340_v6, %v5180_v32  ;;  %v5201_v41 = vadd.f32 %v7126_v40, %v9721_v37 }
 0x387   : > { %5407 = vst [vmem:[%s9760_s4 + $0xb8] sm:$0xff] %v5349_v27 }
 0x388   : > { %5405 = vst [vmem:[%s9760_s4 + $0xa8] sm:$0xff] %v5341_v9  ;;  %v5204_v33 = vadd.f32 %v7129_v0, %v9727_v2 }
 0x38a   : > { %v7130_v21 = vpop.f32.mrb[72].mxu1  ;;  %v7208_v13 = vpop.f32.mrb[72].mxu0 }
 0x38b   : > { %v5362_v52 = vadd.f32 %v7208_v13, %v5201_v41  ;;  %v7131_v59 = vpop.f32.mrb[73].mxu1  ;;  %v5353_v17 = vpop.f32.mrb[73].mxu0 }
 0x38c   : > { %v7132_v49 = vadd.f32 %v7131_v59, %v7130_v21  ;;  %v5354_v3 = vadd.f32 %v5353_v17, %v5193_v5  ;;  %v7133_v14 = vpop.f32.mrb[74].mxu1  ;;  %v7209_v16 = vpop.f32.mrb[74].mxu0 }
 0x38d   : > { %5410 = vst [vmem:[%s9760_s4 + $0xd0] sm:$0xff] %v5362_v52  ;;  %v5365_v32 = vadd.f32 %v7209_v16, %v5204_v33  ;;  %v7134_v60 = vpop.f32.mrb[75].mxu1  ;;  %v5356_v37 = vpop.f32.mrb[75].mxu0 }
 0x38e   : > { %5408 = vst [vmem:[%s9760_s4 + $0xc0] sm:$0xff] %v5354_v3  ;;  %v7135_v63 = vadd.f32 %v7134_v60, %v7133_v14  ;;  %v5357_v30 = vadd.f32 %v5356_v37, %v5196_v57  ;;  %v5209_v2 = vadd.f32 %v7132_v49, %v9733_v12 }
 0x38f   : > { %5411 = vst [vmem:[%s9760_s4 + $0xd8] sm:$0xff] %v5365_v32 }
 0x390   : > { %5409 = vst [vmem:[%s9760_s4 + $0xc8] sm:$0xff] %v5357_v30  ;;  %v5212_v15 = vadd.f32 %v7135_v63, %v9739_v45 }
 0x392   : > { %v7136_v8 = vpop.f32.mrb[76].mxu1  ;;  %v7212_v48 = vpop.f32.mrb[76].mxu0 }
 0x393   : > { %v7137_v35 = vpop.f32.mrb[77].mxu1  ;;  %v5369_v61 = vpop.f32.mrb[77].mxu0 }
 0x394   : > { %v7138_v53 = vadd.f32 %v7137_v35, %v7136_v8  ;;  %v5370_v36 = vadd.f32 %v5369_v61, %v5209_v2  ;;  %v7139_v25 = vpop.f32.mrb[78].mxu1  ;;  %v7213_v44 = vpop.f32.mrb[78].mxu0 }
 0x395   : > { %v7140_v46 = vpop.f32.mrb[79].mxu1  ;;  %v5372_v55 = vpop.f32.mrb[79].mxu0 }
 0x396   : > { %v5217_v56 = vadd.f32 %v7138_v53, %v9745_v23  ;;  %5412 = vst [vmem:[%s9760_s4 + $0xe0] sm:$0xff] %v5370_v36  ;;  %v7141_v12 = vadd.f32 %v7140_v46, %v7139_v25  ;;  %v5373_v24 = vadd.f32 %v5372_v55, %v5212_v15 }
 0x398   : > { %v5378_v62 = vadd.f32 %v7212_v48, %v5217_v56  ;;  %v5220_v45 = vadd.f32 %v7141_v12, %v9752_v38  ;;  %5413 = vst [vmem:[%s9760_s4 + $0xe8] sm:$0xff] %v5373_v24 }
 0x39a   : > { %5414 = vst [vmem:[%s9760_s4 + $0xf0] sm:$0xff] %v5378_v62  ;;  %v5381_v34 = vadd.f32 %v7213_v44, %v5220_v45 }
 0x39c   : > { %5415 = vst [vmem:[%s9760_s4 + $0xf8] sm:$0xff] %v5381_v34 }
 0x39d PF: > { %s13_s14 = sadd.s32 1, %s7942_s14   ;;  %s9845_s12 = smov %s7938_s13 }
 0x39e   : > { %p10_p5 = scmp.ge.s32.totalorder %s13_s14, 4   ;;  %s9846_s13 = smov %s9848_s15 }
 0x3a0   :  { %12 = sbr.rel (!%p10_p5) target bundleno = 2 (0x2), region = 62 }

</bundles_post_ra>
